<compile_context>
chip_gen: v6e
topology: v6e:2x2x1
jax: 0.10.0
libtpu: 0.0.40
codegen_flags: <defaults>
</compile_context>

<pallas_src>
import jax
import jax.numpy as jnp
from jax import lax
from jax.experimental import pallas as pl
from jax.experimental.pallas import tpu as pltpu


def _make_kernel(p_true, eps):
    inv_p = 1.0 / float(p_true)

    def _fused_kernel(x_ref, skip_ref, gb_ref, w_ref, o_ref):
        # x_ref, skip_ref: (Cin, P)  channel-major (Cin on sublanes, P on lanes)
        # gb_ref: (Cin, 2)           [:, 0] = gamma, [:, 1] = beta
        # w_ref:  (Cout, Cin)        o_ref: (Cout, P)
        x = x_ref[...]

        # Two-pass (centered) batch statistics over the P / lane axis.
        mean = jnp.sum(x, axis=1, keepdims=True) * inv_p            # (Cin, 1)
        centered = x - mean
        var = jnp.sum(centered * centered, axis=1, keepdims=True) * inv_p
        inv_std = lax.rsqrt(var + eps)                               # (Cin, 1)

        gb = gb_ref[...]
        gamma = gb[:, 0:1]                                           # (Cin, 1)
        beta = gb[:, 1:2]                                            # (Cin, 1)
        scale = gamma * inv_std

        # BN + residual add + ReLU in one fused elementwise pass.
        y = jnp.maximum(centered * scale + beta + skip_ref[...], 0.0)

        # 1x1 conv == matmul on the MXU; bf16 operands, f32 accumulation.
        o_ref[...] = jnp.dot(
            w_ref[...].astype(jnp.bfloat16),
            y.astype(jnp.bfloat16),
            preferred_element_type=jnp.float32,
        ).astype(o_ref.dtype)

    return _fused_kernel


def fused_bn_add_relu_conv(x437, x430, gamma, beta, conv_w, eps=1e-5):
    """x437, x430: NCHW (1, Cin, H, W); conv_w: (Cout, Cin, 1, 1)."""
    N, Cin, H, W = x437.shape
    Cout = conv_w.shape[0]
    assert N == 1, "channel-major fast path is implemented for N == 1 (module spec)"
    P = H * W

    # N == 1 NCHW is already channel-major: these reshapes are copy-free.
    x_cp = x437.reshape(Cin, P)
    skip_cp = x430.reshape(Cin, P)
    w_oc = conv_w.reshape(Cout, Cin)               # (Cout, Cin, 1, 1) -> (Cout, Cin)
    gb = jnp.stack([gamma, beta], axis=1)          # (Cin, 2): one packed DMA

    flops = 2.0 * Cout * Cin * P + 8.0 * Cin * P
    bytes_accessed = 4 * (2 * Cin * P + Cout * Cin + 2 * Cin + Cout * P)

    out_cp = pl.pallas_call(
        _make_kernel(P, eps),
        out_shape=jax.ShapeDtypeStruct((Cout, P), jnp.float32),
        grid_spec=pltpu.PrefetchScalarGridSpec(
            num_scalar_prefetch=0,
            grid=(1,),
            in_specs=[
                pl.BlockSpec((Cin, P), lambda i: (0, 0)),
                pl.BlockSpec((Cin, P), lambda i: (0, 0)),
                pl.BlockSpec((Cin, 2), lambda i: (0, 0)),
                pl.BlockSpec((Cout, Cin), lambda i: (0, 0)),
            ],
            out_specs=pl.BlockSpec((Cout, P), lambda i: (0, 0)),
        ),
        compiler_params=pltpu.CompilerParams(
            dimension_semantics=("arbitrary",)),
        cost_estimate=pl.CostEstimate(
            flops=int(flops),
            transcendentals=int(Cin),
            bytes_accessed=int(bytes_accessed)),
    )(x_cp, skip_cp, gb, w_oc)

    # (Cout, P) is exactly the N == 1 NCHW output; reshape is copy-free.
    return out_cp.reshape(1, Cout, H, W)


def _reference(x437, x430, gamma, beta, conv_w):
    # Pure-JAX f32 reference for sanity checking.
    mean = jnp.mean(x437, axis=(0, 2, 3), keepdims=True)
    var = jnp.mean((x437 - mean) ** 2, axis=(0, 2, 3), keepdims=True)
    y = (x437 - mean) * lax.rsqrt(var + 1e-5)
    y = y * gamma.reshape(1, -1, 1, 1) + beta.reshape(1, -1, 1, 1)
    y = jnp.maximum(y + x430, 0.0)
    return lax.conv_general_dilated(
        y, conv_w, window_strides=(1, 1), padding="VALID",
        dimension_numbers=("NCHW", "OIHW", "NCHW"))


if __name__ == "__main__":
    N, Cin, H, W = 1, 1024, 14, 14
    Cout = 256

    key = jax.random.PRNGKey(0)
    k1, k2, k3, k4, k5 = jax.random.split(key, 5)

    x437 = jax.random.normal(k1, (N, Cin, H, W), dtype=jnp.float32)
    x430 = jax.random.normal(k2, (N, Cin, H, W), dtype=jnp.float32)

    # Deterministic parameter init (shapes from module __init__).
    gamma = 1.0 + 0.1 * jax.random.normal(k3, (Cin,), dtype=jnp.float32)
    beta = 0.1 * jax.random.normal(k4, (Cin,), dtype=jnp.float32)
    conv_w = (jax.random.normal(k5, (Cout, Cin, 1, 1), dtype=jnp.float32)
              * (1.0 / jnp.sqrt(Cin)))

    out = fused_bn_add_relu_conv(x437, x430, gamma, beta, conv_w)
    out = jax.block_until_ready(out)

    ref = jax.block_until_ready(_reference(x437, x430, gamma, beta, conv_w))
    assert out.shape == (N, Cout, H, W), out.shape
    # Tolerance accounts for bf16 matmul operands (f32 accumulation) over K=1024.
    assert jnp.allclose(out, ref, atol=2e-2, rtol=2e-2), float(
        jnp.max(jnp.abs(out - ref)))

    print("KERNEL_OK")
</pallas_src>

<mosaic_0001>
module attributes {stable_mosaic.version = 11 : i64} {
  func.func @_fused_kernel(%arg0: i32, %arg1: memref<1024x196xf32, #tpu.memory_space<vmem>>, %arg2: memref<1024x196xf32, #tpu.memory_space<vmem>>, %arg3: memref<1024x2xf32, #tpu.memory_space<vmem>>, %arg4: memref<256x1024xf32, #tpu.memory_space<vmem>>, %arg5: memref<256x196xf32, #tpu.memory_space<vmem>>) attributes {dimension_semantics = [#tpu.dimension_semantics<arbitrary>], iteration_bounds = array<i64: 1>, scalar_prefetch = 0 : i64, scratch_operands = 0 : i64, tpu.core_type = #tpu.core_type<tc>, window_params = [{pipeline_mode = #tpu.pipeline_mode<synchronous>, transform_indices = @transform_0, window_bounds = array<i64: 1024, 196>}, {pipeline_mode = #tpu.pipeline_mode<synchronous>, transform_indices = @transform_1, window_bounds = array<i64: 1024, 196>}, {pipeline_mode = #tpu.pipeline_mode<synchronous>, transform_indices = @transform_2, window_bounds = array<i64: 1024, 2>}, {pipeline_mode = #tpu.pipeline_mode<synchronous>, transform_indices = @transform_3, window_bounds = array<i64: 256, 1024>}, {pipeline_mode = #tpu.pipeline_mode<synchronous>, transform_indices = @transform_4, window_bounds = array<i64: 256, 196>}]} {
    %c0 = arith.constant 0 : index
    %c0_0 = arith.constant 0 : index
    %0 = vector.load %arg1[%c0, %c0_0] : memref<1024x196xf32, #tpu.memory_space<vmem>>, vector<1024x196xf32>
    %cst = arith.constant dense<0.000000e+00> : vector<1024xf32>
    %1 = vector.multi_reduction <add>, %0, %cst [1] : vector<1024x196xf32> to vector<1024xf32>
    %2 = vector.shape_cast %1 : vector<1024xf32> to vector<1024x1xf32>
    %cst_1 = arith.constant 0.00510204071 : f32
    %3 = vector.broadcast %cst_1 : f32 to vector<1024x1xf32>
    %4 = arith.mulf %2, %3 : vector<1024x1xf32>
    %5 = vector.broadcast %4 : vector<1024x1xf32> to vector<1024x196xf32>
    %6 = arith.subf %0, %5 : vector<1024x196xf32>
    %7 = arith.mulf %6, %6 : vector<1024x196xf32>
    %cst_2 = arith.constant dense<0.000000e+00> : vector<1024xf32>
    %8 = vector.multi_reduction <add>, %7, %cst_2 [1] : vector<1024x196xf32> to vector<1024xf32>
    %9 = vector.shape_cast %8 : vector<1024xf32> to vector<1024x1xf32>
    %cst_3 = arith.constant 0.00510204071 : f32
    %10 = vector.broadcast %cst_3 : f32 to vector<1024x1xf32>
    %11 = arith.mulf %9, %10 : vector<1024x1xf32>
    %cst_4 = arith.constant 9.99999974E-6 : f32
    %12 = vector.broadcast %cst_4 : f32 to vector<1024x1xf32>
    %13 = arith.addf %11, %12 : vector<1024x1xf32>
    %14 = math.rsqrt %13 : vector<1024x1xf32>
    %c0_5 = arith.constant 0 : index
    %c0_6 = arith.constant 0 : index
    %15 = vector.load %arg3[%c0_5, %c0_6] : memref<1024x2xf32, #tpu.memory_space<vmem>>, vector<1024x2xf32>
    %16 = vector.extract_strided_slice %15 {offsets = [0, 0], sizes = [1024, 1], strides = [1, 1]} : vector<1024x2xf32> to vector<1024x1xf32>
    %17 = vector.extract_strided_slice %15 {offsets = [0, 1], sizes = [1024, 1], strides = [1, 1]} : vector<1024x2xf32> to vector<1024x1xf32>
    %18 = arith.mulf %16, %14 : vector<1024x1xf32>
    %19 = vector.broadcast %18 : vector<1024x1xf32> to vector<1024x196xf32>
    %20 = arith.mulf %6, %19 : vector<1024x196xf32>
    %21 = vector.broadcast %17 : vector<1024x1xf32> to vector<1024x196xf32>
    %22 = arith.addf %20, %21 : vector<1024x196xf32>
    %c0_7 = arith.constant 0 : index
    %c0_8 = arith.constant 0 : index
    %23 = vector.load %arg2[%c0_7, %c0_8] : memref<1024x196xf32, #tpu.memory_space<vmem>>, vector<1024x196xf32>
    %24 = arith.addf %22, %23 : vector<1024x196xf32>
    %cst_9 = arith.constant 0.000000e+00 : f32
    %25 = vector.broadcast %cst_9 : f32 to vector<1024x196xf32>
    %26 = arith.maximumf %24, %25 : vector<1024x196xf32>
    %c0_10 = arith.constant 0 : index
    %c0_11 = arith.constant 0 : index
    %27 = vector.load %arg4[%c0_10, %c0_11] : memref<256x1024xf32, #tpu.memory_space<vmem>>, vector<256x1024xf32>
    %28 = arith.truncf %27 : vector<256x1024xf32> to vector<256x1024xbf16>
    %29 = arith.truncf %26 : vector<1024x196xf32> to vector<1024x196xbf16>
    %cst_12 = arith.constant dense<0.000000e+00> : vector<256x196xf32>
    %30 = tpu.matmul %28, %29, %cst_12 {dimension_numbers = #tpu.dot_dimension_numbers<[1], [0], [0], [1], [0, 0, 1, 1], [], []>} : vector<256x1024xbf16>, vector<1024x196xbf16>, vector<256x196xf32> -> vector<256x196xf32>
    %c0_13 = arith.constant 0 : index
    %c0_14 = arith.constant 0 : index
    %31 = vector.load %arg5[%c0_13, %c0_14] : memref<256x196xf32, #tpu.memory_space<vmem>>, vector<256x196xf32>
    tpu.vector_store %arg5[%c0_13, %c0_14], %30 {strides = array<i32>} : memref<256x196xf32, #tpu.memory_space<vmem>>, vector<256x196xf32>,
    return
  }
  func.func @transform_0(%arg0: i32) -> (i32, i32) {
    %c0_i32 = arith.constant 0 : i32
    %c0_i32_0 = arith.constant 0 : i32
    %c0_i32_1 = arith.constant 0 : i32
    return %c0_i32, %c0_i32_0 : i32, i32
  }
  func.func @transform_1(%arg0: i32) -> (i32, i32) {
    %c0_i32 = arith.constant 0 : i32
    %c0_i32_0 = arith.constant 0 : i32
    %c0_i32_1 = arith.constant 0 : i32
    return %c0_i32, %c0_i32_0 : i32, i32
  }
  func.func @transform_2(%arg0: i32) -> (i32, i32) {
    %c0_i32 = arith.constant 0 : i32
    %c0_i32_0 = arith.constant 0 : i32
    %c0_i32_1 = arith.constant 0 : i32
    return %c0_i32, %c0_i32_0 : i32, i32
  }
  func.func @transform_3(%arg0: i32) -> (i32, i32) {
    %c0_i32 = arith.constant 0 : i32
    %c0_i32_0 = arith.constant 0 : i32
    %c0_i32_1 = arith.constant 0 : i32
    return %c0_i32, %c0_i32_0 : i32, i32
  }
  func.func @transform_4(%arg0: i32) -> (i32, i32) {
    %c0_i32 = arith.constant 0 : i32
    %c0_i32_0 = arith.constant 0 : i32
    %c0_i32_1 = arith.constant 0 : i32
    return %c0_i32, %c0_i32_0 : i32, i32
  }
}

</mosaic_0001>

<bundles_post_ra>
// kernel: tpu_custom_call.1
= control target key start
LH: loop header
LB: loop body
LE: loop exit
PB: predicated region body
PF: predicated region fallthrough
CT: control target
= control target key end

     0   :  { %vm273_vm0 = vcmask 556032   ;;  %s15146_s0 = inlined_call_operand.vmem [shape: f32[1024,196], index: 0, kind: input, shape index: {}]   ;;  %s15147_s2 = inlined_call_operand.vmem [shape: f32[1024,2], index: 2, kind: input, shape index: {}]   ;;  %s15148_s1 = inlined_call_operand.vmem [shape: f32[1024,196], index: 1, kind: input, shape index: {}]   ;;  %s15149_s3 = inlined_call_operand.vmem [shape: f32[256,1024], index: 3, kind: input, shape index: {}]   ;;  %s15150_s4 = inlined_call_operand.vmem [shape: f32[256,196], index: 4, kind: output, shape index: {}]  }
   0x1   :  { %v21_v0 = vld [vmem:[%s15146_s0 + $0x20] sm:$0xff]  ;;  %v22_v1 = vld [vmem:[%s15146_s0 + $0x28] sm:$0xff]  ;;  %v23_v5 = vld [vmem:[%s15146_s0 + $0x30] sm:$0xff] }
   0x2   :  { %v17_v2 = vld [vmem:[%s15146_s0] sm:$0xff]  ;;  %v282_v3 = vsel %vm273_vm0, %v22_v1, 0.0  ;;  %v18_v4 = vld [vmem:[%s15146_s0 + $0x8] sm:$0xff]  ;;  %v24_v6 = vld [vmem:[%s15146_s0 + $0x38] sm:$0xff] }
   0x3   :  { %v283_v7 = vadd.f32 %v282_v3, %v21_v0  ;;  %v274_v8 = vsel %vm273_vm0, %v18_v4, 0.0  ;;  %v286_v9 = vsel %vm273_vm0, %v24_v6, 0.0  ;;  %v19_v10 = vld [vmem:[%s15146_s0 + $0x10] sm:$0xff]  ;;  %v20_v11 = vld [vmem:[%s15146_s0 + $0x18] sm:$0xff]  ;;  %v26_v15 = vld [vmem:[%s15146_s0 + $0x48] sm:$0xff] }
   0x4   :  { %v275_v12 = vadd.f32 %v274_v8, %v17_v2  ;;  %v278_v13 = vsel %vm273_vm0, %v20_v11, 0.0  ;;  %v28_v14 = vld [vmem:[%s15146_s0 + $0x58] sm:$0xff]  ;;  %v287_v16 = vadd.f32 %v286_v9, %v23_v5  ;;  %v27_v18 = vld [vmem:[%s15146_s0 + $0x50] sm:$0xff]  ;;  %v25_v20 = vld [vmem:[%s15146_s0 + $0x40] sm:$0xff]  ;;  %v290_v21 = vsel %vm273_vm0, %v26_v15, 0.0 }
   0x5   :  { %284 = vadd.xlane.f32.xlu1 %v283_v7  ;;  %v279_v17 = vadd.f32 %v278_v13, %v19_v10  ;;  %v294_v19 = vsel %vm273_vm0, %v28_v14, 0.0  ;;  %v32_v22 = vld [vmem:[%s15146_s0 + $0x78] sm:$0xff]  ;;  %v30_v23 = vld [vmem:[%s15146_s0 + $0x68] sm:$0xff]  ;;  %v291_v25 = vadd.f32 %v290_v21, %v25_v20  ;;  %v31_v26 = vld [vmem:[%s15146_s0 + $0x70] sm:$0xff] }
   0x6   :  { %276 = vadd.xlane.f32.xlu0 %v275_v12  ;;  %v295_v24 = vadd.f32 %v294_v19, %v27_v18  ;;  %v302_v27 = vsel %vm273_vm0, %v32_v22, 0.0  ;;  %v29_v28 = vld [vmem:[%s15146_s0 + $0x60] sm:$0xff]  ;;  %v298_v29 = vsel %vm273_vm0, %v30_v23, 0.0  ;;  %v36_v30 = vld [vmem:[%s15146_s0 + $0x98] sm:$0xff]  ;;  %v34_v31 = vld [vmem:[%s15146_s0 + $0x88] sm:$0xff] }
   0x7   :  { %v303_v32 = vadd.f32 %v302_v27, %v31_v26  ;;  %v299_v33 = vadd.f32 %v298_v29, %v29_v28  ;;  %v35_v34 = vld [vmem:[%s15146_s0 + $0x90] sm:$0xff]  ;;  %v310_v35 = vsel %vm273_vm0, %v36_v30, 0.0  ;;  %v33_v36 = vld [vmem:[%s15146_s0 + $0x80] sm:$0xff]  ;;  %v306_v37 = vsel %vm273_vm0, %v34_v31, 0.0  ;;  %v40_v38 = vld [vmem:[%s15146_s0 + $0xb8] sm:$0xff] }
   0x8   :  { %v38_v39 = vld [vmem:[%s15146_s0 + $0xa8] sm:$0xff]  ;;  %v311_v40 = vadd.f32 %v310_v35, %v35_v34  ;;  %v307_v41 = vadd.f32 %v306_v37, %v33_v36  ;;  %v39_v42 = vld [vmem:[%s15146_s0 + $0xb0] sm:$0xff]  ;;  %v318_v43 = vsel %vm273_vm0, %v40_v38, 0.0  ;;  %v37_v44 = vld [vmem:[%s15146_s0 + $0xa0] sm:$0xff] }
   0x9   :  { %288 = vadd.xlane.f32.xlu1 %v287_v16  ;;  %v314_v45 = vsel %vm273_vm0, %v38_v39, 0.0  ;;  %v44_v46 = vld [vmem:[%s15146_s0 + $0xd8] sm:$0xff]  ;;  %v42_v47 = vld [vmem:[%s15146_s0 + $0xc8] sm:$0xff]  ;;  %v319_v48 = vadd.f32 %v318_v43, %v39_v42  ;;  %v43_v50 = vld [vmem:[%s15146_s0 + $0xd0] sm:$0xff] }
   0xa   :  { %280 = vadd.xlane.f32.xlu0 %v279_v17  ;;  %v315_v49 = vadd.f32 %v314_v45, %v37_v44  ;;  %v326_v51 = vsel %vm273_vm0, %v44_v46, 0.0  ;;  %v41_v52 = vld [vmem:[%s15146_s0 + $0xc0] sm:$0xff]  ;;  %v322_v53 = vsel %vm273_vm0, %v42_v47, 0.0  ;;  %v48_v54 = vld [vmem:[%s15146_s0 + $0xf8] sm:$0xff]  ;;  %v46_v55 = vld [vmem:[%s15146_s0 + $0xe8] sm:$0xff] }
   0xb   :  { %v327_v56 = vadd.f32 %v326_v51, %v43_v50  ;;  %v323_v57 = vadd.f32 %v322_v53, %v41_v52  ;;  %v47_v58 = vld [vmem:[%s15146_s0 + $0xf0] sm:$0xff]  ;;  %v334_v59 = vsel %vm273_vm0, %v48_v54, 0.0  ;;  %v45_v60 = vld [vmem:[%s15146_s0 + $0xe0] sm:$0xff]  ;;  %v330_v61 = vsel %vm273_vm0, %v46_v55, 0.0  ;;  %v52_v62 = vld [vmem:[%s15146_s0 + $0x118] sm:$0xff] }
   0xc   :  { %v50_v63 = vld [vmem:[%s15146_s0 + $0x108] sm:$0xff]  ;;  %v335_v0 = vadd.f32 %v334_v59, %v47_v58  ;;  %v331_v1 = vadd.f32 %v330_v61, %v45_v60  ;;  %v51_v2 = vld [vmem:[%s15146_s0 + $0x110] sm:$0xff]  ;;  %v342_v3 = vsel %vm273_vm0, %v52_v62, 0.0  ;;  %v49_v4 = vld [vmem:[%s15146_s0 + $0x100] sm:$0xff] }
   0xd   :  { %296 = vadd.xlane.f32.xlu1 %v295_v24  ;;  %v338_v5 = vsel %vm273_vm0, %v50_v63, 0.0  ;;  %v56_v6 = vld [vmem:[%s15146_s0 + $0x138] sm:$0xff]  ;;  %v54_v7 = vld [vmem:[%s15146_s0 + $0x128] sm:$0xff]  ;;  %v343_v8 = vadd.f32 %v342_v3, %v51_v2  ;;  %v55_v10 = vld [vmem:[%s15146_s0 + $0x130] sm:$0xff] }
   0xe   :  { %292 = vadd.xlane.f32.xlu0 %v291_v25  ;;  %v339_v9 = vadd.f32 %v338_v5, %v49_v4  ;;  %v350_v11 = vsel %vm273_vm0, %v56_v6, 0.0  ;;  %v53_v12 = vld [vmem:[%s15146_s0 + $0x120] sm:$0xff]  ;;  %v346_v13 = vsel %vm273_vm0, %v54_v7, 0.0  ;;  %v60_v14 = vld [vmem:[%s15146_s0 + $0x158] sm:$0xff]  ;;  %v58_v15 = vld [vmem:[%s15146_s0 + $0x148] sm:$0xff] }
   0xf   :  { %v351_v16 = vadd.f32 %v350_v11, %v55_v10  ;;  %v347_v17 = vadd.f32 %v346_v13, %v53_v12  ;;  %v59_v18 = vld [vmem:[%s15146_s0 + $0x150] sm:$0xff]  ;;  %v358_v19 = vsel %vm273_vm0, %v60_v14, 0.0  ;;  %v57_v20 = vld [vmem:[%s15146_s0 + $0x140] sm:$0xff]  ;;  %v354_v21 = vsel %vm273_vm0, %v58_v15, 0.0  ;;  %v64_v22 = vld [vmem:[%s15146_s0 + $0x178] sm:$0xff] }
  0x10   :  { %v62_v23 = vld [vmem:[%s15146_s0 + $0x168] sm:$0xff]  ;;  %v359_v24 = vadd.f32 %v358_v19, %v59_v18  ;;  %v355_v25 = vadd.f32 %v354_v21, %v57_v20  ;;  %v63_v26 = vld [vmem:[%s15146_s0 + $0x170] sm:$0xff]  ;;  %v366_v27 = vsel %vm273_vm0, %v64_v22, 0.0  ;;  %v61_v28 = vld [vmem:[%s15146_s0 + $0x160] sm:$0xff] }
  0x11   :  { %304 = vadd.xlane.f32.xlu1 %v303_v32  ;;  %v362_v29 = vsel %vm273_vm0, %v62_v23, 0.0  ;;  %v68_v30 = vld [vmem:[%s15146_s0 + $0x198] sm:$0xff]  ;;  %v66_v31 = vld [vmem:[%s15146_s0 + $0x188] sm:$0xff]  ;;  %v367_v32 = vadd.f32 %v366_v27, %v63_v26  ;;  %v67_v34 = vld [vmem:[%s15146_s0 + $0x190] sm:$0xff] }
  0x12   :  { %300 = vadd.xlane.f32.xlu0 %v299_v33  ;;  %v363_v33 = vadd.f32 %v362_v29, %v61_v28  ;;  %v374_v35 = vsel %vm273_vm0, %v68_v30, 0.0  ;;  %v65_v36 = vld [vmem:[%s15146_s0 + $0x180] sm:$0xff]  ;;  %v370_v37 = vsel %vm273_vm0, %v66_v31, 0.0  ;;  %v72_v38 = vld [vmem:[%s15146_s0 + $0x1b8] sm:$0xff]  ;;  %v70_v39 = vld [vmem:[%s15146_s0 + $0x1a8] sm:$0xff] }
  0x13   :  { %v71_v42 = vld [vmem:[%s15146_s0 + $0x1b0] sm:$0xff]  ;;  %v382_v43 = vsel %vm273_vm0, %v72_v38, 0.0  ;;  %v69_v44 = vld [vmem:[%s15146_s0 + $0x1a0] sm:$0xff]  ;;  %v378_v45 = vsel %vm273_vm0, %v70_v39, 0.0  ;;  %v76_v46 = vld [vmem:[%s15146_s0 + $0x1d8] sm:$0xff] }
  0x14   :  { %v74_v47 = vld [vmem:[%s15146_s0 + $0x1c8] sm:$0xff]  ;;  %v75_v50 = vld [vmem:[%s15146_s0 + $0x1d0] sm:$0xff]  ;;  %v390_v51 = vsel %vm273_vm0, %v76_v46, 0.0  ;;  %v73_v52 = vld [vmem:[%s15146_s0 + $0x1c0] sm:$0xff] }
  0x15   :  { %312 = vadd.xlane.f32.xlu1 %v311_v40  ;;  %v375_v40 = vadd.f32 %v374_v35, %v67_v34  ;;  %v386_v53 = vsel %vm273_vm0, %v74_v47, 0.0  ;;  %v80_v54 = vld [vmem:[%s15146_s0 + $0x1f8] sm:$0xff]  ;;  %v78_v55 = vld [vmem:[%s15146_s0 + $0x1e8] sm:$0xff]  ;;  %v79_v58 = vld [vmem:[%s15146_s0 + $0x1f0] sm:$0xff] }
  0x16   :  { %308 = vadd.xlane.f32.xlu0 %v307_v41  ;;  %v371_v41 = vadd.f32 %v370_v37, %v65_v36  ;;  %v398_v59 = vsel %vm273_vm0, %v80_v54, 0.0  ;;  %v77_v60 = vld [vmem:[%s15146_s0 + $0x1e0] sm:$0xff]  ;;  %v394_v61 = vsel %vm273_vm0, %v78_v55, 0.0  ;;  %v84_v62 = vld [vmem:[%s15146_s0 + $0x218] sm:$0xff]  ;;  %v82_v63 = vld [vmem:[%s15146_s0 + $0x208] sm:$0xff] }
  0x17   :  { %v83_v2 = vld [vmem:[%s15146_s0 + $0x210] sm:$0xff]  ;;  %v406_v3 = vsel %vm273_vm0, %v84_v62, 0.0  ;;  %v81_v4 = vld [vmem:[%s15146_s0 + $0x200] sm:$0xff]  ;;  %v402_v5 = vsel %vm273_vm0, %v82_v63, 0.0  ;;  %v88_v6 = vld [vmem:[%s15146_s0 + $0x238] sm:$0xff] }
  0x18   :  { %v86_v7 = vld [vmem:[%s15146_s0 + $0x228] sm:$0xff]  ;;  %v87_v10 = vld [vmem:[%s15146_s0 + $0x230] sm:$0xff]  ;;  %v414_v11 = vsel %vm273_vm0, %v88_v6, 0.0  ;;  %v85_v12 = vld [vmem:[%s15146_s0 + $0x220] sm:$0xff] }
  0x19   :  { %320 = vadd.xlane.f32.xlu1 %v319_v48  ;;  %v383_v48 = vadd.f32 %v382_v43, %v71_v42  ;;  %v410_v13 = vsel %vm273_vm0, %v86_v7, 0.0  ;;  %v92_v14 = vld [vmem:[%s15146_s0 + $0x258] sm:$0xff]  ;;  %v90_v15 = vld [vmem:[%s15146_s0 + $0x248] sm:$0xff]  ;;  %v91_v18 = vld [vmem:[%s15146_s0 + $0x250] sm:$0xff] }
  0x1a   :  { %316 = vadd.xlane.f32.xlu0 %v315_v49  ;;  %v379_v49 = vadd.f32 %v378_v45, %v69_v44  ;;  %v422_v19 = vsel %vm273_vm0, %v92_v14, 0.0  ;;  %v89_v20 = vld [vmem:[%s15146_s0 + $0x240] sm:$0xff]  ;;  %v418_v21 = vsel %vm273_vm0, %v90_v15, 0.0  ;;  %v96_v22 = vld [vmem:[%s15146_s0 + $0x278] sm:$0xff]  ;;  %v94_v23 = vld [vmem:[%s15146_s0 + $0x268] sm:$0xff] }
  0x1b   :  { %v95_v26 = vld [vmem:[%s15146_s0 + $0x270] sm:$0xff]  ;;  %v430_v27 = vsel %vm273_vm0, %v96_v22, 0.0  ;;  %v93_v28 = vld [vmem:[%s15146_s0 + $0x260] sm:$0xff]  ;;  %v426_v29 = vsel %vm273_vm0, %v94_v23, 0.0  ;;  %v100_v30 = vld [vmem:[%s15146_s0 + $0x298] sm:$0xff] }
  0x1c   :  { %v98_v31 = vld [vmem:[%s15146_s0 + $0x288] sm:$0xff]  ;;  %v99_v34 = vld [vmem:[%s15146_s0 + $0x290] sm:$0xff]  ;;  %v438_v35 = vsel %vm273_vm0, %v100_v30, 0.0  ;;  %v97_v36 = vld [vmem:[%s15146_s0 + $0x280] sm:$0xff] }
  0x1d   :  { %328 = vadd.xlane.f32.xlu1 %v327_v56  ;;  %v391_v56 = vadd.f32 %v390_v51, %v75_v50  ;;  %v434_v37 = vsel %vm273_vm0, %v98_v31, 0.0  ;;  %v104_v38 = vld [vmem:[%s15146_s0 + $0x2b8] sm:$0xff]  ;;  %v102_v39 = vld [vmem:[%s15146_s0 + $0x2a8] sm:$0xff]  ;;  %v103_v42 = vld [vmem:[%s15146_s0 + $0x2b0] sm:$0xff] }
  0x1e   :  { %324 = vadd.xlane.f32.xlu0 %v323_v57  ;;  %v387_v57 = vadd.f32 %v386_v53, %v73_v52  ;;  %v446_v43 = vsel %vm273_vm0, %v104_v38, 0.0  ;;  %v101_v44 = vld [vmem:[%s15146_s0 + $0x2a0] sm:$0xff]  ;;  %v442_v45 = vsel %vm273_vm0, %v102_v39, 0.0  ;;  %v108_v46 = vld [vmem:[%s15146_s0 + $0x2d8] sm:$0xff]  ;;  %v106_v47 = vld [vmem:[%s15146_s0 + $0x2c8] sm:$0xff] }
  0x1f   :  { %v107_v50 = vld [vmem:[%s15146_s0 + $0x2d0] sm:$0xff]  ;;  %v454_v51 = vsel %vm273_vm0, %v108_v46, 0.0  ;;  %v105_v52 = vld [vmem:[%s15146_s0 + $0x2c0] sm:$0xff]  ;;  %v450_v53 = vsel %vm273_vm0, %v106_v47, 0.0  ;;  %v112_v54 = vld [vmem:[%s15146_s0 + $0x2f8] sm:$0xff] }
  0x20   :  { %v110_v55 = vld [vmem:[%s15146_s0 + $0x2e8] sm:$0xff]  ;;  %v116_v62 = vld [vmem:[%s15146_s0 + $0x318] sm:$0xff] }
  0x21   :  { %336 = vadd.xlane.f32.xlu1 %v335_v0  ;;  %v399_v0 = vadd.f32 %v398_v59, %v79_v58  ;;  %v111_v58 = vld [vmem:[%s15146_s0 + $0x2f0] sm:$0xff]  ;;  %v462_v59 = vsel %vm273_vm0, %v112_v54, 0.0  ;;  %v114_v63 = vld [vmem:[%s15146_s0 + $0x308] sm:$0xff]  ;;  %v120_v6 = vld [vmem:[%s15146_s0 + $0x338] sm:$0xff] }
  0x22   :  { %332 = vadd.xlane.f32.xlu0 %v331_v1  ;;  %v395_v1 = vadd.f32 %v394_v61, %v77_v60  ;;  %v109_v60 = vld [vmem:[%s15146_s0 + $0x2e0] sm:$0xff]  ;;  %v458_v61 = vsel %vm273_vm0, %v110_v55, 0.0  ;;  %v118_v7 = vld [vmem:[%s15146_s0 + $0x328] sm:$0xff]  ;;  %v124_v14 = vld [vmem:[%s15146_s0 + $0x358] sm:$0xff] }
  0x23   :  { %v122_v15 = vld [vmem:[%s15146_s0 + $0x348] sm:$0xff]  ;;  %v128_v22 = vld [vmem:[%s15146_s0 + $0x378] sm:$0xff] }
  0x24   :  { %v126_v23 = vld [vmem:[%s15146_s0 + $0x368] sm:$0xff]  ;;  %v132_v30 = vld [vmem:[%s15146_s0 + $0x398] sm:$0xff] }
  0x25   :  { %344 = vadd.xlane.f32.xlu1 %v343_v8  ;;  %v407_v8 = vadd.f32 %v406_v3, %v83_v2  ;;  %v115_v2 = vld [vmem:[%s15146_s0 + $0x310] sm:$0xff]  ;;  %v470_v3 = vsel %vm273_vm0, %v116_v62, 0.0  ;;  %v130_v31 = vld [vmem:[%s15146_s0 + $0x388] sm:$0xff]  ;;  %v136_v38 = vld [vmem:[%s15146_s0 + $0x3b8] sm:$0xff] }
  0x26   :  { %340 = vadd.xlane.f32.xlu0 %v339_v9  ;;  %v403_v9 = vadd.f32 %v402_v5, %v81_v4  ;;  %v113_v4 = vld [vmem:[%s15146_s0 + $0x300] sm:$0xff]  ;;  %v466_v5 = vsel %vm273_vm0, %v114_v63, 0.0  ;;  %v134_v39 = vld [vmem:[%s15146_s0 + $0x3a8] sm:$0xff]  ;;  %v140_v46 = vld [vmem:[%s15146_s0 + $0x3d8] sm:$0xff] }
  0x27   :  { %v138_v47 = vld [vmem:[%s15146_s0 + $0x3c8] sm:$0xff]  ;;  %v144_v54 = vld [vmem:[%s15146_s0 + $0x3f8] sm:$0xff] }
  0x28   :  { %v142_v55 = vld [vmem:[%s15146_s0 + $0x3e8] sm:$0xff]  ;;  %v148_v62 = vld [vmem:[%s15146_s0 + $0x418] sm:$0xff] }
  0x29   :  { %352 = vadd.xlane.f32.xlu1 %v351_v16  ;;  %v415_v16 = vadd.f32 %v414_v11, %v87_v10  ;;  %v119_v10 = vld [vmem:[%s15146_s0 + $0x330] sm:$0xff]  ;;  %v478_v11 = vsel %vm273_vm0, %v120_v6, 0.0  ;;  %v146_v63 = vld [vmem:[%s15146_s0 + $0x408] sm:$0xff]  ;;  %v152_v6 = vld [vmem:[%s15146_s0 + $0x438] sm:$0xff] }
  0x2a   :  { %348 = vadd.xlane.f32.xlu0 %v347_v17  ;;  %v411_v17 = vadd.f32 %v410_v13, %v85_v12  ;;  %v117_v12 = vld [vmem:[%s15146_s0 + $0x320] sm:$0xff]  ;;  %v474_v13 = vsel %vm273_vm0, %v118_v7, 0.0  ;;  %v150_v7 = vld [vmem:[%s15146_s0 + $0x428] sm:$0xff] }
  0x2d   :  { %360 = vadd.xlane.f32.xlu1 %v359_v24  ;;  %v423_v24 = vadd.f32 %v422_v19, %v91_v18  ;;  %v123_v18 = vld [vmem:[%s15146_s0 + $0x350] sm:$0xff]  ;;  %v486_v19 = vsel %vm273_vm0, %v124_v14, 0.0  ;;  %v156_v14 = vld [vmem:[%s15146_s0 + $0x458] sm:$0xff] }
  0x2e   :  { %356 = vadd.xlane.f32.xlu0 %v355_v25  ;;  %v419_v25 = vadd.f32 %v418_v21, %v89_v20  ;;  %v121_v20 = vld [vmem:[%s15146_s0 + $0x340] sm:$0xff]  ;;  %v482_v21 = vsel %vm273_vm0, %v122_v15, 0.0  ;;  %v154_v15 = vld [vmem:[%s15146_s0 + $0x448] sm:$0xff] }
  0x31   :  { %368 = vadd.xlane.f32.xlu1 %v367_v32  ;;  %v431_v32 = vadd.f32 %v430_v27, %v95_v26  ;;  %v127_v26 = vld [vmem:[%s15146_s0 + $0x370] sm:$0xff]  ;;  %v494_v27 = vsel %vm273_vm0, %v128_v22, 0.0  ;;  %v160_v22 = vld [vmem:[%s15146_s0 + $0x478] sm:$0xff] }
  0x32   :  { %364 = vadd.xlane.f32.xlu0 %v363_v33  ;;  %v427_v33 = vadd.f32 %v426_v29, %v93_v28  ;;  %v125_v28 = vld [vmem:[%s15146_s0 + $0x360] sm:$0xff]  ;;  %v490_v29 = vsel %vm273_vm0, %v126_v23, 0.0  ;;  %v158_v23 = vld [vmem:[%s15146_s0 + $0x468] sm:$0xff] }
  0x35   :  { %376 = vadd.xlane.f32.xlu1 %v375_v40  ;;  %v439_v40 = vadd.f32 %v438_v35, %v99_v34  ;;  %v131_v34 = vld [vmem:[%s15146_s0 + $0x390] sm:$0xff]  ;;  %v502_v35 = vsel %vm273_vm0, %v132_v30, 0.0  ;;  %v164_v30 = vld [vmem:[%s15146_s0 + $0x498] sm:$0xff] }
  0x36   :  { %372 = vadd.xlane.f32.xlu0 %v371_v41  ;;  %v435_v41 = vadd.f32 %v434_v37, %v97_v36  ;;  %v129_v36 = vld [vmem:[%s15146_s0 + $0x380] sm:$0xff]  ;;  %v498_v37 = vsel %vm273_vm0, %v130_v31, 0.0  ;;  %v162_v31 = vld [vmem:[%s15146_s0 + $0x488] sm:$0xff] }
  0x39   :  { %384 = vadd.xlane.f32.xlu1 %v383_v48  ;;  %v447_v48 = vadd.f32 %v446_v43, %v103_v42  ;;  %v135_v42 = vld [vmem:[%s15146_s0 + $0x3b0] sm:$0xff]  ;;  %v510_v43 = vsel %vm273_vm0, %v136_v38, 0.0  ;;  %v161_v38 = vld [vmem:[%s15146_s0 + $0x480] sm:$0xff] }
  0x3a   :  { %380 = vadd.xlane.f32.xlu0 %v379_v49  ;;  %v443_v49 = vadd.f32 %v442_v45, %v101_v44  ;;  %v133_v44 = vld [vmem:[%s15146_s0 + $0x3a0] sm:$0xff]  ;;  %v506_v45 = vsel %vm273_vm0, %v134_v39, 0.0  ;;  %v562_v39 = vsel %vm273_vm0, %v162_v31, 0.0  ;;  %v187_v31 = vld [vmem:[%s15146_s0 + $0x550] sm:$0xff] }
  0x3d   :  { %392 = vadd.xlane.f32.xlu1 %v391_v56  ;;  %v455_v56 = vadd.f32 %v454_v51, %v107_v50  ;;  %v139_v50 = vld [vmem:[%s15146_s0 + $0x3d0] sm:$0xff]  ;;  %v518_v51 = vsel %vm273_vm0, %v140_v46, 0.0 }
  0x3e   :  { %388 = vadd.xlane.f32.xlu0 %v387_v57  ;;  %v451_v57 = vadd.f32 %v450_v53, %v105_v52  ;;  %v137_v52 = vld [vmem:[%s15146_s0 + $0x3c0] sm:$0xff]  ;;  %v514_v53 = vsel %vm273_vm0, %v138_v47, 0.0 }
  0x41   :  { %400 = vadd.xlane.f32.xlu1 %v399_v0  ;;  %v463_v0 = vadd.f32 %v462_v59, %v111_v58  ;;  %v143_v58 = vld [vmem:[%s15146_s0 + $0x3f0] sm:$0xff]  ;;  %v526_v59 = vsel %vm273_vm0, %v144_v54, 0.0 }
  0x42   :  { %396 = vadd.xlane.f32.xlu0 %v395_v1  ;;  %v459_v1 = vadd.f32 %v458_v61, %v109_v60  ;;  %v141_v60 = vld [vmem:[%s15146_s0 + $0x3e0] sm:$0xff]  ;;  %v522_v61 = vsel %vm273_vm0, %v142_v55, 0.0  ;;  %v171_v55 = vld [vmem:[%s15146_s0 + $0x4d0] sm:$0xff] }
  0x45   :  { %408 = vadd.xlane.f32.xlu1 %v407_v8  ;;  %v471_v8 = vadd.f32 %v470_v3, %v115_v2  ;;  %v147_v2 = vld [vmem:[%s15146_s0 + $0x410] sm:$0xff]  ;;  %v534_v3 = vsel %vm273_vm0, %v148_v62, 0.0 }
  0x46   :  { %404 = vadd.xlane.f32.xlu0 %v403_v9  ;;  %v467_v9 = vadd.f32 %v466_v5, %v113_v4  ;;  %v145_v4 = vld [vmem:[%s15146_s0 + $0x400] sm:$0xff]  ;;  %v530_v5 = vsel %vm273_vm0, %v146_v63, 0.0 }
  0x49   :  { %416 = vadd.xlane.f32.xlu1 %v415_v16  ;;  %v479_v16 = vadd.f32 %v478_v11, %v119_v10  ;;  %v151_v10 = vld [vmem:[%s15146_s0 + $0x430] sm:$0xff]  ;;  %v542_v11 = vsel %vm273_vm0, %v152_v6, 0.0  ;;  %v180_v6 = vld [vmem:[%s15146_s0 + $0x518] sm:$0xff] }
  0x4a   :  { %412 = vadd.xlane.f32.xlu0 %v411_v17  ;;  %v475_v17 = vadd.f32 %v474_v13, %v117_v12  ;;  %v149_v12 = vld [vmem:[%s15146_s0 + $0x420] sm:$0xff]  ;;  %v538_v13 = vsel %vm273_vm0, %v150_v7, 0.0  ;;  %v178_v7 = vld [vmem:[%s15146_s0 + $0x508] sm:$0xff] }
  0x4d   :  { %424 = vadd.xlane.f32.xlu1 %v423_v24  ;;  %v487_v24 = vadd.f32 %v486_v19, %v123_v18  ;;  %v155_v18 = vld [vmem:[%s15146_s0 + $0x450] sm:$0xff]  ;;  %v550_v19 = vsel %vm273_vm0, %v156_v14, 0.0  ;;  %v177_v14 = vld [vmem:[%s15146_s0 + $0x500] sm:$0xff] }
  0x4e   :  { %420 = vadd.xlane.f32.xlu0 %v419_v25  ;;  %v483_v25 = vadd.f32 %v482_v21, %v121_v20  ;;  %v153_v20 = vld [vmem:[%s15146_s0 + $0x440] sm:$0xff]  ;;  %v546_v21 = vsel %vm273_vm0, %v154_v15, 0.0  ;;  %v594_v15 = vsel %vm273_vm0, %v178_v7, 0.0 }
  0x51   :  { %432 = vadd.xlane.f32.xlu1 %v431_v32  ;;  %v495_v32 = vadd.f32 %v494_v27, %v127_v26  ;;  %v159_v26 = vld [vmem:[%s15146_s0 + $0x470] sm:$0xff]  ;;  %v558_v27 = vsel %vm273_vm0, %v160_v22, 0.0 }
  0x52   :  { %428 = vadd.xlane.f32.xlu0 %v427_v33  ;;  %v491_v33 = vadd.f32 %v490_v29, %v125_v28  ;;  %v157_v28 = vld [vmem:[%s15146_s0 + $0x460] sm:$0xff]  ;;  %v554_v29 = vsel %vm273_vm0, %v158_v23, 0.0 }
  0x55   :  { %440 = vadd.xlane.f32.xlu1 %v439_v40  ;;  %v503_v40 = vadd.f32 %v502_v35, %v131_v34  ;;  %v555_v34 = vadd.f32 %v554_v29, %v157_v28  ;;  %v163_v35 = vld [vmem:[%s15146_s0 + $0x490] sm:$0xff] }
  0x56   :  { %436 = vadd.xlane.f32.xlu0 %v435_v41  ;;  %v499_v41 = vadd.f32 %v498_v37, %v129_v36  ;;  %v566_v36 = vsel %vm273_vm0, %v164_v30, 0.0 }
  0x59   :  { %448 = vadd.xlane.f32.xlu1 %v447_v48  ;;  %v511_v48 = vadd.f32 %v510_v43, %v135_v42  ;;  %v567_v42 = vadd.f32 %v566_v36, %v163_v35  ;;  %v185_v35 = vld [vmem:[%s15146_s0 + $0x540] sm:$0xff] }
  0x5a   :  { %444 = vadd.xlane.f32.xlu0 %v443_v49  ;;  %v507_v49 = vadd.f32 %v506_v45, %v133_v44  ;;  %v563_v44 = vadd.f32 %v562_v39, %v161_v38  ;;  %v167_v45 = vld [vmem:[%s15146_s0 + $0x4b0] sm:$0xff]  ;;  %v192_v38 = vld [vmem:[%s15146_s0 + $0x578] sm:$0xff]  ;;  %v190_v39 = vld [vmem:[%s15146_s0 + $0x568] sm:$0xff] }
  0x5d   :  { %456 = vadd.xlane.f32.xlu1 %v455_v56  ;;  %v519_v56 = vadd.f32 %v518_v51, %v139_v50  ;;  %v172_v50 = vld [vmem:[%s15146_s0 + $0x4d8] sm:$0xff]  ;;  %v170_v51 = vld [vmem:[%s15146_s0 + $0x4c8] sm:$0xff] }
  0x5e   :  { %452 = vadd.xlane.f32.xlu0 %v451_v57  ;;  %v515_v57 = vadd.f32 %v514_v53, %v137_v52 }
  0x61   :  { %464 = vadd.xlane.f32.xlu1 %v463_v0  ;;  %v527_v0 = vadd.f32 %v526_v59, %v143_v58  ;;  %v169_v58 = vld [vmem:[%s15146_s0 + $0x4c0] sm:$0xff]  ;;  %v578_v59 = vsel %vm273_vm0, %v170_v51, 0.0  ;;  %v194_v51 = vld [vmem:[%s15146_s0 + $0x588] sm:$0xff] }
  0x62   :  { %460 = vadd.xlane.f32.xlu0 %v459_v1  ;;  %v523_v1 = vadd.f32 %v522_v61, %v141_v60  ;;  %v176_v60 = vld [vmem:[%s15146_s0 + $0x4f8] sm:$0xff]  ;;  %v174_v61 = vld [vmem:[%s15146_s0 + $0x4e8] sm:$0xff] }
  0x65   :  { %472 = vadd.xlane.f32.xlu1 %v471_v8  ;;  %v535_v8 = vadd.f32 %v534_v3, %v147_v2  ;;  %v590_v2 = vsel %vm273_vm0, %v176_v60, 0.0  ;;  %v193_v60 = vld [vmem:[%s15146_s0 + $0x580] sm:$0xff] }
  0x66   :  { %468 = vadd.xlane.f32.xlu0 %v467_v9  ;;  %v531_v9 = vadd.f32 %v530_v5, %v145_v4  ;;  %v173_v4 = vld [vmem:[%s15146_s0 + $0x4e0] sm:$0xff]  ;;  %v586_v5 = vsel %vm273_vm0, %v174_v61, 0.0  ;;  %v626_v61 = vsel %vm273_vm0, %v194_v51, 0.0 }
  0x69   :  { %480 = vadd.xlane.f32.xlu1 %v479_v16  ;;  %v543_v16 = vadd.f32 %v542_v11, %v151_v10  ;;  %v587_v10 = vadd.f32 %v586_v5, %v173_v4  ;;  %v179_v11 = vld [vmem:[%s15146_s0 + $0x510] sm:$0xff]  ;;  %v627_v4 = vadd.f32 %v626_v61, %v193_v60 }
  0x6a   :  { %476 = vadd.xlane.f32.xlu0 %v475_v17  ;;  %v539_v17 = vadd.f32 %v538_v13, %v149_v12  ;;  %v598_v12 = vsel %vm273_vm0, %v180_v6, 0.0  ;;  %v199_v5 = vld [vmem:[%s15146_s0 + $0x5b0] sm:$0xff] }
  0x6b   :  { %v215_v61 = vld [vmem:[%s15146_s0 + $0x630] sm:$0xff] }
  0x6d   :  { %488 = vadd.xlane.f32.xlu1 %v487_v24  ;;  %v551_v24 = vadd.f32 %v550_v19, %v155_v18  ;;  %v599_v18 = vadd.f32 %v598_v12, %v179_v11  ;;  %v204_v11 = vld [vmem:[%s15146_s0 + $0x5d8] sm:$0xff]  ;;  %v202_v12 = vld [vmem:[%s15146_s0 + $0x5c8] sm:$0xff] }
  0x6e   :  { %484 = vadd.xlane.f32.xlu0 %v483_v25  ;;  %v547_v25 = vadd.f32 %v546_v21, %v153_v20  ;;  %v595_v20 = vadd.f32 %v594_v15, %v177_v14  ;;  %v183_v21 = vld [vmem:[%s15146_s0 + $0x530] sm:$0xff] }
  0x71   :  { %496 = vadd.xlane.f32.xlu1 %v495_v32  ;;  %v559_v32 = vadd.f32 %v558_v27, %v159_v26  ;;  %v188_v26 = vld [vmem:[%s15146_s0 + $0x558] sm:$0xff]  ;;  %v186_v27 = vld [vmem:[%s15146_s0 + $0x548] sm:$0xff] }
  0x72   :  { %492 = vadd.xlane.f32.xlu0 %v491_v33  ;;  %v610_v36 = vsel %vm273_vm0, %v186_v27, 0.0 }
  0x75   :  { %504 = vadd.xlane.f32.xlu1 %v503_v40  ;;  %v168_v40 = vld [vmem:[%s15146_s0 + $0x4b8] sm:$0xff] }
  0x76   :  { %500 = vadd.xlane.f32.xlu0 %v499_v41  ;;  %v166_v41 = vld [vmem:[%s15146_s0 + $0x4a8] sm:$0xff]  ;;  %v574_v46 = vsel %vm273_vm0, %v168_v40, 0.0 }
  0x77   :  { %v575_v52 = vadd.f32 %v574_v46, %v167_v45  ;;  %v622_v45 = vsel %vm273_vm0, %v192_v38, 0.0  ;;  %v212_v38 = vld [vmem:[%s15146_s0 + $0x618] sm:$0xff] }
  0x79   :  { %512 = vadd.xlane.f32.xlu1 %v511_v48  ;;  %v165_v48 = vld [vmem:[%s15146_s0 + $0x4a0] sm:$0xff] }
  0x7a   :  { %508 = vadd.xlane.f32.xlu0 %v507_v49  ;;  %v570_v49 = vsel %vm273_vm0, %v166_v41, 0.0 }
  0x7b   :  { %v571_v54 = vadd.f32 %v570_v49, %v165_v48  ;;  %v189_v48 = vld [vmem:[%s15146_s0 + $0x560] sm:$0xff]  ;;  %v618_v49 = vsel %vm273_vm0, %v190_v39, 0.0  ;;  %v210_v39 = vld [vmem:[%s15146_s0 + $0x608] sm:$0xff] }
  0x7c   :  { %v658_v51 = vsel %vm273_vm0, %v210_v39, 0.0  ;;  %v226_v39 = vld [vmem:[%s15146_s0 + $0x688] sm:$0xff] }
  0x7d   :  { %520 = vadd.xlane.f32.xlu1 %v519_v56  ;;  %v582_v56 = vsel %vm273_vm0, %v172_v50, 0.0  ;;  %v196_v50 = vld [vmem:[%s15146_s0 + $0x598] sm:$0xff] }
  0x7e   :  { %516 = vadd.xlane.f32.xlu0 %v515_v57  ;;  %v583_v62 = vadd.f32 %v582_v56, %v171_v55  ;;  %v619_v55 = vadd.f32 %v618_v49, %v189_v48  ;;  %v195_v56 = vld [vmem:[%s15146_s0 + $0x590] sm:$0xff]  ;;  %v662_v48 = vsel %vm273_vm0, %v212_v38, 0.0  ;;  %v228_v38 = vld [vmem:[%s15146_s0 + $0x698] sm:$0xff] }
  0x81   :  { %528 = vadd.xlane.f32.xlu1 %v527_v0  ;;  %v579_v0 = vadd.f32 %v578_v59, %v169_v58  ;;  %v630_v58 = vsel %vm273_vm0, %v196_v50, 0.0  ;;  %v209_v50 = vld [vmem:[%s15146_s0 + $0x600] sm:$0xff] }
  0x82   :  { %524 = vadd.xlane.f32.xlu0 %v523_v1  ;;  %v175_v1 = vld [vmem:[%s15146_s0 + $0x4f0] sm:$0xff]  ;;  %v659_v60 = vadd.f32 %v658_v51, %v209_v50  ;;  %v694_v50 = vsel %vm273_vm0, %v228_v38, 0.0 }
  0x85   :  { %536 = vadd.xlane.f32.xlu1 %v535_v8  ;;  %v591_v8 = vadd.f32 %v590_v2, %v175_v1  ;;  %v631_v1 = vadd.f32 %v630_v58, %v195_v56 }
  0x86   :  { %532 = vadd.xlane.f32.xlu0 %v531_v9 }
  0x89   :  { %544 = vadd.xlane.f32.xlu1 %v543_v16  ;;  %v184_v16 = vld [vmem:[%s15146_s0 + $0x538] sm:$0xff] }
  0x8a   :  { %540 = vadd.xlane.f32.xlu0 %v539_v17  ;;  %v182_v17 = vld [vmem:[%s15146_s0 + $0x528] sm:$0xff]  ;;  %v606_v22 = vsel %vm273_vm0, %v184_v16, 0.0 }
  0x8b   :  { %v607_v28 = vadd.f32 %v606_v22, %v183_v21  ;;  %v201_v21 = vld [vmem:[%s15146_s0 + $0x5c0] sm:$0xff]  ;;  %v642_v22 = vsel %vm273_vm0, %v202_v12, 0.0  ;;  %v219_v12 = vld [vmem:[%s15146_s0 + $0x650] sm:$0xff] }
  0x8d   :  { %552 = vadd.xlane.f32.xlu1 %v551_v24  ;;  %v181_v24 = vld [vmem:[%s15146_s0 + $0x520] sm:$0xff] }
  0x8e   :  { %548 = vadd.xlane.f32.xlu0 %v547_v25  ;;  %v7632_v33 = vpop.xlane.xlu1 %284  ;;  %v602_v25 = vsel %vm273_vm0, %v182_v17, 0.0  ;;  %v203_v17 = vld [vmem:[%s15146_s0 + $0x5d0] sm:$0xff] }
  0x8f   :  { %v7638_v37 = vpop.xlane.xlu0 %276  ;;  %v603_v30 = vadd.f32 %v602_v25, %v181_v24  ;;  %v208_v24 = vld [vmem:[%s15146_s0 + $0x5f8] sm:$0xff]  ;;  %v206_v25 = vld [vmem:[%s15146_s0 + $0x5e8] sm:$0xff] }
  0x91   :  { %560 = vadd.xlane.f32.xlu1 %v559_v32  ;;  %v614_v32 = vsel %vm273_vm0, %v188_v26, 0.0 }
  0x92   :  { %556 = vadd.xlane.f32.xlu0 %v555_v34  ;;  %v7650_v43 = vpop.xlane.xlu1 %288  ;;  %v615_v40 = vadd.f32 %v614_v32, %v187_v31  ;;  %v654_v31 = vsel %vm273_vm0, %v208_v24, 0.0 }
  0x93   :  { %v7656_v47 = vpop.xlane.xlu0 %280 }
  0x95   :  { %568 = vadd.xlane.f32.xlu1 %v567_v42  ;;  %v611_v42 = vadd.f32 %v610_v36, %v185_v35  ;;  %v205_v35 = vld [vmem:[%s15146_s0 + $0x5e0] sm:$0xff]  ;;  %v650_v36 = vsel %vm273_vm0, %v206_v25, 0.0 }
  0x96   :  { %564 = vadd.xlane.f32.xlu0 %v563_v44  ;;  %v7668_v53 = vpop.xlane.xlu1 %296  ;;  %v191_v44 = vld [vmem:[%s15146_s0 + $0x570] sm:$0xff] }
  0x97   :  { %v7674_v57 = vpop.xlane.xlu0 %292 }
  0x99   :  { %576 = vadd.xlane.f32.xlu1 %v575_v52  ;;  %v623_v52 = vadd.f32 %v622_v45, %v191_v44  ;;  %v651_v44 = vadd.f32 %v650_v36, %v205_v35  ;;  %v211_v45 = vld [vmem:[%s15146_s0 + $0x610] sm:$0xff]  ;;  %v221_v35 = vld [vmem:[%s15146_s0 + $0x660] sm:$0xff] }
  0x9a   :  { %572 = vadd.xlane.f32.xlu0 %v571_v54  ;;  %v7686_v63 = vpop.xlane.xlu1 %304  ;;  %v663_v56 = vadd.f32 %v662_v48, %v211_v45  ;;  %v227_v48 = vld [vmem:[%s15146_s0 + $0x690] sm:$0xff] }
  0x9b   :  { %v7692_v3 = vpop.xlane.xlu0 %300 }
  0x9d   :  { %584 = vadd.xlane.f32.xlu1 %v583_v62  ;;  %v200_v62 = vld [vmem:[%s15146_s0 + $0x5b8] sm:$0xff] }
  0x9e   :  { %580 = vadd.xlane.f32.xlu0 %v579_v0  ;;  %v7704_v9 = vpop.xlane.xlu1 %312  ;;  %v198_v0 = vld [vmem:[%s15146_s0 + $0x5a8] sm:$0xff]  ;;  %v638_v6 = vsel %vm273_vm0, %v200_v62, 0.0 }
  0x9f   :  { %v7710_v13 = vpop.xlane.xlu0 %308  ;;  %v639_v14 = vadd.f32 %v638_v6, %v199_v5  ;;  %v220_v5 = vld [vmem:[%s15146_s0 + $0x658] sm:$0xff]  ;;  %v218_v6 = vld [vmem:[%s15146_s0 + $0x648] sm:$0xff] }
  0xa1   :  { %592 = vadd.xlane.f32.xlu1 %v591_v8  ;;  %v197_v8 = vld [vmem:[%s15146_s0 + $0x5a0] sm:$0xff] }
  0xa2   :  { %588 = vadd.xlane.f32.xlu0 %v587_v10  ;;  %v7722_v19 = vpop.xlane.xlu1 %320  ;;  %v634_v10 = vsel %vm273_vm0, %v198_v0, 0.0 }
  0xa3   :  { %v7728_v23 = vpop.xlane.xlu0 %316  ;;  %v635_v16 = vadd.f32 %v634_v10, %v197_v8 }
  0xa5   :  { %600 = vadd.xlane.f32.xlu1 %v599_v18  ;;  %v646_v18 = vsel %vm273_vm0, %v204_v11, 0.0 }
  0xa6   :  { %596 = vadd.xlane.f32.xlu0 %v595_v20  ;;  %v7740_v29 = vpop.xlane.xlu1 %328  ;;  %v647_v26 = vadd.f32 %v646_v18, %v203_v17  ;;  %v217_v17 = vld [vmem:[%s15146_s0 + $0x640] sm:$0xff]  ;;  %v674_v18 = vsel %vm273_vm0, %v218_v6, 0.0 }
  0xa7   :  { %v7746_v34 = vpop.xlane.xlu0 %324 }
  0xa9   :  { %608 = vadd.xlane.f32.xlu1 %v607_v28  ;;  %v643_v28 = vadd.f32 %v642_v22, %v201_v21  ;;  %v224_v21 = vld [vmem:[%s15146_s0 + $0x678] sm:$0xff]  ;;  %v222_v22 = vld [vmem:[%s15146_s0 + $0x668] sm:$0xff] }
  0xaa   :  { %604 = vadd.xlane.f32.xlu0 %v603_v30  ;;  %v7758_v41 = vpop.xlane.xlu1 %336  ;;  %v207_v30 = vld [vmem:[%s15146_s0 + $0x5f0] sm:$0xff]  ;;  %v682_v36 = vsel %vm273_vm0, %v222_v22, 0.0 }
  0xab   :  { %v7764_v46 = vpop.xlane.xlu0 %332  ;;  %v683_v45 = vadd.f32 %v682_v36, %v221_v35  ;;  %v235_v22 = vld [vmem:[%s15146_s0 + $0x6d0] sm:$0xff]  ;;  %v240_v35 = vld [vmem:[%s15146_s0 + $0x6f8] sm:$0xff]  ;;  %v238_v36 = vld [vmem:[%s15146_s0 + $0x6e8] sm:$0xff] }
  0xad   :  { %616 = vadd.xlane.f32.xlu1 %v615_v40  ;;  %v655_v40 = vadd.f32 %v654_v31, %v207_v30  ;;  %v686_v30 = vsel %vm273_vm0, %v224_v21, 0.0 }
  0xae   :  { %612 = vadd.xlane.f32.xlu0 %v611_v42  ;;  %v7776_v54 = vpop.xlane.xlu1 %344 }
  0xaf   :  { %v7782_v59 = vpop.xlane.xlu0 %340 }
  0xb1   :  { %624 = vadd.xlane.f32.xlu1 %v623_v52  ;;  %v216_v52 = vld [vmem:[%s15146_s0 + $0x638] sm:$0xff] }
  0xb2   :  { %620 = vadd.xlane.f32.xlu0 %v619_v55  ;;  %v7794_v2 = vpop.xlane.xlu1 %352  ;;  %v214_v55 = vld [vmem:[%s15146_s0 + $0x628] sm:$0xff]  ;;  %v670_v62 = vsel %vm273_vm0, %v216_v52, 0.0  ;;  %v225_v52 = vld [vmem:[%s15146_s0 + $0x680] sm:$0xff] }
  0xb3   :  { %v7800_v7 = vpop.xlane.xlu0 %348  ;;  %v671_v8 = vadd.f32 %v670_v62, %v215_v61  ;;  %v695_v61 = vadd.f32 %v694_v50, %v227_v48  ;;  %v718_v48 = vsel %vm273_vm0, %v240_v35, 0.0 }
  0xb5   :  { %632 = vadd.xlane.f32.xlu1 %v631_v1  ;;  %v213_v1 = vld [vmem:[%s15146_s0 + $0x620] sm:$0xff] }
  0xb6   :  { %628 = vadd.xlane.f32.xlu0 %v627_v4  ;;  %v7812_v15 = vpop.xlane.xlu1 %360  ;;  %v666_v4 = vsel %vm273_vm0, %v214_v55, 0.0  ;;  %v690_v55 = vsel %vm273_vm0, %v226_v39, 0.0 }
  0xb7   :  { %v7818_v20 = vpop.xlane.xlu0 %356  ;;  %v667_v11 = vadd.f32 %v666_v4, %v213_v1  ;;  %v691_v1 = vadd.f32 %v690_v55, %v225_v52  ;;  %v231_v4 = vld [vmem:[%s15146_s0 + $0x6b0] sm:$0xff]  ;;  %v237_v52 = vld [vmem:[%s15146_s0 + $0x6e0] sm:$0xff]  ;;  %v714_v55 = vsel %vm273_vm0, %v238_v36, 0.0 }
  0xb9   :  { %640 = vadd.xlane.f32.xlu1 %v639_v14  ;;  %v678_v14 = vsel %vm273_vm0, %v220_v5, 0.0 }
  0xba   :  { %636 = vadd.xlane.f32.xlu0 %v635_v16  ;;  %v7830_v27 = vpop.xlane.xlu1 %368  ;;  %v679_v24 = vadd.f32 %v678_v14, %v219_v12  ;;  %v236_v12 = vld [vmem:[%s15146_s0 + $0x6d8] sm:$0xff]  ;;  %v234_v14 = vld [vmem:[%s15146_s0 + $0x6c8] sm:$0xff] }
  0xbb   :  { %v7836_v32 = vpop.xlane.xlu0 %364 }
  0xbd   :  { %648 = vadd.xlane.f32.xlu1 %v647_v26  ;;  %v675_v26 = vadd.f32 %v674_v18, %v217_v17 }
  0xbe   :  { %644 = vadd.xlane.f32.xlu0 %v643_v28  ;;  %v7848_v42 = vpop.xlane.xlu1 %376  ;;  %v223_v28 = vld [vmem:[%s15146_s0 + $0x670] sm:$0xff] }
  0xbf   :  { %v7854_v49 = vpop.xlane.xlu0 %372 }
  0xc1   :  { %656 = vadd.xlane.f32.xlu1 %v655_v40  ;;  %v687_v40 = vadd.f32 %v686_v30, %v223_v28  ;;  %v233_v28 = vld [vmem:[%s15146_s0 + $0x6c0] sm:$0xff]  ;;  %v706_v30 = vsel %vm273_vm0, %v234_v14, 0.0 }
  0xc2   :  { %652 = vadd.xlane.f32.xlu0 %v651_v44  ;;  %v7866_v58 = vpop.xlane.xlu1 %384 }
  0xc3   :  { %v7872_v0 = vpop.xlane.xlu0 %380 }
  0xc5   :  { %664 = vadd.xlane.f32.xlu1 %v663_v56  ;;  %v232_v56 = vld [vmem:[%s15146_s0 + $0x6b8] sm:$0xff] }
  0xc6   :  { %660 = vadd.xlane.f32.xlu0 %v659_v60  ;;  %v7884_v10 = vpop.xlane.xlu1 %392  ;;  %v230_v60 = vld [vmem:[%s15146_s0 + $0x6a8] sm:$0xff]  ;;  %v702_v5 = vsel %vm273_vm0, %v232_v56, 0.0  ;;  %v244_v56 = vld [vmem:[%s15146_s0 + $0x718] sm:$0xff] }
  0xc7   :  { %v7890_v16 = vpop.xlane.xlu0 %388  ;;  %v703_v17 = vadd.f32 %v702_v5, %v231_v4  ;;  %v715_v4 = vadd.f32 %v714_v55, %v237_v52  ;;  %v243_v5 = vld [vmem:[%s15146_s0 + $0x710] sm:$0xff] }
  0xc9   :  { %672 = vadd.xlane.f32.xlu1 %v671_v8  ;;  %v229_v8 = vld [vmem:[%s15146_s0 + $0x6a0] sm:$0xff] }
  0xca   :  { %668 = vadd.xlane.f32.xlu0 %v667_v11  ;;  %v7902_v25 = vpop.xlane.xlu1 %400  ;;  %v698_v11 = vsel %vm273_vm0, %v230_v60, 0.0  ;;  %v242_v60 = vld [vmem:[%s15146_s0 + $0x708] sm:$0xff] }
  0xcb   :  { %v7908_v31 = vpop.xlane.xlu0 %396  ;;  %v699_v21 = vadd.f32 %v698_v11, %v229_v8  ;;  %v726_v8 = vsel %vm273_vm0, %v244_v56, 0.0  ;;  %v722_v14 = vsel %vm273_vm0, %v242_v60, 0.0  ;;  %v251_v60 = vld [vmem:[%s15146_s0 + $0x750] sm:$0xff] }
  0xcd   :  { %680 = vadd.xlane.f32.xlu1 %v679_v24  ;;  %v710_v24 = vsel %vm273_vm0, %v236_v12, 0.0  ;;  %v241_v12 = vld [vmem:[%s15146_s0 + $0x700] sm:$0xff] }
  0xce   :  { %676 = vadd.xlane.f32.xlu0 %v675_v26  ;;  %v7920_v44 = vpop.xlane.xlu1 %408  ;;  %v711_v38 = vadd.f32 %v710_v24, %v235_v22  ;;  %v727_v22 = vadd.f32 %v726_v8, %v243_v5  ;;  %v249_v5 = vld [vmem:[%s15146_s0 + $0x740] sm:$0xff] }
  0xcf   :  { %v7926_v51 = vpop.xlane.xlu0 %404 }
  0xd1   :  { %688 = vadd.xlane.f32.xlu1 %v687_v40  ;;  %v707_v40 = vadd.f32 %v706_v30, %v233_v28  ;;  %v723_v28 = vadd.f32 %v722_v14, %v241_v12  ;;  %v247_v30 = vld [vmem:[%s15146_s0 + $0x730] sm:$0xff]  ;;  %v256_v12 = vld [vmem:[%s15146_s0 + $0x778] sm:$0xff]  ;;  %v254_v14 = vld [vmem:[%s15146_s0 + $0x768] sm:$0xff] }
  0xd2   :  { %684 = vadd.xlane.f32.xlu0 %v683_v45  ;;  %v7938_v62 = vpop.xlane.xlu1 %416  ;;  %v239_v45 = vld [vmem:[%s15146_s0 + $0x6f0] sm:$0xff] }
  0xd3   :  { %v7944_v6 = vpop.xlane.xlu0 %412 }
  0xd5   :  { %696 = vadd.xlane.f32.xlu1 %v695_v61  ;;  %v719_v61 = vadd.f32 %v718_v48, %v239_v45  ;;  %v252_v45 = vld [vmem:[%s15146_s0 + $0x758] sm:$0xff]  ;;  %v250_v48 = vld [vmem:[%s15146_s0 + $0x748] sm:$0xff] }
  0xd6   :  { %692 = vadd.xlane.f32.xlu0 %v691_v1  ;;  %v7956_v18 = vpop.xlane.xlu1 %424  ;;  %v738_v8 = vsel %vm273_vm0, %v250_v48, 0.0  ;;  %v258_v48 = vld [vmem:[%s15146_s0 + $0x788] sm:$0xff] }
  0xd7   :  { %v7962_v26 = vpop.xlane.xlu0 %420 }
  0xd9   :  { %704 = vadd.xlane.f32.xlu1 %v703_v17  ;;  %v248_v17 = vld [vmem:[%s15146_s0 + $0x738] sm:$0xff] }
  0xda   :  { %700 = vadd.xlane.f32.xlu0 %v699_v21  ;;  %v7974_v39 = vpop.xlane.xlu1 %432  ;;  %v246_v21 = vld [vmem:[%s15146_s0 + $0x728] sm:$0xff]  ;;  %v734_v35 = vsel %vm273_vm0, %v248_v17, 0.0 }
  0xdb   :  { %v7980_v50 = vpop.xlane.xlu0 %428  ;;  %v735_v52 = vadd.f32 %v734_v35, %v247_v30  ;;  %v750_v30 = vsel %vm273_vm0, %v256_v12, 0.0  ;;  %v257_v12 = vld [vmem:[%s15146_s0 + $0x780] sm:$0xff] }
  0xdd   :  { %712 = vadd.xlane.f32.xlu1 %v711_v38  ;;  %v245_v38 = vld [vmem:[%s15146_s0 + $0x720] sm:$0xff] }
  0xde   :  { %708 = vadd.xlane.f32.xlu0 %v707_v40  ;;  %v7992_v1 = vpop.xlane.xlu1 %440  ;;  %v730_v40 = vsel %vm273_vm0, %v246_v21, 0.0 }
  0xdf   :  { %v7998_v11 = vpop.xlane.xlu0 %436  ;;  %v731_v56 = vadd.f32 %v730_v40, %v245_v38  ;;  %v253_v38 = vld [vmem:[%s15146_s0 + $0x760] sm:$0xff]  ;;  %v746_v40 = vsel %vm273_vm0, %v254_v14, 0.0  ;;  %v754_v14 = vsel %vm273_vm0, %v258_v48, 0.0 }
  0xe1   :  { %720 = vadd.xlane.f32.xlu1 %v719_v61  ;;  %v742_v61 = vsel %vm273_vm0, %v252_v45, 0.0  ;;  %v260_v45 = vld [vmem:[%s15146_s0 + $0x798] sm:$0xff] }
  0xe2   :  { %716 = vadd.xlane.f32.xlu0 %v715_v4  ;;  %v8010_v24 = vpop.xlane.xlu1 %448  ;;  %v743_v17 = vadd.f32 %v742_v61, %v251_v60  ;;  %v747_v60 = vadd.f32 %v746_v40, %v253_v38  ;;  %v259_v61 = vld [vmem:[%s15146_s0 + $0x790] sm:$0xff]  ;;  %v755_v40 = vadd.f32 %v754_v14, %v257_v12  ;;  %v789_v12 = vmul.f32 0.0051020407, %v7650_v43  ;;  %v6771_v14 = vld [vmem:[%s15146_s0 + $0x18] sm:$0xff]  ;;  %v265_v43 = vld [vmem:[%s15146_s0 + $0x7c0] sm:$0xff] }
  0xe3   :  { %v8016_v36 = vpop.xlane.xlu0 %444 }
  0xe5   :  { %728 = vadd.xlane.f32.xlu1 %v727_v22  ;;  %v739_v22 = vadd.f32 %v738_v8, %v249_v5  ;;  %v758_v5 = vsel %vm273_vm0, %v260_v45, 0.0  ;;  %v263_v45 = vld [vmem:[%s15146_s0 + $0x7b0] sm:$0xff] }
  0xe6   :  { %724 = vadd.xlane.f32.xlu0 %v723_v28  ;;  %v8028_v55 = vpop.xlane.xlu1 %456  ;;  %v255_v28 = vld [vmem:[%s15146_s0 + $0x770] sm:$0xff] }
  0xe7   :  { %v8034_v4 = vpop.xlane.xlu0 %452 }
  0xe8   :  { %15530 = vst [vmem:[#allocation2_spill] sm:$0xff] %v8034_v4 }
  0xe9   :  { %736 = vadd.xlane.f32.xlu1 %v735_v52  ;;  %v751_v52 = vadd.f32 %v750_v30, %v255_v28  ;;  %v759_v28 = vadd.f32 %v758_v5, %v259_v61  ;;  %v787_v30 = vmul.f32 0.0051020407, %v7656_v47  ;;  %v268_v47 = vld [vmem:[%s15146_s0 + $0x7d8] sm:$0xff]  ;;  %v786_v61 = vmul.f32 0.0051020407, %v7638_v37 }
  0xea   :  { %732 = vadd.xlane.f32.xlu0 %v731_v56  ;;  %v8046_v21 = vpop.xlane.xlu1 %464  ;;  %v774_v37 = vsel %vm273_vm0, %v268_v47, 0.0 }
  0xeb   :  { %15531 = vst [vmem:[#allocation3_spill] sm:$0xff] %v8046_v21  ;;  %v8052_v35 = vpop.xlane.xlu0 %460 }
  0xec   :  { %15532 = vst [vmem:[#allocation4_spill] sm:$0xff] %v8052_v35 }
  0xed   :  { %744 = vadd.xlane.f32.xlu1 %v743_v17  ;;  %v264_v17 = vld [vmem:[%s15146_s0 + $0x7b8] sm:$0xff] }
  0xee   :  { %740 = vadd.xlane.f32.xlu0 %v739_v22  ;;  %v8064_v56 = vpop.xlane.xlu1 %472  ;;  %v262_v22 = vld [vmem:[%s15146_s0 + $0x7a8] sm:$0xff]  ;;  %v766_v48 = vsel %vm273_vm0, %v264_v17, 0.0  ;;  %v8106_v17 = vsub.f32 %v6771_v14, %v787_v30 }
  0xef   :  { %15533 = vst [vmem:[#allocation5_spill] sm:$0xff] %v8064_v56  ;;  %v8070_v8 = vpop.xlane.xlu0 %468  ;;  %v767_v5 = vadd.f32 %v766_v48, %v263_v45  ;;  %v270_v48 = vld [vmem:[%s15146_s0 + $0x7e8] sm:$0xff] }
  0xf0   :  { %15534 = vst [vmem:[#allocation6_spill] sm:$0xff] %v8070_v8  ;;  %v261_v8 = vld [vmem:[%s15146_s0 + $0x7a0] sm:$0xff]  ;;  %15537 = vst [vmem:[#allocation9_spill] sm:$0xff] %v8106_v17  ;;  %v1173_v21 = vmul.f32 %v8106_v17, %v8106_v17 }
  0xf1   :  { %752 = vadd.xlane.f32.xlu1 %v751_v52  ;;  %v762_v52 = vsel %vm273_vm0, %v262_v22, 0.0 }
  0xf2   :  { %748 = vadd.xlane.f32.xlu0 %v747_v60  ;;  %v8083_v38 = vpop.xlane.xlu1 %480  ;;  %v266_v60 = vld [vmem:[%s15146_s0 + $0x7c8] sm:$0xff]  ;;  %v1430_v4 = vsel %vm273_vm0, %v1173_v21, 0.0 }
  0xf3   :  { %15535 = vst [vmem:[#allocation7_spill] sm:$0xff] %v8083_v38  ;;  %v8089_v56 = vpop.xlane.xlu0 %476  ;;  %v267_v38 = vld [vmem:[%s15146_s0 + $0x7d0] sm:$0xff]  ;;  %v770_v45 = vsel %vm273_vm0, %v266_v60, 0.0 }
  0xf4   :  { %15536 = vst [vmem:[#allocation8_spill] sm:$0xff] %v8089_v56  ;;  %v763_v56 = vadd.f32 %v762_v52, %v261_v8  ;;  %v788_v8 = vmul.f32 0.0051020407, %v7632_v33  ;;  %v6772_v52 = vld [vmem:[%s15146_s0 + $0x8] sm:$0xff]  ;;  %v6773_v60 = vld [vmem:[%s15146_s0 + $0x10] sm:$0xff]  ;;  %v6774_v33 = vld [vmem:[%s15146_s0 + $0x38] sm:$0xff]  ;;  %v771_v35 = vadd.f32 %v770_v45, %v265_v43 }
  0xf5   :  { %760 = vadd.xlane.f32.xlu1 %v759_v28  ;;  %v8130_v47 = vsub.f32 %v6772_v52, %v786_v61  ;;  %v8135_v14 = vsub.f32 %v6773_v60, %v787_v30  ;;  %v271_v30 = vld [vmem:[%s15146_s0 + $0x7f0] sm:$0xff]  ;;  %v269_v60 = vld [vmem:[%s15146_s0 + $0x7e0] sm:$0xff] }
  0xf6   :  { %756 = vadd.xlane.f32.xlu0 %v755_v40  ;;  %v8108_v22 = vpop.xlane.xlu1 %488  ;;  %v272_v40 = vld [vmem:[%s15146_s0 + $0x7f8] sm:$0xff]  ;;  %v6776_v45 = vld [vmem:[%s15146_s0] sm:$0xff] }
  0xf7   :  { %15538 = vst [vmem:[#allocation10_spill] sm:$0xff] %v8108_v22  ;;  %v8114_v28 = vpop.xlane.xlu0 %484  ;;  %15540 = vst [vmem:[#allocation12_spill] sm:$0xff] %v8130_v47  ;;  %v775_v22 = vadd.f32 %v774_v37, %v267_v38  ;;  %v790_v38 = vmul.f32 0.0051020407, %v7674_v57  ;;  %v791_v57 = vmul.f32 0.0051020407, %v7668_v53  ;;  %v1171_v17 = vmul.f32 %v8130_v47, %v8130_v47 }
  0xf8   :  { %15539 = vst [vmem:[#allocation11_spill] sm:$0xff] %v8114_v28  ;;  %15541 = vst [vmem:[#allocation13_spill] sm:$0xff] %v8135_v14  ;;  %v8140_v28 = vsub.f32 %v6774_v33, %v789_v12  ;;  %v778_v33 = vsel %vm273_vm0, %v270_v48, 0.0  ;;  %v6777_v48 = vld [vmem:[%s15146_s0 + $0x30] sm:$0xff] }
  0xf9   :  { %768 = vadd.xlane.f32.xlu1 %v767_v5  ;;  %v782_v5 = vsel %vm273_vm0, %v272_v40, 0.0  ;;  %v8165_v40 = vsub.f32 %v6776_v45, %v786_v61  ;;  %v792_v45 = vmul.f32 0.0051020407, %v7692_v3  ;;  %v779_v47 = vadd.f32 %v778_v33, %v269_v60 }
  0xfa   :  { %15542 = vst [vmem:[#allocation14_spill] sm:$0xff] %v8140_v28  ;;  %764 = vadd.xlane.f32.xlu0 %v763_v56  ;;  %v8144_v52 = vpop.xlane.xlu1 %496  ;;  %v6775_v56 = vld [vmem:[%s15146_s0 + $0x28] sm:$0xff]  ;;  %v1177_v61 = vmul.f32 %v8140_v28, %v8140_v28  ;;  %v793_v60 = vmul.f32 0.0051020407, %v7686_v63 }
  0xfb   :  { %15543 = vst [vmem:[#allocation15_spill] sm:$0xff] %v8144_v52  ;;  %v8151_v37 = vpop.xlane.xlu0 %492  ;;  %v8160_v43 = vsub.f32 %v6775_v56, %v788_v8  ;;  %15546 = vst [vmem:[#allocation18_spill] sm:$0xff] %v8165_v40  ;;  %v8173_v52 = vsub.f32 %v6777_v48, %v789_v12  ;;  %v1172_v56 = vmul.f32 %v8135_v14, %v8135_v14  ;;  %v6778_v12 = vld [vmem:[%s15146_s0 + $0x20] sm:$0xff]  ;;  %v6783_v63 = vld [vmem:[%s15146_s0 + $0x68] sm:$0xff]  ;;  %v795_v14 = vmul.f32 0.0051020407, %v7704_v9 }
  0xfc   :  { %15544 = vst [vmem:[#allocation16_spill] sm:$0xff] %v8151_v37  ;;  %v783_v37 = vadd.f32 %v782_v5, %v271_v30  ;;  %v8186_v48 = vsub.f32 %v6778_v12, %v788_v8  ;;  %v1170_v21 = vmul.f32 %v8165_v40, %v8165_v40  ;;  %v6781_v12 = vld [vmem:[%s15146_s0 + $0x50] sm:$0xff]  ;;  %v1426_v40 = vsel %vm273_vm0, %v1171_v17, 0.0  ;;  %v6784_v9 = vld [vmem:[%s15146_s0 + $0x78] sm:$0xff] }
  0xfd   :  { %15545 = vst [vmem:[#allocation17_spill] sm:$0xff] %v8160_v43  ;;  %15547 = vst [vmem:[#allocation19_spill] sm:$0xff] %v8173_v52  ;;  %776 = vadd.xlane.f32.xlu1 %v775_v22  ;;  %v6779_v22 = vld [vmem:[%s15146_s0 + $0x48] sm:$0xff]  ;;  %v1175_v3 = vmul.f32 %v8160_v43, %v8160_v43  ;;  %v1176_v33 = vmul.f32 %v8173_v52, %v8173_v52  ;;  %v1431_v28 = vadd.f32 %v1430_v4, %v1172_v56 }
  0xfe   :  { %772 = vadd.xlane.f32.xlu0 %v771_v35  ;;  %v8180_v53 = vpop.xlane.xlu1 %504  ;;  %15548 = vst [vmem:[#allocation20_spill] sm:$0xff] %v8186_v48  ;;  %v8191_v30 = vsub.f32 %v6779_v22, %v790_v38  ;;  %v6780_v35 = vld [vmem:[%s15146_s0 + $0x58] sm:$0xff]  ;;  %v8210_v22 = vsub.f32 %v6781_v12, %v791_v57  ;;  %v8221_v52 = vsub.f32 %v6783_v63, %v792_v45  ;;  %v1438_v4 = vsel %vm273_vm0, %v1177_v61, 0.0 }
  0xff   :  { %v8193_v5 = vpop.xlane.xlu0 %500  ;;  %v8202_v8 = vsub.f32 %v6780_v35, %v791_v57  ;;  %v6782_v35 = vld [vmem:[%s15146_s0 + $0x40] sm:$0xff]  ;;  %v1174_v56 = vmul.f32 %v8186_v48, %v8186_v48  ;;  %v1427_v61 = vadd.f32 %v1426_v40, %v1170_v21  ;;  %v1439_v63 = vadd.f32 %v1438_v4, %v1176_v33  ;;  %v6786_v40 = vld [vmem:[%s15146_s0 + $0x98] sm:$0xff]  ;;  %v6788_v33 = vld [vmem:[%s15146_s0 + $0x88] sm:$0xff] }
 0x100   :  { %15549 = vst [vmem:[#allocation21_spill] sm:$0xff] %v8191_v30  ;;  %15551 = vst [vmem:[#allocation23_spill] sm:$0xff] %v8210_v22  ;;  %v8216_v43 = vsub.f32 %v6782_v35, %v790_v38  ;;  %v1179_v17 = vmul.f32 %v8191_v30, %v8191_v30  ;;  %v6785_v35 = vld [vmem:[%s15146_s0 + $0x60] sm:$0xff]  ;;  %v1434_v30 = vsel %vm273_vm0, %v1175_v3, 0.0  ;;  %v8256_v21 = vsub.f32 %v6786_v40, %v795_v14 }
 0x101   :  { %15550 = vst [vmem:[#allocation22_spill] sm:$0xff] %v8202_v8  ;;  %784 = vadd.xlane.f32.xlu1 %v783_v37  ;;  %15553 = vst [vmem:[#allocation25_spill] sm:$0xff] %v8221_v52  ;;  %v794_v37 = vmul.f32 0.0051020407, %v7710_v13  ;;  %v1181_v12 = vmul.f32 %v8202_v8, %v8202_v8  ;;  %v8244_v13 = vsub.f32 %v6785_v35, %v792_v45  ;;  %v6787_v45 = vld [vmem:[%s15146_s0 + $0x70] sm:$0xff] }
 0x102   :  { %15552 = vst [vmem:[#allocation24_spill] sm:$0xff] %v8216_v43  ;;  %780 = vadd.xlane.f32.xlu0 %v779_v47  ;;  %v8224_v57 = vpop.xlane.xlu1 %512  ;;  %v8239_v47 = vsub.f32 %v6784_v9, %v793_v60  ;;  %v1180_v8 = vmul.f32 %v8210_v22, %v8210_v22  ;;  %v1178_v48 = vmul.f32 %v8216_v43, %v8216_v43  ;;  %15556 = vst [vmem:[#allocation28_spill] sm:$0xff] %v8256_v21 }
 0x103   :  { %v8230_v38 = vpop.xlane.xlu0 %508  ;;  %15555 = vst [vmem:[#allocation27_spill] sm:$0xff] %v8244_v13  ;;  %v1183_v9 = vmul.f32 %v8221_v52, %v8221_v52  ;;  %v8263_v3 = vsub.f32 %v6787_v45, %v793_v60  ;;  %v8268_v4 = vsub.f32 %v6788_v33, %v794_v37  ;;  %v796_v35 = vmul.f32 0.0051020407, %v7728_v23  ;;  %v6789_v33 = vld [vmem:[%s15146_s0 + $0x90] sm:$0xff] }
 0x104   :  { %15554 = vst [vmem:[#allocation26_spill] sm:$0xff] %v8239_v47  ;;  %v1185_v40 = vmul.f32 %v8239_v47, %v8239_v47  ;;  %v797_v43 = vmul.f32 0.0051020407, %v7722_v19  ;;  %v1435_v52 = vadd.f32 %v1434_v30, %v1174_v56  ;;  %v1446_v60 = vsel %vm273_vm0, %v1181_v12, 0.0 }
 0x105   :  { %1432 = vadd.xlane.f32.xlu1 %v1431_v28  ;;  %15558 = vst [vmem:[#allocation30_spill] sm:$0xff] %v8263_v3  ;;  %15559 = vst [vmem:[#allocation31_spill] sm:$0xff] %v8268_v4  ;;  %v1182_v45 = vmul.f32 %v8244_v13, %v8244_v13  ;;  %v8283_v23 = vsub.f32 %v6789_v33, %v795_v14  ;;  %v1189_v19 = vmul.f32 %v8256_v21, %v8256_v21 }
 0x106   :  { %1428 = vadd.xlane.f32.xlu0 %v1427_v61  ;;  %v8258_v28 = vpop.xlane.xlu1 %520  ;;  %v1442_v61 = vsel %vm273_vm0, %v1179_v17, 0.0  ;;  %v6790_v17 = vld [vmem:[%s15146_s0 + $0x80] sm:$0xff]  ;;  %v798_v30 = vmul.f32 0.0051020407, %v7746_v34  ;;  %v1450_v47 = vsel %vm273_vm0, %v1183_v9, 0.0  ;;  %v1184_v14 = vmul.f32 %v8263_v3, %v8263_v3 }
 0x107   :  { %15557 = vst [vmem:[#allocation29_spill] sm:$0xff] %v8258_v28  ;;  %v8271_v22 = vpop.xlane.xlu0 %516  ;;  %15560 = vst [vmem:[#allocation32_spill] sm:$0xff] %v8283_v23  ;;  %v8288_v28 = vsub.f32 %v6790_v17, %v794_v37  ;;  %v1443_v12 = vadd.f32 %v1442_v61, %v1178_v48  ;;  %v1187_v33 = vmul.f32 %v8268_v4, %v8268_v4  ;;  %v6791_v37 = vld [vmem:[%s15146_s0 + $0xa8] sm:$0xff]  ;;  %v799_v9 = vmul.f32 0.0051020407, %v7740_v29  ;;  %v6794_v29 = vld [vmem:[%s15146_s0 + $0xa0] sm:$0xff] }
 0x108   :  { %v1447_v34 = vadd.f32 %v1446_v60, %v1180_v8  ;;  %v1454_v61 = vsel %vm273_vm0, %v1185_v40, 0.0  ;;  %v1188_v21 = vmul.f32 %v8283_v23, %v8283_v23  ;;  %v6793_v8 = vld [vmem:[%s15146_s0 + $0xb0] sm:$0xff]  ;;  %v1451_v3 = vadd.f32 %v1450_v47, %v1182_v45  ;;  %v6795_v40 = vld [vmem:[%s15146_s0 + $0xc8] sm:$0xff] }
 0x109   :  { %15561 = vst [vmem:[#allocation33_spill] sm:$0xff] %v8288_v28  ;;  %1440 = vadd.xlane.f32.xlu1 %v1439_v63  ;;  %v8303_v63 = vsub.f32 %v6791_v37, %v796_v35  ;;  %v1186_v37 = vmul.f32 %v8288_v28, %v8288_v28  ;;  %v8321_v60 = vsub.f32 %v6793_v8, %v797_v43  ;;  %v801_v13 = vmul.f32 0.0051020407, %v7758_v41  ;;  %v6796_v41 = vld [vmem:[%s15146_s0 + $0xd8] sm:$0xff] }
 0x10a   :  { %1436 = vadd.xlane.f32.xlu0 %v1435_v52  ;;  %v8293_v56 = vpop.xlane.xlu1 %528  ;;  %v6792_v52 = vld [vmem:[%s15146_s0 + $0xb8] sm:$0xff]  ;;  %v8331_v23 = vsub.f32 %v6795_v40, %v798_v30  ;;  %v800_v45 = vmul.f32 0.0051020407, %v7764_v46  ;;  %v1458_v8 = vsel %vm273_vm0, %v1187_v33, 0.0  ;;  %v6797_v46 = vld [vmem:[%s15146_s0 + $0xc0] sm:$0xff] }
 0x10b   :  { %15562 = vst [vmem:[#allocation34_spill] sm:$0xff] %v8303_v63  ;;  %v8305_v17 = vpop.xlane.xlu0 %524  ;;  %v8310_v48 = vsub.f32 %v6792_v52, %v797_v43  ;;  %15564 = vst [vmem:[#allocation36_spill] sm:$0xff] %v8321_v60  ;;  %v8326_v52 = vsub.f32 %v6794_v29, %v796_v35  ;;  %v1462_v43 = vsel %vm273_vm0, %v1189_v19, 0.0  ;;  %v1191_v47 = vmul.f32 %v8303_v63, %v8303_v63 }
 0x10c   :  { %15566 = vst [vmem:[#allocation38_spill] sm:$0xff] %v8331_v23  ;;  %v1192_v19 = vmul.f32 %v8321_v60, %v8321_v60  ;;  %v8355_v40 = vsub.f32 %v6797_v46, %v798_v30  ;;  %v1459_v63 = vadd.f32 %v1458_v8, %v1186_v37  ;;  %v802_v46 = vmul.f32 0.0051020407, %v7782_v59  ;;  %v6802_v59 = vld [vmem:[%s15146_s0 + $0xe0] sm:$0xff] }
 0x10d   :  { %15563 = vst [vmem:[#allocation35_spill] sm:$0xff] %v8310_v48  ;;  %1448 = vadd.xlane.f32.xlu1 %v1447_v34  ;;  %15565 = vst [vmem:[#allocation37_spill] sm:$0xff] %v8326_v52  ;;  %v1455_v34 = vadd.f32 %v1454_v61, %v1184_v14  ;;  %v1193_v29 = vmul.f32 %v8310_v48, %v8310_v48  ;;  %v1463_v14 = vadd.f32 %v1462_v43, %v1188_v21  ;;  %v6799_v21 = vld [vmem:[%s15146_s0 + $0xd0] sm:$0xff]  ;;  %v6800_v43 = vld [vmem:[%s15146_s0 + $0xe8] sm:$0xff] }
 0x10e   :  { %1444 = vadd.xlane.f32.xlu0 %v1443_v12  ;;  %v8334_v4 = vpop.xlane.xlu1 %536  ;;  %v8348_v12 = vsub.f32 %v6796_v41, %v799_v9  ;;  %15568 = vst [vmem:[#allocation40_spill] sm:$0xff] %v8355_v40  ;;  %v1190_v33 = vmul.f32 %v8326_v52, %v8326_v52  ;;  %v1195_v61 = vmul.f32 %v8331_v23, %v8331_v23  ;;  %v6798_v41 = vld [vmem:[%s15146_s0 + $0xf8] sm:$0xff]  ;;  %v803_v8 = vmul.f32 0.0051020407, %v7776_v54 }
 0x10f   :  { %v8340_v35 = vpop.xlane.xlu0 %532  ;;  %v8364_v48 = vsub.f32 %v6798_v41, %v801_v13  ;;  %v8371_v30 = vsub.f32 %v6799_v21, %v799_v9  ;;  %v1470_v9 = vsel %vm273_vm0, %v1193_v29, 0.0  ;;  %v1194_v21 = vmul.f32 %v8355_v40, %v8355_v40 }
 0x110   :  { %15567 = vst [vmem:[#allocation39_spill] sm:$0xff] %v8348_v12  ;;  %v1197_v37 = vmul.f32 %v8348_v12, %v8348_v12  ;;  %v804_v29 = vmul.f32 0.0051020407, %v7800_v7  ;;  %v1474_v52 = vsel %vm273_vm0, %v1195_v61, 0.0  ;;  %v1471_v7 = vadd.f32 %v1470_v9, %v1192_v19  ;;  %v6805_v19 = vld [vmem:[%s15146_s0 + $0x110] sm:$0xff] }
 0x111   :  { %1456 = vadd.xlane.f32.xlu1 %v1455_v34  ;;  %15569 = vst [vmem:[#allocation41_spill] sm:$0xff] %v8364_v48  ;;  %15570 = vst [vmem:[#allocation42_spill] sm:$0xff] %v8371_v30  ;;  %v8376_v34 = vsub.f32 %v6800_v43, %v800_v45  ;;  %v6801_v43 = vld [vmem:[%s15146_s0 + $0xf0] sm:$0xff]  ;;  %v1201_v54 = vmul.f32 %v8364_v48, %v8364_v48  ;;  %v805_v61 = vmul.f32 0.0051020407, %v7794_v2  ;;  %v6806_v2 = vld [vmem:[%s15146_s0 + $0x100] sm:$0xff] }
 0x112   :  { %1452 = vadd.xlane.f32.xlu0 %v1451_v3  ;;  %v8366_v60 = vpop.xlane.xlu1 %544  ;;  %v1466_v3 = vsel %vm273_vm0, %v1191_v47, 0.0  ;;  %v8391_v23 = vsub.f32 %v6801_v43, %v801_v13  ;;  %v8396_v47 = vsub.f32 %v6802_v59, %v800_v45  ;;  %v1196_v13 = vmul.f32 %v8371_v30, %v8371_v30  ;;  %v6803_v45 = vld [vmem:[%s15146_s0 + $0x108] sm:$0xff] }
 0x113   :  { %15571 = vst [vmem:[#allocation43_spill] sm:$0xff] %v8376_v34  ;;  %v8379_v41 = vpop.xlane.xlu0 %540  ;;  %v1467_v40 = vadd.f32 %v1466_v3, %v1190_v33  ;;  %v1199_v43 = vmul.f32 %v8376_v34, %v8376_v34  ;;  %v1478_v3 = vsel %vm273_vm0, %v1197_v37, 0.0  ;;  %v8429_v9 = vsub.f32 %v6805_v19, %v803_v8  ;;  %v6807_v37 = vld [vmem:[%s15146_s0 + $0x128] sm:$0xff] }
 0x114   :  { %15572 = vst [vmem:[#allocation44_spill] sm:$0xff] %v8391_v23  ;;  %15573 = vst [vmem:[#allocation45_spill] sm:$0xff] %v8396_v47  ;;  %v1200_v30 = vmul.f32 %v8391_v23, %v8391_v23  ;;  %v1475_v48 = vadd.f32 %v1474_v52, %v1194_v21  ;;  %v8439_v23 = vsub.f32 %v6807_v37, %v804_v29  ;;  %v807_v34 = vmul.f32 0.0051020407, %v7812_v15  ;;  %v6808_v15 = vld [vmem:[%s15146_s0 + $0x138] sm:$0xff] }
 0x115   :  { %1464 = vadd.xlane.f32.xlu1 %v1463_v14  ;;  %v8411_v14 = vsub.f32 %v6803_v45, %v802_v46  ;;  %v1198_v45 = vmul.f32 %v8396_v47, %v8396_v47  ;;  %15576 = vst [vmem:[#allocation48_spill] sm:$0xff] %v8429_v9  ;;  %v806_v21 = vmul.f32 0.0051020407, %v7818_v20  ;;  %v1482_v19 = vsel %vm273_vm0, %v1199_v43, 0.0  ;;  %v6809_v20 = vld [vmem:[%s15146_s0 + $0x120] sm:$0xff] }
 0x116   :  { %1460 = vadd.xlane.f32.xlu0 %v1459_v63  ;;  %v8401_v12 = vpop.xlane.xlu1 %552  ;;  %v6804_v63 = vld [vmem:[%s15146_s0 + $0x118] sm:$0xff]  ;;  %15578 = vst [vmem:[#allocation50_spill] sm:$0xff] %v8439_v23  ;;  %v8463_v37 = vsub.f32 %v6809_v20, %v804_v29  ;;  %v808_v20 = vmul.f32 0.0051020407, %v7836_v32  ;;  %v6814_v32 = vld [vmem:[%s15146_s0 + $0x140] sm:$0xff] }
 0x117   :  { %15574 = vst [vmem:[#allocation46_spill] sm:$0xff] %v8411_v14  ;;  %v8413_v59 = vpop.xlane.xlu0 %548  ;;  %v8418_v33 = vsub.f32 %v6804_v63, %v803_v8  ;;  %v8434_v63 = vsub.f32 %v6806_v2, %v802_v46  ;;  %v1486_v8 = vsel %vm273_vm0, %v1201_v54, 0.0  ;;  %v1203_v52 = vmul.f32 %v8411_v14, %v8411_v14 }
 0x118   :  { %v1204_v54 = vmul.f32 %v8429_v9, %v8429_v9  ;;  %15580 = vst [vmem:[#allocation52_spill] sm:$0xff] %v8463_v37  ;;  %v1483_v14 = vadd.f32 %v1482_v19, %v1198_v45  ;;  %v809_v19 = vmul.f32 0.0051020407, %v7830_v27 }
 0x119   :  { %15575 = vst [vmem:[#allocation47_spill] sm:$0xff] %v8418_v33  ;;  %1472 = vadd.xlane.f32.xlu1 %v1471_v7  ;;  %15577 = vst [vmem:[#allocation49_spill] sm:$0xff] %v8434_v63  ;;  %v1479_v7 = vadd.f32 %v1478_v3, %v1196_v13  ;;  %v1205_v2 = vmul.f32 %v8418_v33, %v8418_v33  ;;  %v1487_v13 = vadd.f32 %v1486_v8, %v1200_v30  ;;  %v6811_v30 = vld [vmem:[%s15146_s0 + $0x130] sm:$0xff]  ;;  %v6812_v8 = vld [vmem:[%s15146_s0 + $0x148] sm:$0xff] }
 0x11a   :  { %1468 = vadd.xlane.f32.xlu0 %v1467_v40  ;;  %v8442_v47 = vpop.xlane.xlu1 %560  ;;  %v8456_v40 = vsub.f32 %v6808_v15, %v805_v61  ;;  %v1202_v43 = vmul.f32 %v8434_v63, %v8434_v63  ;;  %v1207_v3 = vmul.f32 %v8439_v23, %v8439_v23  ;;  %v6810_v15 = vld [vmem:[%s15146_s0 + $0x158] sm:$0xff]  ;;  %v8479_v29 = vsub.f32 %v6811_v30, %v805_v61 }
 0x11b   :  { %v8448_v46 = vpop.xlane.xlu0 %556  ;;  %v8472_v33 = vsub.f32 %v6810_v15, %v807_v34  ;;  %v1494_v61 = vsel %vm273_vm0, %v1205_v2, 0.0  ;;  %v1206_v30 = vmul.f32 %v8463_v37, %v8463_v37  ;;  %v810_v2 = vmul.f32 0.0051020407, %v7854_v49 }
 0x11c   :  { %15579 = vst [vmem:[#allocation51_spill] sm:$0xff] %v8456_v40  ;;  %15582 = vst [vmem:[#allocation54_spill] sm:$0xff] %v8479_v29  ;;  %v1209_v45 = vmul.f32 %v8456_v40, %v8456_v40  ;;  %v1498_v63 = vsel %vm273_vm0, %v1207_v3, 0.0  ;;  %v1495_v49 = vadd.f32 %v1494_v61, %v1204_v54  ;;  %v811_v3 = vmul.f32 0.0051020407, %v7848_v42  ;;  %v6817_v54 = vld [vmem:[%s15146_s0 + $0x170] sm:$0xff] }
 0x11d   :  { %1480 = vadd.xlane.f32.xlu1 %v1479_v7  ;;  %15581 = vst [vmem:[#allocation53_spill] sm:$0xff] %v8472_v33  ;;  %v8484_v7 = vsub.f32 %v6812_v8, %v806_v21  ;;  %v6813_v8 = vld [vmem:[%s15146_s0 + $0x150] sm:$0xff]  ;;  %v1213_v27 = vmul.f32 %v8472_v33, %v8472_v33  ;;  %v8537_v61 = vsub.f32 %v6817_v54, %v809_v19  ;;  %v6818_v42 = vld [vmem:[%s15146_s0 + $0x160] sm:$0xff] }
 0x11e   :  { %1476 = vadd.xlane.f32.xlu0 %v1475_v48  ;;  %v8474_v9 = vpop.xlane.xlu1 %568  ;;  %v1490_v48 = vsel %vm273_vm0, %v1203_v52, 0.0  ;;  %v8499_v23 = vsub.f32 %v6813_v8, %v807_v34  ;;  %v8504_v52 = vsub.f32 %v6814_v32, %v806_v21  ;;  %v1208_v34 = vmul.f32 %v8479_v29, %v8479_v29  ;;  %v6815_v21 = vld [vmem:[%s15146_s0 + $0x168] sm:$0xff] }
 0x11f   :  { %15583 = vst [vmem:[#allocation55_spill] sm:$0xff] %v8484_v7  ;;  %v8487_v15 = vpop.xlane.xlu0 %564  ;;  %v1491_v37 = vadd.f32 %v1490_v48, %v1202_v43  ;;  %v1211_v8 = vmul.f32 %v8484_v7, %v8484_v7  ;;  %v1502_v48 = vsel %vm273_vm0, %v1209_v45, 0.0  ;;  %15588 = vst [vmem:[#allocation60_spill] sm:$0xff] %v8537_v61  ;;  %v1499_v33 = vadd.f32 %v1498_v63, %v1206_v30  ;;  %v6819_v45 = vld [vmem:[%s15146_s0 + $0x188] sm:$0xff] }
 0x120   :  { %15584 = vst [vmem:[#allocation56_spill] sm:$0xff] %v8499_v23  ;;  %15585 = vst [vmem:[#allocation57_spill] sm:$0xff] %v8504_v52  ;;  %v1212_v29 = vmul.f32 %v8499_v23, %v8499_v23  ;;  %v8547_v23 = vsub.f32 %v6819_v45, %v810_v2  ;;  %v813_v7 = vmul.f32 0.0051020407, %v7866_v58  ;;  %v812_v30 = vmul.f32 0.0051020407, %v7872_v0 }
 0x121   :  { %1488 = vadd.xlane.f32.xlu1 %v1487_v13  ;;  %v8519_v13 = vsub.f32 %v6815_v21, %v808_v20  ;;  %v1210_v21 = vmul.f32 %v8504_v52, %v8504_v52  ;;  %v1506_v54 = vsel %vm273_vm0, %v1211_v8, 0.0  ;;  %v6820_v58 = vld [vmem:[%s15146_s0 + $0x198] sm:$0xff]  ;;  %v6821_v0 = vld [vmem:[%s15146_s0 + $0x180] sm:$0xff] }
 0x122   :  { %1484 = vadd.xlane.f32.xlu0 %v1483_v14  ;;  %v8509_v40 = vpop.xlane.xlu1 %576  ;;  %v6816_v14 = vld [vmem:[%s15146_s0 + $0x178] sm:$0xff]  ;;  %15590 = vst [vmem:[#allocation62_spill] sm:$0xff] %v8547_v23  ;;  %v8571_v45 = vsub.f32 %v6821_v0, %v810_v2  ;;  %v814_v0 = vmul.f32 0.0051020407, %v7890_v16  ;;  %v6826_v16 = vld [vmem:[%s15146_s0 + $0x1a0] sm:$0xff] }
 0x123   :  { %15586 = vst [vmem:[#allocation58_spill] sm:$0xff] %v8519_v13  ;;  %v8521_v32 = vpop.xlane.xlu0 %572  ;;  %v8526_v43 = vsub.f32 %v6816_v14, %v809_v19  ;;  %v8542_v14 = vsub.f32 %v6818_v42, %v808_v20  ;;  %v1510_v19 = vsel %vm273_vm0, %v1213_v27, 0.0  ;;  %v1215_v63 = vmul.f32 %v8519_v13, %v8519_v13 }
 0x124   :  { %v1216_v27 = vmul.f32 %v8537_v61, %v8537_v61  ;;  %15592 = vst [vmem:[#allocation64_spill] sm:$0xff] %v8571_v45  ;;  %v1507_v13 = vadd.f32 %v1506_v54, %v1210_v21  ;;  %v815_v54 = vmul.f32 0.0051020407, %v7884_v10 }
 0x125   :  { %15587 = vst [vmem:[#allocation59_spill] sm:$0xff] %v8526_v43  ;;  %1496 = vadd.xlane.f32.xlu1 %v1495_v49  ;;  %15589 = vst [vmem:[#allocation61_spill] sm:$0xff] %v8542_v14  ;;  %v1503_v49 = vadd.f32 %v1502_v48, %v1208_v34  ;;  %v1217_v42 = vmul.f32 %v8526_v43, %v8526_v43  ;;  %v1511_v34 = vadd.f32 %v1510_v19, %v1212_v29  ;;  %v6823_v29 = vld [vmem:[%s15146_s0 + $0x190] sm:$0xff]  ;;  %v6824_v19 = vld [vmem:[%s15146_s0 + $0x1a8] sm:$0xff] }
 0x126   :  { %1492 = vadd.xlane.f32.xlu0 %v1491_v37  ;;  %v8550_v52 = vpop.xlane.xlu1 %584  ;;  %v8564_v37 = vsub.f32 %v6820_v58, %v811_v3  ;;  %v1214_v8 = vmul.f32 %v8542_v14, %v8542_v14  ;;  %v1219_v48 = vmul.f32 %v8547_v23, %v8547_v23  ;;  %v6822_v58 = vld [vmem:[%s15146_s0 + $0x1b8] sm:$0xff]  ;;  %v8587_v2 = vsub.f32 %v6823_v29, %v811_v3 }
 0x127   :  { %v8556_v20 = vpop.xlane.xlu0 %580  ;;  %v8580_v43 = vsub.f32 %v6822_v58, %v813_v7  ;;  %v1518_v3 = vsel %vm273_vm0, %v1217_v42, 0.0  ;;  %v1218_v29 = vmul.f32 %v8571_v45, %v8571_v45  ;;  %v816_v42 = vmul.f32 0.0051020407, %v7908_v31 }
 0x128   :  { %15591 = vst [vmem:[#allocation63_spill] sm:$0xff] %v8564_v37  ;;  %15594 = vst [vmem:[#allocation66_spill] sm:$0xff] %v8587_v2  ;;  %v1221_v21 = vmul.f32 %v8564_v37, %v8564_v37  ;;  %v1522_v14 = vsel %vm273_vm0, %v1219_v48, 0.0  ;;  %v1519_v31 = vadd.f32 %v1518_v3, %v1216_v27  ;;  %v817_v48 = vmul.f32 0.0051020407, %v7902_v25  ;;  %v6829_v27 = vld [vmem:[%s15146_s0 + $0x1d0] sm:$0xff] }
 0x129   :  { %1504 = vadd.xlane.f32.xlu1 %v1503_v49  ;;  %15593 = vst [vmem:[#allocation65_spill] sm:$0xff] %v8580_v43  ;;  %v8592_v49 = vsub.f32 %v6824_v19, %v812_v30  ;;  %v6825_v19 = vld [vmem:[%s15146_s0 + $0x1b0] sm:$0xff]  ;;  %v1225_v10 = vmul.f32 %v8580_v43, %v8580_v43  ;;  %v8645_v3 = vsub.f32 %v6829_v27, %v815_v54  ;;  %v6830_v25 = vld [vmem:[%s15146_s0 + $0x1c0] sm:$0xff] }
 0x12a   :  { %1500 = vadd.xlane.f32.xlu0 %v1499_v33  ;;  %v8582_v61 = vpop.xlane.xlu1 %592  ;;  %v1514_v33 = vsel %vm273_vm0, %v1215_v63, 0.0  ;;  %v8607_v23 = vsub.f32 %v6825_v19, %v813_v7  ;;  %v8612_v63 = vsub.f32 %v6826_v16, %v812_v30  ;;  %v1220_v7 = vmul.f32 %v8587_v2, %v8587_v2  ;;  %v6827_v30 = vld [vmem:[%s15146_s0 + $0x1c8] sm:$0xff] }
 0x12b   :  { %15595 = vst [vmem:[#allocation67_spill] sm:$0xff] %v8592_v49  ;;  %v8595_v58 = vpop.xlane.xlu0 %588  ;;  %v1515_v45 = vadd.f32 %v1514_v33, %v1214_v8  ;;  %v1223_v19 = vmul.f32 %v8592_v49, %v8592_v49  ;;  %v1526_v33 = vsel %vm273_vm0, %v1221_v21, 0.0  ;;  %15600 = vst [vmem:[#allocation72_spill] sm:$0xff] %v8645_v3  ;;  %v1523_v43 = vadd.f32 %v1522_v14, %v1218_v29  ;;  %v6831_v21 = vld [vmem:[%s15146_s0 + $0x1e8] sm:$0xff] }
 0x12c   :  { %15596 = vst [vmem:[#allocation68_spill] sm:$0xff] %v8607_v23  ;;  %15597 = vst [vmem:[#allocation69_spill] sm:$0xff] %v8612_v63  ;;  %v1224_v2 = vmul.f32 %v8607_v23, %v8607_v23  ;;  %v8655_v23 = vsub.f32 %v6831_v21, %v816_v42  ;;  %v819_v49 = vmul.f32 0.0051020407, %v7920_v44  ;;  %v818_v29 = vmul.f32 0.0051020407, %v7926_v51 }
 0x12d   :  { %1512 = vadd.xlane.f32.xlu1 %v1511_v34  ;;  %v8627_v34 = vsub.f32 %v6827_v30, %v814_v0  ;;  %v1222_v30 = vmul.f32 %v8612_v63, %v8612_v63  ;;  %v1530_v27 = vsel %vm273_vm0, %v1223_v19, 0.0  ;;  %v6832_v44 = vld [vmem:[%s15146_s0 + $0x1f8] sm:$0xff]  ;;  %v6833_v51 = vld [vmem:[%s15146_s0 + $0x1e0] sm:$0xff] }
 0x12e   :  { %1508 = vadd.xlane.f32.xlu0 %v1507_v13  ;;  %v8617_v37 = vpop.xlane.xlu1 %600  ;;  %v6828_v13 = vld [vmem:[%s15146_s0 + $0x1d8] sm:$0xff]  ;;  %15602 = vst [vmem:[#allocation74_spill] sm:$0xff] %v8655_v23  ;;  %v8679_v21 = vsub.f32 %v6833_v51, %v816_v42  ;;  %v820_v51 = vmul.f32 0.0051020407, %v7944_v6  ;;  %v6838_v6 = vld [vmem:[%s15146_s0 + $0x200] sm:$0xff] }
 0x12f   :  { %15598 = vst [vmem:[#allocation70_spill] sm:$0xff] %v8627_v34  ;;  %v8629_v16 = vpop.xlane.xlu0 %596  ;;  %v8634_v8 = vsub.f32 %v6828_v13, %v815_v54  ;;  %v8650_v13 = vsub.f32 %v6830_v25, %v814_v0  ;;  %v1534_v54 = vsel %vm273_vm0, %v1225_v10, 0.0  ;;  %v1227_v14 = vmul.f32 %v8627_v34, %v8627_v34 }
 0x130   :  { %v1228_v10 = vmul.f32 %v8645_v3, %v8645_v3  ;;  %15604 = vst [vmem:[#allocation76_spill] sm:$0xff] %v8679_v21  ;;  %v1531_v34 = vadd.f32 %v1530_v27, %v1222_v30  ;;  %v821_v27 = vmul.f32 0.0051020407, %v7938_v62 }
 0x131   :  { %15599 = vst [vmem:[#allocation71_spill] sm:$0xff] %v8634_v8  ;;  %1520 = vadd.xlane.f32.xlu1 %v1519_v31  ;;  %15601 = vst [vmem:[#allocation73_spill] sm:$0xff] %v8650_v13  ;;  %v1527_v31 = vadd.f32 %v1526_v33, %v1220_v7  ;;  %v1229_v25 = vmul.f32 %v8634_v8, %v8634_v8  ;;  %v1535_v7 = vadd.f32 %v1534_v54, %v1224_v2  ;;  %v6835_v2 = vld [vmem:[%s15146_s0 + $0x1f0] sm:$0xff]  ;;  %v6836_v54 = vld [vmem:[%s15146_s0 + $0x208] sm:$0xff] }
 0x132   :  { %1516 = vadd.xlane.f32.xlu0 %v1515_v45  ;;  %v8658_v63 = vpop.xlane.xlu1 %608  ;;  %v8672_v45 = vsub.f32 %v6832_v44, %v817_v48  ;;  %v1226_v19 = vmul.f32 %v8650_v13, %v8650_v13  ;;  %v1231_v33 = vmul.f32 %v8655_v23, %v8655_v23  ;;  %v6834_v44 = vld [vmem:[%s15146_s0 + $0x218] sm:$0xff]  ;;  %v8695_v42 = vsub.f32 %v6835_v2, %v817_v48 }
 0x133   :  { %v8664_v0 = vpop.xlane.xlu0 %604  ;;  %v8688_v8 = vsub.f32 %v6834_v44, %v819_v49  ;;  %v1542_v48 = vsel %vm273_vm0, %v1229_v25, 0.0  ;;  %v1230_v2 = vmul.f32 %v8679_v21, %v8679_v21  ;;  %v822_v25 = vmul.f32 0.0051020407, %v7962_v26 }
 0x134   :  { %15603 = vst [vmem:[#allocation75_spill] sm:$0xff] %v8672_v45  ;;  %15606 = vst [vmem:[#allocation78_spill] sm:$0xff] %v8695_v42  ;;  %v1233_v30 = vmul.f32 %v8672_v45, %v8672_v45  ;;  %v1546_v13 = vsel %vm273_vm0, %v1231_v33, 0.0  ;;  %v1543_v26 = vadd.f32 %v1542_v48, %v1228_v10  ;;  %v823_v33 = vmul.f32 0.0051020407, %v7956_v18  ;;  %v6841_v10 = vld [vmem:[%s15146_s0 + $0x230] sm:$0xff] }
 0x135   :  { %1528 = vadd.xlane.f32.xlu1 %v1527_v31  ;;  %15605 = vst [vmem:[#allocation77_spill] sm:$0xff] %v8688_v8  ;;  %v8700_v31 = vsub.f32 %v6836_v54, %v818_v29  ;;  %v6837_v54 = vld [vmem:[%s15146_s0 + $0x210] sm:$0xff]  ;;  %v1237_v62 = vmul.f32 %v8688_v8, %v8688_v8  ;;  %v8753_v48 = vsub.f32 %v6841_v10, %v821_v27  ;;  %v6842_v18 = vld [vmem:[%s15146_s0 + $0x220] sm:$0xff] }
 0x136   :  { %1524 = vadd.xlane.f32.xlu0 %v1523_v43  ;;  %v8690_v3 = vpop.xlane.xlu1 %616  ;;  %v1538_v43 = vsel %vm273_vm0, %v1227_v14, 0.0  ;;  %v8715_v23 = vsub.f32 %v6837_v54, %v819_v49  ;;  %v8720_v14 = vsub.f32 %v6838_v6, %v818_v29  ;;  %v1232_v49 = vmul.f32 %v8695_v42, %v8695_v42  ;;  %v6839_v29 = vld [vmem:[%s15146_s0 + $0x228] sm:$0xff] }
 0x137   :  { %15607 = vst [vmem:[#allocation79_spill] sm:$0xff] %v8700_v31  ;;  %v8703_v44 = vpop.xlane.xlu0 %612  ;;  %v1539_v21 = vadd.f32 %v1538_v43, %v1226_v19  ;;  %v1235_v54 = vmul.f32 %v8700_v31, %v8700_v31  ;;  %v1550_v43 = vsel %vm273_vm0, %v1233_v30, 0.0  ;;  %15612 = vst [vmem:[#allocation84_spill] sm:$0xff] %v8753_v48  ;;  %v1547_v8 = vadd.f32 %v1546_v13, %v1230_v2  ;;  %v6843_v30 = vld [vmem:[%s15146_s0 + $0x248] sm:$0xff] }
 0x138   :  { %15608 = vst [vmem:[#allocation80_spill] sm:$0xff] %v8715_v23  ;;  %15609 = vst [vmem:[#allocation81_spill] sm:$0xff] %v8720_v14  ;;  %v1236_v42 = vmul.f32 %v8715_v23, %v8715_v23  ;;  %v8763_v23 = vsub.f32 %v6843_v30, %v822_v25  ;;  %v825_v31 = vmul.f32 0.0051020407, %v7974_v39  ;;  %v824_v2 = vmul.f32 0.0051020407, %v7980_v50 }
 0x139   :  { %1536 = vadd.xlane.f32.xlu1 %v1535_v7  ;;  %v8735_v7 = vsub.f32 %v6839_v29, %v820_v51  ;;  %v1234_v29 = vmul.f32 %v8720_v14, %v8720_v14  ;;  %v1554_v10 = vsel %vm273_vm0, %v1235_v54, 0.0  ;;  %v6844_v39 = vld [vmem:[%s15146_s0 + $0x258] sm:$0xff]  ;;  %v6845_v50 = vld [vmem:[%s15146_s0 + $0x240] sm:$0xff] }
 0x13a   :  { %1532 = vadd.xlane.f32.xlu0 %v1531_v34  ;;  %v8725_v45 = vpop.xlane.xlu1 %624  ;;  %v6840_v34 = vld [vmem:[%s15146_s0 + $0x238] sm:$0xff]  ;;  %15614 = vst [vmem:[#allocation86_spill] sm:$0xff] %v8763_v23  ;;  %v8787_v30 = vsub.f32 %v6845_v50, %v822_v25  ;;  %v826_v50 = vmul.f32 0.0051020407, %v7998_v11  ;;  %v6850_v11 = vld [vmem:[%s15146_s0 + $0x260] sm:$0xff] }
 0x13b   :  { %15610 = vst [vmem:[#allocation82_spill] sm:$0xff] %v8735_v7  ;;  %v8737_v6 = vpop.xlane.xlu0 %620  ;;  %v8742_v19 = vsub.f32 %v6840_v34, %v821_v27  ;;  %v8758_v34 = vsub.f32 %v6842_v18, %v820_v51  ;;  %v1558_v27 = vsel %vm273_vm0, %v1237_v62, 0.0  ;;  %v1239_v13 = vmul.f32 %v8735_v7, %v8735_v7 }
 0x13c   :  { %v1240_v62 = vmul.f32 %v8753_v48, %v8753_v48  ;;  %15616 = vst [vmem:[#allocation88_spill] sm:$0xff] %v8787_v30  ;;  %v1555_v7 = vadd.f32 %v1554_v10, %v1234_v29  ;;  %v827_v10 = vmul.f32 0.0051020407, %v7992_v1 }
 0x13d   :  { %15611 = vst [vmem:[#allocation83_spill] sm:$0xff] %v8742_v19  ;;  %1544 = vadd.xlane.f32.xlu1 %v1543_v26  ;;  %15613 = vst [vmem:[#allocation85_spill] sm:$0xff] %v8758_v34  ;;  %v1551_v26 = vadd.f32 %v1550_v43, %v1232_v49  ;;  %v1241_v18 = vmul.f32 %v8742_v19, %v8742_v19  ;;  %v1559_v49 = vadd.f32 %v1558_v27, %v1236_v42  ;;  %v6847_v42 = vld [vmem:[%s15146_s0 + $0x250] sm:$0xff]  ;;  %v6848_v27 = vld [vmem:[%s15146_s0 + $0x268] sm:$0xff] }
 0x13e   :  { %1540 = vadd.xlane.f32.xlu0 %v1539_v21  ;;  %v8766_v14 = vpop.xlane.xlu1 %632  ;;  %v8780_v21 = vsub.f32 %v6844_v39, %v823_v33  ;;  %v1238_v54 = vmul.f32 %v8758_v34, %v8758_v34  ;;  %v1243_v43 = vmul.f32 %v8763_v23, %v8763_v23  ;;  %v6846_v39 = vld [vmem:[%s15146_s0 + $0x278] sm:$0xff]  ;;  %v8803_v25 = vsub.f32 %v6847_v42, %v823_v33 }
 0x13f   :  { %v8772_v51 = vpop.xlane.xlu0 %628  ;;  %v8796_v19 = vsub.f32 %v6846_v39, %v825_v31  ;;  %v1566_v33 = vsel %vm273_vm0, %v1241_v18, 0.0  ;;  %v1242_v42 = vmul.f32 %v8787_v30, %v8787_v30  ;;  %v828_v18 = vmul.f32 0.0051020407, %v8016_v36 }
 0x140   :  { %15615 = vst [vmem:[#allocation87_spill] sm:$0xff] %v8780_v21  ;;  %15618 = vst [vmem:[#allocation90_spill] sm:$0xff] %v8803_v25  ;;  %v1245_v29 = vmul.f32 %v8780_v21, %v8780_v21  ;;  %v1570_v34 = vsel %vm273_vm0, %v1243_v43, 0.0  ;;  %v1567_v36 = vadd.f32 %v1566_v33, %v1240_v62  ;;  %v829_v43 = vmul.f32 0.0051020407, %v8010_v24  ;;  %v6853_v62 = vld [vmem:[%s15146_s0 + $0x290] sm:$0xff] }
 0x141   :  { %1552 = vadd.xlane.f32.xlu1 %v1551_v26  ;;  %15617 = vst [vmem:[#allocation89_spill] sm:$0xff] %v8796_v19  ;;  %v8808_v26 = vsub.f32 %v6848_v27, %v824_v2  ;;  %v6849_v27 = vld [vmem:[%s15146_s0 + $0x270] sm:$0xff]  ;;  %v1249_v1 = vmul.f32 %v8796_v19, %v8796_v19  ;;  %v8861_v33 = vsub.f32 %v6853_v62, %v827_v10  ;;  %v6854_v24 = vld [vmem:[%s15146_s0 + $0x280] sm:$0xff] }
 0x142   :  { %1548 = vadd.xlane.f32.xlu0 %v1547_v8  ;;  %v8798_v48 = vpop.xlane.xlu1 %640  ;;  %v1562_v8 = vsel %vm273_vm0, %v1239_v13, 0.0  ;;  %v8823_v23 = vsub.f32 %v6849_v27, %v825_v31  ;;  %v8828_v13 = vsub.f32 %v6850_v11, %v824_v2  ;;  %v1244_v31 = vmul.f32 %v8803_v25, %v8803_v25  ;;  %v6851_v2 = vld [vmem:[%s15146_s0 + $0x288] sm:$0xff] }
 0x143   :  { %15619 = vst [vmem:[#allocation91_spill] sm:$0xff] %v8808_v26  ;;  %v8811_v39 = vpop.xlane.xlu0 %636  ;;  %v1563_v30 = vadd.f32 %v1562_v8, %v1238_v54  ;;  %v1247_v27 = vmul.f32 %v8808_v26, %v8808_v26  ;;  %v1574_v8 = vsel %vm273_vm0, %v1245_v29, 0.0  ;;  %15624 = vst [vmem:[#allocation96_spill] sm:$0xff] %v8861_v33  ;;  %v1571_v19 = vadd.f32 %v1570_v34, %v1242_v42  ;;  %v6855_v29 = vld [vmem:[%s15146_s0 + $0x2a8] sm:$0xff]  ;;  %v15627_v42 = vld [vmem:[#allocation2_spill] sm:$0xff] }
 0x144   :  { %15620 = vst [vmem:[#allocation92_spill] sm:$0xff] %v8823_v23  ;;  %15621 = vst [vmem:[#allocation93_spill] sm:$0xff] %v8828_v13  ;;  %v1248_v25 = vmul.f32 %v8823_v23, %v8823_v23  ;;  %v8871_v23 = vsub.f32 %v6855_v29, %v828_v18  ;;  %v831_v26 = vmul.f32 0.0051020407, %v8028_v55  ;;  %v1575_v62 = vadd.f32 %v1574_v8, %v1244_v31  ;;  %v6856_v55 = vld [vmem:[%s15146_s0 + $0x2b8] sm:$0xff] }
 0x145   :  { %1560 = vadd.xlane.f32.xlu1 %v1559_v49  ;;  %v8843_v49 = vsub.f32 %v6851_v2, %v826_v50  ;;  %v1246_v2 = vmul.f32 %v8828_v13, %v8828_v13 }
 0x146   :  { %1556 = vadd.xlane.f32.xlu0 %v1555_v7  ;;  %v8833_v21 = vpop.xlane.xlu1 %648  ;;  %v6852_v7 = vld [vmem:[%s15146_s0 + $0x298] sm:$0xff]  ;;  %15626 = vst [vmem:[#allocation98_spill] sm:$0xff] %v8871_v23  ;;  %v1255_v8 = vmul.f32 %v8871_v23, %v8871_v23 }
 0x147   :  { %15622 = vst [vmem:[#allocation94_spill] sm:$0xff] %v8843_v49  ;;  %v8845_v11 = vpop.xlane.xlu0 %644  ;;  %v8850_v54 = vsub.f32 %v6852_v7, %v827_v10  ;;  %v8866_v7 = vsub.f32 %v6854_v24, %v826_v50  ;;  %v1582_v10 = vsel %vm273_vm0, %v1249_v1, 0.0  ;;  %v1251_v34 = vmul.f32 %v8843_v49, %v8843_v49 }
 0x148   :  { %v1578_v24 = vsel %vm273_vm0, %v1247_v27, 0.0  ;;  %v1252_v1 = vmul.f32 %v8861_v33, %v8861_v33  ;;  %v1583_v31 = vadd.f32 %v1582_v10, %v1248_v25  ;;  %v6859_v25 = vld [vmem:[%s15146_s0 + $0x2b0] sm:$0xff]  ;;  %v6860_v10 = vld [vmem:[%s15146_s0 + $0x2c8] sm:$0xff] }
 0x149   :  { %15623 = vst [vmem:[#allocation95_spill] sm:$0xff] %v8850_v54  ;;  %1568 = vadd.xlane.f32.xlu1 %v1567_v36  ;;  %15625 = vst [vmem:[#allocation97_spill] sm:$0xff] %v8866_v7  ;;  %v830_v36 = vmul.f32 0.0051020407, %v15627_v42  ;;  %v1253_v29 = vmul.f32 %v8850_v54, %v8850_v54  ;;  %v6857_v42 = vld [vmem:[%s15146_s0 + $0x2a0] sm:$0xff]  ;;  %v1250_v27 = vmul.f32 %v8866_v7, %v8866_v7 }
 0x14a   :  { %1564 = vadd.xlane.f32.xlu0 %v1563_v30  ;;  %v8874_v13 = vpop.xlane.xlu1 %656  ;;  %v8888_v30 = vsub.f32 %v6856_v55, %v829_v43  ;;  %v8895_v49 = vsub.f32 %v6857_v42, %v828_v18  ;;  %v6858_v55 = vld [vmem:[%s15146_s0 + $0x2d8] sm:$0xff]  ;;  %v1579_v28 = vadd.f32 %v1578_v24, %v1246_v2  ;;  %v8911_v18 = vsub.f32 %v6859_v25, %v829_v43  ;;  %v15635_v42 = vld [vmem:[#allocation4_spill] sm:$0xff]  ;;  %v15637_v24 = vld [vmem:[#allocation3_spill] sm:$0xff] }
 0x14b   :  { %v8880_v50 = vpop.xlane.xlu0 %652  ;;  %v8904_v54 = vsub.f32 %v6858_v55, %v831_v26  ;;  %v832_v7 = vmul.f32 0.0051020407, %v15635_v42  ;;  %v833_v23 = vmul.f32 0.0051020407, %v15637_v24  ;;  %v1590_v43 = vsel %vm273_vm0, %v1253_v29, 0.0  ;;  %v15640_v29 = vld [vmem:[#allocation6_spill] sm:$0xff] }
 0x14c   :  { %15628 = vst [vmem:[#allocation2_spill] sm:$0xff] %v8880_v50  ;;  %15629 = vst [vmem:[#allocation99_spill] sm:$0xff] %v8888_v30  ;;  %v1257_v2 = vmul.f32 %v8888_v30, %v8888_v30  ;;  %v1254_v25 = vmul.f32 %v8895_v49, %v8895_v49  ;;  %v834_v30 = vmul.f32 0.0051020407, %v15640_v29  ;;  %v1594_v50 = vsel %vm273_vm0, %v1255_v8, 0.0 }
 0x14d   :  { %15630 = vst [vmem:[#allocation100_spill] sm:$0xff] %v8895_v49  ;;  %1576 = vadd.xlane.f32.xlu1 %v1575_v62  ;;  %15631 = vst [vmem:[#allocation101_spill] sm:$0xff] %v8904_v54  ;;  %v8916_v62 = vsub.f32 %v6860_v10, %v830_v36  ;;  %v6861_v10 = vld [vmem:[%s15146_s0 + $0x2d0] sm:$0xff]  ;;  %v1261_v24 = vmul.f32 %v8904_v54, %v8904_v54 }
 0x14e   :  { %1572 = vadd.xlane.f32.xlu0 %v1571_v19  ;;  %v8906_v33 = vpop.xlane.xlu1 %664  ;;  %15633 = vst [vmem:[#allocation103_spill] sm:$0xff] %v8911_v18  ;;  %v1586_v19 = vsel %vm273_vm0, %v1251_v34, 0.0  ;;  %v6862_v34 = vld [vmem:[%s15146_s0 + $0x2c0] sm:$0xff] }
 0x14f   :  { %15632 = vst [vmem:[#allocation102_spill] sm:$0xff] %v8906_v33  ;;  %15634 = vst [vmem:[#allocation104_spill] sm:$0xff] %v8916_v62  ;;  %v8919_v55 = vpop.xlane.xlu0 %660  ;;  %v8931_v33 = vsub.f32 %v6861_v10, %v831_v26  ;;  %v8936_v42 = vsub.f32 %v6862_v34, %v830_v36  ;;  %v1256_v26 = vmul.f32 %v8911_v18, %v8911_v18  ;;  %v6863_v36 = vld [vmem:[%s15146_s0 + $0x2e8] sm:$0xff]  ;;  %v1598_v18 = vsel %vm273_vm0, %v1257_v2, 0.0 }
 0x150   :  { %15636 = vst [vmem:[#allocation4_spill] sm:$0xff] %v8919_v55  ;;  %v1587_v55 = vadd.f32 %v1586_v19, %v1250_v27  ;;  %v1259_v10 = vmul.f32 %v8916_v62, %v8916_v62  ;;  %v6864_v27 = vld [vmem:[%s15146_s0 + $0x2f8] sm:$0xff]  ;;  %v1595_v62 = vadd.f32 %v1594_v50, %v1254_v25  ;;  %v6867_v2 = vld [vmem:[%s15146_s0 + $0x308] sm:$0xff]  ;;  %v15651_v25 = vld [vmem:[#allocation8_spill] sm:$0xff] }
 0x151   :  { %15638 = vst [vmem:[#allocation3_spill] sm:$0xff] %v8931_v33  ;;  %15639 = vst [vmem:[#allocation105_spill] sm:$0xff] %v8936_v42  ;;  %1584 = vadd.xlane.f32.xlu1 %v1583_v31  ;;  %v8951_v31 = vsub.f32 %v6863_v36, %v832_v7  ;;  %v8958_v8 = vsub.f32 %v6864_v27, %v833_v23  ;;  %v15645_v19 = vld [vmem:[#allocation5_spill] sm:$0xff]  ;;  %v1260_v54 = vmul.f32 %v8931_v33, %v8931_v33  ;;  %v6866_v27 = vld [vmem:[%s15146_s0 + $0x2e0] sm:$0xff] }
 0x152   :  { %1580 = vadd.xlane.f32.xlu0 %v1579_v28  ;;  %v8941_v49 = vpop.xlane.xlu1 %672  ;;  %v1591_v28 = vadd.f32 %v1590_v43, %v1252_v1  ;;  %v835_v29 = vmul.f32 0.0051020407, %v15645_v19  ;;  %v1258_v36 = vmul.f32 %v8936_v42, %v8936_v42  ;;  %v6865_v1 = vld [vmem:[%s15146_s0 + $0x2f0] sm:$0xff]  ;;  %v8974_v19 = vsub.f32 %v6866_v27, %v832_v7  ;;  %v15649_v42 = vld [vmem:[#allocation7_spill] sm:$0xff] }
 0x153   :  { %15641 = vst [vmem:[#allocation6_spill] sm:$0xff] %v8941_v49  ;;  %15642 = vst [vmem:[#allocation106_spill] sm:$0xff] %v8951_v31  ;;  %v8953_v34 = vpop.xlane.xlu0 %668  ;;  %v8969_v43 = vsub.f32 %v6865_v1, %v833_v23  ;;  %v8979_v33 = vsub.f32 %v6867_v2, %v834_v30  ;;  %v837_v49 = vmul.f32 0.0051020407, %v15649_v42  ;;  %v1606_v23 = vsel %vm273_vm0, %v1261_v24, 0.0 }
 0x154   :  { %15643 = vst [vmem:[#allocation107_spill] sm:$0xff] %v8953_v34  ;;  %15644 = vst [vmem:[#allocation108_spill] sm:$0xff] %v8958_v8  ;;  %v1263_v50 = vmul.f32 %v8951_v31, %v8951_v31  ;;  %v1599_v1 = vadd.f32 %v1598_v18, %v1256_v26  ;;  %v1602_v27 = vsel %vm273_vm0, %v1259_v10, 0.0  ;;  %v1265_v2 = vmul.f32 %v8958_v8, %v8958_v8 }
 0x155   :  { %15646 = vst [vmem:[#allocation5_spill] sm:$0xff] %v8969_v43  ;;  %1592 = vadd.xlane.f32.xlu1 %v1591_v28  ;;  %15647 = vst [vmem:[#allocation109_spill] sm:$0xff] %v8974_v19  ;;  %v836_v28 = vmul.f32 0.0051020407, %v15651_v25  ;;  %v1264_v24 = vmul.f32 %v8969_v43, %v8969_v43  ;;  %v6869_v25 = vld [vmem:[%s15146_s0 + $0x300] sm:$0xff]  ;;  %v1607_v18 = vadd.f32 %v1606_v23, %v1260_v54  ;;  %v6871_v54 = vld [vmem:[%s15146_s0 + $0x310] sm:$0xff] }
 0x156   :  { %15648 = vst [vmem:[#allocation110_spill] sm:$0xff] %v8979_v33  ;;  %1588 = vadd.xlane.f32.xlu0 %v1587_v55  ;;  %v8982_v34 = vpop.xlane.xlu1 %680  ;;  %v6868_v55 = vld [vmem:[%s15146_s0 + $0x318] sm:$0xff]  ;;  %v9003_v31 = vsub.f32 %v6869_v25, %v834_v30  ;;  %v1262_v26 = vmul.f32 %v8974_v19, %v8974_v19  ;;  %v1267_v10 = vmul.f32 %v8979_v33, %v8979_v33  ;;  %v6872_v23 = vld [vmem:[%s15146_s0 + $0x328] sm:$0xff] }
 0x157   :  { %15650 = vst [vmem:[#allocation7_spill] sm:$0xff] %v8982_v34  ;;  %v8988_v7 = vpop.xlane.xlu0 %676  ;;  %v8996_v42 = vsub.f32 %v6868_v55, %v835_v29  ;;  %v6870_v55 = vld [vmem:[%s15146_s0 + $0x338] sm:$0xff]  ;;  %v1603_v34 = vadd.f32 %v1602_v27, %v1258_v36  ;;  %v9019_v30 = vsub.f32 %v6871_v54, %v835_v29  ;;  %v15659_v25 = vld [vmem:[#allocation11_spill] sm:$0xff]  ;;  %v15661_v27 = vld [vmem:[#allocation10_spill] sm:$0xff]  ;;  %v1614_v29 = vsel %vm273_vm0, %v1265_v2, 0.0 }
 0x158   :  { %15652 = vst [vmem:[#allocation8_spill] sm:$0xff] %v8988_v7  ;;  %15654 = vst [vmem:[#allocation112_spill] sm:$0xff] %v9003_v31  ;;  %v9012_v8 = vsub.f32 %v6870_v55, %v837_v49  ;;  %v838_v33 = vmul.f32 0.0051020407, %v15659_v25  ;;  %v839_v19 = vmul.f32 0.0051020407, %v15661_v27  ;;  %v1266_v54 = vmul.f32 %v9003_v31, %v9003_v31 }
 0x159   :  { %15653 = vst [vmem:[#allocation111_spill] sm:$0xff] %v8996_v42  ;;  %1600 = vadd.xlane.f32.xlu1 %v1599_v1  ;;  %15657 = vst [vmem:[#allocation115_spill] sm:$0xff] %v9019_v30  ;;  %v9024_v1 = vsub.f32 %v6872_v23, %v836_v28  ;;  %v1269_v36 = vmul.f32 %v8996_v42, %v8996_v42  ;;  %v6873_v23 = vld [vmem:[%s15146_s0 + $0x330] sm:$0xff]  ;;  %v1618_v7 = vsel %vm273_vm0, %v1267_v10, 0.0 }
 0x15a   :  { %15655 = vst [vmem:[#allocation113_spill] sm:$0xff] %v9012_v8  ;;  %1596 = vadd.xlane.f32.xlu0 %v1595_v62  ;;  %v9014_v43 = vpop.xlane.xlu1 %688  ;;  %v1610_v62 = vsel %vm273_vm0, %v1263_v50, 0.0  ;;  %v6874_v50 = vld [vmem:[%s15146_s0 + $0x320] sm:$0xff]  ;;  %v1273_v27 = vmul.f32 %v9012_v8, %v9012_v8  ;;  %v15664_v2 = vld [vmem:[#allocation16_spill] sm:$0xff] }
 0x15b   :  { %15656 = vst [vmem:[#allocation114_spill] sm:$0xff] %v9014_v43  ;;  %15658 = vst [vmem:[#allocation116_spill] sm:$0xff] %v9024_v1  ;;  %v9027_v55 = vpop.xlane.xlu0 %684  ;;  %v9039_v43 = vsub.f32 %v6873_v23, %v837_v49  ;;  %v9044_v25 = vsub.f32 %v6874_v50, %v836_v28  ;;  %v840_v42 = vmul.f32 0.0051020407, %v15664_v2  ;;  %v1268_v49 = vmul.f32 %v9019_v30, %v9019_v30  ;;  %v6875_v28 = vld [vmem:[%s15146_s0 + $0x348] sm:$0xff] }
 0x15c   :  { %15660 = vst [vmem:[#allocation11_spill] sm:$0xff] %v9027_v55  ;;  %v1611_v55 = vadd.f32 %v1610_v62, %v1262_v26  ;;  %v1271_v23 = vmul.f32 %v9024_v1, %v9024_v1  ;;  %v6876_v26 = vld [vmem:[%s15146_s0 + $0x358] sm:$0xff]  ;;  %v15668_v62 = vld [vmem:[#allocation15_spill] sm:$0xff]  ;;  %v1622_v30 = vsel %vm273_vm0, %v1269_v36, 0.0  ;;  %v1619_v1 = vadd.f32 %v1618_v7, %v1266_v54 }
 0x15d   :  { %15662 = vst [vmem:[#allocation10_spill] sm:$0xff] %v9039_v43  ;;  %15663 = vst [vmem:[#allocation117_spill] sm:$0xff] %v9044_v25  ;;  %1608 = vadd.xlane.f32.xlu1 %v1607_v18  ;;  %v9059_v18 = vsub.f32 %v6875_v28, %v838_v33  ;;  %v9066_v10 = vsub.f32 %v6876_v26, %v839_v19  ;;  %v841_v2 = vmul.f32 0.0051020407, %v15668_v62  ;;  %v6878_v26 = vld [vmem:[%s15146_s0 + $0x340] sm:$0xff]  ;;  %v6879_v36 = vld [vmem:[%s15146_s0 + $0x368] sm:$0xff] }
 0x15e   :  { %1604 = vadd.xlane.f32.xlu0 %v1603_v34  ;;  %v9049_v31 = vpop.xlane.xlu1 %696  ;;  %v1615_v34 = vadd.f32 %v1614_v29, %v1264_v24  ;;  %v1272_v8 = vmul.f32 %v9039_v43, %v9039_v43  ;;  %v1270_v28 = vmul.f32 %v9044_v25, %v9044_v25  ;;  %v6877_v24 = vld [vmem:[%s15146_s0 + $0x350] sm:$0xff]  ;;  %v9082_v62 = vsub.f32 %v6878_v26, %v838_v33 }
 0x15f   :  { %15665 = vst [vmem:[#allocation16_spill] sm:$0xff] %v9059_v18  ;;  %v9061_v50 = vpop.xlane.xlu0 %692  ;;  %15667 = vst [vmem:[#allocation119_spill] sm:$0xff] %v9066_v10  ;;  %v9077_v29 = vsub.f32 %v6877_v24, %v839_v19  ;;  %v9087_v43 = vsub.f32 %v6879_v36, %v840_v42  ;;  %v843_v25 = vmul.f32 0.0051020407, %v8180_v53  ;;  %v1630_v19 = vsel %vm273_vm0, %v1273_v27, 0.0  ;;  %v6880_v53 = vld [vmem:[%s15146_s0 + $0x378] sm:$0xff] }
 0x160   :  { %15666 = vst [vmem:[#allocation118_spill] sm:$0xff] %v9061_v50  ;;  %15670 = vst [vmem:[#allocation120_spill] sm:$0xff] %v9082_v62  ;;  %v1275_v7 = vmul.f32 %v9059_v18, %v9059_v18  ;;  %v842_v54 = vmul.f32 0.0051020407, %v8193_v5  ;;  %v1626_v24 = vsel %vm273_vm0, %v1271_v23, 0.0  ;;  %v1277_v26 = vmul.f32 %v9066_v10, %v9066_v10  ;;  %v6881_v5 = vld [vmem:[%s15146_s0 + $0x360] sm:$0xff] }
 0x161   :  { %15669 = vst [vmem:[#allocation15_spill] sm:$0xff] %v9077_v29  ;;  %1616 = vadd.xlane.f32.xlu1 %v1615_v34  ;;  %15671 = vst [vmem:[#allocation121_spill] sm:$0xff] %v9087_v43  ;;  %v1623_v34 = vadd.f32 %v1622_v30, %v1268_v49  ;;  %v1276_v27 = vmul.f32 %v9077_v29, %v9077_v29  ;;  %v9111_v36 = vsub.f32 %v6881_v5, %v840_v42 }
 0x162   :  { %1612 = vadd.xlane.f32.xlu0 %v1611_v55  ;;  %v9090_v50 = vpop.xlane.xlu1 %704  ;;  %v9104_v55 = vsub.f32 %v6880_v53, %v841_v2  ;;  %v1631_v30 = vadd.f32 %v1630_v19, %v1272_v8  ;;  %v1274_v49 = vmul.f32 %v9082_v62, %v9082_v62  ;;  %v1279_v23 = vmul.f32 %v9087_v43, %v9087_v43  ;;  %v6882_v53 = vld [vmem:[%s15146_s0 + $0x398] sm:$0xff]  ;;  %v6883_v8 = vld [vmem:[%s15146_s0 + $0x370] sm:$0xff]  ;;  %v6884_v19 = vld [vmem:[%s15146_s0 + $0x388] sm:$0xff] }
 0x163   :  { %v9096_v33 = vpop.xlane.xlu0 %700  ;;  %15673 = vst [vmem:[#allocation123_spill] sm:$0xff] %v9111_v36  ;;  %v9120_v10 = vsub.f32 %v6882_v53, %v843_v25  ;;  %v1627_v18 = vadd.f32 %v1626_v24, %v1270_v28  ;;  %v9127_v42 = vsub.f32 %v6883_v8, %v841_v2  ;;  %v844_v5 = vmul.f32 0.0051020407, %v8230_v38 }
 0x164   :  { %15672 = vst [vmem:[#allocation122_spill] sm:$0xff] %v9104_v55  ;;  %v1281_v28 = vmul.f32 %v9104_v55, %v9104_v55  ;;  %v845_v24 = vmul.f32 0.0051020407, %v8224_v57  ;;  %v1638_v2 = vsel %vm273_vm0, %v1277_v26, 0.0  ;;  %v1278_v8 = vmul.f32 %v9111_v36, %v9111_v36  ;;  %v6886_v57 = vld [vmem:[%s15146_s0 + $0x380] sm:$0xff] }
 0x165   :  { %1624 = vadd.xlane.f32.xlu1 %v1623_v34  ;;  %15674 = vst [vmem:[#allocation124_spill] sm:$0xff] %v9120_v10  ;;  %15675 = vst [vmem:[#allocation125_spill] sm:$0xff] %v9127_v42  ;;  %v9132_v34 = vsub.f32 %v6884_v19, %v842_v54  ;;  %v6885_v19 = vld [vmem:[%s15146_s0 + $0x390] sm:$0xff]  ;;  %v846_v38 = vmul.f32 0.0051020407, %v8271_v22  ;;  %v9155_v26 = vsub.f32 %v6886_v57, %v842_v54  ;;  %v1642_v62 = vsel %vm273_vm0, %v1279_v23, 0.0 }
 0x166   :  { %1620 = vadd.xlane.f32.xlu0 %v1619_v1  ;;  %v9122_v29 = vpop.xlane.xlu1 %712  ;;  %v1634_v1 = vsel %vm273_vm0, %v1275_v7, 0.0  ;;  %v9147_v43 = vsub.f32 %v6885_v19, %v843_v25  ;;  %v1285_v7 = vmul.f32 %v9120_v10, %v9120_v10  ;;  %v1280_v25 = vmul.f32 %v9127_v42, %v9127_v42 }
 0x167   :  { %15676 = vst [vmem:[#allocation126_spill] sm:$0xff] %v9132_v34  ;;  %v9135_v53 = vpop.xlane.xlu0 %708  ;;  %15678 = vst [vmem:[#allocation128_spill] sm:$0xff] %v9155_v26  ;;  %v1635_v36 = vadd.f32 %v1634_v1, %v1274_v49  ;;  %v1283_v22 = vmul.f32 %v9132_v34, %v9132_v34  ;;  %v6888_v49 = vld [vmem:[%s15146_s0 + $0x3b8] sm:$0xff]  ;;  %v1646_v42 = vsel %vm273_vm0, %v1281_v28, 0.0  ;;  %v6890_v28 = vld [vmem:[%s15146_s0 + $0x3a0] sm:$0xff] }
 0x168   :  { %15677 = vst [vmem:[#allocation127_spill] sm:$0xff] %v9147_v43  ;;  %v9174_v23 = vsub.f32 %v6888_v49, %v845_v24  ;;  %v15682_v1 = vld [vmem:[#allocation29_spill] sm:$0xff]  ;;  %v1284_v10 = vmul.f32 %v9147_v43, %v9147_v43  ;;  %v1282_v49 = vmul.f32 %v9155_v26, %v9155_v26  ;;  %v848_v43 = vmul.f32 0.0051020407, %v8305_v17 }
 0x169   :  { %1632 = vadd.xlane.f32.xlu1 %v1631_v30  ;;  %v6887_v30 = vld [vmem:[%s15146_s0 + $0x3a8] sm:$0xff]  ;;  %v847_v57 = vmul.f32 0.0051020407, %v15682_v1  ;;  %v9191_v1 = vsub.f32 %v6890_v28, %v844_v5  ;;  %v1650_v28 = vsel %vm273_vm0, %v1283_v22, 0.0 }
 0x16a   :  { %1628 = vadd.xlane.f32.xlu0 %v1627_v18  ;;  %v9157_v55 = vpop.xlane.xlu1 %720  ;;  %v9167_v19 = vsub.f32 %v6887_v30, %v844_v5  ;;  %v1639_v18 = vadd.f32 %v1638_v2, %v1276_v27  ;;  %15681 = vst [vmem:[#allocation131_spill] sm:$0xff] %v9174_v23  ;;  %v6889_v30 = vld [vmem:[%s15146_s0 + $0x3c8] sm:$0xff]  ;;  %v849_v27 = vmul.f32 0.0051020407, %v8293_v56  ;;  %v1643_v2 = vadd.f32 %v1642_v62, %v1278_v8  ;;  %v6891_v56 = vld [vmem:[%s15146_s0 + $0x3b0] sm:$0xff] }
 0x16b   :  { %v9169_v54 = vpop.xlane.xlu0 %716  ;;  %v9183_v34 = vsub.f32 %v6889_v30, %v846_v38  ;;  %15684 = vst [vmem:[#allocation132_spill] sm:$0xff] %v9191_v1  ;;  %v1654_v30 = vsel %vm273_vm0, %v1285_v7, 0.0  ;;  %v9200_v62 = vsub.f32 %v6891_v56, %v845_v24  ;;  %v1647_v5 = vadd.f32 %v1646_v42, %v1280_v25  ;;  %v6893_v24 = vld [vmem:[%s15146_s0 + $0x3c0] sm:$0xff]  ;;  %v6894_v25 = vld [vmem:[%s15146_s0 + $0x3f8] sm:$0xff] }
 0x16c   :  { %15679 = vst [vmem:[#allocation129_spill] sm:$0xff] %v9167_v19  ;;  %15680 = vst [vmem:[#allocation130_spill] sm:$0xff] %v9169_v54  ;;  %v1287_v8 = vmul.f32 %v9167_v19, %v9167_v19  ;;  %v1289_v17 = vmul.f32 %v9174_v23, %v9174_v23  ;;  %v9217_v56 = vsub.f32 %v6893_v24, %v846_v38  ;;  %v6895_v23 = vld [vmem:[%s15146_s0 + $0x3e8] sm:$0xff]  ;;  %v851_v24 = vmul.f32 0.0051020407, %v8334_v4 }
 0x16d   :  { %15683 = vst [vmem:[#allocation29_spill] sm:$0xff] %v9183_v34  ;;  %1640 = vadd.xlane.f32.xlu1 %v1639_v18  ;;  %15685 = vst [vmem:[#allocation133_spill] sm:$0xff] %v9200_v62  ;;  %v1291_v42 = vmul.f32 %v9183_v34, %v9183_v34  ;;  %v9224_v22 = vsub.f32 %v6894_v25, %v849_v27  ;;  %v1655_v26 = vadd.f32 %v1654_v30, %v1284_v10  ;;  %v6896_v10 = vld [vmem:[%s15146_s0 + $0x3d0] sm:$0xff] }
 0x16e   :  { %1636 = vadd.xlane.f32.xlu0 %v1635_v36  ;;  %v9194_v54 = vpop.xlane.xlu1 %728  ;;  %v6892_v36 = vld [vmem:[%s15146_s0 + $0x3d8] sm:$0xff]  ;;  %15687 = vst [vmem:[#allocation135_spill] sm:$0xff] %v9217_v56  ;;  %v9231_v38 = vsub.f32 %v6895_v23, %v848_v43  ;;  %v1651_v34 = vadd.f32 %v1650_v28, %v1282_v49  ;;  %v1288_v25 = vmul.f32 %v9200_v62, %v9200_v62  ;;  %v1658_v23 = vsel %vm273_vm0, %v1287_v8, 0.0  ;;  %v6897_v49 = vld [vmem:[%s15146_s0 + $0x3f0] sm:$0xff]  ;;  %v6898_v8 = vld [vmem:[%s15146_s0 + $0x3e0] sm:$0xff] }
 0x16f   :  { %v9204_v18 = vpop.xlane.xlu0 %724  ;;  %v9212_v7 = vsub.f32 %v6892_v36, %v847_v57  ;;  %15688 = vst [vmem:[#allocation136_spill] sm:$0xff] %v9224_v22  ;;  %v1286_v36 = vmul.f32 %v9191_v1, %v9191_v1  ;;  %v9241_v30 = vsub.f32 %v6896_v10, %v847_v57  ;;  %v9254_v28 = vsub.f32 %v6897_v49, %v849_v27  ;;  %v6899_v27 = vld [vmem:[%s15146_s0 + $0x418] sm:$0xff] }
 0x170   :  { %15689 = vst [vmem:[#allocation137_spill] sm:$0xff] %v9231_v38  ;;  %v1662_v57 = vsel %vm273_vm0, %v1289_v17, 0.0  ;;  %v9262_v10 = vsub.f32 %v6898_v8, %v848_v43  ;;  %v1666_v62 = vsel %vm273_vm0, %v1291_v42, 0.0  ;;  %v9270_v17 = vsub.f32 %v6899_v27, %v851_v24 }
 0x171   :  { %15686 = vst [vmem:[#allocation134_spill] sm:$0xff] %v9212_v7  ;;  %1648 = vadd.xlane.f32.xlu1 %v1647_v5  ;;  %15690 = vst [vmem:[#allocation138_spill] sm:$0xff] %v9241_v30  ;;  %v850_v5 = vmul.f32 0.0051020407, %v8340_v35  ;;  %v1293_v4 = vmul.f32 %v9212_v7, %v9212_v7  ;;  %v1297_v35 = vmul.f32 %v9224_v22, %v9224_v22  ;;  %v852_v49 = vmul.f32 0.0051020407, %v8379_v41 }
 0x172   :  { %1644 = vadd.xlane.f32.xlu0 %v1643_v2  ;;  %v9234_v19 = vpop.xlane.xlu1 %736  ;;  %v1290_v2 = vmul.f32 %v9217_v56, %v9217_v56  ;;  %15691 = vst [vmem:[#allocation139_spill] sm:$0xff] %v9254_v28  ;;  %15692 = vst [vmem:[#allocation140_spill] sm:$0xff] %v9262_v10  ;;  %v1295_v7 = vmul.f32 %v9231_v38, %v9231_v38  ;;  %v1659_v22 = vadd.f32 %v1658_v23, %v1286_v36 }
 0x173   :  { %v9244_v1 = vpop.xlane.xlu0 %732  ;;  %15693 = vst [vmem:[#allocation141_spill] sm:$0xff] %v9270_v17  ;;  %v1292_v43 = vmul.f32 %v9241_v30, %v9241_v30  ;;  %v1663_v38 = vadd.f32 %v1662_v57, %v1288_v25  ;;  %v1296_v27 = vmul.f32 %v9254_v28, %v9254_v28  ;;  %v853_v41 = vmul.f32 0.0051020407, %v8366_v60  ;;  %v6901_v30 = vld [vmem:[%s15146_s0 + $0x410] sm:$0xff]  ;;  %v6902_v25 = vld [vmem:[%s15146_s0 + $0x400] sm:$0xff] }
 0x174   :  { %v1667_v36 = vadd.f32 %v1666_v62, %v1290_v2  ;;  %v1294_v23 = vmul.f32 %v9262_v10, %v9262_v10  ;;  %v9298_v57 = vsub.f32 %v6902_v25, %v850_v5  ;;  %v1678_v60 = vsel %vm273_vm0, %v1297_v35, 0.0 }
 0x175   :  { %1656 = vadd.xlane.f32.xlu1 %v1655_v26  ;;  %v6900_v26 = vld [vmem:[%s15146_s0 + $0x408] sm:$0xff]  ;;  %v1301_v62 = vmul.f32 %v9270_v17, %v9270_v17  ;;  %v854_v35 = vmul.f32 0.0051020407, %v8413_v59  ;;  %v1679_v59 = vadd.f32 %v1678_v60, %v1296_v27 }
 0x176   :  { %1652 = vadd.xlane.f32.xlu0 %v1651_v34  ;;  %v9273_v56 = vpop.xlane.xlu1 %744  ;;  %v9280_v42 = vsub.f32 %v6900_v26, %v850_v5  ;;  %v1670_v34 = vsel %vm273_vm0, %v1293_v4, 0.0  ;;  %v9293_v26 = vsub.f32 %v6901_v30, %v851_v24  ;;  %15696 = vst [vmem:[#allocation144_spill] sm:$0xff] %v9298_v57  ;;  %v6903_v4 = vld [vmem:[%s15146_s0 + $0x428] sm:$0xff]  ;;  %v855_v24 = vmul.f32 0.0051020407, %v8401_v12 }
 0x177   :  { %v9282_v8 = vpop.xlane.xlu0 %740  ;;  %v9306_v2 = vsub.f32 %v6903_v4, %v852_v49  ;;  %v1674_v5 = vsel %vm273_vm0, %v1295_v7, 0.0  ;;  %v1671_v17 = vadd.f32 %v1670_v34, %v1292_v43  ;;  %v6904_v4 = vld [vmem:[%s15146_s0 + $0x438] sm:$0xff]  ;;  %v6905_v7 = vld [vmem:[%s15146_s0 + $0x420] sm:$0xff]  ;;  %v1298_v43 = vmul.f32 %v9298_v57, %v9298_v57 }
 0x178   :  { %15694 = vst [vmem:[#allocation142_spill] sm:$0xff] %v9280_v42  ;;  %15695 = vst [vmem:[#allocation143_spill] sm:$0xff] %v9293_v26  ;;  %v9320_v28 = vsub.f32 %v6904_v4, %v853_v41  ;;  %v1300_v12 = vmul.f32 %v9293_v26, %v9293_v26  ;;  %v6906_v4 = vld [vmem:[%s15146_s0 + $0x458] sm:$0xff] }
 0x179   :  { %1664 = vadd.xlane.f32.xlu1 %v1663_v38  ;;  %15697 = vst [vmem:[#allocation145_spill] sm:$0xff] %v9306_v2  ;;  %v1299_v38 = vmul.f32 %v9280_v42, %v9280_v42  ;;  %v1675_v42 = vadd.f32 %v1674_v5, %v1294_v23  ;;  %v1303_v34 = vmul.f32 %v9306_v2, %v9306_v2  ;;  %v6908_v23 = vld [vmem:[%s15146_s0 + $0x448] sm:$0xff]  ;;  %v856_v5 = vmul.f32 0.0051020407, %v8448_v46 }
 0x17a   :  { %1660 = vadd.xlane.f32.xlu0 %v1659_v22  ;;  %v9309_v30 = vpop.xlane.xlu1 %752  ;;  %15698 = vst [vmem:[#allocation146_spill] sm:$0xff] %v9320_v28  ;;  %v9327_v22 = vsub.f32 %v6905_v7, %v852_v49  ;;  %v9336_v26 = vsub.f32 %v6906_v4, %v855_v24  ;;  %v1686_v49 = vsel %vm273_vm0, %v1301_v62, 0.0  ;;  %v9349_v60 = vsub.f32 %v6908_v23, %v854_v35 }
 0x17b   :  { %v9315_v25 = vpop.xlane.xlu0 %748  ;;  %v1305_v62 = vmul.f32 %v9320_v28, %v9320_v28  ;;  %v857_v4 = vmul.f32 0.0051020407, %v8442_v47  ;;  %v858_v46 = vmul.f32 0.0051020407, %v8487_v15  ;;  %v1687_v2 = vadd.f32 %v1686_v49, %v1300_v12  ;;  %v6910_v47 = vld [vmem:[%s15146_s0 + $0x440] sm:$0xff] }
 0x17c   :  { %15699 = vst [vmem:[#allocation147_spill] sm:$0xff] %v9327_v22  ;;  %15700 = vst [vmem:[#allocation148_spill] sm:$0xff] %v9336_v26  ;;  %v9371_v28 = vsub.f32 %v6910_v47, %v854_v35  ;;  %v1307_v12 = vmul.f32 %v9349_v60, %v9349_v60  ;;  %v859_v35 = vmul.f32 0.0051020407, %v8474_v9 }
 0x17d   :  { %1672 = vadd.xlane.f32.xlu1 %v1671_v17  ;;  %v6907_v17 = vld [vmem:[%s15146_s0 + $0x430] sm:$0xff]  ;;  %15702 = vst [vmem:[#allocation150_spill] sm:$0xff] %v9349_v60 }
 0x17e   :  { %1668 = vadd.xlane.f32.xlu0 %v1667_v36  ;;  %v9338_v10 = vpop.xlane.xlu1 %760  ;;  %v9344_v27 = vsub.f32 %v6907_v17, %v853_v41  ;;  %v1682_v36 = vsel %vm273_vm0, %v1299_v38, 0.0  ;;  %v1302_v41 = vmul.f32 %v9327_v22, %v9327_v22  ;;  %v6909_v17 = vld [vmem:[%s15146_s0 + $0x450] sm:$0xff]  ;;  %v1309_v38 = vmul.f32 %v9336_v26, %v9336_v26  ;;  %15704 = vst [vmem:[#allocation152_spill] sm:$0xff] %v9371_v28 }
 0x17f   :  { %v9352_v7 = vpop.xlane.xlu0 %756  ;;  %v9363_v23 = vsub.f32 %v6909_v17, %v855_v24  ;;  %v1683_v57 = vadd.f32 %v1682_v36, %v1298_v43  ;;  %v1690_v24 = vsel %vm273_vm0, %v1303_v34, 0.0  ;;  %v6912_v43 = vld [vmem:[%s15146_s0 + $0x478] sm:$0xff]  ;;  %v861_v36 = vmul.f32 0.0051020407, %v8509_v40  ;;  %v6914_v40 = vld [vmem:[%s15146_s0 + $0x470] sm:$0xff] }
 0x180   :  { %15701 = vst [vmem:[#allocation149_spill] sm:$0xff] %v9344_v27  ;;  %v1304_v15 = vmul.f32 %v9344_v27, %v9344_v27  ;;  %v9391_v34 = vsub.f32 %v6912_v43, %v857_v4  ;;  %v1694_v17 = vsel %vm273_vm0, %v1305_v62, 0.0  ;;  %v860_v26 = vmul.f32 0.0051020407, %v8521_v32 }
 0x181   :  { %15703 = vst [vmem:[#allocation151_spill] sm:$0xff] %v9363_v23  ;;  %1680 = vadd.xlane.f32.xlu1 %v1679_v59  ;;  %v6911_v59 = vld [vmem:[%s15146_s0 + $0x468] sm:$0xff]  ;;  %v1308_v47 = vmul.f32 %v9363_v23, %v9363_v23  ;;  %v1691_v27 = vadd.f32 %v1690_v24, %v1302_v41  ;;  %v1306_v43 = vmul.f32 %v9371_v28, %v9371_v28  ;;  %v6915_v23 = vld [vmem:[%s15146_s0 + $0x460] sm:$0xff]  ;;  %v1702_v32 = vsel %vm273_vm0, %v1309_v38, 0.0  ;;  %v6916_v41 = vld [vmem:[%s15146_s0 + $0x498] sm:$0xff] }
 0x182   :  { %1676 = vadd.xlane.f32.xlu0 %v1675_v42  ;;  %v9373_v22 = vpop.xlane.xlu1 %768  ;;  %v9383_v49 = vsub.f32 %v6911_v59, %v856_v5  ;;  %15706 = vst [vmem:[#allocation154_spill] sm:$0xff] %v9391_v34  ;;  %v6913_v59 = vld [vmem:[%s15146_s0 + $0x488] sm:$0xff]  ;;  %v9408_v62 = vsub.f32 %v6914_v40, %v857_v4  ;;  %v9413_v60 = vsub.f32 %v6915_v23, %v856_v5  ;;  %v1698_v5 = vsel %vm273_vm0, %v1307_v12, 0.0  ;;  %v6917_v23 = vld [vmem:[%s15146_s0 + $0x480] sm:$0xff] }
 0x183   :  { %v9386_v42 = vpop.xlane.xlu0 %764  ;;  %v9400_v9 = vsub.f32 %v6913_v59, %v858_v46  ;;  %v9423_v4 = vsub.f32 %v6916_v41, %v859_v35  ;;  %v1695_v40 = vadd.f32 %v1694_v17, %v1304_v15  ;;  %v9433_v38 = vsub.f32 %v6917_v23, %v858_v46  ;;  %v6919_v12 = vld [vmem:[%s15146_s0 + $0x4a8] sm:$0xff] }
 0x184   :  { %15705 = vst [vmem:[#allocation153_spill] sm:$0xff] %v9383_v49  ;;  %15708 = vst [vmem:[#allocation156_spill] sm:$0xff] %v9408_v62  ;;  %v9445_v17 = vsub.f32 %v6919_v12, %v860_v26  ;;  %v1703_v46 = vadd.f32 %v1702_v32, %v1308_v47  ;;  %v1312_v23 = vmul.f32 %v9408_v62, %v9408_v62  ;;  %v862_v28 = vmul.f32 0.0051020407, %v8556_v20  ;;  %v6920_v12 = vld [vmem:[%s15146_s0 + $0x490] sm:$0xff] }
 0x185   :  { %15707 = vst [vmem:[#allocation155_spill] sm:$0xff] %v9400_v9  ;;  %1688 = vadd.xlane.f32.xlu1 %v1687_v2  ;;  %15709 = vst [vmem:[#allocation157_spill] sm:$0xff] %v9413_v60  ;;  %v1311_v2 = vmul.f32 %v9383_v49, %v9383_v49  ;;  %v6918_v49 = vld [vmem:[%s15146_s0 + $0x4b8] sm:$0xff]  ;;  %v1315_v15 = vmul.f32 %v9400_v9, %v9400_v9  ;;  %v6921_v47 = vld [vmem:[%s15146_s0 + $0x4b0] sm:$0xff] }
 0x186   :  { %1684 = vadd.xlane.f32.xlu0 %v1683_v57  ;;  %v9415_v59 = vpop.xlane.xlu1 %776  ;;  %15711 = vst [vmem:[#allocation159_spill] sm:$0xff] %v9423_v4  ;;  %v1313_v57 = vmul.f32 %v9391_v34, %v9391_v34  ;;  %15713 = vst [vmem:[#allocation161_spill] sm:$0xff] %v9433_v38  ;;  %v9438_v41 = vsub.f32 %v6918_v49, %v861_v36  ;;  %v863_v34 = vmul.f32 0.0051020407, %v8550_v52 }
 0x187   :  { %15710 = vst [vmem:[#allocation158_spill] sm:$0xff] %v9415_v59  ;;  %v9425_v24 = vpop.xlane.xlu0 %772  ;;  %15715 = vst [vmem:[#allocation163_spill] sm:$0xff] %v9445_v17  ;;  %v1310_v49 = vmul.f32 %v9413_v60, %v9413_v60  ;;  %v1699_v59 = vadd.f32 %v1698_v5, %v1306_v43  ;;  %v1317_v52 = vmul.f32 %v9423_v4, %v9423_v4  ;;  %v6924_v4 = vld [vmem:[%s15146_s0 + $0x4c8] sm:$0xff] }
 0x188   :  { %15712 = vst [vmem:[#allocation160_spill] sm:$0xff] %v9425_v24  ;;  %15714 = vst [vmem:[#allocation162_spill] sm:$0xff] %v9438_v41  ;;  %v9458_v24 = vsub.f32 %v6920_v12, %v859_v35  ;;  %v9465_v32 = vsub.f32 %v6921_v47, %v861_v36  ;;  %v1314_v43 = vmul.f32 %v9433_v38, %v9433_v38  ;;  %v1710_v12 = vsel %vm273_vm0, %v1313_v57, 0.0 }
 0x189   :  { %1696 = vadd.xlane.f32.xlu1 %v1695_v40  ;;  %v1321_v35 = vmul.f32 %v9438_v41, %v9438_v41  ;;  %v6922_v40 = vld [vmem:[%s15146_s0 + $0x4a0] sm:$0xff]  ;;  %v1319_v36 = vmul.f32 %v9445_v17, %v9445_v17  ;;  %v1714_v41 = vsel %vm273_vm0, %v1315_v15, 0.0  ;;  %v865_v57 = vmul.f32 0.0051020407, %v8582_v61 }
 0x18a   :  { %1692 = vadd.xlane.f32.xlu0 %v1691_v27  ;;  %v9453_v9 = vpop.xlane.xlu1 %784  ;;  %15716 = vst [vmem:[#allocation164_spill] sm:$0xff] %v9458_v24  ;;  %15717 = vst [vmem:[#allocation165_spill] sm:$0xff] %v9465_v32  ;;  %v1706_v27 = vsel %vm273_vm0, %v1311_v2, 0.0  ;;  %v9477_v5 = vsub.f32 %v6922_v40, %v860_v26  ;;  %v6923_v2 = vld [vmem:[%s15146_s0 + $0x4d8] sm:$0xff]  ;;  %v9491_v26 = vsub.f32 %v6924_v4, %v862_v28  ;;  %v864_v40 = vmul.f32 0.0051020407, %v8595_v58 }
 0x18b   :  { %v9467_v20 = vpop.xlane.xlu0 %780  ;;  %v9485_v47 = vsub.f32 %v6923_v2, %v863_v34  ;;  %v1707_v17 = vadd.f32 %v1706_v27, %v1310_v49  ;;  %v1316_v2 = vmul.f32 %v9458_v24, %v9458_v24  ;;  %v1320_v15 = vmul.f32 %v9465_v32, %v9465_v32  ;;  %v6925_v58 = vld [vmem:[%s15146_s0 + $0x4d0] sm:$0xff] }
 0x18c   :  { %15718 = vst [vmem:[#allocation166_spill] sm:$0xff] %v9477_v5  ;;  %15720 = vst [vmem:[#allocation168_spill] sm:$0xff] %v9491_v26  ;;  %v1711_v38 = vadd.f32 %v1710_v12, %v1312_v23  ;;  %v1718_v4 = vsel %vm273_vm0, %v1317_v52, 0.0  ;;  %v1318_v61 = vmul.f32 %v9477_v5, %v9477_v5  ;;  %v1715_v49 = vadd.f32 %v1714_v41, %v1314_v43  ;;  %v6926_v23 = vld [vmem:[%s15146_s0 + $0x4c0] sm:$0xff]  ;;  %v6928_v43 = vld [vmem:[%s15146_s0 + $0x4e8] sm:$0xff] }
 0x18d   :  { %15719 = vst [vmem:[#allocation167_spill] sm:$0xff] %v9485_v47  ;;  %1704 = vadd.xlane.f32.xlu1 %v1703_v46  ;;  %v1726_v27 = vsel %vm273_vm0, %v1321_v35, 0.0  ;;  %v1325_v32 = vmul.f32 %v9485_v47, %v9485_v47  ;;  %v9517_v52 = vsub.f32 %v6926_v23, %v862_v28  ;;  %v1722_v12 = vsel %vm273_vm0, %v1319_v36, 0.0 }
 0x18e   :  { %1700 = vadd.xlane.f32.xlu0 %v1699_v59  ;;  %v9495_v62 = vpop.xlane.xlu1 %1432  ;;  %v9509_v59 = vsub.f32 %v6925_v58, %v863_v34  ;;  %v1323_v24 = vmul.f32 %v9491_v26, %v9491_v26  ;;  %v6927_v34 = vld [vmem:[%s15146_s0 + $0x4f8] sm:$0xff]  ;;  %v9530_v35 = vsub.f32 %v6928_v43, %v864_v40  ;;  %v867_v36 = vmul.f32 0.0051020407, %v8617_v37  ;;  %v6929_v43 = vld [vmem:[%s15146_s0 + $0x4f0] sm:$0xff]  ;;  %v6930_v37 = vld [vmem:[%s15146_s0 + $0x4e0] sm:$0xff] }
 0x18f   :  { %v9501_v46 = vpop.xlane.xlu0 %1428  ;;  %15722 = vst [vmem:[#allocation170_spill] sm:$0xff] %v9517_v52  ;;  %v9525_v41 = vsub.f32 %v6927_v34, %v865_v57  ;;  %v866_v58 = vmul.f32 0.0051020407, %v8629_v16  ;;  %v1719_v34 = vadd.f32 %v1718_v4, %v1316_v2  ;;  %v1727_v26 = vadd.f32 %v1726_v27, %v1320_v15  ;;  %v6931_v27 = vld [vmem:[%s15146_s0 + $0x518] sm:$0xff] }
 0x190   :  { %15721 = vst [vmem:[#allocation169_spill] sm:$0xff] %v9509_v59  ;;  %15724 = vst [vmem:[#allocation172_spill] sm:$0xff] %v9530_v35  ;;  %v1324_v47 = vmul.f32 %v9509_v59, %v9509_v59  ;;  %v1723_v5 = vadd.f32 %v1722_v12, %v1318_v61  ;;  %v9551_v16 = vsub.f32 %v6930_v37, %v864_v40  ;;  %v1734_v2 = vsel %vm273_vm0, %v1325_v32, 0.0  ;;  %v6932_v32 = vld [vmem:[%s15146_s0 + $0x508] sm:$0xff] }
 0x191   :  { %1712 = vadd.xlane.f32.xlu1 %v1711_v38  ;;  %15723 = vst [vmem:[#allocation171_spill] sm:$0xff] %v9525_v41  ;;  %v15304_v38 = vmov 0   ;;  %v1329_v15 = vmul.f32 %v9525_v41, %v9525_v41  ;;  %v1327_v4 = vmul.f32 %v9530_v35, %v9530_v35  ;;  %v9564_v40 = vsub.f32 %v6931_v27, %v867_v36  ;;  %v6933_v41 = vld [vmem:[%s15146_s0 + $0x510] sm:$0xff] }
 0x192   :  { %1708 = vadd.xlane.f32.xlu0 %v1707_v17  ;;  %v9532_v28 = vpop.xlane.xlu1 %1440  ;;  %6492 = vset.pattern.permute.xlu1 %v15304_v38  ;;  %v1322_v17 = vmul.f32 %v9517_v52, %v9517_v52  ;;  %v9546_v38 = vsub.f32 %v6929_v43, %v865_v57  ;;  %15726 = vst [vmem:[#allocation174_spill] sm:$0xff] %v9551_v16  ;;  %v1730_v57 = vsel %vm273_vm0, %v1323_v24, 0.0  ;;  %v15308_v37 = vmov 1  }
 0x193   :  { %v9537_v23 = vpop.xlane.xlu0 %1436  ;;  %15727 = vst [vmem:[#allocation175_spill] sm:$0xff] %v9564_v40  ;;  %v9569_v12 = vsub.f32 %v6932_v32, %v866_v58  ;;  %6494 = vset.pattern.permute.xlu0 %v15308_v37  ;;  %v1735_v24 = vadd.f32 %v1734_v2, %v1324_v47  ;;  %v9581_v59 = vsub.f32 %v6933_v41, %v867_v36  ;;  %v870_v32 = vmul.f32 0.0051020407, %v8703_v44  ;;  %v6934_v47 = vld [vmem:[%s15146_s0 + $0x500] sm:$0xff]  ;;  %v6935_v36 = vld [vmem:[%s15146_s0 + $0x538] sm:$0xff] }
 0x194   :  { %15725 = vst [vmem:[#allocation173_spill] sm:$0xff] %v9546_v38  ;;  %v1328_v27 = vmul.f32 %v9546_v38, %v9546_v38  ;;  %v9589_v2 = vsub.f32 %v6934_v47, %v866_v58  ;;  %v1742_v38 = vsel %vm273_vm0, %v1329_v15, 0.0  ;;  %v1738_v41 = vsel %vm273_vm0, %v1327_v4, 0.0  ;;  %v6937_v47 = vld [vmem:[%s15146_s0 + $0x548] sm:$0xff] }
 0x195   :  { %1720 = vadd.xlane.f32.xlu1 %v1719_v34  ;;  %15728 = vst [vmem:[#allocation176_spill] sm:$0xff] %v9569_v12  ;;  %v869_v34 = vmul.f32 0.0051020407, %v8658_v63  ;;  %15729 = vst [vmem:[#allocation177_spill] sm:$0xff] %v9581_v59  ;;  %v1731_v63 = vadd.f32 %v1730_v57, %v1322_v17  ;;  %v1333_v44 = vmul.f32 %v9564_v40, %v9564_v40  ;;  %v871_v4 = vmul.f32 0.0051020407, %v8690_v3 }
 0x196   :  { %1716 = vadd.xlane.f32.xlu0 %v1715_v49  ;;  %v9558_v61 = vpop.xlane.xlu1 %1448  ;;  %v868_v49 = vmul.f32 0.0051020407, %v8664_v0  ;;  %v1326_v0 = vmul.f32 %v9551_v16, %v9551_v16  ;;  %15730 = vst [vmem:[#allocation178_spill] sm:$0xff] %v9589_v2  ;;  %v1332_v57 = vmul.f32 %v9581_v59, %v9581_v59  ;;  %v1743_v40 = vadd.f32 %v1742_v38, %v1328_v27  ;;  %v6938_v3 = vld [vmem:[%s15146_s0 + $0x530] sm:$0xff]  ;;  %v6939_v59 = vld [vmem:[%s15146_s0 + $0x520] sm:$0xff] }
 0x197   :  { %v9573_v43 = vpop.xlane.xlu0 %1444  ;;  %v9602_v17 = vsub.f32 %v6935_v36, %v869_v34  ;;  %v872_v36 = vmul.f32 0.0051020407, %v8737_v6  ;;  %v9625_v35 = vsub.f32 %v6938_v3, %v869_v34  ;;  %v1750_v34 = vsel %vm273_vm0, %v1333_v44, 0.0  ;;  %v6942_v44 = vld [vmem:[%s15146_s0 + $0x568] sm:$0xff] }
 0x198   :  { %v9630_v16 = vsub.f32 %v6939_v59, %v868_v49  ;;  %v1739_v6 = vadd.f32 %v1738_v41, %v1326_v0  ;;  %v6940_v59 = vld [vmem:[%s15146_s0 + $0x558] sm:$0xff]  ;;  %v873_v41 = vmul.f32 0.0051020407, %v8725_v45 }
 0x199   :  { %1728 = vadd.xlane.f32.xlu1 %v1727_v26  ;;  %v1331_v26 = vmul.f32 %v9569_v12, %v9569_v12  ;;  %15731 = vst [vmem:[#allocation179_spill] sm:$0xff] %v9602_v17  ;;  %v9617_v12 = vsub.f32 %v6937_v47, %v870_v32  ;;  %15734 = vst [vmem:[#allocation182_spill] sm:$0xff] %v9625_v35  ;;  %v1337_v38 = vmul.f32 %v9602_v17, %v9602_v17 }
 0x19a   :  { %1724 = vadd.xlane.f32.xlu0 %v1723_v5  ;;  %v9591_v37 = vpop.xlane.xlu1 %1456  ;;  %v6936_v5 = vld [vmem:[%s15146_s0 + $0x528] sm:$0xff]  ;;  %15735 = vst [vmem:[#allocation183_spill] sm:$0xff] %v9630_v16  ;;  %v1336_v17 = vmul.f32 %v9625_v35, %v9625_v35 }
 0x19b   :  { %v9607_v58 = vsub.f32 %v6936_v5, %v868_v49  ;;  %v9609_v15 = vpop.xlane.xlu0 %1452  ;;  %15733 = vst [vmem:[#allocation181_spill] sm:$0xff] %v9617_v12  ;;  %v1330_v5 = vmul.f32 %v9589_v2, %v9589_v2  ;;  %v1746_v3 = vsel %vm273_vm0, %v1331_v26, 0.0  ;;  %v9645_v49 = vsub.f32 %v6940_v59, %v871_v4 }
 0x19c   :  { %v1339_v2 = vmul.f32 %v9617_v12, %v9617_v12  ;;  %v9658_v26 = vsub.f32 %v6942_v44, %v872_v36  ;;  %v1334_v59 = vmul.f32 %v9630_v16, %v9630_v16  ;;  %v6943_v12 = vld [vmem:[%s15146_s0 + $0x550] sm:$0xff]  ;;  %v1758_v16 = vsel %vm273_vm0, %v1337_v38, 0.0 }
 0x19d   :  { %15732 = vst [vmem:[#allocation180_spill] sm:$0xff] %v9607_v58  ;;  %1736 = vadd.xlane.f32.xlu1 %v1735_v24  ;;  %v1335_v24 = vmul.f32 %v9607_v58, %v9607_v58  ;;  %15737 = vst [vmem:[#allocation185_spill] sm:$0xff] %v9645_v49  ;;  %v874_v58 = vmul.f32 0.0051020407, %v8772_v51  ;;  %v1747_v45 = vadd.f32 %v1746_v3, %v1330_v5  ;;  %v6944_v5 = vld [vmem:[%s15146_s0 + $0x578] sm:$0xff] }
 0x19e   :  { %1732 = vadd.xlane.f32.xlu0 %v1731_v63  ;;  %v9632_v47 = vpop.xlane.xlu1 %1464  ;;  %v6941_v63 = vld [vmem:[%s15146_s0 + $0x540] sm:$0xff]  ;;  %15739 = vst [vmem:[#allocation187_spill] sm:$0xff] %v9658_v26  ;;  %v9670_v44 = vsub.f32 %v6943_v12, %v871_v4  ;;  %v875_v12 = vmul.f32 0.0051020407, %v8766_v14  ;;  %v877_v3 = vmul.f32 0.0051020407, %v8798_v48 }
 0x19f   :  { %15736 = vst [vmem:[#allocation184_spill] sm:$0xff] %v9632_v47  ;;  %v9638_v27 = vpop.xlane.xlu0 %1460  ;;  %v9650_v0 = vsub.f32 %v6941_v63, %v870_v32  ;;  %v1751_v63 = vadd.f32 %v1750_v34, %v1332_v57  ;;  %v1754_v51 = vsel %vm273_vm0, %v1335_v24, 0.0  ;;  %v9683_v34 = vsub.f32 %v6944_v5, %v873_v41  ;;  %v6945_v4 = vld [vmem:[%s15146_s0 + $0x560] sm:$0xff]  ;;  %v6946_v5 = vld [vmem:[%s15146_s0 + $0x588] sm:$0xff]  ;;  %v6947_v48 = vld [vmem:[%s15146_s0 + $0x570] sm:$0xff] }
 0x1a0   :  { %15741 = vst [vmem:[#allocation189_spill] sm:$0xff] %v9670_v44  ;;  %v9689_v38 = vsub.f32 %v6945_v4, %v872_v36  ;;  %v1343_v24 = vmul.f32 %v9658_v26, %v9658_v26  ;;  %v1762_v35 = vsel %vm273_vm0, %v1339_v2, 0.0  ;;  %v876_v14 = vmul.f32 0.0051020407, %v8811_v39  ;;  %v6948_v39 = vld [vmem:[%s15146_s0 + $0x598] sm:$0xff] }
 0x1a1   :  { %15738 = vst [vmem:[#allocation186_spill] sm:$0xff] %v9650_v0  ;;  %1744 = vadd.xlane.f32.xlu1 %v1743_v40  ;;  %v1338_v57 = vmul.f32 %v9650_v0, %v9650_v0  ;;  %15742 = vst [vmem:[#allocation190_spill] sm:$0xff] %v9683_v34  ;;  %v9698_v0 = vsub.f32 %v6946_v5, %v874_v58  ;;  %v1755_v36 = vadd.f32 %v1754_v51, %v1334_v59 }
 0x1a2   :  { %1740 = vadd.xlane.f32.xlu0 %v1739_v6  ;;  %v9663_v32 = vpop.xlane.xlu1 %1472  ;;  %v1341_v6 = vmul.f32 %v9645_v49, %v9645_v49  ;;  %15743 = vst [vmem:[#allocation191_spill] sm:$0xff] %v9689_v38  ;;  %v1340_v4 = vmul.f32 %v9670_v44, %v9670_v44  ;;  %v9708_v2 = vsub.f32 %v6947_v48, %v873_v41  ;;  %v6949_v41 = vld [vmem:[%s15146_s0 + $0x580] sm:$0xff] }
 0x1a3   :  { %15740 = vst [vmem:[#allocation188_spill] sm:$0xff] %v9663_v32  ;;  %v9672_v40 = vpop.xlane.xlu0 %1468  ;;  %15744 = vst [vmem:[#allocation192_spill] sm:$0xff] %v9698_v0  ;;  %v1759_v26 = vadd.f32 %v1758_v16, %v1336_v17  ;;  %v1345_v5 = vmul.f32 %v9683_v34, %v9683_v34  ;;  %v9717_v59 = vsub.f32 %v6948_v39, %v875_v12  ;;  %v6950_v17 = vld [vmem:[%s15146_s0 + $0x5b8] sm:$0xff]  ;;  %v1770_v39 = vsel %vm273_vm0, %v1343_v24, 0.0  ;;  %v6952_v24 = vld [vmem:[%s15146_s0 + $0x590] sm:$0xff] }
 0x1a4   :  { %15746 = vst [vmem:[#allocation194_spill] sm:$0xff] %v9708_v2  ;;  %v1763_v51 = vadd.f32 %v1762_v35, %v1338_v57  ;;  %v1342_v44 = vmul.f32 %v9689_v38, %v9689_v38  ;;  %v9725_v16 = vsub.f32 %v6949_v41, %v874_v58  ;;  %v9730_v48 = vsub.f32 %v6950_v17, %v877_v3 }
 0x1a5   :  { %1752 = vadd.xlane.f32.xlu1 %v1751_v63  ;;  %15747 = vst [vmem:[#allocation195_spill] sm:$0xff] %v9717_v59  ;;  %v1347_v35 = vmul.f32 %v9698_v0, %v9698_v0  ;;  %v879_v58 = vmul.f32 0.0051020407, %v8833_v21  ;;  %v878_v41 = vmul.f32 0.0051020407, %v8845_v11  ;;  %v9749_v17 = vsub.f32 %v6952_v24, %v875_v12  ;;  %v6953_v11 = vld [vmem:[%s15146_s0 + $0x5b0] sm:$0xff] }
 0x1a6   :  { %1748 = vadd.xlane.f32.xlu0 %v1747_v45  ;;  %v9701_v49 = vpop.xlane.xlu1 %1480  ;;  %v1766_v45 = vsel %vm273_vm0, %v1341_v6, 0.0  ;;  %15748 = vst [vmem:[#allocation196_spill] sm:$0xff] %v9725_v16  ;;  %15749 = vst [vmem:[#allocation197_spill] sm:$0xff] %v9730_v48  ;;  %v6951_v6 = vld [vmem:[%s15146_s0 + $0x5a8] sm:$0xff]  ;;  %v1349_v21 = vmul.f32 %v9717_v59, %v9717_v59  ;;  %v1346_v0 = vmul.f32 %v9725_v16, %v9725_v16 }
 0x1a7   :  { %15745 = vst [vmem:[#allocation193_spill] sm:$0xff] %v9701_v49  ;;  %v9710_v63 = vpop.xlane.xlu0 %1476  ;;  %v9738_v57 = vsub.f32 %v6951_v6, %v876_v14  ;;  %15752 = vst [vmem:[#allocation200_spill] sm:$0xff] %v9749_v17  ;;  %v1767_v6 = vadd.f32 %v1766_v45, %v1340_v4  ;;  %v1353_v12 = vmul.f32 %v9730_v48, %v9730_v48  ;;  %v6954_v4 = vld [vmem:[%s15146_s0 + $0x5a0] sm:$0xff]  ;;  %v6956_v16 = vld [vmem:[%s15146_s0 + $0x5c8] sm:$0xff] }
 0x1a8   :  { %v9768_v45 = vsub.f32 %v6954_v4, %v876_v14  ;;  %v1771_v24 = vadd.f32 %v1770_v39, %v1342_v44  ;;  %v9780_v59 = vsub.f32 %v6956_v16, %v878_v41  ;;  %v1778_v44 = vsel %vm273_vm0, %v1347_v35, 0.0  ;;  %v15758_v4 = vld [vmem:[#allocation2_spill] sm:$0xff]  ;;  %v6957_v35 = vld [vmem:[%s15146_s0 + $0x5d0] sm:$0xff]  ;;  %v15783_v49 = vld [vmem:[#allocation11_spill] sm:$0xff] }
 0x1a9   :  { %1760 = vadd.xlane.f32.xlu1 %v1759_v26  ;;  %15750 = vst [vmem:[#allocation198_spill] sm:$0xff] %v9738_v57  ;;  %v1344_v26 = vmul.f32 %v9708_v2, %v9708_v2  ;;  %v1774_v2 = vsel %vm273_vm0, %v1345_v5, 0.0  ;;  %v6955_v5 = vld [vmem:[%s15146_s0 + $0x5d8] sm:$0xff]  ;;  %v1348_v39 = vmul.f32 %v9749_v17, %v9749_v17  ;;  %v1782_v16 = vsel %vm273_vm0, %v1349_v21, 0.0 }
 0x1aa   :  { %1756 = vadd.xlane.f32.xlu0 %v1755_v36  ;;  %v9742_v38 = vpop.xlane.xlu1 %1488  ;;  %v9758_v36 = vsub.f32 %v6953_v11, %v877_v3  ;;  %15754 = vst [vmem:[#allocation202_spill] sm:$0xff] %v9768_v45  ;;  %v1351_v3 = vmul.f32 %v9738_v57, %v9738_v57  ;;  %v9775_v11 = vsub.f32 %v6955_v5, %v879_v58  ;;  %15756 = vst [vmem:[#allocation204_spill] sm:$0xff] %v9780_v59 }
 0x1ab   :  { %15751 = vst [vmem:[#allocation199_spill] sm:$0xff] %v9742_v38  ;;  %v9751_v34 = vpop.xlane.xlu0 %1484  ;;  %v880_v57 = vmul.f32 0.0051020407, %v15758_v4  ;;  %v1775_v48 = vadd.f32 %v1774_v2, %v1344_v26  ;;  %v9799_v17 = vsub.f32 %v6957_v35, %v879_v58  ;;  %v1790_v4 = vsel %vm273_vm0, %v1353_v12, 0.0  ;;  %v6958_v26 = vld [vmem:[%s15146_s0 + $0x5c0] sm:$0xff]  ;;  %v6960_v12 = vld [vmem:[%s15146_s0 + $0x5e8] sm:$0xff] }
 0x1ac   :  { %15753 = vst [vmem:[#allocation201_spill] sm:$0xff] %v9758_v36  ;;  %15755 = vst [vmem:[#allocation203_spill] sm:$0xff] %v9775_v11  ;;  %v1352_v52 = vmul.f32 %v9758_v36, %v9758_v36  ;;  %v1357_v2 = vmul.f32 %v9775_v11, %v9775_v11  ;;  %v9807_v21 = vsub.f32 %v6958_v26, %v878_v41 }
 0x1ad   :  { %1768 = vadd.xlane.f32.xlu1 %v1767_v6  ;;  %v881_v6 = vmul.f32 0.0051020407, %v8874_v13  ;;  %15759 = vst [vmem:[#allocation2_spill] sm:$0xff] %v9799_v17  ;;  %v1779_v13 = vadd.f32 %v1778_v44, %v1346_v0  ;;  %v6959_v0 = vld [vmem:[%s15146_s0 + $0x5f8] sm:$0xff]  ;;  %v9822_v41 = vsub.f32 %v6960_v12, %v880_v57  ;;  %v15764_v44 = vld [vmem:[#allocation4_spill] sm:$0xff]  ;;  %v1356_v60 = vmul.f32 %v9799_v17, %v9799_v17 }
 0x1ae   :  { %1764 = vadd.xlane.f32.xlu0 %v1763_v51  ;;  %v9782_v14 = vpop.xlane.xlu1 %1496  ;;  %v1350_v51 = vmul.f32 %v9768_v45, %v9768_v45  ;;  %15760 = vst [vmem:[#allocation206_spill] sm:$0xff] %v9807_v21  ;;  %v1355_v45 = vmul.f32 %v9780_v59, %v9780_v59  ;;  %v882_v35 = vmul.f32 0.0051020407, %v15764_v44  ;;  %v15765_v59 = vld [vmem:[#allocation102_spill] sm:$0xff]  ;;  %v1354_v44 = vmul.f32 %v9807_v21, %v9807_v21 }
 0x1af   :  { %15757 = vst [vmem:[#allocation205_spill] sm:$0xff] %v9782_v14  ;;  %v9789_v5 = vpop.xlane.xlu0 %1492  ;;  %v9817_v58 = vsub.f32 %v6959_v0, %v881_v6  ;;  %15763 = vst [vmem:[#allocation209_spill] sm:$0xff] %v9822_v41  ;;  %v883_v11 = vmul.f32 0.0051020407, %v15765_v59  ;;  %v6961_v0 = vld [vmem:[%s15146_s0 + $0x5f0] sm:$0xff]  ;;  %v15767_v14 = vld [vmem:[#allocation107_spill] sm:$0xff] }
 0x1b0   :  { %v884_v12 = vmul.f32 0.0051020407, %v15767_v14 }
 0x1b1   :  { %1776 = vadd.xlane.f32.xlu1 %v1775_v48  ;;  %v1786_v48 = vsel %vm273_vm0, %v1351_v3, 0.0  ;;  %15762 = vst [vmem:[#allocation208_spill] sm:$0xff] %v9817_v58  ;;  %v1791_v3 = vadd.f32 %v1790_v4, %v1352_v52  ;;  %v6962_v52 = vld [vmem:[%s15146_s0 + $0x5e0] sm:$0xff]  ;;  %v1361_v14 = vmul.f32 %v9817_v58, %v9817_v58  ;;  %v6963_v4 = vld [vmem:[%s15146_s0 + $0x608] sm:$0xff] }
 0x1b2   :  { %1772 = vadd.xlane.f32.xlu0 %v1771_v24  ;;  %v9811_v36 = vpop.xlane.xlu1 %1504  ;;  %v1783_v24 = vadd.f32 %v1782_v16, %v1348_v39  ;;  %v1787_v38 = vadd.f32 %v1786_v48, %v1350_v51  ;;  %v9841_v59 = vsub.f32 %v6962_v52, %v880_v57  ;;  %v1798_v16 = vsel %vm273_vm0, %v1357_v2, 0.0  ;;  %v15771_v57 = vld [vmem:[#allocation6_spill] sm:$0xff]  ;;  %v6965_v52 = vld [vmem:[%s15146_s0 + $0x628] sm:$0xff] }
 0x1b3   :  { %15761 = vst [vmem:[#allocation207_spill] sm:$0xff] %v9811_v36  ;;  %v9825_v26 = vpop.xlane.xlu0 %1500  ;;  %v9833_v36 = vsub.f32 %v6961_v0, %v881_v6  ;;  %v1794_v6 = vsel %vm273_vm0, %v1355_v45, 0.0  ;;  %v1359_v51 = vmul.f32 %v9822_v41, %v9822_v41  ;;  %v9854_v48 = vsub.f32 %v6963_v4, %v882_v35  ;;  %v6964_v45 = vld [vmem:[%s15146_s0 + $0x618] sm:$0xff]  ;;  %v15774_v4 = vld [vmem:[#allocation8_spill] sm:$0xff] }
 0x1b4   :  { %15768 = vst [vmem:[#allocation102_spill] sm:$0xff] %v9841_v59  ;;  %v9862_v2 = vsub.f32 %v6964_v45, %v883_v11  ;;  %v9869_v21 = vsub.f32 %v6965_v52, %v884_v12  ;;  %v886_v17 = vmul.f32 0.0051020407, %v15774_v4  ;;  %v1358_v41 = vmul.f32 %v9841_v59, %v9841_v59  ;;  %v6966_v45 = vld [vmem:[%s15146_s0 + $0x610] sm:$0xff] }
 0x1b5   :  { %15766 = vst [vmem:[#allocation4_spill] sm:$0xff] %v9833_v36  ;;  %1784 = vadd.xlane.f32.xlu1 %v1783_v24  ;;  %15770 = vst [vmem:[#allocation210_spill] sm:$0xff] %v9854_v48  ;;  %v1360_v0 = vmul.f32 %v9833_v36, %v9833_v36  ;;  %v9877_v58 = vsub.f32 %v6966_v45, %v883_v11  ;;  %v6967_v36 = vld [vmem:[%s15146_s0 + $0x600] sm:$0xff]  ;;  %v1806_v45 = vsel %vm273_vm0, %v1361_v14, 0.0  ;;  %v6970_v14 = vld [vmem:[%s15146_s0 + $0x648] sm:$0xff] }
 0x1b6   :  { %1780 = vadd.xlane.f32.xlu0 %v1779_v13  ;;  %v9843_v39 = vpop.xlane.xlu1 %1512  ;;  %v885_v13 = vmul.f32 0.0051020407, %v15771_v57  ;;  %15772 = vst [vmem:[#allocation6_spill] sm:$0xff] %v9862_v2  ;;  %15773 = vst [vmem:[#allocation211_spill] sm:$0xff] %v9869_v21  ;;  %v1799_v57 = vadd.f32 %v1798_v16, %v1356_v60  ;;  %v1363_v60 = vmul.f32 %v9854_v48, %v9854_v48  ;;  %v6968_v16 = vld [vmem:[%s15146_s0 + $0x638] sm:$0xff] }
 0x1b7   :  { %15769 = vst [vmem:[#allocation107_spill] sm:$0xff] %v9843_v39  ;;  %v9857_v24 = vpop.xlane.xlu0 %1508  ;;  %15775 = vst [vmem:[#allocation8_spill] sm:$0xff] %v9877_v58  ;;  %v9882_v39 = vsub.f32 %v6967_v36, %v882_v35  ;;  %v1802_v36 = vsel %vm273_vm0, %v1359_v51, 0.0  ;;  %v6969_v35 = vld [vmem:[%s15146_s0 + $0x620] sm:$0xff]  ;;  %v9910_v48 = vsub.f32 %v6970_v14, %v886_v17  ;;  %v6971_v14 = vld [vmem:[%s15146_s0 + $0x630] sm:$0xff] }
 0x1b8   :  { %v9891_v4 = vsub.f32 %v6968_v16, %v885_v13  ;;  %v1367_v16 = vmul.f32 %v9869_v21, %v9869_v21  ;;  %v15782_v51 = vld [vmem:[#allocation114_spill] sm:$0xff]  ;;  %v1803_v32 = vadd.f32 %v1802_v36, %v1358_v41  ;;  %v1364_v21 = vmul.f32 %v9877_v58, %v9877_v58  ;;  %v6972_v41 = vld [vmem:[%s15146_s0 + $0x658] sm:$0xff] }
 0x1b9   :  { %1792 = vadd.xlane.f32.xlu1 %v1791_v3  ;;  %15776 = vst [vmem:[#allocation212_spill] sm:$0xff] %v9882_v39  ;;  %v1795_v3 = vadd.f32 %v1794_v6, %v1354_v44  ;;  %v9902_v44 = vsub.f32 %v6969_v35, %v884_v12  ;;  %v15780_v6 = vld [vmem:[#allocation7_spill] sm:$0xff]  ;;  %v888_v12 = vmul.f32 0.0051020407, %v15783_v49  ;;  %v9923_v47 = vsub.f32 %v6971_v14, %v885_v13  ;;  %v6973_v13 = vld [vmem:[%s15146_s0 + $0x640] sm:$0xff]  ;;  %v6974_v14 = vld [vmem:[%s15146_s0 + $0x678] sm:$0xff] }
 0x1ba   :  { %1788 = vadd.xlane.f32.xlu0 %v1787_v38  ;;  %v9884_v52 = vpop.xlane.xlu1 %1520  ;;  %15778 = vst [vmem:[#allocation214_spill] sm:$0xff] %v9891_v4  ;;  %v1365_v38 = vmul.f32 %v9862_v2, %v9862_v2  ;;  %v887_v59 = vmul.f32 0.0051020407, %v15780_v6  ;;  %15781 = vst [vmem:[#allocation7_spill] sm:$0xff] %v9910_v48  ;;  %v1362_v2 = vmul.f32 %v9882_v39, %v9882_v39  ;;  %v1810_v49 = vsel %vm273_vm0, %v1363_v60, 0.0 }
 0x1bb   :  { %15777 = vst [vmem:[#allocation213_spill] sm:$0xff] %v9884_v52  ;;  %v9893_v11 = vpop.xlane.xlu0 %1516  ;;  %15779 = vst [vmem:[#allocation215_spill] sm:$0xff] %v9902_v44  ;;  %v889_v52 = vmul.f32 0.0051020407, %v15782_v51  ;;  %v1807_v6 = vadd.f32 %v1806_v45, %v1360_v0  ;;  %v1366_v0 = vmul.f32 %v9902_v44, %v9902_v44  ;;  %v9940_v45 = vsub.f32 %v6973_v13, %v886_v17  ;;  %v6975_v17 = vld [vmem:[%s15146_s0 + $0x668] sm:$0xff] }
 0x1bc   :  { %15785 = vst [vmem:[#allocation11_spill] sm:$0xff] %v9923_v47  ;;  %v1814_v36 = vsel %vm273_vm0, %v1365_v38, 0.0  ;;  %v1371_v60 = vmul.f32 %v9910_v48, %v9910_v48  ;;  %v1818_v58 = vsel %vm273_vm0, %v1367_v16, 0.0  ;;  %v9955_v13 = vsub.f32 %v6975_v17, %v888_v12  ;;  %v15790_v38 = vld [vmem:[#allocation118_spill] sm:$0xff] }
 0x1bd   :  { %1800 = vadd.xlane.f32.xlu1 %v1799_v57  ;;  %v1369_v57 = vmul.f32 %v9891_v4, %v9891_v4  ;;  %15787 = vst [vmem:[#allocation217_spill] sm:$0xff] %v9940_v45  ;;  %v9948_v4 = vsub.f32 %v6974_v14, %v889_v52  ;;  %v890_v44 = vmul.f32 0.0051020407, %v15790_v38  ;;  %v1811_v39 = vadd.f32 %v1810_v49, %v1362_v2  ;;  %v6977_v49 = vld [vmem:[%s15146_s0 + $0x670] sm:$0xff] }
 0x1be   :  { %1796 = vadd.xlane.f32.xlu0 %v1795_v3  ;;  %v9916_v35 = vpop.xlane.xlu1 %1528  ;;  %v9935_v3 = vsub.f32 %v6972_v41, %v887_v59  ;;  %v891_v41 = vmul.f32 0.0051020407, %v9049_v31  ;;  %15789 = vst [vmem:[#allocation219_spill] sm:$0xff] %v9955_v13  ;;  %v1368_v14 = vmul.f32 %v9923_v47, %v9923_v47  ;;  %v6976_v31 = vld [vmem:[%s15146_s0 + $0x650] sm:$0xff]  ;;  %v1370_v2 = vmul.f32 %v9940_v45, %v9940_v45 }
 0x1bf   :  { %15784 = vst [vmem:[#allocation114_spill] sm:$0xff] %v9916_v35  ;;  %v9927_v51 = vpop.xlane.xlu0 %1524  ;;  %15788 = vst [vmem:[#allocation218_spill] sm:$0xff] %v9948_v4  ;;  %v9965_v16 = vsub.f32 %v6976_v31, %v887_v59  ;;  %v1815_v35 = vadd.f32 %v1814_v36, %v1364_v21  ;;  %v1822_v17 = vsel %vm273_vm0, %v1369_v57, 0.0  ;;  %v9977_v38 = vsub.f32 %v6977_v49, %v889_v52  ;;  %v6978_v21 = vld [vmem:[%s15146_s0 + $0x660] sm:$0xff]  ;;  %v6979_v36 = vld [vmem:[%s15146_s0 + $0x698] sm:$0xff] }
 0x1c0   :  { %15786 = vst [vmem:[#allocation216_spill] sm:$0xff] %v9935_v3  ;;  %v1819_v47 = vadd.f32 %v1818_v58, %v1366_v0  ;;  %v1377_v59 = vmul.f32 %v9948_v4, %v9948_v4  ;;  %v9984_v57 = vsub.f32 %v6978_v21, %v888_v12  ;;  %v9989_v31 = vsub.f32 %v6979_v36, %v891_v41  ;;  %v6980_v0 = vld [vmem:[%s15146_s0 + $0x688] sm:$0xff] }
 0x1c1   :  { %1808 = vadd.xlane.f32.xlu1 %v1807_v6  ;;  %15791 = vst [vmem:[#allocation118_spill] sm:$0xff] %v9965_v16  ;;  %15792 = vst [vmem:[#allocation220_spill] sm:$0xff] %v9977_v38  ;;  %v1826_v52 = vsel %vm273_vm0, %v1371_v60, 0.0  ;;  %v1375_v58 = vmul.f32 %v9955_v13, %v9955_v13  ;;  %v9997_v49 = vsub.f32 %v6980_v0, %v890_v44  ;;  %v893_v12 = vmul.f32 0.0051020407, %v9090_v50  ;;  %v6981_v0 = vld [vmem:[%s15146_s0 + $0x690] sm:$0xff] }
 0x1c2   :  { %1804 = vadd.xlane.f32.xlu0 %v1803_v32  ;;  %v9958_v48 = vpop.xlane.xlu1 %1536  ;;  %v1373_v32 = vmul.f32 %v9935_v3, %v9935_v3  ;;  %15793 = vst [vmem:[#allocation221_spill] sm:$0xff] %v9984_v57  ;;  %15794 = vst [vmem:[#allocation222_spill] sm:$0xff] %v9989_v31  ;;  %v892_v21 = vmul.f32 0.0051020407, %v9096_v33  ;;  %v1823_v36 = vadd.f32 %v1822_v17, %v1368_v14  ;;  %v6982_v14 = vld [vmem:[%s15146_s0 + $0x680] sm:$0xff] }
 0x1c3   :  { %v9967_v6 = vpop.xlane.xlu0 %1532  ;;  %15795 = vst [vmem:[#allocation223_spill] sm:$0xff] %v9997_v49  ;;  %v1376_v3 = vmul.f32 %v9977_v38, %v9977_v38  ;;  %v10012_v13 = vsub.f32 %v6981_v0, %v891_v41  ;;  %v1827_v33 = vadd.f32 %v1826_v52, %v1370_v2  ;;  %v10022_v17 = vsub.f32 %v6982_v14, %v890_v44  ;;  %v6984_v52 = vld [vmem:[%s15146_s0 + $0x6a8] sm:$0xff] }
 0x1c4   :  { %v1830_v50 = vsel %vm273_vm0, %v1373_v32, 0.0  ;;  %v1838_v38 = vsel %vm273_vm0, %v1377_v59, 0.0  ;;  %v1379_v41 = vmul.f32 %v9997_v49, %v9997_v49  ;;  %v6983_v32 = vld [vmem:[%s15146_s0 + $0x6b8] sm:$0xff]  ;;  %v10035_v0 = vsub.f32 %v6984_v52, %v892_v21 }
 0x1c5   :  { %1816 = vadd.xlane.f32.xlu1 %v1815_v35  ;;  %v1372_v35 = vmul.f32 %v9965_v16, %v9965_v16  ;;  %15796 = vst [vmem:[#allocation224_spill] sm:$0xff] %v10012_v13  ;;  %v1381_v16 = vmul.f32 %v9989_v31, %v9989_v31  ;;  %15797 = vst [vmem:[#allocation225_spill] sm:$0xff] %v10022_v17  ;;  %v10030_v2 = vsub.f32 %v6983_v32, %v893_v12 }
 0x1c6   :  { %1812 = vadd.xlane.f32.xlu0 %v1811_v39  ;;  %v10001_v4 = vpop.xlane.xlu1 %1544  ;;  %v1374_v39 = vmul.f32 %v9984_v57, %v9984_v57  ;;  %15799 = vst [vmem:[#allocation227_spill] sm:$0xff] %v10035_v0  ;;  %v1834_v59 = vsel %vm273_vm0, %v1375_v58, 0.0  ;;  %v894_v14 = vmul.f32 0.0051020407, %v9135_v53  ;;  %v1380_v32 = vmul.f32 %v10012_v13, %v10012_v13 }
 0x1c7   :  { %v10005_v60 = vpop.xlane.xlu0 %1540  ;;  %15798 = vst [vmem:[#allocation226_spill] sm:$0xff] %v10030_v2  ;;  %v1831_v49 = vadd.f32 %v1830_v50, %v1372_v35  ;;  %v1839_v57 = vadd.f32 %v1838_v38, %v1376_v3  ;;  %v1378_v52 = vmul.f32 %v10022_v17, %v10022_v17  ;;  %v1846_v53 = vsel %vm273_vm0, %v1381_v16, 0.0  ;;  %v6986_v3 = vld [vmem:[%s15146_s0 + $0x6a0] sm:$0xff]  ;;  %v6987_v16 = vld [vmem:[%s15146_s0 + $0x6d8] sm:$0xff] }
 0x1c8   :  { %v1385_v58 = vmul.f32 %v10030_v2, %v10030_v2  ;;  %v10059_v38 = vsub.f32 %v6986_v3, %v892_v21  ;;  %v1383_v35 = vmul.f32 %v10035_v0, %v10035_v0  ;;  %v1847_v2 = vadd.f32 %v1846_v53, %v1380_v32  ;;  %v6990_v32 = vld [vmem:[%s15146_s0 + $0x6c0] sm:$0xff] }
 0x1c9   :  { %1824 = vadd.xlane.f32.xlu1 %v1823_v36  ;;  %v895_v36 = vmul.f32 0.0051020407, %v9122_v29  ;;  %v1835_v29 = vadd.f32 %v1834_v59, %v1374_v39  ;;  %v6988_v39 = vld [vmem:[%s15146_s0 + $0x6c8] sm:$0xff]  ;;  %v897_v59 = vmul.f32 0.0051020407, %v9157_v55  ;;  %v10093_v53 = vsub.f32 %v6990_v32, %v894_v14 }
 0x1ca   :  { %1820 = vadd.xlane.f32.xlu0 %v1819_v47  ;;  %v10037_v44 = vpop.xlane.xlu1 %1552  ;;  %v6985_v47 = vld [vmem:[%s15146_s0 + $0x6b0] sm:$0xff]  ;;  %15801 = vst [vmem:[#allocation229_spill] sm:$0xff] %v10059_v38  ;;  %v10074_v21 = vsub.f32 %v6988_v39, %v894_v14  ;;  %v898_v0 = vmul.f32 0.0051020407, %v9204_v18  ;;  %v1382_v55 = vmul.f32 %v10059_v38, %v10059_v38  ;;  %v6992_v14 = vld [vmem:[%s15146_s0 + $0x6e8] sm:$0xff] }
 0x1cb   :  { %v10042_v31 = vpop.xlane.xlu0 %1548  ;;  %v10051_v45 = vsub.f32 %v6985_v47, %v893_v12  ;;  %v10069_v12 = vsub.f32 %v6987_v16, %v895_v36  ;;  %v15804_v47 = vld [vmem:[#allocation130_spill] sm:$0xff]  ;;  %v6989_v16 = vld [vmem:[%s15146_s0 + $0x6d0] sm:$0xff]  ;;  %15806 = vst [vmem:[#allocation232_spill] sm:$0xff] %v10093_v53  ;;  %v6993_v32 = vld [vmem:[%s15146_s0 + $0x708] sm:$0xff] }
 0x1cc   :  { %15803 = vst [vmem:[#allocation231_spill] sm:$0xff] %v10074_v21  ;;  %v10085_v13 = vsub.f32 %v6989_v16, %v895_v36  ;;  %v1850_v36 = vsel %vm273_vm0, %v1383_v35, 0.0  ;;  %v899_v35 = vmul.f32 0.0051020407, %v9194_v54  ;;  %v6994_v54 = vld [vmem:[%s15146_s0 + $0x6f0] sm:$0xff] }
 0x1cd   :  { %15800 = vst [vmem:[#allocation228_spill] sm:$0xff] %v10051_v45  ;;  %1832 = vadd.xlane.f32.xlu1 %v1831_v49  ;;  %v1842_v49 = vsel %vm273_vm0, %v1379_v41, 0.0  ;;  %15802 = vst [vmem:[#allocation230_spill] sm:$0xff] %v10069_v12  ;;  %v1384_v41 = vmul.f32 %v10051_v45, %v10051_v45  ;;  %v1854_v45 = vsel %vm273_vm0, %v1385_v58, 0.0  ;;  %v1389_v18 = vmul.f32 %v10069_v12, %v10069_v12 }
 0x1ce   :  { %1828 = vadd.xlane.f32.xlu0 %v1827_v33  ;;  %v10063_v50 = vpop.xlane.xlu1 %1560  ;;  %v896_v33 = vmul.f32 0.0051020407, %v15804_v47  ;;  %15805 = vst [vmem:[#allocation130_spill] sm:$0xff] %v10085_v13  ;;  %v1843_v39 = vadd.f32 %v1842_v49, %v1378_v52  ;;  %v6991_v52 = vld [vmem:[%s15146_s0 + $0x6f8] sm:$0xff]  ;;  %v1388_v16 = vmul.f32 %v10085_v13, %v10085_v13  ;;  %v10121_v12 = vsub.f32 %v6993_v32, %v898_v0  ;;  %v6995_v13 = vld [vmem:[%s15146_s0 + $0x6e0] sm:$0xff] }
 0x1cf   :  { %v10078_v3 = vpop.xlane.xlu0 %1556  ;;  %v10106_v49 = vsub.f32 %v6991_v52, %v897_v59  ;;  %v900_v52 = vmul.f32 0.0051020407, %v9244_v1  ;;  %v10129_v38 = vsub.f32 %v6994_v54, %v897_v59  ;;  %v1851_v1 = vadd.f32 %v1850_v36, %v1382_v55 }
 0x1d0   :  { %15809 = vst [vmem:[#allocation235_spill] sm:$0xff] %v10121_v12  ;;  %v10134_v17 = vsub.f32 %v6995_v13, %v896_v33  ;;  %v1862_v59 = vsel %vm273_vm0, %v1389_v18, 0.0  ;;  %v6996_v13 = vld [vmem:[%s15146_s0 + $0x718] sm:$0xff]  ;;  %v901_v36 = vmul.f32 0.0051020407, %v9234_v19  ;;  %v6998_v18 = vld [vmem:[%s15146_s0 + $0x728] sm:$0xff] }
 0x1d1   :  { %1840 = vadd.xlane.f32.xlu1 %v1839_v57  ;;  %v1387_v57 = vmul.f32 %v10074_v21, %v10074_v21  ;;  %15807 = vst [vmem:[#allocation233_spill] sm:$0xff] %v10106_v49  ;;  %v1855_v21 = vadd.f32 %v1854_v45, %v1384_v41  ;;  %15810 = vst [vmem:[#allocation236_spill] sm:$0xff] %v10129_v38  ;;  %v1393_v45 = vmul.f32 %v10106_v49, %v10106_v49 }
 0x1d2   :  { %1836 = vadd.xlane.f32.xlu0 %v1835_v29  ;;  %v10095_v47 = vpop.xlane.xlu1 %1568  ;;  %v10111_v29 = vsub.f32 %v6992_v14, %v896_v33  ;;  %v1386_v14 = vmul.f32 %v10093_v53, %v10093_v53  ;;  %15811 = vst [vmem:[#allocation237_spill] sm:$0xff] %v10134_v17  ;;  %v10149_v33 = vsub.f32 %v6996_v13, %v899_v35  ;;  %v6999_v53 = vld [vmem:[%s15146_s0 + $0x710] sm:$0xff] }
 0x1d3   :  { %v10113_v58 = vpop.xlane.xlu0 %1564  ;;  %v1858_v54 = vsel %vm273_vm0, %v1387_v57, 0.0  ;;  %v1395_v49 = vmul.f32 %v10121_v12, %v10121_v12  ;;  %v10162_v57 = vsub.f32 %v6998_v18, %v900_v52  ;;  %v1390_v13 = vmul.f32 %v10134_v17, %v10134_v17 }
 0x1d4   :  { %15808 = vst [vmem:[#allocation234_spill] sm:$0xff] %v10111_v29  ;;  %15812 = vst [vmem:[#allocation238_spill] sm:$0xff] %v10149_v33  ;;  %v1859_v19 = vadd.f32 %v1858_v54, %v1386_v14  ;;  %v1392_v12 = vmul.f32 %v10129_v38, %v10129_v38  ;;  %v10174_v18 = vsub.f32 %v6999_v53, %v899_v35  ;;  %v1870_v17 = vsel %vm273_vm0, %v1393_v45, 0.0  ;;  %v7000_v14 = vld [vmem:[%s15146_s0 + $0x738] sm:$0xff]  ;;  %v7001_v35 = vld [vmem:[%s15146_s0 + $0x720] sm:$0xff] }
 0x1d5   :  { %1848 = vadd.xlane.f32.xlu1 %v1847_v2  ;;  %v1391_v2 = vmul.f32 %v10111_v29, %v10111_v29  ;;  %15814 = vst [vmem:[#allocation240_spill] sm:$0xff] %v10162_v57  ;;  %v902_v29 = vmul.f32 0.0051020407, %v9282_v8  ;;  %v903_v53 = vmul.f32 0.0051020407, %v9273_v56  ;;  %v10193_v45 = vsub.f32 %v7001_v35, %v900_v52 }
 0x1d6   :  { %1844 = vadd.xlane.f32.xlu0 %v1843_v39  ;;  %v10136_v32 = vpop.xlane.xlu1 %1576  ;;  %v6997_v39 = vld [vmem:[%s15146_s0 + $0x700] sm:$0xff]  ;;  %15815 = vst [vmem:[#allocation241_spill] sm:$0xff] %v10174_v18  ;;  %v905_v54 = vmul.f32 0.0051020407, %v9309_v30  ;;  %v904_v56 = vmul.f32 0.0051020407, %v9315_v25  ;;  %v1396_v35 = vmul.f32 %v10174_v18, %v10174_v18 }
 0x1d7   :  { %v10142_v41 = vpop.xlane.xlu0 %1572  ;;  %v10154_v55 = vsub.f32 %v6997_v39, %v898_v0  ;;  %v1863_v39 = vadd.f32 %v1862_v59, %v1388_v16  ;;  %v1866_v8 = vsel %vm273_vm0, %v1391_v2, 0.0  ;;  %v10187_v59 = vsub.f32 %v7000_v14, %v901_v36  ;;  %15817 = vst [vmem:[#allocation243_spill] sm:$0xff] %v10193_v45  ;;  %v7002_v14 = vld [vmem:[%s15146_s0 + $0x748] sm:$0xff]  ;;  %v7003_v30 = vld [vmem:[%s15146_s0 + $0x730] sm:$0xff]  ;;  %v7004_v25 = vld [vmem:[%s15146_s0 + $0x758] sm:$0xff] }
 0x1d8   :  { %v1399_v2 = vmul.f32 %v10162_v57, %v10162_v57  ;;  %v1867_v52 = vadd.f32 %v1866_v8, %v1390_v13  ;;  %v1871_v57 = vadd.f32 %v1870_v17, %v1392_v12  ;;  %v10221_v13 = vsub.f32 %v7004_v25, %v903_v53  ;;  %v7006_v12 = vld [vmem:[%s15146_s0 + $0x778] sm:$0xff] }
 0x1d9   :  { %15813 = vst [vmem:[#allocation239_spill] sm:$0xff] %v10154_v55  ;;  %1856 = vadd.xlane.f32.xlu1 %v1855_v21  ;;  %v1394_v16 = vmul.f32 %v10154_v55, %v10154_v55  ;;  %15816 = vst [vmem:[#allocation242_spill] sm:$0xff] %v10187_v59  ;;  %v10202_v55 = vsub.f32 %v7002_v14, %v902_v29  ;;  %v1401_v14 = vmul.f32 %v10187_v59, %v10187_v59 }
 0x1da   :  { %1852 = vadd.xlane.f32.xlu0 %v1851_v1  ;;  %v10167_v0 = vpop.xlane.xlu1 %1584  ;;  %v1397_v1 = vmul.f32 %v10149_v33, %v10149_v33  ;;  %v1874_v33 = vsel %vm273_vm0, %v1395_v49, 0.0  ;;  %v10212_v49 = vsub.f32 %v7003_v30, %v901_v36  ;;  %15821 = vst [vmem:[#allocation247_spill] sm:$0xff] %v10221_v13  ;;  %v1398_v18 = vmul.f32 %v10193_v45, %v10193_v45  ;;  %v7005_v36 = vld [vmem:[%s15146_s0 + $0x740] sm:$0xff] }
 0x1db   :  { %v10176_v21 = vpop.xlane.xlu0 %1580  ;;  %15818 = vst [vmem:[#allocation244_spill] sm:$0xff] %v10202_v55  ;;  %v1875_v8 = vadd.f32 %v1874_v33, %v1394_v16  ;;  %v10229_v17 = vsub.f32 %v7005_v36, %v902_v29  ;;  %v10234_v30 = vsub.f32 %v7006_v12, %v905_v54  ;;  %v1882_v25 = vsel %vm273_vm0, %v1399_v2, 0.0  ;;  %v7008_v2 = vld [vmem:[%s15146_s0 + $0x750] sm:$0xff] }
 0x1dc   :  { %15820 = vst [vmem:[#allocation246_spill] sm:$0xff] %v10212_v49  ;;  %v1403_v33 = vmul.f32 %v10202_v55, %v10202_v55  ;;  %v907_v29 = vmul.f32 0.0051020407, %v9338_v10  ;;  %v906_v36 = vmul.f32 0.0051020407, %v9352_v7  ;;  %v10253_v12 = vsub.f32 %v7008_v2, %v903_v53  ;;  %v7009_v7 = vld [vmem:[%s15146_s0 + $0x770] sm:$0xff] }
 0x1dd   :  { %1864 = vadd.xlane.f32.xlu1 %v1863_v39  ;;  %15822 = vst [vmem:[#allocation248_spill] sm:$0xff] %v10229_v17  ;;  %15823 = vst [vmem:[#allocation249_spill] sm:$0xff] %v10234_v30  ;;  %v1405_v10 = vmul.f32 %v10221_v13, %v10221_v13  ;;  %v1402_v55 = vmul.f32 %v10229_v17, %v10229_v17  ;;  %v1409_v53 = vmul.f32 %v10234_v30, %v10234_v30  ;;  %v7012_v13 = vld [vmem:[%s15146_s0 + $0x788] sm:$0xff] }
 0x1de   :  { %1860 = vadd.xlane.f32.xlu0 %v1859_v19  ;;  %v10205_v38 = vpop.xlane.xlu1 %1592  ;;  %v1878_v19 = vsel %vm273_vm0, %v1397_v1, 0.0  ;;  %v7007_v1 = vld [vmem:[%s15146_s0 + $0x768] sm:$0xff]  ;;  %15826 = vst [vmem:[#allocation252_spill] sm:$0xff] %v10253_v12  ;;  %v1883_v2 = vadd.f32 %v1882_v25, %v1398_v18  ;;  %v10284_v17 = vsub.f32 %v7012_v13, %v906_v36  ;;  %v1890_v18 = vsel %vm273_vm0, %v1403_v33, 0.0  ;;  %v7013_v33 = vld [vmem:[%s15146_s0 + $0x790] sm:$0xff] }
 0x1df   :  { %15819 = vst [vmem:[#allocation245_spill] sm:$0xff] %v10205_v38  ;;  %v10214_v39 = vpop.xlane.xlu0 %1588  ;;  %v10242_v16 = vsub.f32 %v7007_v1, %v904_v56  ;;  %v1879_v1 = vadd.f32 %v1878_v19, %v1396_v35  ;;  %v7010_v35 = vld [vmem:[%s15146_s0 + $0x760] sm:$0xff]  ;;  %v1404_v25 = vmul.f32 %v10253_v12, %v10253_v12  ;;  %v1894_v13 = vsel %vm273_vm0, %v1405_v10, 0.0 }
 0x1e0   :  { %v10272_v19 = vsub.f32 %v7010_v35, %v904_v56  ;;  %15830 = vst [vmem:[#allocation256_spill] sm:$0xff] %v10284_v17  ;;  %v908_v35 = vmul.f32 0.0051020407, %v9386_v42  ;;  %v10303_v12 = vsub.f32 %v7013_v33, %v907_v29  ;;  %v1902_v42 = vsel %vm273_vm0, %v1409_v53, 0.0  ;;  %v7016_v53 = vld [vmem:[%s15146_s0 + $0x7a8] sm:$0xff] }
 0x1e1   :  { %1872 = vadd.xlane.f32.xlu1 %v1871_v57  ;;  %15824 = vst [vmem:[#allocation250_spill] sm:$0xff] %v10242_v16  ;;  %v1400_v57 = vmul.f32 %v10212_v49, %v10212_v49  ;;  %v1886_v49 = vsel %vm273_vm0, %v1401_v14, 0.0  ;;  %v7011_v14 = vld [vmem:[%s15146_s0 + $0x798] sm:$0xff] }
 0x1e2   :  { %1868 = vadd.xlane.f32.xlu0 %v1867_v52  ;;  %v10246_v59 = vpop.xlane.xlu1 %1600  ;;  %v10262_v52 = vsub.f32 %v7009_v7, %v905_v54  ;;  %15828 = vst [vmem:[#allocation254_spill] sm:$0xff] %v10272_v19  ;;  %v1407_v54 = vmul.f32 %v10242_v16, %v10242_v16  ;;  %v10279_v7 = vsub.f32 %v7011_v14, %v907_v29  ;;  %15832 = vst [vmem:[#allocation258_spill] sm:$0xff] %v10303_v12 }
 0x1e3   :  { %15825 = vst [vmem:[#allocation251_spill] sm:$0xff] %v10246_v59  ;;  %v10255_v45 = vpop.xlane.xlu0 %1596  ;;  %v1887_v30 = vadd.f32 %v1886_v49, %v1400_v57  ;;  %v7014_v57 = vld [vmem:[%s15146_s0 + $0x780] sm:$0xff] }
 0x1e4   :  { %15827 = vst [vmem:[#allocation253_spill] sm:$0xff] %v10262_v52  ;;  %15829 = vst [vmem:[#allocation255_spill] sm:$0xff] %v10279_v7  ;;  %v1408_v16 = vmul.f32 %v10262_v52, %v10262_v52  ;;  %v1413_v49 = vmul.f32 %v10279_v7, %v10279_v7  ;;  %v10311_v10 = vsub.f32 %v7014_v57, %v906_v36  ;;  %v15838_v7 = vld [vmem:[#allocation158_spill] sm:$0xff] }
 0x1e5   :  { %1880 = vadd.xlane.f32.xlu1 %v1879_v1  ;;  %v909_v1 = vmul.f32 0.0051020407, %v9373_v22  ;;  %v1891_v22 = vadd.f32 %v1890_v18, %v1402_v55  ;;  %v1411_v52 = vmul.f32 %v10284_v17, %v10284_v17  ;;  %v7015_v55 = vld [vmem:[%s15146_s0 + $0x7b8] sm:$0xff]  ;;  %v10326_v36 = vsub.f32 %v7016_v53, %v908_v35  ;;  %v15837_v18 = vld [vmem:[#allocation160_spill] sm:$0xff]  ;;  %v2350_v59 = vld [vmem:[%s15147_s2 + $0xe0] sm:$0xff] }
 0x1e6   :  { %1876 = vadd.xlane.f32.xlu0 %v1875_v8  ;;  %v10286_v56 = vpop.xlane.xlu1 %1608  ;;  %v1406_v8 = vmul.f32 %v10272_v19, %v10272_v19  ;;  %15833 = vst [vmem:[#allocation259_spill] sm:$0xff] %v10311_v10  ;;  %v910_v33 = vmul.f32 0.0051020407, %v15837_v18  ;;  %v911_v17 = vmul.f32 0.0051020407, %v15838_v7  ;;  %v1410_v18 = vmul.f32 %v10311_v10, %v10311_v10 }
 0x1e7   :  { %15831 = vst [vmem:[#allocation257_spill] sm:$0xff] %v10286_v56  ;;  %v10293_v14 = vpop.xlane.xlu0 %1604  ;;  %v10321_v29 = vsub.f32 %v7015_v55, %v909_v1  ;;  %15836 = vst [vmem:[#allocation262_spill] sm:$0xff] %v10326_v36  ;;  %v7017_v55 = vld [vmem:[%s15146_s0 + $0x7b0] sm:$0xff]  ;;  %v1903_v56 = vadd.f32 %v1902_v42, %v1408_v16  ;;  %v7019_v42 = vld [vmem:[%s15146_s0 + $0x7c8] sm:$0xff] }
 0x1e9   :  { %1888 = vadd.xlane.f32.xlu1 %v1887_v30  ;;  %v1898_v30 = vsel %vm273_vm0, %v1407_v54, 0.0  ;;  %15835 = vst [vmem:[#allocation261_spill] sm:$0xff] %v10321_v29  ;;  %v1412_v54 = vmul.f32 %v10303_v12, %v10303_v12  ;;  %v1910_v12 = vsel %vm273_vm0, %v1413_v49, 0.0  ;;  %v1417_v16 = vmul.f32 %v10321_v29, %v10321_v29 }
 0x1ea   :  { %1884 = vadd.xlane.f32.xlu0 %v1883_v2  ;;  %v10315_v19 = vpop.xlane.xlu1 %1616  ;;  %v1895_v2 = vadd.f32 %v1894_v13, %v1404_v25  ;;  %v1899_v53 = vadd.f32 %v1898_v30, %v1406_v8  ;;  %v7018_v25 = vld [vmem:[%s15146_s0 + $0x7a0] sm:$0xff]  ;;  %v1415_v8 = vmul.f32 %v10326_v36, %v10326_v36  ;;  %v10357_v30 = vsub.f32 %v7019_v42, %v910_v33 }
 0x1eb   :  { %15834 = vst [vmem:[#allocation260_spill] sm:$0xff] %v10315_v19  ;;  %v10329_v57 = vpop.xlane.xlu0 %1612  ;;  %v10337_v19 = vsub.f32 %v7017_v55, %v909_v1  ;;  %v10344_v7 = vsub.f32 %v7018_v25, %v908_v35  ;;  %v1906_v1 = vsel %vm273_vm0, %v1411_v52, 0.0  ;;  %v912_v35 = vmul.f32 0.0051020407, %v9467_v20  ;;  %v7020_v52 = vld [vmem:[%s15146_s0 + $0x7d8] sm:$0xff]  ;;  %v7021_v20 = vld [vmem:[%s15146_s0 + $0x7d0] sm:$0xff] }
 0x1ec   :  { %15842 = vst [vmem:[#allocation264_spill] sm:$0xff] %v10357_v30  ;;  %v10365_v49 = vsub.f32 %v7020_v52, %v911_v17  ;;  %v1911_v25 = vadd.f32 %v1910_v12, %v1412_v54  ;;  %v10375_v10 = vsub.f32 %v7021_v20, %v911_v17  ;;  %v7022_v52 = vld [vmem:[%s15146_s0 + $0x7c0] sm:$0xff]  ;;  %v1419_v12 = vmul.f32 %v10357_v30, %v10357_v30  ;;  %v7023_v54 = vld [vmem:[%s15146_s0 + $0x7e8] sm:$0xff] }
 0x1ed   :  { %15839 = vst [vmem:[#allocation160_spill] sm:$0xff] %v10337_v19  ;;  %1896 = vadd.xlane.f32.xlu1 %v1895_v2  ;;  %15840 = vst [vmem:[#allocation158_spill] sm:$0xff] %v10344_v7  ;;  %v913_v2 = vmul.f32 0.0051020407, %v9453_v9  ;;  %v1416_v55 = vmul.f32 %v10337_v19, %v10337_v19  ;;  %v1414_v42 = vmul.f32 %v10344_v7, %v10344_v7  ;;  %v1918_v20 = vsel %vm273_vm0, %v1417_v16, 0.0 }
 0x1ee   :  { %1892 = vadd.xlane.f32.xlu0 %v1891_v22  ;;  %v10346_v13 = vpop.xlane.xlu1 %1624  ;;  %15843 = vst [vmem:[#allocation265_spill] sm:$0xff] %v10365_v49  ;;  %15844 = vst [vmem:[#allocation266_spill] sm:$0xff] %v10375_v10  ;;  %v10380_v29 = vsub.f32 %v7022_v52, %v910_v33  ;;  %v10389_v19 = vsub.f32 %v7023_v54, %v912_v35  ;;  %v1914_v33 = vsel %vm273_vm0, %v1415_v8, 0.0  ;;  %v7025_v54 = vld [vmem:[%s15146_s0 + $0x7e0] sm:$0xff] }
 0x1ef   :  { %15841 = vst [vmem:[#allocation263_spill] sm:$0xff] %v10346_v13  ;;  %v10360_v22 = vpop.xlane.xlu0 %1620  ;;  %v10407_v16 = vsub.f32 %v7025_v54, %v912_v35  ;;  %v1919_v36 = vadd.f32 %v1918_v20, %v1416_v55  ;;  %v1915_v7 = vadd.f32 %v1914_v33, %v1414_v42  ;;  %v1922_v35 = vsel %vm273_vm0, %v1419_v12, 0.0 }
 0x1f0   :  { %15845 = vst [vmem:[#allocation267_spill] sm:$0xff] %v10380_v29  ;;  %15847 = vst [vmem:[#allocation269_spill] sm:$0xff] %v10389_v19  ;;  %v1418_v52 = vmul.f32 %v10380_v29, %v10380_v29  ;;  %v1423_v30 = vmul.f32 %v10389_v19, %v10389_v19  ;;  %v1939_v42 = vmul.f32 0.0051020407, %v9495_v62  ;;  %v1940_v62 = vmul.f32 0.0051020407, %v9537_v23 }
 0x1f1   :  { %1904 = vadd.xlane.f32.xlu1 %v1903_v56  ;;  %v1907_v56 = vadd.f32 %v1906_v1, %v1410_v18  ;;  %v7024_v18 = vld [vmem:[%s15146_s0 + $0x7f8] sm:$0xff]  ;;  %15849 = vst [vmem:[#allocation271_spill] sm:$0xff] %v10407_v16  ;;  %v1422_v20 = vmul.f32 %v10407_v16, %v10407_v16 }
 0x1f2   :  { %1900 = vadd.xlane.f32.xlu0 %v1899_v53  ;;  %v10382_v9 = vpop.xlane.xlu1 %1632  ;;  %v1421_v53 = vmul.f32 %v10365_v49, %v10365_v49  ;;  %v10400_v1 = vsub.f32 %v7024_v18, %v913_v2  ;;  %v1420_v49 = vmul.f32 %v10375_v10, %v10375_v10  ;;  %v1923_v33 = vadd.f32 %v1922_v35, %v1418_v52 }
 0x1f3   :  { %15846 = vst [vmem:[#allocation268_spill] sm:$0xff] %v10382_v9  ;;  %v10391_v17 = vpop.xlane.xlu0 %1628  ;;  %v1930_v10 = vsel %vm273_vm0, %v1423_v30, 0.0  ;;  %v1941_v35 = vmul.f32 0.0051020407, %v9532_v28 }
 0x1f4   :  { %15848 = vst [vmem:[#allocation270_spill] sm:$0xff] %v10400_v1  ;;  %v1425_v55 = vmul.f32 %v10400_v1, %v10400_v1  ;;  %v2067_v1 = vadd.f32 1e-05, %v1939_v42 }
 0x1f5   :  { %1912 = vadd.xlane.f32.xlu1 %v1911_v25  ;;  %v7026_v25 = vld [vmem:[%s15146_s0 + $0x7f0] sm:$0xff]  ;;  %v2069_v23 = vadd.f32 1e-05, %v1941_v35 }
 0x1f6   :  { %1908 = vadd.xlane.f32.xlu0 %v1907_v56  ;;  %v10409_v8 = vpop.xlane.xlu1 %1640  ;;  %v10416_v18 = vsub.f32 %v7026_v25, %v913_v2  ;;  %v1926_v56 = vsel %vm273_vm0, %v1421_v53, 0.0  ;;  %6515 = vrsqrt.f32 %v2067_v1  ;;  %v1943_v1 = vmul.f32 0.0051020407, %v9558_v61  ;;  %v10469_v35 = vld [vmem:[%s15147_s2 + $0x10] sm:$0xff] }
 0x1f7   :  { %15850 = vst [vmem:[#allocation272_spill] sm:$0xff] %v10409_v8  ;;  %v10420_v29 = vpop.xlane.xlu0 %1636  ;;  %v1927_v12 = vadd.f32 %v1926_v56, %v1420_v49  ;;  %v1945_v61 = vmul.f32 0.0051020407, %v9591_v37 }
 0x1f8   :  { %15851 = vst [vmem:[#allocation273_spill] sm:$0xff] %v10416_v18  ;;  %v1424_v54 = vmul.f32 %v10416_v18, %v10416_v18  ;;  %v2068_v18 = vadd.f32 1e-05, %v1940_v62 }
 0x1f9   :  { %1920 = vadd.xlane.f32.xlu1 %v1919_v36  ;;  %v1934_v36 = vsel %vm273_vm0, %v1425_v55, 0.0  ;;  %v1942_v55 = vmul.f32 0.0051020407, %v9573_v43  ;;  %v2323_v43 = vld [vmem:[%s15147_s2 + $0x8] sm:$0xff] }
 0x1fa   :  { %1916 = vadd.xlane.f32.xlu0 %v1915_v7  ;;  %v10429_v2 = vpop.xlane.xlu1 %1648  ;;  %v1931_v7 = vadd.f32 %v1930_v10, %v1422_v20  ;;  %v1935_v52 = vadd.f32 %v1934_v36, %v1424_v54  ;;  %6517 = vrsqrt.f32 %v2068_v18  ;;  %v1944_v54 = vmul.f32 0.0051020407, %v9609_v15 }
 0x1fb   :  { %15852 = vst [vmem:[#allocation274_spill] sm:$0xff] %v10429_v2  ;;  %v10433_v25 = vpop.xlane.xlu0 %1644  ;;  %6519 = vrsqrt.f32 %v2069_v23  ;;  %v2070_v56 = vadd.f32 1e-05, %v1942_v55  ;;  %v2073_v55 = vadd.f32 1e-05, %v1945_v61 }
 0x1fc   :  { %v2072_v36 = vadd.f32 1e-05, %v1944_v54 }
 0x1fd   :  { %1928 = vadd.xlane.f32.xlu1 %v1927_v12  ;;  %6521 = vrsqrt.f32 %v2070_v56 }
 0x1fe   :  { %1924 = vadd.xlane.f32.xlu0 %v1923_v33  ;;  %v10438_v53 = vpop.xlane.xlu1 %1656  ;;  %v2071_v33 = vadd.f32 1e-05, %v1943_v1  ;;  %v1946_v1 = vmul.f32 0.0051020407, %v9638_v27  ;;  %v1948_v27 = vmul.f32 0.0051020407, %v9672_v40 }
 0x1ff   :  { %15853 = vst [vmem:[#allocation275_spill] sm:$0xff] %v10438_v53  ;;  %v10440_v19 = vpop.xlane.xlu0 %1652 }
 0x200   :  { %6523 = vrsqrt.f32 %v2071_v33  ;;  %v2325_v33 = vld [vmem:[%s15147_s2 + $0x18] sm:$0xff]  ;;  %v2074_v61 = vadd.f32 1e-05, %v1946_v1  ;;  %v2076_v40 = vadd.f32 1e-05, %v1948_v27 }
 0x201   :  { %1936 = vadd.xlane.f32.xlu1 %v1935_v52  ;;  %6525 = vrsqrt.f32 %v2072_v36  ;;  %v1950_v1 = vmul.f32 0.0051020407, %v9710_v63  ;;  %v1952_v27 = vmul.f32 0.0051020407, %v9751_v34  ;;  %v1954_v34 = vmul.f32 0.0051020407, %v9789_v5 }
 0x202   :  { %1932 = vadd.xlane.f32.xlu0 %v1931_v7  ;;  %v10443_v30 = vpop.xlane.xlu1 %1664  ;;  %6527 = vrsqrt.f32 %v2073_v55  ;;  %v10503_v55 = vld [vmem:[%s15147_s2 + $0x60] sm:$0xff]  ;;  %v1956_v5 = vmul.f32 0.0051020407, %v9825_v26 }
 0x203   :  { %15854 = vst [vmem:[#allocation276_spill] sm:$0xff] %v10443_v30  ;;  %v10445_v49 = vpop.xlane.xlu0 %1660  ;;  %v6516_v12 = vpop.eup %6515  ;;  %6529 = vrsqrt.f32 %v2074_v61  ;;  %v10518_v61 = vld [vmem:[%s15147_s2 + $0x160] sm:$0xff]  ;;  %v2078_v63 = vadd.f32 1e-05, %v1950_v1  ;;  %v2080_v1 = vadd.f32 1e-05, %v1952_v27 }
 0x204   :  { %v2451_v7 = vmul.f32 %v6516_v12, %v2323_v43  ;;  %v10487_v43 = vld [vmem:[%s15147_s2 + $0x78] sm:$0xff]  ;;  %6531 = vrsqrt.f32 %v2076_v40  ;;  %v2332_v40 = vld [vmem:[%s15147_s2 + $0x50] sm:$0xff]  ;;  %v2084_v53 = vadd.f32 1e-05, %v1956_v5 }
 0x205   :  { %6533 = vrsqrt.f32 %v2078_v63  ;;  %v2082_v63 = vadd.f32 1e-05, %v1954_v34 }
 0x206   :  { %v10448_v42 = vpop.xlane.xlu1 %1672  ;;  %6535 = vrsqrt.f32 %v2080_v1  ;;  %v1958_v1 = vmul.f32 0.0051020407, %v9857_v24 }
 0x207   :  { %15855 = vst [vmem:[#allocation277_spill] sm:$0xff] %v10448_v42  ;;  %v10450_v10 = vpop.xlane.xlu0 %1668  ;;  %v6518_v52 = vpop.eup %6517  ;;  %6537 = vrsqrt.f32 %v2082_v63  ;;  %v1960_v63 = vmul.f32 0.0051020407, %v9893_v11  ;;  %v2336_v11 = vld [vmem:[%s15147_s2 + $0x70] sm:$0xff] }
 0x208   :  { %v2452_v56 = vmul.f32 %v6518_v52, %v10469_v35  ;;  %v6520_v37 = vpop.eup %6519  ;;  %v10494_v52 = vld [vmem:[%s15147_s2 + $0x20] sm:$0xff]  ;;  %6539 = vrsqrt.f32 %v2084_v53 }
 0x209   :  { %v2453_v36 = vmul.f32 %v6520_v37, %v2325_v33 }
 0x20a   :  { %v10453_v28 = vpop.xlane.xlu1 %1680 }
 0x20b   :  { %15856 = vst [vmem:[#allocation278_spill] sm:$0xff] %v10453_v28  ;;  %v10455_v20 = vpop.xlane.xlu0 %1676  ;;  %v2329_v28 = vld [vmem:[%s15147_s2 + $0x38] sm:$0xff] }
 0x20e   :  { %v10461_v18 = vpop.xlane.xlu1 %1688 }
 0x20f   :  { %15857 = vst [vmem:[#allocation279_spill] sm:$0xff] %v10461_v18  ;;  %v10463_v62 = vpop.xlane.xlu0 %1684 }
 0x212   :  { %2585 = vperm.xlu1 %6492, %v2451_v7   ;;  %v10471_v15 = vpop.xlane.xlu1 %1696  ;;  %v6522_v7 = vpop.eup %6521 }
 0x213   :  { %15858 = vst [vmem:[#allocation280_spill] sm:$0xff] %v10471_v15  ;;  %v10473_v23 = vpop.xlane.xlu0 %1692  ;;  %v2454_v37 = vmul.f32 %v6522_v7, %v10494_v52  ;;  %v6524_v33 = vpop.eup %6523 }
 0x214   :  { %v6526_v15 = vpop.eup %6525 }
 0x216   :  { %v10480_v54 = vpop.xlane.xlu1 %1704  ;;  %2590 = vperm.xlu1 %6492, %v2452_v56  }
 0x217   :  { %15859 = vst [vmem:[#allocation281_spill] sm:$0xff] %v10480_v54  ;;  %v10482_v12 = vpop.xlane.xlu0 %1700 }
 0x218   :  { %3551 = vperm.xlu0 %6494, %v10487_v43  }
 0x21a   :  { %v10496_v56 = vpop.xlane.xlu1 %1712  ;;  %2595 = vperm.xlu1 %6492, %v2453_v36   ;;  %v2327_v36 = vld [vmem:[%s15147_s2 + $0x28] sm:$0xff] }
 0x21b   :  { %15860 = vst [vmem:[#allocation282_spill] sm:$0xff] %v10496_v56  ;;  %v10498_v16 = vpop.xlane.xlu0 %1708  ;;  %v2455_v7 = vmul.f32 %v6524_v33, %v2327_v36  ;;  %v6528_v36 = vpop.eup %6527 }
 0x21c   :  { %3536 = vperm.xlu0 %6494, %v10503_v55   ;;  %v6530_v27 = vpop.eup %6529 }
 0x21d   :  { %v6532_v26 = vpop.eup %6531 }
 0x21e   :  { %v10511_v56 = vpop.xlane.xlu1 %1720  ;;  %2600 = vperm.xlu1 %6492, %v2454_v37   ;;  %v2460_v5 = vmul.f32 %v6532_v26, %v2332_v40  ;;  %v6534_v24 = vpop.eup %6533  ;;  %v10582_v26 = vld [vmem:[%s15147_s2 + $0x130] sm:$0xff] }
 0x21f   :  { %15861 = vst [vmem:[#allocation283_spill] sm:$0xff] %v10511_v56  ;;  %v10513_v54 = vpop.xlane.xlu0 %1716  ;;  %v2328_v56 = vld [vmem:[%s15147_s2 + $0x30] sm:$0xff]  ;;  %v6536_v53 = vpop.eup %6535 }
 0x220   :  { %3696 = vperm.xlu0 %6494, %v10518_v61   ;;  %v2456_v33 = vmul.f32 %v6526_v15, %v2328_v56  ;;  %v2457_v15 = vmul.f32 %v6528_v36, %v2329_v28  ;;  %v10562_v36 = vld [vmem:[%s15147_s2 + $0x140] sm:$0xff] }
 0x222   :  { %v10525_v37 = vpop.xlane.xlu1 %1728  ;;  %2605 = vperm.xlu1 %6492, %v2455_v7  }
 0x223   :  { %15862 = vst [vmem:[#allocation284_spill] sm:$0xff] %v10525_v37  ;;  %v10527_v18 = vpop.xlane.xlu0 %1724  ;;  %v10543_v37 = vld [vmem:[%s15147_s2 + $0x150] sm:$0xff] }
 0x224   :  { %3526 = vperm.xlu0 %6494, %v2332_v40  }
 0x226   :  { %v10536_v42 = vpop.xlane.xlu1 %1736  ;;  %2610 = vperm.xlu1 %6492, %v2456_v33  }
 0x227   :  { %15863 = vst [vmem:[#allocation285_spill] sm:$0xff] %v10536_v42  ;;  %v10538_v7 = vpop.xlane.xlu0 %1732  ;;  %v2330_v42 = vld [vmem:[%s15147_s2 + $0x40] sm:$0xff] }
 0x228   :  { %3686 = vperm.xlu0 %6494, %v10543_v37   ;;  %v2458_v34 = vmul.f32 %v6530_v27, %v2330_v42 }
 0x22a   :  { %v10550_v33 = vpop.xlane.xlu1 %1744  ;;  %2615 = vperm.xlu1 %6492, %v2457_v15   ;;  %v2086_v15 = vadd.f32 1e-05, %v1958_v1 }
 0x22b   :  { %15864 = vst [vmem:[#allocation286_spill] sm:$0xff] %v10550_v33  ;;  %v10552_v30 = vpop.xlane.xlu0 %1740  ;;  %v2462_v33 = vmul.f32 %v6534_v24, %v10503_v55  ;;  %v1964_v55 = vmul.f32 0.0051020407, %v9967_v6 }
 0x22c   :  { %3516 = vperm.xlu0 %6494, %v2330_v42   ;;  %6541 = vrsqrt.f32 %v2086_v15  ;;  %v6538_v15 = vpop.eup %6537 }
 0x22d   :  { %v2092_v24 = vadd.f32 1e-05, %v1964_v55 }
 0x22e   :  { %v10555_v2 = vpop.xlane.xlu1 %1752  ;;  %2620 = vperm.xlu1 %6492, %v2458_v34   ;;  %v2088_v34 = vadd.f32 1e-05, %v1960_v63  ;;  %v10589_v63 = vld [vmem:[%s15147_s2 + $0x80] sm:$0xff] }
 0x22f   :  { %15865 = vst [vmem:[#allocation287_spill] sm:$0xff] %v10555_v2  ;;  %v10557_v28 = vpop.xlane.xlu0 %1748  ;;  %v1962_v2 = vmul.f32 0.0051020407, %v9927_v51  ;;  %v2466_v6 = vmul.f32 %v6538_v15, %v10589_v63 }
 0x230   :  { %3676 = vperm.xlu0 %6494, %v10562_v36   ;;  %6543 = vrsqrt.f32 %v2088_v34  ;;  %v6540_v34 = vpop.eup %6539 }
 0x231   :  { %v2090_v51 = vadd.f32 1e-05, %v1962_v2  ;;  %v1966_v2 = vmul.f32 0.0051020407, %v10005_v60 }
 0x232   :  { %v10566_v42 = vpop.xlane.xlu1 %1760  ;;  %2630 = vperm.xlu1 %6492, %v2460_v5  }
 0x233   :  { %15866 = vst [vmem:[#allocation288_spill] sm:$0xff] %v10566_v42  ;;  %v10568_v27 = vpop.xlane.xlu0 %1756  ;;  %6545 = vrsqrt.f32 %v2090_v51  ;;  %v10610_v51 = vld [vmem:[%s15147_s2 + $0x120] sm:$0xff]  ;;  %v2094_v60 = vadd.f32 1e-05, %v1966_v2  ;;  %v1970_v2 = vmul.f32 0.0051020407, %v10078_v3 }
 0x234   :  { %3506 = vperm.xlu0 %6494, %v2328_v56   ;;  %v2464_v56 = vmul.f32 %v6536_v53, %v2336_v11  ;;  %v10601_v53 = vld [vmem:[%s15147_s2 + $0x90] sm:$0xff]  ;;  %6547 = vrsqrt.f32 %v2092_v24 }
 0x235   :  { %v2468_v55 = vmul.f32 %v6540_v34, %v10601_v53  ;;  %6549 = vrsqrt.f32 %v2094_v60  ;;  %v10639_v60 = vld [vmem:[%s15147_s2 + $0x110] sm:$0xff]  ;;  %v2098_v3 = vadd.f32 1e-05, %v1970_v2  ;;  %v1974_v2 = vmul.f32 0.0051020407, %v10142_v41 }
 0x236   :  { %v10575_v40 = vpop.xlane.xlu1 %1768  ;;  %2640 = vperm.xlu1 %6492, %v2462_v33  }
 0x237   :  { %15867 = vst [vmem:[#allocation289_spill] sm:$0xff] %v10575_v40  ;;  %v10577_v1 = vpop.xlane.xlu0 %1764  ;;  %v10630_v40 = vld [vmem:[%s15147_s2 + $0xb0] sm:$0xff]  ;;  %v2102_v41 = vadd.f32 1e-05, %v1974_v2 }
 0x238   :  { %3666 = vperm.xlu0 %6494, %v10582_v26  }
 0x239   :  { %v6542_v15 = vpop.eup %6541 }
 0x23a   :  { %v10591_v33 = vpop.xlane.xlu1 %1776  ;;  %2650 = vperm.xlu1 %6492, %v2464_v56  }
 0x23b   :  { %15868 = vst [vmem:[#allocation290_spill] sm:$0xff] %v10591_v33  ;;  %v10593_v5 = vpop.xlane.xlu0 %1772 }
 0x23c   :  { %3496 = vperm.xlu0 %6494, %v10494_v52   ;;  %v1968_v52 = vmul.f32 0.0051020407, %v10042_v31 }
 0x23d   :  { %v6544_v34 = vpop.eup %6543 }
 0x23e   :  { %v10603_v11 = vpop.xlane.xlu1 %1784  ;;  %2660 = vperm.xlu1 %6492, %v2466_v6   ;;  %v10618_v6 = vld [vmem:[%s15147_s2 + $0xa0] sm:$0xff]  ;;  %v2096_v24 = vadd.f32 1e-05, %v1968_v52  ;;  %v2472_v52 = vmul.f32 %v6544_v34, %v10630_v40 }
 0x23f   :  { %15869 = vst [vmem:[#allocation291_spill] sm:$0xff] %v10603_v11  ;;  %v10605_v56 = vpop.xlane.xlu0 %1780  ;;  %v2470_v31 = vmul.f32 %v6542_v15, %v10618_v6 }
 0x240   :  { %3656 = vperm.xlu0 %6494, %v10610_v51   ;;  %6551 = vrsqrt.f32 %v2096_v24  ;;  %v6546_v15 = vpop.eup %6545  ;;  %v10656_v24 = vld [vmem:[%s15147_s2] sm:$0xff] }
 0x241   :  { %6553 = vrsqrt.f32 %v2098_v3  ;;  %v6548_v8 = vpop.eup %6547  ;;  %v2354_v3 = vld [vmem:[%s15147_s2 + $0x100] sm:$0xff] }
 0x242   :  { %v10620_v11 = vpop.xlane.xlu1 %1792  ;;  %2670 = vperm.xlu1 %6492, %v2468_v55   ;;  %v6550_v13 = vpop.eup %6549 }
 0x243   :  { %15870 = vst [vmem:[#allocation292_spill] sm:$0xff] %v10620_v11  ;;  %v10622_v33 = vpop.xlane.xlu0 %1788 }
 0x244   :  { %3486 = vperm.xlu0 %6494, %v10469_v35   ;;  %v1972_v35 = vmul.f32 0.0051020407, %v10113_v58 }
 0x246   :  { %v10632_v42 = vpop.xlane.xlu1 %1800  ;;  %2680 = vperm.xlu1 %6492, %v2470_v31   ;;  %v10647_v31 = vld [vmem:[%s15147_s2 + $0xc0] sm:$0xff]  ;;  %v2100_v58 = vadd.f32 1e-05, %v1972_v35  ;;  %v1976_v35 = vmul.f32 0.0051020407, %v10176_v21 }
 0x247   :  { %15871 = vst [vmem:[#allocation293_spill] sm:$0xff] %v10632_v42  ;;  %v10634_v55 = vpop.xlane.xlu0 %1796  ;;  %v2474_v34 = vmul.f32 %v6546_v15, %v10647_v31  ;;  %v1978_v21 = vmul.f32 0.0051020407, %v10214_v39 }
 0x248   :  { %15872 = vst [vmem:[#allocation294_spill] sm:$0xff] %v10634_v55  ;;  %3646 = vperm.xlu0 %6494, %v10639_v60   ;;  %6555 = vrsqrt.f32 %v2100_v58  ;;  %v2104_v58 = vadd.f32 1e-05, %v1976_v35 }
 0x249   :  { %6557 = vrsqrt.f32 %v2102_v41  ;;  %v1980_v41 = vmul.f32 0.0051020407, %v10255_v45 }
 0x24a   :  { %v10649_v42 = vpop.xlane.xlu1 %1808  ;;  %2690 = vperm.xlu1 %6492, %v2472_v52   ;;  %v2348_v52 = vld [vmem:[%s15147_s2 + $0xd0] sm:$0xff]  ;;  %6559 = vrsqrt.f32 %v2104_v58 }
 0x24b   :  { %15873 = vst [vmem:[#allocation295_spill] sm:$0xff] %v10649_v42  ;;  %v10651_v11 = vpop.xlane.xlu0 %1804  ;;  %v2476_v15 = vmul.f32 %v6548_v8, %v2348_v52  ;;  %v2478_v8 = vmul.f32 %v6550_v13, %v2350_v59 }
 0x24c   :  { %15874 = vst [vmem:[#allocation296_spill] sm:$0xff] %v10651_v11  ;;  %3476 = vperm.xlu0 %6494, %v10656_v24  }
 0x24d   :  { %v6552_v2 = vpop.eup %6551 }
 0x24e   :  { %v10664_v42 = vpop.xlane.xlu1 %1816  ;;  %2700 = vperm.xlu1 %6492, %v2474_v34   ;;  %v6554_v39 = vpop.eup %6553 }
 0x24f   :  { %15875 = vst [vmem:[#allocation297_spill] sm:$0xff] %v10664_v42  ;;  %v10666_v9 = vpop.xlane.xlu0 %1812  ;;  %v2352_v42 = vld [vmem:[%s15147_s2 + $0xf0] sm:$0xff] }
 0x250   :  { %15876 = vst [vmem:[#allocation298_spill] sm:$0xff] %v10666_v9  ;;  %3636 = vperm.xlu0 %6494, %v2354_v3   ;;  %v2480_v35 = vmul.f32 %v6552_v2, %v2352_v42 }
 0x252   :  { %v10675_v11 = vpop.xlane.xlu1 %1824  ;;  %2710 = vperm.xlu1 %6492, %v2476_v15   ;;  %v10690_v15 = vld [vmem:[%s15147_s2 + $0x1f0] sm:$0xff] }
 0x253   :  { %15877 = vst [vmem:[#allocation299_spill] sm:$0xff] %v10675_v11  ;;  %v10677_v34 = vpop.xlane.xlu0 %1820  ;;  %v2106_v11 = vadd.f32 1e-05, %v1978_v21 }
 0x254   :  { %15878 = vst [vmem:[#allocation300_spill] sm:$0xff] %v10677_v34  ;;  %3626 = vperm.xlu0 %6494, %v2352_v42   ;;  %v2482_v34 = vmul.f32 %v6554_v39, %v2354_v3  ;;  %v10706_v42 = vld [vmem:[%s15147_s2 + $0x1e0] sm:$0xff] }
 0x255   :  { %6561 = vrsqrt.f32 %v2106_v11  ;;  %v6556_v55 = vpop.eup %6555  ;;  %v1984_v11 = vmul.f32 0.0051020407, %v10329_v57 }
 0x256   :  { %v10683_v9 = vpop.xlane.xlu1 %1832  ;;  %2720 = vperm.xlu1 %6492, %v2478_v8   ;;  %v2108_v8 = vadd.f32 1e-05, %v1980_v41  ;;  %v2484_v2 = vmul.f32 %v6556_v55, %v10639_v60  ;;  %v1986_v41 = vmul.f32 0.0051020407, %v10360_v22  ;;  %v10724_v55 = vld [vmem:[%s15147_s2 + $0x1d0] sm:$0xff] }
 0x257   :  { %15879 = vst [vmem:[#allocation301_spill] sm:$0xff] %v10683_v9  ;;  %v10685_v38 = vpop.xlane.xlu0 %1828 }
 0x258   :  { %15880 = vst [vmem:[#allocation302_spill] sm:$0xff] %v10685_v38  ;;  %3786 = vperm.xlu0 %6494, %v10690_v15   ;;  %v1982_v38 = vmul.f32 0.0051020407, %v10293_v14  ;;  %6563 = vrsqrt.f32 %v2108_v8  ;;  %v2114_v60 = vadd.f32 1e-05, %v1986_v41  ;;  %v10743_v41 = vld [vmem:[%s15147_s2 + $0x1c0] sm:$0xff] }
 0x259   :  { %v1988_v8 = vmul.f32 0.0051020407, %v10391_v17 }
 0x25a   :  { %v10694_v13 = vpop.xlane.xlu1 %1840  ;;  %2730 = vperm.xlu1 %6492, %v2480_v35   ;;  %v2110_v21 = vadd.f32 1e-05, %v1982_v38 }
 0x25b   :  { %v10696_v9 = vpop.xlane.xlu0 %1836 }
 0x25c   :  { %3616 = vperm.xlu0 %6494, %v2350_v59   ;;  %v6558_v59 = vpop.eup %6557  ;;  %6565 = vrsqrt.f32 %v2110_v21 }
 0x25d   :  { %v2486_v35 = vmul.f32 %v6558_v59, %v10610_v51  ;;  %v6560_v38 = vpop.eup %6559 }
 0x25e   :  { %v10699_v58 = vpop.xlane.xlu1 %1848  ;;  %2740 = vperm.xlu1 %6492, %v2482_v34   ;;  %v2112_v34 = vadd.f32 1e-05, %v1984_v11  ;;  %v2488_v22 = vmul.f32 %v6560_v38, %v10582_v26  ;;  %v2116_v11 = vadd.f32 1e-05, %v1988_v8  ;;  %v1992_v38 = vmul.f32 0.0051020407, %v10433_v25 }
 0x25f   :  { %v10701_v45 = vpop.xlane.xlu0 %1844  ;;  %v10758_v25 = vld [vmem:[%s15147_s2 + $0x170] sm:$0xff] }
 0x260   :  { %3776 = vperm.xlu0 %6494, %v10706_v42   ;;  %6567 = vrsqrt.f32 %v2112_v34  ;;  %v2120_v8 = vadd.f32 1e-05, %v1992_v38 }
 0x261   :  { %6569 = vrsqrt.f32 %v2114_v60 }
 0x262   :  { %v10711_v14 = vpop.xlane.xlu1 %1856  ;;  %2750 = vperm.xlu1 %6492, %v2484_v2   ;;  %v6562_v51 = vpop.eup %6561  ;;  %v1990_v2 = vmul.f32 0.0051020407, %v10420_v29  ;;  %6571 = vrsqrt.f32 %v2116_v11 }
 0x263   :  { %v10713_v3 = vpop.xlane.xlu0 %1852  ;;  %v2490_v59 = vmul.f32 %v6562_v51, %v10562_v36 }
 0x264   :  { %3606 = vperm.xlu0 %6494, %v2348_v52  }
 0x265   :  { %v6564_v34 = vpop.eup %6563 }
 0x266   :  { %v10717_v39 = vpop.xlane.xlu1 %1864  ;;  %2760 = vperm.xlu1 %6492, %v2486_v35   ;;  %v2118_v35 = vadd.f32 1e-05, %v1990_v2  ;;  %v2492_v29 = vmul.f32 %v6564_v34, %v10543_v37 }
 0x267   :  { %v10719_v57 = vpop.xlane.xlu0 %1860 }
 0x268   :  { %3766 = vperm.xlu0 %6494, %v10724_v55   ;;  %6573 = vrsqrt.f32 %v2118_v35  ;;  %v10772_v35 = vld [vmem:[%s15147_s2 + $0x180] sm:$0xff] }
 0x269   :  { %v6566_v36 = vpop.eup %6565  ;;  %6575 = vrsqrt.f32 %v2120_v8 }
 0x26a   :  { %v10729_v52 = vpop.xlane.xlu1 %1872  ;;  %2770 = vperm.xlu1 %6492, %v2488_v22   ;;  %v1994_v22 = vmul.f32 0.0051020407, %v10440_v19  ;;  %v2494_v51 = vmul.f32 %v6566_v36, %v10518_v61  ;;  %v1996_v61 = vmul.f32 0.0051020407, %v10445_v49  ;;  %v1998_v49 = vmul.f32 0.0051020407, %v10450_v10 }
 0x26b   :  { %v10731_v21 = vpop.xlane.xlu0 %1868  ;;  %v2374_v10 = vld [vmem:[%s15147_s2 + $0x1a0] sm:$0xff] }
 0x26c   :  { %3596 = vperm.xlu0 %6494, %v10647_v31   ;;  %v2122_v19 = vadd.f32 1e-05, %v1994_v22  ;;  %v2124_v8 = vadd.f32 1e-05, %v1996_v61 }
 0x26d   :  { %v6568_v11 = vpop.eup %6567 }
 0x26e   :  { %v10736_v17 = vpop.xlane.xlu1 %1880  ;;  %2780 = vperm.xlu1 %6492, %v2490_v59   ;;  %v2376_v59 = vld [vmem:[%s15147_s2 + $0x1b0] sm:$0xff]  ;;  %v6570_v34 = vpop.eup %6569  ;;  %6577 = vrsqrt.f32 %v2122_v19  ;;  %v2000_v19 = vmul.f32 0.0051020407, %v10455_v20 }
 0x26f   :  { %15881 = vst [vmem:[#allocation303_spill] sm:$0xff] %v10736_v17  ;;  %v10738_v26 = vpop.xlane.xlu0 %1876  ;;  %v2498_v22 = vmul.f32 %v6570_v34, %v10772_v35  ;;  %6579 = vrsqrt.f32 %v2124_v8 }
 0x270   :  { %3756 = vperm.xlu0 %6494, %v10743_v41  }
 0x272   :  { %v10748_v31 = vpop.xlane.xlu1 %1888  ;;  %2790 = vperm.xlu1 %6492, %v2492_v29   ;;  %v1938_v29 = vmul.f32 0.0051020407, %v9501_v46  ;;  %v15887_v46 = vld [vmem:[#allocation184_spill] sm:$0xff] }
 0x273   :  { %v10750_v60 = vpop.xlane.xlu0 %1884 }
 0x274   :  { %3586 = vperm.xlu0 %6494, %v10630_v40   ;;  %v2496_v40 = vmul.f32 %v6568_v11, %v10758_v25  ;;  %v2372_v11 = vld [vmem:[%s15147_s2 + $0x190] sm:$0xff] }
 0x276   :  { %v10760_v37 = vpop.xlane.xlu1 %1896  ;;  %2800 = vperm.xlu1 %6492, %v2494_v51   ;;  %v6572_v51 = vpop.eup %6571 }
 0x277   :  { %15882 = vst [vmem:[#allocation304_spill] sm:$0xff] %v10760_v37  ;;  %v10762_v2 = vpop.xlane.xlu0 %1892  ;;  %v2500_v61 = vmul.f32 %v6572_v51, %v2372_v11  ;;  %v6574_v34 = vpop.eup %6573  ;;  %v2002_v37 = vmul.f32 0.0051020407, %v10463_v62 }
 0x278   :  { %15883 = vst [vmem:[#allocation305_spill] sm:$0xff] %v10762_v2  ;;  %3746 = vperm.xlu0 %6494, %v2376_v59   ;;  %v2502_v8 = vmul.f32 %v6574_v34, %v2374_v10  ;;  %v6576_v20 = vpop.eup %6575 }
 0x27a   :  { %v10774_v38 = vpop.xlane.xlu1 %1904  ;;  %2810 = vperm.xlu1 %6492, %v2496_v40   ;;  %v2066_v40 = vadd.f32 1e-05, %v1938_v29 }
 0x27b   :  { %15884 = vst [vmem:[#allocation306_spill] sm:$0xff] %v10774_v38  ;;  %v10777_v36 = vpop.xlane.xlu0 %1900  ;;  %v1947_v38 = vmul.f32 0.0051020407, %v15887_v46 }
 0x27c   :  { %15885 = vst [vmem:[#allocation307_spill] sm:$0xff] %v10777_v36  ;;  %3576 = vperm.xlu0 %6494, %v10618_v6   ;;  %v2126_v6 = vadd.f32 1e-05, %v1998_v49  ;;  %6581 = vrsqrt.f32 %v2066_v40 }
 0x27d   :  { %v2075_v29 = vadd.f32 1e-05, %v1947_v38  ;;  %v2130_v38 = vadd.f32 1e-05, %v2002_v37 }
 0x27e   :  { %v10785_v17 = vpop.xlane.xlu1 %1912  ;;  %2820 = vperm.xlu1 %6492, %v2498_v22   ;;  %v15889_v22 = vld [vmem:[#allocation188_spill] sm:$0xff]  ;;  %6583 = vrsqrt.f32 %v2126_v6  ;;  %v6578_v6 = vpop.eup %6577 }
 0x27f   :  { %15886 = vst [vmem:[#allocation308_spill] sm:$0xff] %v10785_v17  ;;  %v10788_v36 = vpop.xlane.xlu0 %1908  ;;  %v1949_v46 = vmul.f32 0.0051020407, %v15889_v22  ;;  %6585 = vrsqrt.f32 %v2075_v29  ;;  %v2004_v22 = vmul.f32 0.0051020407, %v10473_v23  ;;  %v2506_v37 = vmul.f32 %v6578_v6, %v10743_v41  ;;  %v6580_v23 = vpop.eup %6579 }
 0x280   :  { %15888 = vst [vmem:[#allocation184_spill] sm:$0xff] %v10788_v36  ;;  %3736 = vperm.xlu0 %6494, %v2374_v10   ;;  %v2128_v36 = vadd.f32 1e-05, %v2000_v19  ;;  %v15892_v10 = vld [vmem:[#allocation199_spill] sm:$0xff] }
 0x281   :  { %v2077_v51 = vadd.f32 1e-05, %v1949_v46  ;;  %v1953_v34 = vmul.f32 0.0051020407, %v15892_v10  ;;  %v2132_v29 = vadd.f32 1e-05, %v2004_v22 }
 0x282   :  { %v10794_v2 = vpop.xlane.xlu1 %1920  ;;  %2830 = vperm.xlu1 %6492, %v2500_v61   ;;  %v15891_v61 = vld [vmem:[#allocation193_spill] sm:$0xff]  ;;  %6587 = vrsqrt.f32 %v2128_v36  ;;  %v2006_v46 = vmul.f32 0.0051020407, %v10482_v12  ;;  %v2508_v12 = vmul.f32 %v6580_v23, %v10724_v55  ;;  %v15897_v23 = vld [vmem:[#allocation107_spill] sm:$0xff] }
 0x283   :  { %v10797_v17 = vpop.xlane.xlu0 %1916  ;;  %v1951_v40 = vmul.f32 0.0051020407, %v15891_v61  ;;  %6589 = vrsqrt.f32 %v2077_v51  ;;  %v2081_v36 = vadd.f32 1e-05, %v1953_v34  ;;  %v2008_v61 = vmul.f32 0.0051020407, %v10498_v16 }
 0x284   :  { %15890 = vst [vmem:[#allocation188_spill] sm:$0xff] %v10797_v17  ;;  %3566 = vperm.xlu0 %6494, %v10601_v53   ;;  %v2504_v17 = vmul.f32 %v6576_v20, %v2376_v59  ;;  %6591 = vrsqrt.f32 %v2130_v38  ;;  %v2134_v51 = vadd.f32 1e-05, %v2006_v46  ;;  %v15894_v38 = vld [vmem:[#allocation207_spill] sm:$0xff]  ;;  %v2010_v16 = vmul.f32 0.0051020407, %v10513_v54 }
 0x285   :  { %v2079_v53 = vadd.f32 1e-05, %v1951_v40  ;;  %v1957_v22 = vmul.f32 0.0051020407, %v15894_v38  ;;  %v2136_v34 = vadd.f32 1e-05, %v2008_v61 }
 0x286   :  { %v10801_v49 = vpop.xlane.xlu1 %1928  ;;  %2840 = vperm.xlu1 %6492, %v2502_v8   ;;  %v10846_v61 = vld [vmem:[%s15147_s2 + $0x58] sm:$0xff] }
 0x287   :  { %v10805_v19 = vpop.xlane.xlu0 %1924  ;;  %6593 = vrsqrt.f32 %v2079_v53 }
 0x288   :  { %3726 = vperm.xlu0 %6494, %v2372_v11   ;;  %v15893_v11 = vld [vmem:[#allocation205_spill] sm:$0xff]  ;;  %6595 = vrsqrt.f32 %v2132_v29  ;;  %v10833_v29 = vld [vmem:[%s15147_s2 + $0x48] sm:$0xff] }
 0x289   :  { %v6582_v20 = vpop.eup %6581  ;;  %6597 = vrsqrt.f32 %v2081_v36  ;;  %v1959_v36 = vmul.f32 0.0051020407, %v15897_v23 }
 0x28a   :  { %v10807_v62 = vpop.xlane.xlu1 %1936  ;;  %2850 = vperm.xlu1 %6492, %v2504_v17   ;;  %v1955_v17 = vmul.f32 0.0051020407, %v15893_v11  ;;  %v2450_v6 = vmul.f32 %v6582_v20, %v10656_v24  ;;  %6599 = vrsqrt.f32 %v2134_v51  ;;  %v2085_v24 = vadd.f32 1e-05, %v1957_v22  ;;  %v15898_v22 = vld [vmem:[#allocation213_spill] sm:$0xff] }
 0x28b   :  { %v10816_v8 = vpop.xlane.xlu0 %1932  ;;  %v2012_v20 = vmul.f32 0.0051020407, %v10527_v18  ;;  %v2087_v38 = vadd.f32 1e-05, %v1959_v36  ;;  %v1961_v18 = vmul.f32 0.0051020407, %v15898_v22 }
 0x28c   :  { %3556 = vperm.xlu0 %6494, %v10589_v63   ;;  %v6584_v63 = vpop.eup %6583  ;;  %v2083_v40 = vadd.f32 1e-05, %v1955_v17  ;;  %v2138_v17 = vadd.f32 1e-05, %v2010_v16  ;;  %v2014_v16 = vmul.f32 0.0051020407, %v10538_v7 }
 0x28d   :  { %v6586_v10 = vpop.eup %6585  ;;  %v2510_v55 = vmul.f32 %v6584_v63, %v10706_v42  ;;  %v2386_v63 = vld [vmem:[%s15147_s2 + $0x200] sm:$0xff] }
 0x28e   :  { %v10813_v59 = vpop.permute.xlu1 %2585  ;;  %2860 = vperm.xlu1 %6492, %v2506_v37   ;;  %6601 = vrsqrt.f32 %v2083_v40  ;;  %v2459_v54 = vmul.f32 %v6586_v10, %v10833_v29 }
 0x28f   :  { %v6588_v46 = vpop.eup %6587  ;;  %6603 = vrsqrt.f32 %v2136_v34  ;;  %v2140_v34 = vadd.f32 1e-05, %v2012_v20 }
 0x290   :  { %3716 = vperm.xlu0 %6494, %v10772_v35   ;;  %v15896_v35 = vmov 0   ;;  %v6590_v42 = vpop.eup %6589  ;;  %v2512_v51 = vmul.f32 %v6588_v46, %v10690_v15  ;;  %6605 = vrsqrt.f32 %v2085_v24  ;;  %v10861_v46 = vld [vmem:[%s15147_s2 + $0x68] sm:$0xff]  ;;  %v2388_v24 = vld [vmem:[%s15147_s2 + $0x210] sm:$0xff] }
 0x291   :  { %v2461_v15 = vmul.f32 %v6590_v42, %v10846_v61  ;;  %6607 = vrsqrt.f32 %v2138_v17  ;;  %v15900_v42 = vld [vmem:[#allocation114_spill] sm:$0xff] }
 0x292   :  { %v10821_v41 = vpop.permute.xlu1 %2590  ;;  %2870 = vperm.xlu1 %6492, %v2508_v12   ;;  %v6592_v12 = vpop.eup %6591  ;;  %6609 = vrsqrt.f32 %v2087_v38  ;;  %v1963_v17 = vmul.f32 0.0051020407, %v15900_v42  ;;  %v1965_v42 = vmul.f32 0.0051020407, %v9958_v48  ;;  %v2392_v48 = vld [vmem:[%s15147_s2 + $0x230] sm:$0xff] }
 0x293   :  { %v10825_v53 = vpop.permute.xlu0 %3551  ;;  %6611 = vrsqrt.f32 %v2140_v34 }
 0x294   :  { %15895 = vst [vmem:[#allocation193_spill] sm:$0xff] %v10825_v53  ;;  %6495 = vset.pattern.permute.xlu0 %v15896_v35  ;;  %v6594_v10 = vpop.eup %6593  ;;  %v10991_v53 = vld [vmem:[%s15147_s2 + $0x108] sm:$0xff] }
 0x295   :  { %2580 = vperm.xlu0 %6495, %v2450_v6   ;;  %v6596_v23 = vpop.eup %6595  ;;  %v2463_v20 = vmul.f32 %v6594_v10, %v10861_v46 }
 0x296   :  { %v10835_v37 = vpop.permute.xlu1 %2595  ;;  %2880 = vperm.xlu1 %6492, %v2510_v55   ;;  %v2514_v55 = vmul.f32 %v6592_v12, %v2386_v63  ;;  %v2142_v12 = vadd.f32 1e-05, %v2014_v16  ;;  %v2016_v63 = vmul.f32 0.0051020407, %v10552_v30  ;;  %v2516_v22 = vmul.f32 %v6596_v23, %v2388_v24 }
 0x297   :  { %v10838_v11 = vpop.permute.xlu0 %3536  ;;  %v2018_v23 = vmul.f32 0.0051020407, %v10557_v28 }
 0x298   :  { %v2144_v30 = vadd.f32 1e-05, %v2016_v63 }
 0x299   :  { %2625 = vperm.xlu0 %6495, %v2459_v54   ;;  %v2089_v54 = vadd.f32 1e-05, %v1961_v18  ;;  %v2091_v18 = vadd.f32 1e-05, %v1963_v17  ;;  %v1967_v17 = vmul.f32 0.0051020407, %v10001_v4 }
 0x29a   :  { %v10851_v40 = vpop.permute.xlu1 %2600  ;;  %2890 = vperm.xlu1 %6492, %v2512_v51   ;;  %v6598_v51 = vpop.eup %6597  ;;  %v2146_v63 = vadd.f32 1e-05, %v2018_v23 }
 0x29b   :  { %v10854_v6 = vpop.permute.xlu0 %3696  ;;  %6613 = vrsqrt.f32 %v2089_v54  ;;  %v2465_v10 = vmul.f32 %v6598_v51, %v10487_v43  ;;  %v2093_v43 = vadd.f32 1e-05, %v1965_v42  ;;  %v2095_v42 = vadd.f32 1e-05, %v1967_v17 }
 0x29c   :  { %15899 = vst [vmem:[#allocation199_spill] sm:$0xff] %v10854_v6  ;;  %6615 = vrsqrt.f32 %v2142_v12 }
 0x29d   :  { %2635 = vperm.xlu0 %6495, %v2461_v15   ;;  %v6600_v15 = vpop.eup %6599  ;;  %6617 = vrsqrt.f32 %v2091_v18  ;;  %v2394_v18 = vld [vmem:[%s15147_s2 + $0x240] sm:$0xff] }
 0x29e   :  { %v10866_v36 = vpop.permute.xlu1 %2605  ;;  %2900 = vperm.xlu1 %6492, %v2514_v55   ;;  %v2390_v55 = vld [vmem:[%s15147_s2 + $0x220] sm:$0xff]  ;;  %v6602_v16 = vpop.eup %6601  ;;  %6619 = vrsqrt.f32 %v2144_v30 }
 0x29f   :  { %v10869_v7 = vpop.permute.xlu0 %3526  ;;  %v2518_v24 = vmul.f32 %v6600_v15, %v2390_v55  ;;  %v6604_v6 = vpop.eup %6603  ;;  %v2341_v55 = vld [vmem:[%s15147_s2 + $0x98] sm:$0xff]  ;;  %6621 = vrsqrt.f32 %v2093_v43  ;;  %v2396_v43 = vld [vmem:[%s15147_s2 + $0x250] sm:$0xff] }
 0x2a0   :  { %v6606_v12 = vpop.eup %6605  ;;  %v2520_v15 = vmul.f32 %v6604_v6, %v2392_v48  ;;  %6623 = vrsqrt.f32 %v2146_v63  ;;  %v2343_v48 = vld [vmem:[%s15147_s2 + $0xa8] sm:$0xff] }
 0x2a1   :  { %2645 = vperm.xlu0 %6495, %v2463_v20   ;;  %v2339_v20 = vld [vmem:[%s15147_s2 + $0x88] sm:$0xff]  ;;  %6625 = vrsqrt.f32 %v2095_v42  ;;  %v2398_v42 = vld [vmem:[%s15147_s2 + $0x260] sm:$0xff] }
 0x2a2   :  { %v10876_v38 = vpop.permute.xlu1 %2610  ;;  %2910 = vperm.xlu1 %6492, %v2516_v22   ;;  %v2467_v28 = vmul.f32 %v6602_v16, %v2339_v20  ;;  %v2020_v22 = vmul.f32 0.0051020407, %v10568_v27  ;;  %v1969_v16 = vmul.f32 0.0051020407, %v10037_v44  ;;  %v2469_v27 = vmul.f32 %v6606_v12, %v2341_v55 }
 0x2a3   :  { %v10880_v34 = vpop.permute.xlu0 %3686  ;;  %v1971_v12 = vmul.f32 0.0051020407, %v10063_v50  ;;  %v2024_v55 = vmul.f32 0.0051020407, %v10593_v5 }
 0x2a4   :  { %15901 = vst [vmem:[#allocation205_spill] sm:$0xff] %v10880_v34  ;;  %v2148_v23 = vadd.f32 1e-05, %v2020_v22  ;;  %v2097_v17 = vadd.f32 1e-05, %v1969_v16  ;;  %v15913_v34 = vld [vmem:[#allocation298_spill] sm:$0xff] }
 0x2a5   :  { %2655 = vperm.xlu0 %6495, %v2465_v10   ;;  %v6608_v10 = vpop.eup %6607  ;;  %v2099_v16 = vadd.f32 1e-05, %v1971_v12 }
 0x2a6   :  { %v10889_v54 = vpop.permute.xlu1 %2615  ;;  %2920 = vperm.xlu1 %6492, %v2518_v24   ;;  %v6610_v6 = vpop.eup %6609  ;;  %v2022_v24 = vmul.f32 0.0051020407, %v10577_v1  ;;  %v2522_v20 = vmul.f32 %v6608_v10, %v2394_v18  ;;  %6627 = vrsqrt.f32 %v2148_v23  ;;  %v2345_v18 = vld [vmem:[%s15147_s2 + $0xb8] sm:$0xff] }
 0x2a7   :  { %v10892_v51 = vpop.permute.xlu0 %3516  ;;  %v2471_v1 = vmul.f32 %v6610_v6, %v2343_v48  ;;  %6629 = vrsqrt.f32 %v2097_v17  ;;  %v1973_v6 = vmul.f32 0.0051020407, %v10095_v47  ;;  %v2026_v48 = vmul.f32 0.0051020407, %v10605_v56  ;;  %v2400_v17 = vld [vmem:[%s15147_s2 + $0x270] sm:$0xff] }
 0x2a9   :  { %2665 = vperm.xlu0 %6495, %v2467_v28   ;;  %v6612_v28 = vpop.eup %6611  ;;  %v2101_v12 = vadd.f32 1e-05, %v1973_v6 }
 0x2aa   :  { %v10901_v4 = vpop.permute.xlu1 %2620  ;;  %2930 = vperm.xlu1 %6492, %v2520_v15   ;;  %v6614_v22 = vpop.eup %6613  ;;  %v2150_v15 = vadd.f32 1e-05, %v2022_v24  ;;  %v2524_v10 = vmul.f32 %v6612_v28, %v2396_v43  ;;  %v2347_v43 = vld [vmem:[%s15147_s2 + $0xc8] sm:$0xff] }
 0x2ab   :  { %v10904_v30 = vpop.permute.xlu0 %3676  ;;  %v2473_v5 = vmul.f32 %v6614_v22, %v2345_v18  ;;  %v1975_v22 = vmul.f32 0.0051020407, %v10136_v32  ;;  %v2028_v18 = vmul.f32 0.0051020407, %v10622_v33  ;;  %v2402_v32 = vld [vmem:[%s15147_s2 + $0x280] sm:$0xff] }
 0x2ac   :  { %15902 = vst [vmem:[#allocation207_spill] sm:$0xff] %v10904_v30  ;;  %6631 = vrsqrt.f32 %v2150_v15  ;;  %v10976_v30 = vld [vmem:[%s15147_s2 + $0xf8] sm:$0xff] }
 0x2ad   :  { %2675 = vperm.xlu0 %6495, %v2469_v27   ;;  %v6616_v27 = vpop.eup %6615  ;;  %6633 = vrsqrt.f32 %v2099_v16  ;;  %v2103_v6 = vadd.f32 1e-05, %v1975_v22 }
 0x2ae   :  { %v10913_v44 = vpop.permute.xlu1 %2630  ;;  %2940 = vperm.xlu1 %6492, %v2522_v20   ;;  %v6618_v24 = vpop.eup %6617  ;;  %v2152_v20 = vadd.f32 1e-05, %v2024_v55  ;;  %v2526_v28 = vmul.f32 %v6616_v27, %v2398_v42  ;;  %v10946_v42 = vld [vmem:[%s15147_s2 + $0xd8] sm:$0xff] }
 0x2af   :  { %v10916_v63 = vpop.permute.xlu0 %3506  ;;  %v2475_v56 = vmul.f32 %v6618_v24, %v2347_v43  ;;  %v1977_v24 = vmul.f32 0.0051020407, %v10167_v0  ;;  %v15906_v43 = vld [vmem:[#allocation294_spill] sm:$0xff]  ;;  %v2404_v0 = vld [vmem:[%s15147_s2 + $0x290] sm:$0xff] }
 0x2b0   :  { %6635 = vrsqrt.f32 %v2152_v20 }
 0x2b1   :  { %2685 = vperm.xlu0 %6495, %v2471_v1   ;;  %v6620_v1 = vpop.eup %6619  ;;  %6637 = vrsqrt.f32 %v2101_v12  ;;  %v2105_v22 = vadd.f32 1e-05, %v1977_v24 }
 0x2b2   :  { %v10925_v50 = vpop.permute.xlu1 %2640  ;;  %2950 = vperm.xlu1 %6492, %v2524_v10   ;;  %v6622_v55 = vpop.eup %6621  ;;  %v2154_v10 = vadd.f32 1e-05, %v2026_v48  ;;  %v2528_v27 = vmul.f32 %v6620_v1, %v2400_v17  ;;  %v2030_v1 = vmul.f32 0.0051020407, %v15906_v43 }
 0x2b3   :  { %v10928_v23 = vpop.permute.xlu0 %3666  ;;  %v2477_v20 = vmul.f32 %v6622_v55, %v10946_v42  ;;  %v15908_v55 = vld [vmem:[#allocation245_spill] sm:$0xff] }
 0x2b4   :  { %15903 = vst [vmem:[#allocation107_spill] sm:$0xff] %v10928_v23  ;;  %6639 = vrsqrt.f32 %v2154_v10  ;;  %v1979_v10 = vmul.f32 0.0051020407, %v15908_v55  ;;  %v2158_v43 = vadd.f32 1e-05, %v2030_v1  ;;  %v15909_v23 = vld [vmem:[#allocation296_spill] sm:$0xff] }
 0x2b5   :  { %2695 = vperm.xlu0 %6495, %v2473_v5   ;;  %v6624_v5 = vpop.eup %6623  ;;  %6641 = vrsqrt.f32 %v2103_v6  ;;  %v2406_v6 = vld [vmem:[%s15147_s2 + $0x2a0] sm:$0xff] }
 0x2b6   :  { %v10937_v47 = vpop.permute.xlu1 %2650  ;;  %2960 = vperm.xlu1 %6492, %v2526_v28   ;;  %v6626_v48 = vpop.eup %6625  ;;  %v2156_v28 = vadd.f32 1e-05, %v2028_v18  ;;  %v2530_v17 = vmul.f32 %v6624_v5, %v2402_v32 }
 0x2b7   :  { %v10940_v15 = vpop.permute.xlu0 %3496 }
 0x2b8   :  { %6643 = vrsqrt.f32 %v2156_v28  ;;  %v15911_v28 = vld [vmem:[#allocation251_spill] sm:$0xff] }
 0x2b9   :  { %2705 = vperm.xlu0 %6495, %v2475_v56   ;;  %v10961_v56 = vld [vmem:[%s15147_s2 + $0xe8] sm:$0xff]  ;;  %6645 = vrsqrt.f32 %v2105_v22  ;;  %v1981_v1 = vmul.f32 0.0051020407, %v15911_v28  ;;  %v2408_v22 = vld [vmem:[%s15147_s2 + $0x2b0] sm:$0xff] }
 0x2ba   :  { %v10951_v16 = vpop.permute.xlu1 %2660  ;;  %2970 = vperm.xlu1 %6492, %v2528_v27   ;;  %v6628_v27 = vpop.eup %6627  ;;  %v2479_v5 = vmul.f32 %v6626_v48, %v10961_v56  ;;  %v2107_v48 = vadd.f32 1e-05, %v1979_v10  ;;  %6647 = vrsqrt.f32 %v2158_v43  ;;  %v15915_v43 = vld [vmem:[#allocation257_spill] sm:$0xff] }
 0x2bb   :  { %15904 = vst [vmem:[#allocation213_spill] sm:$0xff] %v10951_v16  ;;  %v10954_v33 = vpop.permute.xlu0 %3656  ;;  %v6630_v32 = vpop.eup %6629  ;;  %v11021_v16 = vld [vmem:[%s15147_s2 + $0x128] sm:$0xff] }
 0x2bc   :  { %15905 = vst [vmem:[#allocation114_spill] sm:$0xff] %v10954_v33  ;;  %v2532_v33 = vmul.f32 %v6628_v27, %v2404_v0  ;;  %v2481_v27 = vmul.f32 %v6630_v32, %v10976_v30  ;;  %6649 = vrsqrt.f32 %v2107_v48  ;;  %v2109_v32 = vadd.f32 1e-05, %v1981_v1  ;;  %v2410_v48 = vld [vmem:[%s15147_s2 + $0x2c0] sm:$0xff] }
 0x2bd   :  { %2715 = vperm.xlu0 %6495, %v2477_v20   ;;  %v2032_v20 = vmul.f32 0.0051020407, %v15909_v23 }
 0x2be   :  { %v10966_v12 = vpop.permute.xlu1 %2670  ;;  %2980 = vperm.xlu1 %6492, %v2530_v17   ;;  %v6632_v17 = vpop.eup %6631 }
 0x2bf   :  { %15907 = vst [vmem:[#allocation294_spill] sm:$0xff] %v10966_v12  ;;  %v10969_v18 = vpop.permute.xlu0 %3486  ;;  %v6634_v0 = vpop.eup %6633  ;;  %v2160_v55 = vadd.f32 1e-05, %v2032_v20  ;;  %v2534_v35 = vmul.f32 %v6632_v17, %v2406_v6  ;;  %v1983_v20 = vmul.f32 0.0051020407, %v15915_v43  ;;  %v11006_v12 = vld [vmem:[%s15147_s2 + $0x118] sm:$0xff] }
 0x2c0   :  { %v2483_v17 = vmul.f32 %v6634_v0, %v10991_v53 }
 0x2c1   :  { %2725 = vperm.xlu0 %6495, %v2479_v5   ;;  %v2034_v5 = vmul.f32 0.0051020407, %v15913_v34  ;;  %6651 = vrsqrt.f32 %v2160_v55  ;;  %v2111_v0 = vadd.f32 1e-05, %v1983_v20  ;;  %v15919_v55 = vld [vmem:[#allocation260_spill] sm:$0xff] }
 0x2c2   :  { %v10981_v24 = vpop.permute.xlu1 %2680  ;;  %2990 = vperm.xlu1 %6492, %v2532_v33   ;;  %v6636_v33 = vpop.eup %6635  ;;  %6653 = vrsqrt.f32 %v2109_v32  ;;  %v2412_v32 = vld [vmem:[%s15147_s2 + $0x2d0] sm:$0xff] }
 0x2c3   :  { %15910 = vst [vmem:[#allocation245_spill] sm:$0xff] %v10981_v24  ;;  %v10984_v23 = vpop.permute.xlu0 %3646  ;;  %v6638_v6 = vpop.eup %6637  ;;  %v2162_v28 = vadd.f32 1e-05, %v2034_v5  ;;  %v2536_v24 = vmul.f32 %v6636_v33, %v2408_v22  ;;  %v1985_v5 = vmul.f32 0.0051020407, %v15919_v55 }
 0x2c4   :  { %15912 = vst [vmem:[#allocation296_spill] sm:$0xff] %v10984_v23  ;;  %v15917_v23 = vld [vmem:[#allocation300_spill] sm:$0xff]  ;;  %v2485_v33 = vmul.f32 %v6638_v6, %v11006_v12 }
 0x2c5   :  { %2735 = vperm.xlu0 %6495, %v2481_v27   ;;  %v2036_v27 = vmul.f32 0.0051020407, %v15917_v23  ;;  %6655 = vrsqrt.f32 %v2162_v28  ;;  %v2113_v6 = vadd.f32 1e-05, %v1985_v5  ;;  %v15923_v28 = vld [vmem:[#allocation263_spill] sm:$0xff] }
 0x2c6   :  { %v10996_v10 = vpop.permute.xlu1 %2690  ;;  %3000 = vperm.xlu1 %6492, %v2534_v35   ;;  %v6640_v35 = vpop.eup %6639  ;;  %6657 = vrsqrt.f32 %v2111_v0  ;;  %v2414_v0 = vld [vmem:[%s15147_s2 + $0x2e0] sm:$0xff] }
 0x2c7   :  { %15914 = vst [vmem:[#allocation251_spill] sm:$0xff] %v10996_v10  ;;  %v10999_v34 = vpop.permute.xlu0 %3476  ;;  %v6642_v22 = vpop.eup %6641  ;;  %v2164_v43 = vadd.f32 1e-05, %v2036_v27  ;;  %v2538_v10 = vmul.f32 %v6640_v35, %v2410_v48  ;;  %v1987_v27 = vmul.f32 0.0051020407, %v15923_v28 }
 0x2c8   :  { %15916 = vst [vmem:[#allocation298_spill] sm:$0xff] %v10999_v34  ;;  %v15921_v34 = vld [vmem:[#allocation302_spill] sm:$0xff]  ;;  %v2487_v35 = vmul.f32 %v6642_v22, %v11021_v16 }
 0x2c9   :  { %2745 = vperm.xlu0 %6495, %v2483_v17   ;;  %v2038_v17 = vmul.f32 0.0051020407, %v15921_v34  ;;  %6659 = vrsqrt.f32 %v2164_v43  ;;  %v2115_v22 = vadd.f32 1e-05, %v1987_v27  ;;  %v15926_v43 = vld [vmem:[#allocation268_spill] sm:$0xff] }
 0x2ca   :  { %v11011_v1 = vpop.permute.xlu1 %2700  ;;  %3010 = vperm.xlu1 %6492, %v2536_v24   ;;  %v6644_v24 = vpop.eup %6643  ;;  %6661 = vrsqrt.f32 %v2113_v6  ;;  %v2416_v6 = vld [vmem:[%s15147_s2 + $0x2f0] sm:$0xff] }
 0x2cb   :  { %15918 = vst [vmem:[#allocation257_spill] sm:$0xff] %v11011_v1  ;;  %v11014_v23 = vpop.permute.xlu0 %3636  ;;  %v6646_v48 = vpop.eup %6645  ;;  %v2166_v55 = vadd.f32 1e-05, %v2038_v17  ;;  %v11036_v1 = vld [vmem:[%s15147_s2 + $0x138] sm:$0xff]  ;;  %v1989_v17 = vmul.f32 0.0051020407, %v15926_v43 }
 0x2cc   :  { %15920 = vst [vmem:[#allocation300_spill] sm:$0xff] %v11014_v23  ;;  %v2540_v23 = vmul.f32 %v6644_v24, %v2412_v32  ;;  %v2489_v24 = vmul.f32 %v6646_v48, %v11036_v1 }
 0x2cd   :  { %2755 = vperm.xlu0 %6495, %v2485_v33   ;;  %v2040_v33 = vmul.f32 0.0051020407, %v10696_v9  ;;  %6663 = vrsqrt.f32 %v2166_v55  ;;  %v2117_v48 = vadd.f32 1e-05, %v1989_v17  ;;  %v15929_v55 = vld [vmem:[#allocation272_spill] sm:$0xff] }
 0x2ce   :  { %v11026_v20 = vpop.permute.xlu1 %2710  ;;  %3020 = vperm.xlu1 %6492, %v2538_v10   ;;  %v6648_v10 = vpop.eup %6647  ;;  %6665 = vrsqrt.f32 %v2115_v22  ;;  %v2418_v22 = vld [vmem:[%s15147_s2 + $0x300] sm:$0xff] }
 0x2cf   :  { %15922 = vst [vmem:[#allocation260_spill] sm:$0xff] %v11026_v20  ;;  %v11029_v34 = vpop.permute.xlu0 %3626  ;;  %v6650_v32 = vpop.eup %6649  ;;  %v2168_v28 = vadd.f32 1e-05, %v2040_v33  ;;  %v2542_v20 = vmul.f32 %v6648_v10, %v2414_v0  ;;  %v1991_v33 = vmul.f32 0.0051020407, %v15929_v55 }
 0x2d0   :  { %15924 = vst [vmem:[#allocation302_spill] sm:$0xff] %v11029_v34  ;;  %v11051_v34 = vld [vmem:[%s15147_s2 + $0x148] sm:$0xff] }
 0x2d1   :  { %2765 = vperm.xlu0 %6495, %v2487_v35   ;;  %v2042_v35 = vmul.f32 0.0051020407, %v10701_v45  ;;  %v2491_v10 = vmul.f32 %v6650_v32, %v11051_v34  ;;  %6667 = vrsqrt.f32 %v2168_v28  ;;  %v2119_v32 = vadd.f32 1e-05, %v1991_v33  ;;  %v15932_v28 = vld [vmem:[#allocation274_spill] sm:$0xff] }
 0x2d2   :  { %v11041_v5 = vpop.permute.xlu1 %2720  ;;  %3030 = vperm.xlu1 %6492, %v2540_v23   ;;  %v6652_v23 = vpop.eup %6651  ;;  %6669 = vrsqrt.f32 %v2117_v48  ;;  %v2420_v48 = vld [vmem:[%s15147_s2 + $0x310] sm:$0xff] }
 0x2d3   :  { %15925 = vst [vmem:[#allocation263_spill] sm:$0xff] %v11041_v5  ;;  %v11044_v9 = vpop.permute.xlu0 %3786  ;;  %v6654_v0 = vpop.eup %6653  ;;  %v2170_v43 = vadd.f32 1e-05, %v2042_v35  ;;  %v11066_v5 = vld [vmem:[%s15147_s2 + $0x158] sm:$0xff]  ;;  %v1993_v35 = vmul.f32 0.0051020407, %v15932_v28 }
 0x2d4   :  { %15927 = vst [vmem:[#allocation268_spill] sm:$0xff] %v11044_v9  ;;  %v2544_v9 = vmul.f32 %v6652_v23, %v2416_v6  ;;  %v2493_v23 = vmul.f32 %v6654_v0, %v11066_v5 }
 0x2d5   :  { %2775 = vperm.xlu0 %6495, %v2489_v24   ;;  %v2044_v24 = vmul.f32 0.0051020407, %v10713_v3  ;;  %6671 = vrsqrt.f32 %v2170_v43  ;;  %v2121_v0 = vadd.f32 1e-05, %v1993_v35  ;;  %v15935_v43 = vld [vmem:[#allocation275_spill] sm:$0xff] }
 0x2d6   :  { %v11056_v27 = vpop.permute.xlu1 %2730  ;;  %3040 = vperm.xlu1 %6492, %v2542_v20   ;;  %v6656_v20 = vpop.eup %6655  ;;  %6673 = vrsqrt.f32 %v2119_v32 }
 0x2d7   :  { %15928 = vst [vmem:[#allocation309_spill] sm:$0xff] %v11056_v27  ;;  %v11059_v45 = vpop.permute.xlu0 %3616  ;;  %v6658_v6 = vpop.eup %6657  ;;  %v2172_v55 = vadd.f32 1e-05, %v2044_v24  ;;  %v11081_v27 = vld [vmem:[%s15147_s2 + $0x168] sm:$0xff]  ;;  %v1995_v24 = vmul.f32 0.0051020407, %v15935_v43 }
 0x2d8   :  { %15930 = vst [vmem:[#allocation272_spill] sm:$0xff] %v11059_v45  ;;  %v2546_v45 = vmul.f32 %v6656_v20, %v2418_v22  ;;  %v2495_v20 = vmul.f32 %v6658_v6, %v11081_v27  ;;  %v15938_v6 = vld [vmem:[#allocation276_spill] sm:$0xff] }
 0x2d9   :  { %2785 = vperm.xlu0 %6495, %v2491_v10   ;;  %v2046_v10 = vmul.f32 0.0051020407, %v10719_v57  ;;  %6675 = vrsqrt.f32 %v2172_v55  ;;  %v2123_v35 = vadd.f32 1e-05, %v1995_v24  ;;  %v1997_v55 = vmul.f32 0.0051020407, %v15938_v6 }
 0x2da   :  { %v11071_v17 = vpop.permute.xlu1 %2740  ;;  %3050 = vperm.xlu1 %6492, %v2544_v9   ;;  %v6660_v9 = vpop.eup %6659  ;;  %6677 = vrsqrt.f32 %v2121_v0  ;;  %v15941_v6 = vld [vmem:[#allocation277_spill] sm:$0xff] }
 0x2db   :  { %15931 = vst [vmem:[#allocation310_spill] sm:$0xff] %v11071_v17  ;;  %v11074_v3 = vpop.permute.xlu0 %3776  ;;  %v6662_v22 = vpop.eup %6661  ;;  %v2174_v28 = vadd.f32 1e-05, %v2046_v10  ;;  %v2125_v24 = vadd.f32 1e-05, %v1997_v55 }
 0x2dc   :  { %15933 = vst [vmem:[#allocation274_spill] sm:$0xff] %v11074_v3  ;;  %v2548_v3 = vmul.f32 %v6660_v9, %v2420_v48  ;;  %v6664_v17 = vpop.eup %6663 }
 0x2dd   :  { %2795 = vperm.xlu0 %6495, %v2493_v23   ;;  %v11095_v23 = vld [vmem:[%s15147_s2 + $0x178] sm:$0xff]  ;;  %v6666_v48 = vpop.eup %6665  ;;  %6679 = vrsqrt.f32 %v2174_v28 }
 0x2de   :  { %v11086_v33 = vpop.permute.xlu1 %2750  ;;  %3060 = vperm.xlu1 %6492, %v2546_v45   ;;  %v2422_v45 = vld [vmem:[%s15147_s2 + $0x320] sm:$0xff]  ;;  %v2497_v9 = vmul.f32 %v6662_v22, %v11095_v23  ;;  %6681 = vrsqrt.f32 %v2123_v35  ;;  %v1999_v22 = vmul.f32 0.0051020407, %v15941_v6 }
 0x2df   :  { %15934 = vst [vmem:[#allocation311_spill] sm:$0xff] %v11086_v33  ;;  %v11089_v57 = vpop.permute.xlu0 %3606  ;;  %v2550_v43 = vmul.f32 %v6664_v17, %v2422_v45  ;;  %6683 = vrsqrt.f32 %v2125_v24  ;;  %v15945_v6 = vld [vmem:[#allocation278_spill] sm:$0xff]  ;;  %v2428_v24 = vld [vmem:[%s15147_s2 + $0x350] sm:$0xff] }
 0x2e0   :  { %15936 = vst [vmem:[#allocation275_spill] sm:$0xff] %v11089_v57  ;;  %v6668_v57 = vpop.eup %6667  ;;  %v2127_v55 = vadd.f32 1e-05, %v1999_v22 }
 0x2e1   :  { %2805 = vperm.xlu0 %6495, %v2495_v20   ;;  %v2371_v20 = vld [vmem:[%s15147_s2 + $0x188] sm:$0xff]  ;;  %v6670_v28 = vpop.eup %6669 }
 0x2e2   :  { %v11100_v32 = vpop.permute.xlu1 %2760  ;;  %3070 = vperm.xlu1 %6492, %v2548_v3   ;;  %v2424_v3 = vld [vmem:[%s15147_s2 + $0x330] sm:$0xff]  ;;  %v2499_v17 = vmul.f32 %v6666_v48, %v2371_v20  ;;  %v2001_v48 = vmul.f32 0.0051020407, %v15945_v6  ;;  %6685 = vrsqrt.f32 %v2127_v55  ;;  %v15948_v6 = vld [vmem:[#allocation279_spill] sm:$0xff] }
 0x2e3   :  { %15937 = vst [vmem:[#allocation312_spill] sm:$0xff] %v11100_v32  ;;  %v11103_v10 = vpop.permute.xlu0 %3766  ;;  %v2552_v45 = vmul.f32 %v6668_v57, %v2424_v3  ;;  %v6672_v32 = vpop.eup %6671 }
 0x2e4   :  { %15939 = vst [vmem:[#allocation276_spill] sm:$0xff] %v11103_v10  ;;  %v6674_v3 = vpop.eup %6673 }
 0x2e5   :  { %2815 = vperm.xlu0 %6495, %v2497_v9   ;;  %v11120_v9 = vld [vmem:[%s15147_s2 + $0x198] sm:$0xff] }
 0x2e6   :  { %v11112_v0 = vpop.permute.xlu1 %2770  ;;  %3080 = vperm.xlu1 %6492, %v2550_v43   ;;  %15943 = vst [vmem:[#allocation314_spill] sm:$0xff] %v11120_v9  ;;  %v2426_v43 = vld [vmem:[%s15147_s2 + $0x340] sm:$0xff]  ;;  %v2501_v57 = vmul.f32 %v6670_v28, %v11120_v9  ;;  %v2003_v28 = vmul.f32 0.0051020407, %v15948_v6  ;;  %v15951_v6 = vld [vmem:[#allocation280_spill] sm:$0xff] }
 0x2e7   :  { %15940 = vst [vmem:[#allocation313_spill] sm:$0xff] %v11112_v0  ;;  %v11115_v10 = vpop.permute.xlu0 %3596  ;;  %v6676_v0 = vpop.eup %6675 }
 0x2e8   :  { %15942 = vst [vmem:[#allocation277_spill] sm:$0xff] %v11115_v10  ;;  %v2554_v10 = vmul.f32 %v6672_v32, %v2426_v43  ;;  %v6678_v43 = vpop.eup %6677 }
 0x2e9   :  { %2825 = vperm.xlu0 %6495, %v2499_v17   ;;  %v11134_v17 = vld [vmem:[%s15147_s2 + $0x1a8] sm:$0xff] }
 0x2ea   :  { %v11125_v35 = vpop.permute.xlu1 %2780  ;;  %3090 = vperm.xlu1 %6492, %v2552_v45   ;;  %v2129_v45 = vadd.f32 1e-05, %v2001_v48  ;;  %v2503_v32 = vmul.f32 %v6674_v3, %v11134_v17  ;;  %v6680_v33 = vpop.eup %6679  ;;  %v2131_v48 = vadd.f32 1e-05, %v2003_v28  ;;  %v2005_v3 = vmul.f32 0.0051020407, %v15951_v6 }
 0x2eb   :  { %15944 = vst [vmem:[#allocation315_spill] sm:$0xff] %v11125_v35  ;;  %v11128_v20 = vpop.permute.xlu0 %3756  ;;  %v2556_v35 = vmul.f32 %v6676_v0, %v2428_v24  ;;  %v6682_v24 = vpop.eup %6681 }
 0x2ec   :  { %15946 = vst [vmem:[#allocation278_spill] sm:$0xff] %v11128_v20  ;;  %6687 = vrsqrt.f32 %v2129_v45  ;;  %v15954_v45 = vld [vmem:[#allocation281_spill] sm:$0xff] }
 0x2ed   :  { %2835 = vperm.xlu0 %6495, %v2501_v57   ;;  %v11148_v57 = vld [vmem:[%s15147_s2 + $0x1b8] sm:$0xff]  ;;  %6689 = vrsqrt.f32 %v2131_v48  ;;  %v2007_v28 = vmul.f32 0.0051020407, %v15954_v45  ;;  %v15958_v48 = vld [vmem:[#allocation282_spill] sm:$0xff] }
 0x2ee   :  { %v11139_v22 = vpop.permute.xlu1 %2790  ;;  %3100 = vperm.xlu1 %6492, %v2554_v10   ;;  %v2430_v10 = vld [vmem:[%s15147_s2 + $0x360] sm:$0xff]  ;;  %v2505_v0 = vmul.f32 %v6678_v43, %v11148_v57  ;;  %v6684_v43 = vpop.eup %6683 }
 0x2ef   :  { %15947 = vst [vmem:[#allocation316_spill] sm:$0xff] %v11139_v22  ;;  %v11142_v20 = vpop.permute.xlu0 %3586  ;;  %v2558_v22 = vmul.f32 %v6680_v33, %v2430_v10  ;;  %v11173_v33 = vld [vmem:[%s15147_s2 + $0x1d8] sm:$0xff] }
 0x2f0   :  { %15949 = vst [vmem:[#allocation279_spill] sm:$0xff] %v11142_v20 }
 0x2f1   :  { %2845 = vperm.xlu0 %6495, %v2503_v32   ;;  %v11162_v32 = vld [vmem:[%s15147_s2 + $0x1c8] sm:$0xff] }
 0x2f2   :  { %v11153_v55 = vpop.permute.xlu1 %2800  ;;  %3110 = vperm.xlu1 %6492, %v2556_v35   ;;  %v2133_v35 = vadd.f32 1e-05, %v2005_v3  ;;  %v2009_v3 = vmul.f32 0.0051020407, %v15958_v48  ;;  %v15961_v48 = vld [vmem:[#allocation283_spill] sm:$0xff] }
 0x2f3   :  { %15950 = vst [vmem:[#allocation317_spill] sm:$0xff] %v11153_v55  ;;  %v11156_v20 = vpop.permute.xlu0 %3746  ;;  %v6686_v55 = vpop.eup %6685 }
 0x2f4   :  { %15952 = vst [vmem:[#allocation280_spill] sm:$0xff] %v11156_v20  ;;  %v2507_v20 = vmul.f32 %v6682_v24, %v11162_v32  ;;  %6691 = vrsqrt.f32 %v2133_v35  ;;  %v7027_v24 = vld [vmem:[%s15147_s2 + $0x70] sm:$0xff] }
 0x2f5   :  { %2855 = vperm.xlu0 %6495, %v2505_v0   ;;  %v15957_v0 = vmov 1  }
 0x2f6   :  { %v11164_v9 = vpop.permute.xlu1 %2810  ;;  %3120 = vperm.xlu1 %6492, %v2558_v22   ;;  %v2135_v22 = vadd.f32 1e-05, %v2007_v28  ;;  %v2137_v28 = vadd.f32 1e-05, %v2009_v3  ;;  %v15964_v3 = vld [vmem:[#allocation284_spill] sm:$0xff] }
 0x2f7   :  { %15953 = vst [vmem:[#allocation318_spill] sm:$0xff] %v11164_v9  ;;  %v11167_v6 = vpop.permute.xlu0 %3576 }
 0x2f8   :  { %15955 = vst [vmem:[#allocation281_spill] sm:$0xff] %v11167_v6  ;;  %v2509_v6 = vmul.f32 %v6684_v43, %v11173_v33  ;;  %6693 = vrsqrt.f32 %v2135_v22 }
 0x2f9   :  { %2865 = vperm.xlu0 %6495, %v2507_v20   ;;  %v11188_v20 = vld [vmem:[%s15147_s2 + $0x1e8] sm:$0xff]  ;;  %v6688_v43 = vpop.eup %6687  ;;  %6695 = vrsqrt.f32 %v2137_v28  ;;  %v15967_v28 = vld [vmem:[#allocation285_spill] sm:$0xff] }
 0x2fa   :  { %v11175_v10 = vpop.permute.xlu1 %2820  ;;  %6493 = vset.pattern.permute.xlu1 %v15957_v0  ;;  %v11200_v0 = vld [vmem:[%s15147_s2 + $0x1f8] sm:$0xff] }
 0x2fb   :  { %15956 = vst [vmem:[#allocation319_spill] sm:$0xff] %v11175_v10  ;;  %v11179_v45 = vpop.permute.xlu0 %3736  ;;  %3546 = vperm.xlu1 %6493, %v7027_v24   ;;  %v2511_v24 = vmul.f32 %v6686_v55, %v11188_v20  ;;  %v6690_v55 = vpop.eup %6689 }
 0x2fc   :  { %15959 = vst [vmem:[#allocation282_spill] sm:$0xff] %v11179_v45  ;;  %v2011_v45 = vmul.f32 0.0051020407, %v15961_v48 }
 0x2fd   :  { %2875 = vperm.xlu0 %6495, %v2509_v6  }
 0x2fe   :  { %v11190_v35 = vpop.permute.xlu1 %2830  ;;  %v2139_v22 = vadd.f32 1e-05, %v2011_v45  ;;  %v2015_v45 = vmul.f32 0.0051020407, %v15967_v28 }
 0x2ff   :  { %15960 = vst [vmem:[#allocation320_spill] sm:$0xff] %v11190_v35  ;;  %v11193_v10 = vpop.permute.xlu0 %3566  ;;  %3706 = vperm.xlu1 %6493, %v10758_v25   ;;  %v2013_v35 = vmul.f32 0.0051020407, %v15964_v3  ;;  %v2513_v25 = vmul.f32 %v6688_v43, %v11200_v0  ;;  %v2389_v43 = vld [vmem:[%s15147_s2 + $0x218] sm:$0xff] }
 0x300   :  { %15962 = vst [vmem:[#allocation283_spill] sm:$0xff] %v11193_v10  ;;  %v2387_v10 = vld [vmem:[%s15147_s2 + $0x208] sm:$0xff]  ;;  %6697 = vrsqrt.f32 %v2139_v22 }
 0x301   :  { %2885 = vperm.xlu0 %6495, %v2511_v24   ;;  %v2141_v24 = vadd.f32 1e-05, %v2013_v35  ;;  %v2515_v3 = vmul.f32 %v6690_v55, %v2387_v10 }
 0x302   :  { %v11202_v6 = vpop.permute.xlu1 %2840 }
 0x303   :  { %15963 = vst [vmem:[#allocation321_spill] sm:$0xff] %v11202_v6  ;;  %v11205_v48 = vpop.permute.xlu0 %3726  ;;  %3711 = vperm.xlu1 %6493, %v11095_v23   ;;  %v6692_v23 = vpop.eup %6691  ;;  %6699 = vrsqrt.f32 %v2141_v24 }
 0x304   :  { %15965 = vst [vmem:[#allocation284_spill] sm:$0xff] %v11205_v48  ;;  %v2517_v28 = vmul.f32 %v6692_v23, %v2389_v43 }
 0x305   :  { %2895 = vperm.xlu0 %6495, %v2513_v25   ;;  %v2143_v25 = vadd.f32 1e-05, %v2015_v45 }
 0x306   :  { %v11212_v9 = vpop.permute.xlu1 %2850 }
 0x307   :  { %15966 = vst [vmem:[#allocation322_spill] sm:$0xff] %v11212_v9  ;;  %v11215_v6 = vpop.permute.xlu0 %3556  ;;  %3541 = vperm.xlu1 %6493, %v10861_v46   ;;  %v15970_v9 = vld [vmem:[#allocation286_spill] sm:$0xff]  ;;  %v2391_v46 = vld [vmem:[%s15147_s2 + $0x228] sm:$0xff]  ;;  %6701 = vrsqrt.f32 %v2143_v25 }
 0x308   :  { %15968 = vst [vmem:[#allocation285_spill] sm:$0xff] %v11215_v6  ;;  %v2017_v22 = vmul.f32 0.0051020407, %v15970_v9  ;;  %v6694_v6 = vpop.eup %6693 }
 0x309   :  { %2905 = vperm.xlu0 %6495, %v2515_v3   ;;  %v15973_v3 = vld [vmem:[#allocation287_spill] sm:$0xff]  ;;  %v2519_v9 = vmul.f32 %v6694_v6, %v2391_v46  ;;  %v6696_v45 = vpop.eup %6695 }
 0x30a   :  { %v11221_v48 = vpop.permute.xlu1 %2860  ;;  %v2145_v55 = vadd.f32 1e-05, %v2017_v22  ;;  %v2019_v24 = vmul.f32 0.0051020407, %v15973_v3  ;;  %v2395_v6 = vld [vmem:[%s15147_s2 + $0x248] sm:$0xff] }
 0x30b   :  { %15969 = vst [vmem:[#allocation323_spill] sm:$0xff] %v11221_v48  ;;  %v11224_v35 = vpop.permute.xlu0 %3716  ;;  %3701 = vperm.xlu1 %6493, %v11081_v27   ;;  %v2393_v27 = vld [vmem:[%s15147_s2 + $0x238] sm:$0xff] }
 0x30c   :  { %15971 = vst [vmem:[#allocation286_spill] sm:$0xff] %v11224_v35  ;;  %6703 = vrsqrt.f32 %v2145_v55  ;;  %v2147_v43 = vadd.f32 1e-05, %v2019_v24  ;;  %v2521_v22 = vmul.f32 %v6696_v45, %v2393_v27  ;;  %v15978_v48 = vld [vmem:[#allocation289_spill] sm:$0xff] }
 0x30d   :  { %2915 = vperm.xlu0 %6495, %v2517_v28   ;;  %v15976_v28 = vld [vmem:[#allocation288_spill] sm:$0xff]  ;;  %v6698_v3 = vpop.eup %6697  ;;  %v2023_v55 = vmul.f32 0.0051020407, %v15978_v48  ;;  %v2397_v45 = vld [vmem:[%s15147_s2 + $0x258] sm:$0xff] }
 0x30e   :  { %v11230_v10 = vpop.permute.xlu1 %2870  ;;  %v2021_v25 = vmul.f32 0.0051020407, %v15976_v28  ;;  %6705 = vrsqrt.f32 %v2147_v43  ;;  %v2523_v24 = vmul.f32 %v6698_v3, %v2395_v6  ;;  %v2399_v3 = vld [vmem:[%s15147_s2 + $0x268] sm:$0xff] }
 0x30f   :  { %15972 = vst [vmem:[#allocation324_spill] sm:$0xff] %v11230_v10  ;;  %3531 = vperm.xlu1 %6493, %v10846_v61   ;;  %v15980_v10 = vld [vmem:[#allocation290_spill] sm:$0xff] }
 0x310   :  { %v11234_v35 = vpop.permute.xlu0 %2580  ;;  %v6700_v28 = vpop.eup %6699  ;;  %v2025_v43 = vmul.f32 0.0051020407, %v15980_v10  ;;  %v7028_v10 = vld [vmem:[%s15147_s2 + $0x38] sm:$0xff] }
 0x311   :  { %15974 = vst [vmem:[#allocation287_spill] sm:$0xff] %v11234_v35  ;;  %2925 = vperm.xlu0 %6495, %v2519_v9   ;;  %v2149_v9 = vadd.f32 1e-05, %v2021_v25  ;;  %v2525_v48 = vmul.f32 %v6700_v28, %v2397_v45  ;;  %v11277_v45 = vld [vmem:[%s15147_s2 + $0x278] sm:$0xff]  ;;  %v16040_v35 = vld [vmem:[#allocation40_spill] sm:$0xff] }
 0x312   :  { %v11239_v23 = vpop.permute.xlu1 %2880 }
 0x313   :  { %15975 = vst [vmem:[#allocation325_spill] sm:$0xff] %v11239_v23  ;;  %3691 = vperm.xlu1 %6493, %v11066_v5   ;;  %6707 = vrsqrt.f32 %v2149_v9 }
 0x314   :  { %v11243_v61 = vpop.permute.xlu0 %2625  ;;  %v6702_v25 = vpop.eup %6701 }
 0x315   :  { %2935 = vperm.xlu0 %6495, %v2521_v22   ;;  %v2151_v22 = vadd.f32 1e-05, %v2023_v55 }
 0x316   :  { %v11248_v46 = vpop.permute.xlu1 %2890 }
 0x317   :  { %15977 = vst [vmem:[#allocation288_spill] sm:$0xff] %v11248_v46  ;;  %3521 = vperm.xlu1 %6493, %v10833_v29   ;;  %6709 = vrsqrt.f32 %v2151_v22 }
 0x318   :  { %v11252_v5 = vpop.permute.xlu0 %2635 }
 0x319   :  { %2945 = vperm.xlu0 %6495, %v2523_v24   ;;  %v2153_v24 = vadd.f32 1e-05, %v2025_v43  ;;  %v6704_v55 = vpop.eup %6703 }
 0x31a   :  { %v11257_v27 = vpop.permute.xlu1 %2900 }
 0x31b   :  { %15979 = vst [vmem:[#allocation289_spill] sm:$0xff] %v11257_v27  ;;  %3681 = vperm.xlu1 %6493, %v11051_v34   ;;  %v15982_v27 = vld [vmem:[#allocation291_spill] sm:$0xff]  ;;  %v2527_v34 = vmul.f32 %v6702_v25, %v2399_v3  ;;  %6711 = vrsqrt.f32 %v2153_v24  ;;  %v6706_v25 = vpop.eup %6705  ;;  %v15987_v24 = vld [vmem:[#allocation293_spill] sm:$0xff] }
 0x31c   :  { %v11261_v29 = vpop.permute.xlu0 %2645  ;;  %v2027_v9 = vmul.f32 0.0051020407, %v15982_v27  ;;  %v15984_v27 = vld [vmem:[#allocation292_spill] sm:$0xff] }
 0x31d   :  { %2955 = vperm.xlu0 %6495, %v2525_v48   ;;  %v2029_v43 = vmul.f32 0.0051020407, %v15984_v27 }
 0x31e   :  { %v11266_v6 = vpop.permute.xlu1 %2910  ;;  %v2155_v22 = vadd.f32 1e-05, %v2027_v9  ;;  %v2031_v9 = vmul.f32 0.0051020407, %v15987_v24 }
 0x31f   :  { %15981 = vst [vmem:[#allocation290_spill] sm:$0xff] %v11266_v6  ;;  %3511 = vperm.xlu1 %6493, %v7028_v10   ;;  %v2529_v10 = vmul.f32 %v6704_v55, %v11277_v45  ;;  %v2403_v6 = vld [vmem:[%s15147_s2 + $0x288] sm:$0xff] }
 0x320   :  { %v11272_v28 = vpop.permute.xlu0 %2655  ;;  %6713 = vrsqrt.f32 %v2155_v22  ;;  %v2531_v55 = vmul.f32 %v6706_v25, %v2403_v6  ;;  %v6708_v27 = vpop.eup %6707  ;;  %v2159_v22 = vadd.f32 1e-05, %v2031_v9  ;;  %v2407_v6 = vld [vmem:[%s15147_s2 + $0x2a8] sm:$0xff]  ;;  %v7030_v9 = vld [vmem:[%s15147_s2 + $0x18] sm:$0xff] }
 0x321   :  { %2965 = vperm.xlu0 %6495, %v2527_v34   ;;  %v2157_v34 = vadd.f32 1e-05, %v2029_v43  ;;  %v15990_v43 = vld [vmem:[#allocation295_spill] sm:$0xff] }
 0x322   :  { %v11279_v48 = vpop.permute.xlu1 %2920  ;;  %v2033_v24 = vmul.f32 0.0051020407, %v15990_v43  ;;  %v2409_v43 = vld [vmem:[%s15147_s2 + $0x2b8] sm:$0xff] }
 0x323   :  { %15983 = vst [vmem:[#allocation291_spill] sm:$0xff] %v11279_v48  ;;  %3671 = vperm.xlu1 %6493, %v11036_v1   ;;  %v7029_v1 = vld [vmem:[%s15147_s2 + $0x28] sm:$0xff]  ;;  %6715 = vrsqrt.f32 %v2157_v34 }
 0x324   :  { %v11284_v3 = vpop.permute.xlu0 %2665  ;;  %v6710_v46 = vpop.eup %6709  ;;  %6717 = vrsqrt.f32 %v2159_v22 }
 0x325   :  { %15985 = vst [vmem:[#allocation292_spill] sm:$0xff] %v11284_v3  ;;  %2975 = vperm.xlu0 %6495, %v2529_v10   ;;  %v2405_v3 = vld [vmem:[%s15147_s2 + $0x298] sm:$0xff] }
 0x326   :  { %v11289_v23 = vpop.permute.xlu1 %2930 }
 0x327   :  { %15986 = vst [vmem:[#allocation326_spill] sm:$0xff] %v11289_v23  ;;  %3501 = vperm.xlu1 %6493, %v7029_v1   ;;  %v2533_v23 = vmul.f32 %v6708_v27, %v2405_v3 }
 0x328   :  { %v11295_v48 = vpop.permute.xlu0 %2675  ;;  %v6712_v3 = vpop.eup %6711 }
 0x329   :  { %15988 = vst [vmem:[#allocation293_spill] sm:$0xff] %v11295_v48  ;;  %2985 = vperm.xlu0 %6495, %v2531_v55   ;;  %v2161_v55 = vadd.f32 1e-05, %v2033_v24  ;;  %v15996_v24 = vld [vmem:[#allocation299_spill] sm:$0xff] }
 0x32a   :  { %v11300_v10 = vpop.permute.xlu1 %2940 }
 0x32b   :  { %15989 = vst [vmem:[#allocation327_spill] sm:$0xff] %v11300_v10  ;;  %3661 = vperm.xlu1 %6493, %v11021_v16   ;;  %v15993_v10 = vld [vmem:[#allocation297_spill] sm:$0xff]  ;;  %v2535_v16 = vmul.f32 %v6710_v46, %v2407_v6  ;;  %6719 = vrsqrt.f32 %v2161_v55  ;;  %v2411_v46 = vld [vmem:[%s15147_s2 + $0x2c8] sm:$0xff] }
 0x32c   :  { %v11304_v1 = vpop.permute.xlu0 %2685  ;;  %v2035_v34 = vmul.f32 0.0051020407, %v15993_v10  ;;  %v2037_v10 = vmul.f32 0.0051020407, %v15996_v24  ;;  %v2413_v24 = vld [vmem:[%s15147_s2 + $0x2d8] sm:$0xff] }
 0x32d   :  { %15991 = vst [vmem:[#allocation295_spill] sm:$0xff] %v11304_v1  ;;  %2995 = vperm.xlu0 %6495, %v2533_v23   ;;  %v6714_v48 = vpop.eup %6713 }
 0x32e   :  { %v11309_v25 = vpop.permute.xlu1 %2950  ;;  %v2163_v22 = vadd.f32 1e-05, %v2035_v34  ;;  %v7031_v34 = vld [vmem:[%s15147_s2 + $0x8] sm:$0xff] }
 0x32f   :  { %15992 = vst [vmem:[#allocation328_spill] sm:$0xff] %v11309_v25  ;;  %3491 = vperm.xlu1 %6493, %v7030_v9   ;;  %v2537_v25 = vmul.f32 %v6712_v3, %v2409_v43 }
 0x330   :  { %v11315_v27 = vpop.permute.xlu0 %2695  ;;  %6721 = vrsqrt.f32 %v2163_v22  ;;  %v6716_v3 = vpop.eup %6715 }
 0x331   :  { %15994 = vst [vmem:[#allocation297_spill] sm:$0xff] %v11315_v27  ;;  %3005 = vperm.xlu0 %6495, %v2535_v16   ;;  %v2165_v16 = vadd.f32 1e-05, %v2037_v10  ;;  %v2541_v10 = vmul.f32 %v6716_v3, %v2413_v24 }
 0x332   :  { %v11320_v23 = vpop.permute.xlu1 %2960 }
 0x333   :  { %15995 = vst [vmem:[#allocation329_spill] sm:$0xff] %v11320_v23  ;;  %3651 = vperm.xlu1 %6493, %v11006_v12   ;;  %v15999_v23 = vld [vmem:[#allocation301_spill] sm:$0xff]  ;;  %v2539_v12 = vmul.f32 %v6714_v48, %v2411_v46  ;;  %6723 = vrsqrt.f32 %v2165_v16  ;;  %v2043_v48 = vmul.f32 0.0051020407, %v10699_v58  ;;  %v2047_v16 = vmul.f32 0.0051020407, %v10717_v39 }
 0x334   :  { %v11324_v9 = vpop.permute.xlu0 %2705  ;;  %v2039_v55 = vmul.f32 0.0051020407, %v15999_v23  ;;  %v2041_v23 = vmul.f32 0.0051020407, %v10694_v13 }
 0x335   :  { %15997 = vst [vmem:[#allocation299_spill] sm:$0xff] %v11324_v9  ;;  %3015 = vperm.xlu0 %6495, %v2537_v25   ;;  %v2171_v24 = vadd.f32 1e-05, %v2043_v48 }
 0x336   :  { %v11329_v6 = vpop.permute.xlu1 %2970  ;;  %v2167_v22 = vadd.f32 1e-05, %v2039_v55  ;;  %v2169_v13 = vadd.f32 1e-05, %v2041_v23 }
 0x337   :  { %15998 = vst [vmem:[#allocation330_spill] sm:$0xff] %v11329_v6  ;;  %3481 = vperm.xlu1 %6493, %v7031_v34   ;;  %v6718_v6 = vpop.eup %6717  ;;  %v2415_v34 = vld [vmem:[%s15147_s2 + $0x2e8] sm:$0xff] }
 0x338   :  { %v11335_v43 = vpop.permute.xlu0 %2715  ;;  %6725 = vrsqrt.f32 %v2167_v22  ;;  %v2543_v58 = vmul.f32 %v6718_v6, %v2415_v34  ;;  %v6720_v3 = vpop.eup %6719  ;;  %v2175_v22 = vadd.f32 1e-05, %v2047_v16  ;;  %v2052_v6 = vmul.f32 0.0051020407, %v10750_v60  ;;  %v16008_v16 = vld [vmem:[#allocation305_spill] sm:$0xff] }
 0x339   :  { %16000 = vst [vmem:[#allocation301_spill] sm:$0xff] %v11335_v43  ;;  %3025 = vperm.xlu0 %6495, %v2539_v12   ;;  %v2045_v12 = vmul.f32 0.0051020407, %v10711_v14  ;;  %v2417_v14 = vld [vmem:[%s15147_s2 + $0x2f8] sm:$0xff]  ;;  %6727 = vrsqrt.f32 %v2169_v13  ;;  %v2054_v13 = vmul.f32 0.0051020407, %v16008_v16 }
 0x33a   :  { %v11340_v25 = vpop.permute.xlu1 %2980  ;;  %6729 = vrsqrt.f32 %v2171_v24 }
 0x33b   :  { %16001 = vst [vmem:[#allocation331_spill] sm:$0xff] %v11340_v25  ;;  %3641 = vperm.xlu1 %6493, %v10991_v53   ;;  %v2049_v53 = vmul.f32 0.0051020407, %v10729_v52  ;;  %v2048_v25 = vmul.f32 0.0051020407, %v10731_v21  ;;  %v2545_v21 = vmul.f32 %v6720_v3, %v2417_v14 }
 0x33c   :  { %v11345_v46 = vpop.permute.xlu0 %2725  ;;  %v2173_v39 = vadd.f32 1e-05, %v2045_v12  ;;  %v2053_v52 = vmul.f32 0.0051020407, %v10748_v31 }
 0x33d   :  { %16002 = vst [vmem:[#allocation332_spill] sm:$0xff] %v11345_v46  ;;  %3035 = vperm.xlu0 %6495, %v2541_v10   ;;  %v2050_v10 = vmul.f32 0.0051020407, %v10738_v26  ;;  %v6722_v48 = vpop.eup %6721  ;;  %v2176_v34 = vadd.f32 1e-05, %v2048_v25  ;;  %v2419_v26 = vld [vmem:[%s15147_s2 + $0x308] sm:$0xff] }
 0x33e   :  { %v11352_v55 = vpop.permute.xlu1 %2990  ;;  %6731 = vrsqrt.f32 %v2173_v39  ;;  %v2181_v60 = vadd.f32 1e-05, %v2053_v52  ;;  %v2180_v25 = vadd.f32 1e-05, %v2052_v6  ;;  %v2547_v24 = vmul.f32 %v6722_v48, %v2419_v26  ;;  %v2442_v46 = vld [vmem:[%s15147_s2 + $0x3c0] sm:$0xff] }
 0x33f   :  { %16003 = vst [vmem:[#allocation333_spill] sm:$0xff] %v11352_v55  ;;  %3631 = vperm.xlu1 %6493, %v10976_v30   ;;  %v2177_v30 = vadd.f32 1e-05, %v2049_v53  ;;  %v16006_v55 = vld [vmem:[#allocation304_spill] sm:$0xff]  ;;  %v2178_v31 = vadd.f32 1e-05, %v2050_v10  ;;  %6733 = vrsqrt.f32 %v2175_v22 }
 0x340   :  { %v11357_v1 = vpop.permute.xlu0 %2735  ;;  %v2055_v12 = vmul.f32 0.0051020407, %v16006_v55  ;;  %v16011_v55 = vld [vmem:[#allocation307_spill] sm:$0xff]  ;;  %v6724_v14 = vpop.eup %6723  ;;  %v16012_v10 = vld [vmem:[#allocation308_spill] sm:$0xff]  ;;  %v2421_v22 = vld [vmem:[%s15147_s2 + $0x318] sm:$0xff] }
 0x341   :  { %16004 = vst [vmem:[#allocation334_spill] sm:$0xff] %v11357_v1  ;;  %3045 = vperm.xlu0 %6495, %v2543_v58   ;;  %6735 = vrsqrt.f32 %v2177_v30  ;;  %v2056_v3 = vmul.f32 0.0051020407, %v16011_v55  ;;  %v2182_v52 = vadd.f32 1e-05, %v2054_v13  ;;  %v16014_v30 = vld [vmem:[#allocation184_spill] sm:$0xff] }
 0x342   :  { %v11364_v23 = vpop.permute.xlu1 %3000  ;;  %6737 = vrsqrt.f32 %v2176_v34  ;;  %v2183_v39 = vadd.f32 1e-05, %v2055_v12  ;;  %v2058_v6 = vmul.f32 0.0051020407, %v16014_v30  ;;  %v16016_v12 = vld [vmem:[#allocation188_spill] sm:$0xff] }
 0x343   :  { %16005 = vst [vmem:[#allocation335_spill] sm:$0xff] %v11364_v23  ;;  %3791 = vperm.xlu1 %6493, %v11200_v0   ;;  %v16009_v0 = vld [vmem:[#allocation306_spill] sm:$0xff]  ;;  %v2059_v23 = vmul.f32 0.0051020407, %v16012_v10  ;;  %6739 = vrsqrt.f32 %v2178_v31  ;;  %v2184_v34 = vadd.f32 1e-05, %v2056_v3 }
 0x344   :  { %v11369_v27 = vpop.permute.xlu0 %2745  ;;  %v2057_v53 = vmul.f32 0.0051020407, %v16009_v0  ;;  %6741 = vrsqrt.f32 %v2181_v60  ;;  %v2060_v26 = vmul.f32 0.0051020407, %v16016_v12  ;;  %v2549_v0 = vmul.f32 %v6724_v14, %v2421_v22 }
 0x345   :  { %16007 = vst [vmem:[#allocation304_spill] sm:$0xff] %v11369_v27  ;;  %3055 = vperm.xlu0 %6495, %v2545_v21   ;;  %6743 = vrsqrt.f32 %v2180_v25  ;;  %v6726_v55 = vpop.eup %6725  ;;  %v2187_v31 = vadd.f32 1e-05, %v2059_v23  ;;  %v2063_v13 = vmul.f32 0.0051020407, %v10801_v49 }
 0x346   :  { %v11376_v58 = vpop.permute.xlu1 %3010  ;;  %v2185_v21 = vadd.f32 1e-05, %v2057_v53  ;;  %6745 = vrsqrt.f32 %v2183_v39  ;;  %v2186_v60 = vadd.f32 1e-05, %v2058_v6  ;;  %v2062_v53 = vmul.f32 0.0051020407, %v10805_v19  ;;  %v6728_v14 = vpop.eup %6727 }
 0x347   :  { %16010 = vst [vmem:[#allocation305_spill] sm:$0xff] %v11376_v58  ;;  %3621 = vperm.xlu1 %6493, %v10961_v56   ;;  %v2061_v56 = vmul.f32 0.0051020407, %v10794_v2  ;;  %v2423_v2 = vld [vmem:[%s15147_s2 + $0x328] sm:$0xff]  ;;  %6747 = vrsqrt.f32 %v2182_v52  ;;  %v2188_v23 = vadd.f32 1e-05, %v2060_v26  ;;  %v6730_v52 = vpop.eup %6729 }
 0x348   :  { %v11381_v16 = vpop.permute.xlu0 %2755  ;;  %6749 = vrsqrt.f32 %v2185_v21  ;;  %v2064_v49 = vmul.f32 0.0051020407, %v10816_v8  ;;  %v2191_v39 = vadd.f32 1e-05, %v2063_v13  ;;  %v2425_v19 = vld [vmem:[%s15147_s2 + $0x338] sm:$0xff]  ;;  %v11417_v26 = vld [vmem:[%s15147_s2 + $0x348] sm:$0xff] }
 0x349   :  { %16013 = vst [vmem:[#allocation306_spill] sm:$0xff] %v11381_v16  ;;  %3065 = vperm.xlu0 %6495, %v2547_v24   ;;  %v2189_v25 = vadd.f32 1e-05, %v2061_v56  ;;  %6751 = vrsqrt.f32 %v2184_v34  ;;  %v2551_v24 = vmul.f32 %v6726_v55, %v2423_v2  ;;  %v2553_v56 = vmul.f32 %v6728_v14, %v2425_v19  ;;  %16020 = vst [vmem:[#allocation336_spill] sm:$0xff] %v11417_v26  ;;  %v2436_v19 = vld [vmem:[%s15147_s2 + $0x390] sm:$0xff] }
 0x34a   :  { %v11388_v48 = vpop.permute.xlu1 %3020  ;;  %6753 = vrsqrt.f32 %v2187_v31  ;;  %v2192_v21 = vadd.f32 1e-05, %v2064_v49  ;;  %v2555_v2 = vmul.f32 %v6730_v52, %v11417_v26  ;;  %v11440_v49 = vld [vmem:[%s15147_s2 + $0x378] sm:$0xff]  ;;  %v2434_v52 = vld [vmem:[%s15147_s2 + $0x380] sm:$0xff] }
 0x34b   :  { %16015 = vst [vmem:[#allocation307_spill] sm:$0xff] %v11388_v48  ;;  %3781 = vperm.xlu1 %6493, %v11188_v20   ;;  %v2065_v20 = vmul.f32 0.0051020407, %v10807_v62  ;;  %6755 = vrsqrt.f32 %v2186_v60  ;;  %v2190_v62 = vadd.f32 1e-05, %v2062_v53  ;;  %v6732_v30 = vpop.eup %6731  ;;  %v16041_v26 = vld [vmem:[#allocation38_spill] sm:$0xff] }
 0x34c   :  { %v11393_v10 = vpop.permute.xlu0 %2765  ;;  %6757 = vrsqrt.f32 %v2189_v25  ;;  %v11430_v25 = vld [vmem:[%s15147_s2 + $0x358] sm:$0xff] }
 0x34d   :  { %16017 = vst [vmem:[#allocation308_spill] sm:$0xff] %v11393_v10  ;;  %3075 = vperm.xlu0 %6495, %v2549_v0   ;;  %v2193_v6 = vadd.f32 1e-05, %v2065_v20  ;;  %6759 = vrsqrt.f32 %v2188_v23  ;;  %v11435_v23 = vld [vmem:[%s15147_s2 + $0x368] sm:$0xff]  ;;  %v3243_v10 = vmul.f32 %v10925_v50, %v16041_v26  ;;  %v2449_v26 = vld [vmem:[%s15147_s2 + $0x3f8] sm:$0xff] }
 0x34e   :  { %v11400_v3 = vpop.permute.xlu1 %3030  ;;  %6761 = vrsqrt.f32 %v2191_v39  ;;  %v11447_v39 = vld [vmem:[%s15147_s2 + $0x370] sm:$0xff] }
 0x34f   :  { %16018 = vst [vmem:[#allocation184_spill] sm:$0xff] %v11400_v3  ;;  %3611 = vperm.xlu1 %6493, %v10946_v42   ;;  %v6734_v42 = vpop.eup %6733  ;;  %6763 = vrsqrt.f32 %v2190_v62 }
 0x350   :  { %v11404_v22 = vpop.permute.xlu0 %2775  ;;  %v6736_v34 = vpop.eup %6735  ;;  %6765 = vrsqrt.f32 %v2193_v6  ;;  %v2557_v6 = vmul.f32 %v6732_v30, %v11430_v25  ;;  %v2441_v30 = vld [vmem:[%s15147_s2 + $0x3b8] sm:$0xff]  ;;  %v2559_v3 = vmul.f32 %v6734_v42, %v11435_v23  ;;  %v2443_v42 = vld [vmem:[%s15147_s2 + $0x3c8] sm:$0xff] }
 0x351   :  { %3085 = vperm.xlu0 %6495, %v2551_v24   ;;  %v6738_v0 = vpop.eup %6737  ;;  %6767 = vrsqrt.f32 %v2192_v21  ;;  %v2438_v21 = vld [vmem:[%s15147_s2 + $0x3a0] sm:$0xff] }
 0x352   :  { %v11409_v8 = vpop.permute.xlu1 %3040  ;;  %v6740_v55 = vpop.eup %6739 }
 0x353   :  { %16019 = vst [vmem:[#allocation188_spill] sm:$0xff] %v11409_v8  ;;  %3771 = vperm.xlu1 %6493, %v11173_v33   ;;  %v6742_v13 = vpop.eup %6741  ;;  %v7032_v33 = vld [vmem:[%s15147_s2 + $0xc8] sm:$0xff]  ;;  %v2560_v8 = vmul.f32 %v6738_v0, %v11447_v39 }
 0x354   :  { %v11412_v12 = vpop.permute.xlu0 %2785  ;;  %v6744_v60 = vpop.eup %6743 }
 0x355   :  { %3095 = vperm.xlu0 %6495, %v2553_v56   ;;  %v6746_v20 = vpop.eup %6745  ;;  %v2439_v56 = vld [vmem:[%s15147_s2 + $0x3a8] sm:$0xff]  ;;  %v11488_v27 = vmul.f32 %v6744_v60, %v2436_v19  ;;  %v7033_v60 = vld [vmem:[%s15147_s2 + $0xb8] sm:$0xff] }
 0x356   :  { %v11419_v31 = vpop.permute.xlu1 %3050  ;;  %v6748_v24 = vpop.eup %6747  ;;  %v11493_v0 = vmul.f32 %v6746_v20, %v2439_v56  ;;  %v16031_v56 = vld [vmem:[#allocation9_spill] sm:$0xff] }
 0x357   :  { %16021 = vst [vmem:[#allocation337_spill] sm:$0xff] %v11419_v31  ;;  %3601 = vperm.xlu1 %6493, %v7032_v33   ;;  %v6750_v62 = vpop.eup %6749  ;;  %v2437_v33 = vld [vmem:[%s15147_s2 + $0x398] sm:$0xff]  ;;  %v11477_v31 = vmul.f32 %v6736_v34, %v11440_v49  ;;  %v11486_v1 = vmul.f32 %v6748_v24, %v2438_v21 }
 0x358   :  { %v11425_v53 = vpop.permute.xlu0 %2795  ;;  %16024 = vst [vmem:[#allocation340_spill] sm:$0xff] %v11493_v0  ;;  %v11495_v34 = vmul.f32 %v6742_v13, %v2437_v33  ;;  %v11506_v19 = vmul.f32 %v6750_v62, %v2441_v30  ;;  %v16029_v21 = vld [vmem:[#allocation13_spill] sm:$0xff]  ;;  %v11514_v33 = vmul.f32 %v10813_v59, %v16031_v56  ;;  %v2444_v62 = vld [vmem:[%s15147_s2 + $0x3d0] sm:$0xff]  ;;  %v16038_v0 = vld [vmem:[#allocation27_spill] sm:$0xff] }
 0x359   :  { %3105 = vperm.xlu0 %6495, %v2555_v2   ;;  %v6752_v2 = vpop.eup %6751  ;;  %v11510_v13 = vmul.f32 %v10813_v59, %v16029_v21  ;;  %v16035_v30 = vld [vmem:[#allocation20_spill] sm:$0xff]  ;;  %v16036_v21 = vld [vmem:[#allocation17_spill] sm:$0xff] }
 0x35a   :  { %v11442_v14 = vpop.permute.xlu1 %3060  ;;  %v6754_v48 = vpop.eup %6753  ;;  %16025 = vst [vmem:[#allocation341_spill] sm:$0xff] %v11495_v34  ;;  %16032 = vst [vmem:[#allocation13_spill] sm:$0xff] %v11514_v33  ;;  %v11530_v59 = vmul.f32 %v10821_v41, %v16035_v30  ;;  %v11534_v56 = vmul.f32 %v10821_v41, %v16036_v21  ;;  %v16039_v33 = vld [vmem:[#allocation25_spill] sm:$0xff]  ;;  %v3242_v30 = vmul.f32 %v10925_v50, %v16040_v35  ;;  %v2448_v50 = vld [vmem:[%s15147_s2 + $0x3f0] sm:$0xff] }
 0x35b   :  { %16022 = vst [vmem:[#allocation338_spill] sm:$0xff] %v11442_v14  ;;  %3761 = vperm.xlu1 %6493, %v11162_v32   ;;  %v2440_v32 = vld [vmem:[%s15147_s2 + $0x3b0] sm:$0xff]  ;;  %v11479_v14 = vmul.f32 %v6740_v55, %v2434_v52  ;;  %v6756_v9 = vpop.eup %6755  ;;  %v16026_v52 = vld [vmem:[#allocation33_spill] sm:$0xff]  ;;  %v4390_v21 = vld [vmem:[%s15148_s1 + $0xa0] sm:$0xff] }
 0x35c   :  { %v11466_v58 = vpop.permute.xlu0 %2805  ;;  %v6758_v55 = vpop.eup %6757  ;;  %v11504_v24 = vmul.f32 %v6752_v2, %v2440_v32  ;;  %16028 = vst [vmem:[#allocation33_spill] sm:$0xff] %v11506_v19  ;;  %v2445_v2 = vld [vmem:[%s15147_s2 + $0x3d8] sm:$0xff]  ;;  %v3230_v19 = vmul.f32 %v10876_v38, %v16038_v0 }
 0x35d   :  { %3115 = vperm.xlu0 %6495, %v2557_v6   ;;  %v3234_v6 = vmul.f32 %v10901_v4, %v16026_v52  ;;  %v6760_v20 = vpop.eup %6759  ;;  %v16033_v52 = vld [vmem:[#allocation37_spill] sm:$0xff] }
 0x35e   :  { %v11481_v43 = vpop.permute.xlu1 %3070  ;;  %v6762_v32 = vpop.eup %6761  ;;  %v11562_v35 = vmul.f32 %v6760_v20, %v2444_v62  ;;  %v16045_v62 = vld [vmem:[#allocation19_spill] sm:$0xff] }
 0x35f   :  { %16023 = vst [vmem:[#allocation339_spill] sm:$0xff] %v11481_v43  ;;  %v16027_v43 = vld [vmem:[#allocation31_spill] sm:$0xff]  ;;  %3591 = vperm.xlu1 %6493, %v7033_v60  }
 0x360   :  { %v3235_v16 = vmul.f32 %v10901_v4, %v16027_v43  ;;  %16030 = vst [vmem:[#allocation31_spill] sm:$0xff] %v11510_v13  ;;  %v3238_v4 = vmul.f32 %v10913_v44, %v16033_v52  ;;  %v16034_v43 = vld [vmem:[#allocation34_spill] sm:$0xff]  ;;  %v11520_v60 = vpop.permute.xlu0 %2815  ;;  %v11538_v52 = vmul.f32 %v6754_v48, %v2443_v42  ;;  %v3231_v13 = vmul.f32 %v10876_v38, %v16039_v33 }
 0x361   :  { %v3239_v34 = vmul.f32 %v10913_v44, %v16034_v43  ;;  %3125 = vperm.xlu0 %6495, %v2559_v3   ;;  %v11536_v44 = vmul.f32 %v6756_v9, %v2442_v46  ;;  %v6764_v43 = vpop.eup %6763  ;;  %v2446_v9 = vld [vmem:[%s15147_s2 + $0x3e0] sm:$0xff]  ;;  %v2447_v46 = vld [vmem:[%s15147_s2 + $0x3e8] sm:$0xff]  ;;  %v4130_v3 = vadd.f32 %v10892_v51, %v3234_v6  ;;  %v11567_v42 = vmul.f32 %v6758_v55, %v2445_v2 }
 0x362   :  { %16037 = vst [vmem:[#allocation9_spill] sm:$0xff] %v11538_v52  ;;  %v11548_v41 = vpop.permute.xlu1 %3080  ;;  %v6766_v48 = vpop.eup %6765  ;;  %v4131_v38 = vadd.f32 %v10892_v51, %v3235_v16  ;;  %v4134_v33 = vadd.f32 %v10869_v7, %v3238_v4  ;;  %v4382_v51 = vld [vmem:[%s15148_s1 + $0x60] sm:$0xff]  ;;  %v4127_v16 = vadd.f32 %v10916_v63, %v3231_v13  ;;  %v4387_v55 = vld [vmem:[%s15148_s1 + $0x88] sm:$0xff]  ;;  %v16050_v52 = vld [vmem:[#allocation24_spill] sm:$0xff] }
 0x363   :  { %16042 = vst [vmem:[#allocation37_spill] sm:$0xff] %v11548_v41  ;;  %3751 = vperm.xlu1 %6493, %v11148_v57   ;;  %16043 = vst [vmem:[#allocation34_spill] sm:$0xff] %v11567_v42  ;;  %v6768_v0 = vpop.eup %6767  ;;  %v4135_v6 = vadd.f32 %v10869_v7, %v3239_v34  ;;  %v4126_v57 = vadd.f32 %v10916_v63, %v3230_v19  ;;  %v4386_v4 = vld [vmem:[%s15148_s1 + $0x80] sm:$0xff]  ;;  %v11586_v7 = vmul.f32 %v10835_v37, %v16045_v62  ;;  %v4383_v63 = vld [vmem:[%s15148_s1 + $0x68] sm:$0xff] }
 0x364   :  { %v11576_v20 = vpop.permute.xlu0 %2825  ;;  %v16047_v34 = vld [vmem:[#allocation14_spill] sm:$0xff]  ;;  %v2574_v19 = vmul.f32 %v6764_v43, %v2446_v9  ;;  %v4391_v13 = vld [vmem:[%s15148_s1 + $0xa8] sm:$0xff]  ;;  %v11601_v62 = vmul.f32 %v6762_v32, %v2447_v46  ;;  %v4138_v41 = vadd.f32 %v10838_v11, %v3242_v30  ;;  %v2576_v42 = vmul.f32 %v6768_v0, %v2448_v50 }
 0x365   :  { %16044 = vst [vmem:[#allocation20_spill] sm:$0xff] %v11576_v20  ;;  %16046 = vst [vmem:[#allocation17_spill] sm:$0xff] %v11586_v7  ;;  %v11590_v2 = vmul.f32 %v10835_v37, %v16047_v34  ;;  %3130 = vperm.xlu0 %6495, %v2560_v8   ;;  %v3226_v37 = vmul.f32 %v10851_v40, %v16050_v52  ;;  %v16051_v34 = vld [vmem:[#allocation21_spill] sm:$0xff]  ;;  %v4139_v8 = vadd.f32 %v10838_v11, %v3243_v10  ;;  %v7034_v9 = vld [vmem:[%s15147_s2 + $0xa8] sm:$0xff] }
 0x366   :  { %16049 = vst [vmem:[#allocation25_spill] sm:$0xff] %v11601_v62  ;;  %v3227_v20 = vmul.f32 %v10851_v40, %v16051_v34  ;;  %v11609_v43 = vpop.permute.xlu1 %3090  ;;  %v4395_v32 = vld [vmem:[%s15148_s1 + $0xc8] sm:$0xff]  ;;  %v4394_v40 = vld [vmem:[%s15148_s1 + $0xc0] sm:$0xff]  ;;  %v11620_v52 = vadd.f32 %v4387_v55, %v4131_v38  ;;  %v11622_v30 = vadd.f32 %v4386_v4, %v4130_v3  ;;  %v11624_v11 = vmul.f32 %v6766_v48, %v2449_v26 }
 0x367   :  { %16048 = vst [vmem:[#allocation27_spill] sm:$0xff] %v11590_v2  ;;  %16052 = vst [vmem:[#allocation40_spill] sm:$0xff] %v11609_v43  ;;  %3581 = vperm.xlu1 %6493, %v7034_v9   ;;  %v11626_v10 = vadd.f32 %v4382_v51, %v4126_v57  ;;  %v11628_v46 = vadd.f32 %v4383_v63, %v4127_v16  ;;  %v11632_v50 = vadd.f32 %v4391_v13, %v4135_v6  ;;  %v16055_v9 = vld [vmem:[#allocation23_spill] sm:$0xff]  ;;  %v16056_v38 = vld [vmem:[#allocation22_spill] sm:$0xff] }
 0x368   :  { %16053 = vst [vmem:[#allocation38_spill] sm:$0xff] %v11624_v11  ;;  %v11630_v34 = vpop.permute.xlu0 %2835  ;;  %v11634_v0 = vadd.f32 %v4390_v21, %v4134_v33  ;;  %v11638_v43 = vmul.f32 %v10866_v36, %v16055_v9  ;;  %v11642_v3 = vmul.f32 %v10866_v36, %v16056_v38  ;;  %v4122_v48 = vadd.f32 %v10940_v15, %v3226_v37  ;;  %v4378_v6 = vld [vmem:[%s15148_s1 + $0x40] sm:$0xff]  ;;  %v4379_v33 = vld [vmem:[%s15148_s1 + $0x48] sm:$0xff]  ;;  %v16098_v11 = vld [vmem:[#allocation81_spill] sm:$0xff] }
 0x369   :  { %16054 = vst [vmem:[#allocation19_spill] sm:$0xff] %v11630_v34  ;;  %v4123_v26 = vadd.f32 %v10940_v15, %v3227_v20  ;;  %3210 = vperm.xlu0 %6495, %v2576_v42   ;;  %v4118_v51 = vadd.f32 %v10969_v18, %v11530_v59  ;;  %v4119_v36 = vadd.f32 %v10969_v18, %v11534_v56  ;;  %v16059_v42 = vld [vmem:[#allocation30_spill] sm:$0xff]  ;;  %v4375_v18 = vld [vmem:[%s15148_s1 + $0x28] sm:$0xff]  ;;  %v16069_v56 = vld [vmem:[#allocation73_spill] sm:$0xff] }
 0x36a   :  { %16057 = vst [vmem:[#allocation14_spill] sm:$0xff] %v11642_v3  ;;  %v11656_v57 = vpop.permute.xlu1 %3100  ;;  %v11658_v16 = vadd.f32 %v4395_v32, %v4139_v8  ;;  %v11660_v15 = vadd.f32 %v4394_v40, %v4138_v41  ;;  %v11664_v20 = vmul.f32 %v10889_v54, %v16059_v42  ;;  %v16060_v55 = vld [vmem:[#allocation26_spill] sm:$0xff]  ;;  %v16062_v8 = vld [vmem:[#allocation45_spill] sm:$0xff]  ;;  %v16063_v40 = vld [vmem:[#allocation43_spill] sm:$0xff]  ;;  %v11689_v9 = vadd.f32 %v4378_v6, %v4122_v48 }
 0x36b   :  { %16058 = vst [vmem:[#allocation24_spill] sm:$0xff] %v11656_v57  ;;  %v11668_v4 = vmul.f32 %v10889_v54, %v16060_v55  ;;  %v4374_v59 = vld [vmem:[%s15148_s1 + $0x20] sm:$0xff]  ;;  %3741 = vperm.xlu1 %6493, %v11134_v17   ;;  %v3246_v32 = vmul.f32 %v10937_v47, %v16062_v8  ;;  %v3247_v17 = vmul.f32 %v10937_v47, %v16063_v40  ;;  %v16070_v8 = vld [vmem:[#allocation263_spill] sm:$0xff]  ;;  %v16072_v48 = vld [vmem:[#allocation44_spill] sm:$0xff] }
 0x36c   :  { %v11679_v63 = vpop.permute.xlu0 %2845  ;;  %16064 = vst [vmem:[#allocation23_spill] sm:$0xff] %v11689_v9  ;;  %v11691_v38 = vadd.f32 %v4379_v33, %v4123_v26  ;;  %v11693_v42 = vadd.f32 %v4374_v59, %v4118_v51  ;;  %v11695_v55 = vadd.f32 %v4375_v18, %v4119_v36  ;;  %v3274_v54 = vmul.f32 %v16070_v8, %v16069_v56  ;;  %v16071_v13 = vld [vmem:[#allocation70_spill] sm:$0xff]  ;;  %v7035_v33 = vld [vmem:[%s15147_s2 + $0x98] sm:$0xff]  ;;  %v16113_v9 = vld [vmem:[#allocation300_spill] sm:$0xff] }
 0x36d   :  { %16061 = vst [vmem:[#allocation21_spill] sm:$0xff] %v11679_v63  ;;  %3200 = vperm.xlu0 %6495, %v2574_v19   ;;  %v3275_v47 = vmul.f32 %v16070_v8, %v16071_v13  ;;  %v3248_v26 = vmul.f32 %v11272_v28, %v16072_v48  ;;  %v16073_v19 = vld [vmem:[#allocation41_spill] sm:$0xff]  ;;  %v16077_v18 = vld [vmem:[#allocation46_spill] sm:$0xff]  ;;  %v16079_v13 = vld [vmem:[#allocation76_spill] sm:$0xff] }
 0x36e   :  { %16065 = vst [vmem:[#allocation22_spill] sm:$0xff] %v11691_v38  ;;  %16066 = vst [vmem:[#allocation30_spill] sm:$0xff] %v11693_v42  ;;  %v11697_v41 = vpop.permute.xlu1 %3110  ;;  %v3249_v6 = vmul.f32 %v11272_v28, %v16073_v19  ;;  %v16074_v51 = vld [vmem:[#allocation49_spill] sm:$0xff]  ;;  %v16081_v48 = vld [vmem:[#allocation74_spill] sm:$0xff] }
 0x36f   :  { %16067 = vst [vmem:[#allocation26_spill] sm:$0xff] %v11695_v55  ;;  %16068 = vst [vmem:[#allocation45_spill] sm:$0xff] %v11697_v41  ;;  %3571 = vperm.xlu1 %6493, %v7035_v33   ;;  %v16075_v36 = vld [vmem:[#allocation213_spill] sm:$0xff]  ;;  %v16083_v19 = vld [vmem:[#allocation272_spill] sm:$0xff] }
 0x370   :  { %v11714_v59 = vmul.f32 %v16075_v36, %v16074_v51  ;;  %v11718_v56 = vmul.f32 %v16075_v36, %v16077_v18  ;;  %v16080_v40 = vld [vmem:[#allocation309_spill] sm:$0xff]  ;;  %v11724_v28 = vpop.permute.xlu0 %2855  ;;  %v4170_v21 = vadd.f32 %v16083_v19, %v3274_v54  ;;  %v4171_v33 = vadd.f32 %v16083_v19, %v3275_v47  ;;  %v16084_v36 = vld [vmem:[#allocation52_spill] sm:$0xff]  ;;  %v16085_v18 = vld [vmem:[#allocation294_spill] sm:$0xff] }
 0x371   :  { %v3278_v8 = vmul.f32 %v16080_v40, %v16079_v13  ;;  %v3279_v37 = vmul.f32 %v16080_v40, %v16081_v48  ;;  %16082 = vst [vmem:[#allocation263_spill] sm:$0xff] %v11724_v28  ;;  %3190 = vperm.xlu0 %6495, %v11562_v35   ;;  %v11733_v57 = vmul.f32 %v16085_v18, %v16084_v36  ;;  %v16087_v13 = vld [vmem:[#allocation50_spill] sm:$0xff]  ;;  %v16089_v40 = vld [vmem:[#allocation57_spill] sm:$0xff]  ;;  %v16092_v54 = vld [vmem:[#allocation55_spill] sm:$0xff] }
 0x372   :  { %16076 = vst [vmem:[#allocation43_spill] sm:$0xff] %v11714_v59  ;;  %16078 = vst [vmem:[#allocation73_spill] sm:$0xff] %v11718_v56  ;;  %v11737_v34 = vmul.f32 %v16085_v18, %v16087_v13  ;;  %v16090_v48 = vld [vmem:[#allocation245_spill] sm:$0xff]  ;;  %v4426_v35 = vld [vmem:[%s15148_s1 + $0x1c0] sm:$0xff]  ;;  %v11753_v36 = vpop.permute.xlu1 %3120 }
 0x373   :  { %16086 = vst [vmem:[#allocation70_spill] sm:$0xff] %v11733_v57  ;;  %v11741_v63 = vmul.f32 %v16090_v48, %v16089_v40  ;;  %v11745_v47 = vmul.f32 %v16090_v48, %v16092_v54  ;;  %v4427_v19 = vld [vmem:[%s15148_s1 + $0x1c8] sm:$0xff]  ;;  %16094 = vst [vmem:[#allocation213_spill] sm:$0xff] %v11753_v36  ;;  %v16095_v18 = vld [vmem:[#allocation193_spill] sm:$0xff] }
 0x374   :  { %16088 = vst [vmem:[#allocation44_spill] sm:$0xff] %v11737_v34  ;;  %v4144_v13 = vadd.f32 %v16095_v18, %v3248_v26  ;;  %v16096_v41 = vld [vmem:[#allocation314_spill] sm:$0xff]  ;;  %v4145_v40 = vadd.f32 %v16095_v18, %v3249_v6  ;;  %v16100_v34 = vld [vmem:[#allocation79_spill] sm:$0xff]  ;;  %v11766_v57 = vpop.permute.xlu0 %2865  ;;  %v4400_v26 = vld [vmem:[%s15148_s1 + $0xf0] sm:$0xff] }
 0x375   :  { %16091 = vst [vmem:[#allocation41_spill] sm:$0xff] %v11741_v63  ;;  %16093 = vst [vmem:[#allocation49_spill] sm:$0xff] %v11745_v47  ;;  %3731 = vperm.xlu1 %6493, %v16096_v41   ;;  %v16097_v54 = vld [vmem:[#allocation302_spill] sm:$0xff]  ;;  %v4401_v41 = vld [vmem:[%s15148_s1 + $0xf8] sm:$0xff]  ;;  %3180 = vperm.xlu0 %6495, %v11536_v44  }
 0x376   :  { %v4174_v62 = vadd.f32 %v16097_v54, %v3278_v8  ;;  %v4175_v28 = vadd.f32 %v16097_v54, %v3279_v37  ;;  %v16099_v56 = vld [vmem:[#allocation310_spill] sm:$0xff]  ;;  %16101 = vst [vmem:[#allocation46_spill] sm:$0xff] %v11766_v57  ;;  %v16102_v6 = vld [vmem:[#allocation61_spill] sm:$0xff]  ;;  %v16103_v8 = vld [vmem:[#allocation251_spill] sm:$0xff]  ;;  %v11782_v54 = vadd.f32 %v4426_v35, %v4170_v21  ;;  %v3547_v42 = vpop.permute.xlu1 %3546 }
 0x377   :  { %v3282_v59 = vmul.f32 %v16099_v56, %v16098_v11  ;;  %v3283_v36 = vmul.f32 %v16099_v56, %v16100_v34  ;;  %v11776_v18 = vmul.f32 %v16103_v8, %v16102_v6  ;;  %v16104_v37 = vld [vmem:[#allocation58_spill] sm:$0xff]  ;;  %v11784_v34 = vadd.f32 %v4427_v19, %v4171_v33  ;;  %v4431_v56 = vld [vmem:[%s15148_s1 + $0x1e8] sm:$0xff]  ;;  %v16107_v6 = vld [vmem:[#allocation64_spill] sm:$0xff] }
 0x378   :  { %v11780_v11 = vmul.f32 %v16103_v8, %v16104_v37  ;;  %16105 = vst [vmem:[#allocation76_spill] sm:$0xff] %v11782_v54  ;;  %v4430_v48 = vld [vmem:[%s15148_s1 + $0x1e0] sm:$0xff]  ;;  %v16108_v51 = vld [vmem:[#allocation257_spill] sm:$0xff]  ;;  %v16111_v35 = vld [vmem:[#allocation260_spill] sm:$0xff]  ;;  %v4142_v2 = vadd.f32 %v3547_v42, %v3246_v32  ;;  %v4143_v7 = vadd.f32 %v3547_v42, %v3247_v17  ;;  %v11816_v38 = vpop.permute.xlu0 %2875  ;;  %v11818_v47 = vadd.f32 %v4431_v56, %v4175_v28 }
 0x379   :  { %16106 = vst [vmem:[#allocation309_spill] sm:$0xff] %v11784_v34  ;;  %v11795_v57 = vmul.f32 %v16108_v51, %v16107_v6  ;;  %v16109_v8 = vld [vmem:[#allocation62_spill] sm:$0xff]  ;;  %v16110_v33 = vld [vmem:[#allocation69_spill] sm:$0xff]  ;;  %v16112_v44 = vld [vmem:[#allocation67_spill] sm:$0xff]  ;;  %v11820_v63 = vadd.f32 %v4430_v48, %v4174_v62  ;;  %3170 = vperm.xlu0 %6495, %v11504_v24  }
 0x37a   :  { %v11799_v21 = vmul.f32 %v16108_v51, %v16109_v8  ;;  %v3270_v19 = vmul.f32 %v16111_v35, %v16110_v33  ;;  %v3271_v37 = vmul.f32 %v16111_v35, %v16112_v44  ;;  %v4399_v55 = vld [vmem:[%s15148_s1 + $0xe8] sm:$0xff]  ;;  %v4398_v6 = vld [vmem:[%s15148_s1 + $0xe0] sm:$0xff]  ;;  %v4657_v8 = vadd.f32 %v4401_v41, %v4145_v40  ;;  %16114 = vst [vmem:[#allocation74_spill] sm:$0xff] %v11816_v38  ;;  %v16117_v28 = vld [vmem:[#allocation85_spill] sm:$0xff] }
 0x37b   :  { %v7036_v51 = vld [vmem:[%s15147_s2 + $0x88] sm:$0xff]  ;;  %v4656_v33 = vadd.f32 %v4400_v26, %v4144_v13  ;;  %v4178_v35 = vadd.f32 %v16113_v9, %v3282_v59  ;;  %v4179_v44 = vadd.f32 %v16113_v9, %v3283_v36  ;;  %16115 = vst [vmem:[#allocation272_spill] sm:$0xff] %v11818_v47  ;;  %16116 = vst [vmem:[#allocation52_spill] sm:$0xff] %v11820_v63  ;;  %v4434_v59 = vld [vmem:[%s15148_s1 + $0x200] sm:$0xff]  ;;  %v3707_v26 = vpop.permute.xlu1 %3706 }
 0x37c   :  { %3561 = vperm.xlu1 %6493, %v7036_v51   ;;  %v4655_v32 = vadd.f32 %v4399_v55, %v4143_v7  ;;  %v4654_v17 = vadd.f32 %v4398_v6, %v4142_v2  ;;  %v4435_v42 = vld [vmem:[%s15148_s1 + $0x208] sm:$0xff]  ;;  %v16119_v40 = vld [vmem:[#allocation82_spill] sm:$0xff]  ;;  %v16120_v7 = vld [vmem:[#allocation109_spill] sm:$0xff]  ;;  %v4913_v51 = vmax.f32 %v4657_v8, 0.0  ;;  %v11842_v54 = vpop.permute.xlu0 %2885 }
 0x37d   :  { %v16118_v13 = vld [vmem:[#allocation311_spill] sm:$0xff]  ;;  %v16121_v2 = vld [vmem:[#allocation318_spill] sm:$0xff]  ;;  %v4912_v9 = vmax.f32 %v4656_v33, 0.0  ;;  %16123 = vst [vmem:[#allocation294_spill] sm:$0xff] %v11842_v54  ;;  %3160 = vperm.xlu0 %6495, %v11486_v1  }
 0x37e   :  { %v3286_v62 = vmul.f32 %v16118_v13, %v16117_v28  ;;  %v3287_v24 = vmul.f32 %v16118_v13, %v16119_v40  ;;  %v3310_v55 = vmul.f32 %v16121_v2, %v16120_v7  ;;  %v16122_v48 = vld [vmem:[#allocation106_spill] sm:$0xff]  ;;  %v7037_v56 = vld [vmem:[%s15147_s2 + $0x188] sm:$0xff]  ;;  %v4911_v6 = vmax.f32 %v4655_v32, 0.0  ;;  %v16125_v7 = vld [vmem:[#allocation5_spill] sm:$0xff] }
 0x37f   :  { %v3311_v41 = vmul.f32 %v16121_v2, %v16122_v48  ;;  %v4910_v36 = vmax.f32 %v4654_v17, 0.0  ;;  %v11844_v13 = vadd.f32 %v4435_v42, %v4179_v44  ;;  %v11846_v40 = vadd.f32 %v4434_v59, %v4178_v35  ;;  %v16126_v48 = vld [vmem:[#allocation108_spill] sm:$0xff]  ;;  %v4463_v33 = vld [vmem:[%s15148_s1 + $0x2e8] sm:$0xff]  ;;  %v4462_v44 = vld [vmem:[%s15148_s1 + $0x2e0] sm:$0xff]  ;;  %v3712_v1 = vpop.permute.xlu1 %3711 }
 0x380   :  { %3721 = vperm.xlu1 %6493, %v7037_v56   ;;  %v4206_v28 = vadd.f32 %v3707_v26, %v3310_v55  ;;  %v3312_v2 = vmul.f32 %v11520_v60, %v16125_v7  ;;  %v3313_v34 = vmul.f32 %v11520_v60, %v16126_v48  ;;  %v5537_v32 = vpack.c.bf16 %v4913_v51, %v4911_v6  ;;  %v16127_v35 = vld [vmem:[#allocation296_spill] sm:$0xff]  ;;  %v16128_v59 = vld [vmem:[#allocation275_spill] sm:$0xff]  ;;  %v16145_v63 = vld [vmem:[#allocation98_spill] sm:$0xff] }
 0x381   :  { %v4207_v38 = vadd.f32 %v3707_v26, %v3311_v41  ;;  %16124 = vst [vmem:[#allocation50_spill] sm:$0xff] %v11844_v13  ;;  %v5536_v8 = vpack.c.bf16 %v4912_v9, %v4910_v36  ;;  %v11860_v17 = vadd.f32 %v16127_v35, %v3286_v62  ;;  %v4183_v42 = vadd.f32 %v16127_v35, %v3287_v24  ;;  %v4465_v9 = vld [vmem:[%s15148_s1 + $0x2f8] sm:$0xff]  ;;  %v4464_v36 = vld [vmem:[%s15148_s1 + $0x2f0] sm:$0xff]  ;;  %v4422_v62 = vld [vmem:[%s15148_s1 + $0x1a0] sm:$0xff]  ;;  %v11883_v35 = vpop.permute.xlu0 %2895 }
 0x382   :  { %v4166_v55 = vadd.f32 %v16128_v59, %v3270_v19  ;;  %v4167_v60 = vadd.f32 %v16128_v59, %v3271_v37  ;;  %v4423_v24 = vld [vmem:[%s15148_s1 + $0x1a8] sm:$0xff]  ;;  %v16129_v19 = vld [vmem:[#allocation105_spill] sm:$0xff]  ;;  %v4208_v26 = vadd.f32 %v3712_v1, %v3312_v2  ;;  %v4209_v56 = vadd.f32 %v3712_v1, %v3313_v34  ;;  %5650 = vmatprep.subr.bf16.mxu0 %v5537_v32  ;;  %v16132_v7 = vld [vmem:[#allocation104_spill] sm:$0xff] }
 0x383   :  { %v16130_v41 = vld [vmem:[#allocation317_spill] sm:$0xff]  ;;  %v16131_v6 = vmov 0   ;;  %5651 = vmatpush1.bf16.msra.mxu0 %v5536_v8  ;;  %v4719_v59 = vadd.f32 %v4463_v33, %v4207_v38  ;;  %v4718_v54 = vadd.f32 %v4462_v44, %v4206_v28  ;;  %v16134_v2 = vld [vmem:[#allocation39_spill] sm:$0xff]  ;;  %3150 = vperm.xlu0 %6495, %v11488_v27   ;;  %v16136_v8 = vld [vmem:[#allocation312_spill] sm:$0xff]  ;;  %v3542_v33 = vpop.permute.xlu1 %3541 }
 0x384   :  { %v3306_v37 = vmul.f32 %v16130_v41, %v16129_v19  ;;  %6496 = vset.pattern.permute.xlu1 %v16131_v6  ;;  %v3307_v48 = vmul.f32 %v16130_v41, %v16132_v7  ;;  %v16133_v19 = vld [vmem:[#allocation42_spill] sm:$0xff]  ;;  %v3245_v32 = vmul.f32 %v11261_v29, %v16134_v2  ;;  %v4721_v1 = vadd.f32 %v4465_v9, %v4209_v56  ;;  %v4396_v28 = vld [vmem:[%s15148_s1 + $0xd0] sm:$0xff]  ;;  %v16140_v3 = vld [vmem:[#allocation3_spill] sm:$0xff] }
 0x385   :  { %3135 = vperm.xlu1 %6496, %v11477_v31   ;;  %v3244_v34 = vmul.f32 %v11261_v29, %v16133_v19  ;;  %v4720_v51 = vadd.f32 %v4464_v36, %v4208_v26  ;;  %v11892_v41 = vadd.f32 %v4422_v62, %v4166_v55  ;;  %v11894_v7 = vadd.f32 %v4423_v24, %v4167_v60  ;;  %v16135_v31 = vld [vmem:[#allocation88_spill] sm:$0xff]  ;;  %v4397_v29 = vld [vmem:[%s15148_s1 + $0xd8] sm:$0xff]  ;;  %v4439_v36 = vld [vmem:[%s15148_s1 + $0x228] sm:$0xff]  ;;  %v11912_v56 = vpop.permute.xlu0 %2905 }
 0x386   :  { %v11898_v38 = vmul.f32 %v16136_v8, %v16135_v31  ;;  %v4141_v55 = vadd.f32 %v3542_v33, %v3245_v32  ;;  %v4977_v9 = vmax.f32 %v4721_v1, 0.0  ;;  %v16137_v62 = vld [vmem:[#allocation199_spill] sm:$0xff]  ;;  %16138 = vst [vmem:[#allocation57_spill] sm:$0xff] %v11912_v56  ;;  %v16139_v19 = vmov 1   ;;  %v16141_v32 = vld [vmem:[#allocation101_spill] sm:$0xff]  ;;  %v16143_v27 = vld [vmem:[#allocation100_spill] sm:$0xff] }
 0x387   :  { %v4140_v44 = vadd.f32 %v3542_v33, %v3244_v34  ;;  %v4976_v60 = vmax.f32 %v4720_v51, 0.0  ;;  %v4202_v24 = vadd.f32 %v16137_v62, %v3306_v37  ;;  %v4203_v26 = vadd.f32 %v16137_v62, %v3307_v48  ;;  %3140 = vperm.xlu0 %6495, %v11479_v14   ;;  %v4459_v37 = vld [vmem:[%s15148_s1 + $0x2c8] sm:$0xff]  ;;  %v4458_v48 = vld [vmem:[%s15148_s1 + $0x2c0] sm:$0xff]  ;;  %v4460_v14 = vld [vmem:[%s15148_s1 + $0x2d0] sm:$0xff] }
 0x388   :  { %v4975_v2 = vmax.f32 %v4719_v59, 0.0  ;;  %v4974_v31 = vmax.f32 %v4718_v54, 0.0  ;;  %v3308_v34 = vmul.f32 %v11466_v58, %v16140_v3  ;;  %v3309_v51 = vmul.f32 %v11466_v58, %v16141_v32  ;;  %v16142_v59 = vld [vmem:[#allocation86_spill] sm:$0xff]  ;;  %v7038_v58 = vld [vmem:[%s15147_s2 + $0x270] sm:$0xff]  ;;  %v4461_v3 = vld [vmem:[%s15148_s1 + $0x2d8] sm:$0xff] }
 0x389   :  { %6497 = vset.pattern.permute.xlu1 %v16139_v19  ;;  %v4652_v1 = vadd.f32 %v4396_v28, %v4140_v44  ;;  %v4653_v33 = vadd.f32 %v4397_v29, %v4141_v55  ;;  %v11928_v54 = vmul.f32 %v16136_v8, %v16142_v59  ;;  %v3702_v28 = vpop.permute.xlu1 %3701  ;;  %v11939_v55 = vadd.f32 %v4439_v36, %v4183_v42  ;;  %v16144_v56 = vld [vmem:[#allocation316_spill] sm:$0xff]  ;;  %v11948_v13 = vpop.permute.xlu0 %2915 }
 0x38a   :  { %3866 = vperm.xlu1 %6497, %v7038_v58   ;;  %v5569_v29 = vpack.c.bf16 %v4977_v9, %v4975_v2  ;;  %v5568_v44 = vpack.c.bf16 %v4976_v60, %v4974_v31  ;;  %v4204_v8 = vadd.f32 %v3702_v28, %v3308_v34  ;;  %v4205_v62 = vadd.f32 %v3702_v28, %v3309_v51  ;;  %v4438_v58 = vld [vmem:[%s15148_s1 + $0x220] sm:$0xff]  ;;  %v16146_v60 = vld [vmem:[#allocation36_spill] sm:$0xff]  ;;  %v16147_v2 = vld [vmem:[#allocation35_spill] sm:$0xff] }
 0x38b   :  { %v4909_v32 = vmax.f32 %v4653_v33, 0.0  ;;  %v4908_v59 = vmax.f32 %v4652_v1, 0.0  ;;  %v3302_v6 = vmul.f32 %v16144_v56, %v16143_v27  ;;  %v3303_v47 = vmul.f32 %v16144_v56, %v16145_v63  ;;  %6512 = vset.pattern.permute.xlu0 %v16139_v19  ;;  %v4392_v63 = vld [vmem:[%s15148_s1 + $0xb0] sm:$0xff]  ;;  %v4393_v27 = vld [vmem:[%s15148_s1 + $0xb8] sm:$0xff] }
 0x38c   :  { %5843 = vmatprep.subr.bf16.mxu1 %v5569_v29  ;;  %v4715_v9 = vadd.f32 %v4459_v37, %v4203_v26  ;;  %v4714_v42 = vadd.f32 %v4458_v48, %v4202_v24  ;;  %v3240_v36 = vmul.f32 %v11252_v5, %v16146_v60  ;;  %v3241_v31 = vmul.f32 %v11252_v5, %v16147_v2  ;;  %v16150_v28 = vld [vmem:[#allocation205_spill] sm:$0xff] }
 0x38d   :  { %v4716_v34 = vadd.f32 %v4460_v14, %v4204_v8  ;;  %v4717_v51 = vadd.f32 %v4461_v3, %v4205_v62  ;;  %5844 = vmatpush1.bf16.msra.mxu1 %v5568_v44  ;;  %v3532_v24 = vpop.permute.xlu1 %3531  ;;  %v16148_v26 = vmax.f32 %v11658_v16, 0.0  ;;  %v16149_v5 = vmax.f32 %v11660_v15, 0.0  ;;  %3871 = vperm.xlu0 %6512, %v11277_v45   ;;  %v11973_v16 = vpop.permute.xlu0 %2925  ;;  %v16151_v62 = vld [vmem:[#allocation103_spill] sm:$0xff] }
 0x38e   :  { %4026 = vperm.xlu1 %6497, %v11447_v39   ;;  %v11967_v33 = vadd.f32 %v4438_v58, %v11860_v17  ;;  %v4946_v39 = vmax.f32 %v11846_v40, 0.0  ;;  %v4136_v37 = vadd.f32 %v3532_v24, %v3240_v36  ;;  %v4137_v48 = vadd.f32 %v3532_v24, %v3241_v31  ;;  %v4455_v17 = vld [vmem:[%s15148_s1 + $0x2a8] sm:$0xff]  ;;  %v4457_v31 = vld [vmem:[%s15148_s1 + $0x2b8] sm:$0xff]  ;;  %v7039_v24 = vld [vmem:[%s15147_s2 + $0x260] sm:$0xff] }
 0x38f   :  { %v5535_v56 = vpack.c.bf16 %v4909_v32, %v16148_v26  ;;  %v5534_v1 = vpack.c.bf16 %v4908_v59, %v16149_v5  ;;  %v4973_v14 = vmax.f32 %v4717_v51, 0.0  ;;  %v4972_v3 = vmax.f32 %v4716_v34, 0.0  ;;  %v16152_v32 = vld [vmem:[#allocation99_spill] sm:$0xff]  ;;  %v16242_v40 = vld [vmem:[#allocation325_spill] sm:$0xff] }
 0x390   :  { %v4198_v29 = vadd.f32 %v16150_v28, %v3302_v6  ;;  %v4199_v44 = vadd.f32 %v16150_v28, %v3303_v47  ;;  %v4971_v15 = vmax.f32 %v4715_v9, 0.0  ;;  %v4970_v8 = vmax.f32 %v4714_v42, 0.0  ;;  %v4454_v47 = vld [vmem:[%s15148_s1 + $0x2a0] sm:$0xff]  ;;  %v5139_v6 = vld [vmem:[%s15149_s3 + $0x8] sm:$0xff]  ;;  %v16153_v42 = vld [vmem:[#allocation97_spill] sm:$0xff] }
 0x391   :  { %5652 = vmatprep.subr.bf16.mxu0 %v5535_v56  ;;  %v3304_v45 = vmul.f32 %v11425_v53, %v16151_v62  ;;  %v3305_v59 = vmul.f32 %v11425_v53, %v16152_v32  ;;  %v4648_v58 = vadd.f32 %v4392_v63, %v4136_v37  ;;  %v4649_v60 = vadd.f32 %v4393_v27, %v4137_v48  ;;  %v5147_v9 = vld [vmem:[%s15149_s3 + $0x48] sm:$0xff]  ;;  %v4456_v53 = vld [vmem:[%s15148_s1 + $0x2b0] sm:$0xff]  ;;  %v3692_v34 = vpop.permute.xlu1 %3691  ;;  %v12005_v48 = vpop.permute.xlu0 %2935 }
 0x392   :  { %5653 = vmatpush1.bf16.msra.mxu0 %v5534_v1  ;;  %v16154_v36 = vld [vmem:[#allocation315_spill] sm:$0xff]  ;;  %4031 = vperm.xlu1 %6497, %v11440_v49   ;;  %v5567_v51 = vpack.c.bf16 %v4973_v14, %v4971_v15  ;;  %v5566_v63 = vpack.c.bf16 %v4972_v3, %v4970_v8  ;;  %v5395_v27 = vpack.c.bf16 %v5147_v9, %v5139_v6  ;;  %v16155_v1 = vld [vmem:[#allocation94_spill] sm:$0xff]  ;;  %v16156_v3 = vld [vmem:[#allocation32_spill] sm:$0xff]  ;;  %v16159_v9 = vmax.f32 %v11634_v0, 0.0 }
 0x393   :  { %v3298_v2 = vmul.f32 %v16154_v36, %v16153_v42  ;;  %3856 = vperm.xlu0 %6512, %v7039_v24   ;;  %v4200_v26 = vadd.f32 %v3692_v34, %v3304_v45  ;;  %v4201_v56 = vadd.f32 %v3692_v34, %v3305_v59  ;;  %v4905_v49 = vmax.f32 %v4649_v60, 0.0  ;;  %v16157_v8 = vld [vmem:[#allocation28_spill] sm:$0xff]  ;;  %v16160_v24 = vld [vmem:[#allocation207_spill] sm:$0xff] }
 0x394   :  { %v4904_v5 = vmax.f32 %v4648_v58, 0.0  ;;  %v3299_v37 = vmul.f32 %v16154_v36, %v16155_v1  ;;  %5845 = vmatprep.subr.bf16.mxu1 %v5567_v51  ;;  %v4711_v28 = vadd.f32 %v4455_v17, %v4199_v44  ;;  %v4710_v62 = vadd.f32 %v4454_v47, %v4198_v29  ;;  %5682 = vmatprep.mubr.bf16.mxu0 %v5395_v27  ;;  %v5141_v58 = vld [vmem:[%s15149_s3 + $0x18] sm:$0xff]  ;;  %v7040_v44 = vld [vmem:[%s15147_s2 + $0x268] sm:$0xff] }
 0x395   :  { %v3236_v15 = vmul.f32 %v11243_v61, %v16156_v3  ;;  %v3237_v45 = vmul.f32 %v11243_v61, %v16157_v8  ;;  %v4712_v32 = vadd.f32 %v4456_v53, %v4200_v26  ;;  %v4713_v59 = vadd.f32 %v4457_v31, %v4201_v56  ;;  %5846 = vmatpush1.bf16.msra.mxu1 %v5566_v63  ;;  %v5149_v29 = vld [vmem:[%s15149_s3 + $0x58] sm:$0xff]  ;;  %v4388_v61 = vld [vmem:[%s15148_s1 + $0x90] sm:$0xff]  ;;  %v3522_v60 = vpop.permute.xlu1 %3521  ;;  %v7041_v31 = vld [vmem:[%s15147_s2 + $0x360] sm:$0xff]  ;;  %v12037_v56 = vpop.permute.xlu0 %2945 }
 0x396   :  { %3861 = vperm.xlu1 %6497, %v7040_v44   ;;  %v4389_v17 = vld [vmem:[%s15148_s1 + $0x98] sm:$0xff]  ;;  %v16158_v47 = vmax.f32 %v11632_v50, 0.0  ;;  %v5532_v42 = vpack.c.bf16 %v4904_v5, %v16159_v9  ;;  %v5397_v53 = vpack.c.bf16 %v5149_v29, %v5141_v58  ;;  %v4194_v26 = vadd.f32 %v16160_v24, %v3298_v2  ;;  %v16161_v5 = vld [vmem:[#allocation96_spill] sm:$0xff]  ;;  %v16162_v3 = vld [vmem:[#allocation95_spill] sm:$0xff] }
 0x397   :  { %4016 = vperm.xlu0 %6512, %v7041_v31   ;;  %v4132_v34 = vadd.f32 %v3522_v60, %v3236_v15  ;;  %v4133_v51 = vadd.f32 %v3522_v60, %v3237_v45  ;;  %v4969_v63 = vmax.f32 %v4713_v59, 0.0  ;;  %v4968_v27 = vmax.f32 %v4712_v32, 0.0  ;;  %v4451_v2 = vld [vmem:[%s15148_s1 + $0x288] sm:$0xff]  ;;  %v4453_v29 = vld [vmem:[%s15148_s1 + $0x298] sm:$0xff]  ;;  %v7042_v60 = vld [vmem:[%s15147_s2 + $0x250] sm:$0xff] }
 0x398   :  { %v5533_v6 = vpack.c.bf16 %v4905_v49, %v16158_v47  ;;  %v4195_v50 = vadd.f32 %v16160_v24, %v3299_v37  ;;  %v4967_v0 = vmax.f32 %v4711_v28, 0.0  ;;  %v4966_v49 = vmax.f32 %v4710_v62, 0.0  ;;  %5875 = vmatprep.mubr.bf16.mxu1 %v5397_v53  ;;  %v4450_v37 = vld [vmem:[%s15148_s1 + $0x280] sm:$0xff]  ;;  %v16163_v28 = vld [vmem:[#allocation93_spill] sm:$0xff]  ;;  %v16165_v59 = vld [vmem:[#allocation91_spill] sm:$0xff] }
 0x399   :  { %v3300_v1 = vmul.f32 %v11412_v12, %v16161_v5  ;;  %v3301_v8 = vmul.f32 %v11412_v12, %v16162_v3  ;;  %v4644_v15 = vadd.f32 %v4388_v61, %v4132_v34  ;;  %v4645_v45 = vadd.f32 %v4389_v17, %v4133_v51  ;;  %v16164_v62 = vld [vmem:[#allocation313_spill] sm:$0xff]  ;;  %v4452_v12 = vld [vmem:[%s15148_s1 + $0x290] sm:$0xff]  ;;  %v3682_v44 = vpop.permute.xlu1 %3681  ;;  %v12067_v34 = vpop.permute.xlu0 %2955  ;;  %v16167_v5 = vld [vmem:[#allocation107_spill] sm:$0xff] }
 0x39a   :  { %5654 = vmatprep.subr.bf16.mxu0 %v5533_v6  ;;  %v3294_v32 = vmul.f32 %v16164_v62, %v16163_v28  ;;  %v3295_v58 = vmul.f32 %v16164_v62, %v16165_v59  ;;  %4021 = vperm.xlu1 %6497, %v11435_v23   ;;  %v5565_v61 = vpack.c.bf16 %v4969_v63, %v4967_v0  ;;  %v4951_v0 = vmax.f32 %v11939_v55, 0.0  ;;  %v16223_v36 = vld [vmem:[#allocation77_spill] sm:$0xff] }
 0x39b   :  { %5655 = vmatpush1.bf16.msra.mxu0 %v5532_v42  ;;  %v5564_v17 = vpack.c.bf16 %v4968_v27, %v4966_v49  ;;  %3846 = vperm.xlu0 %6512, %v7042_v60   ;;  %v4196_v47 = vadd.f32 %v3682_v44, %v3300_v1  ;;  %v4197_v6 = vadd.f32 %v3682_v44, %v3301_v8  ;;  %v4901_v9 = vmax.f32 %v4645_v45, 0.0  ;;  %v16166_v42 = vld [vmem:[#allocation114_spill] sm:$0xff] }
 0x39c   :  { %v4900_v23 = vmax.f32 %v4644_v15, 0.0  ;;  %v4186_v53 = vadd.f32 %v16166_v42, %v11898_v38  ;;  %v4187_v31 = vadd.f32 %v16166_v42, %v11928_v54  ;;  %5847 = vmatprep.subr.bf16.mxu1 %v5565_v61  ;;  %v4707_v51 = vadd.f32 %v4451_v2, %v4195_v50  ;;  %v7043_v38 = vld [vmem:[%s15147_s2 + $0x258] sm:$0xff]  ;;  %v4384_v54 = vld [vmem:[%s15148_s1 + $0x70] sm:$0xff]  ;;  %v4418_v61 = vld [vmem:[%s15148_s1 + $0x180] sm:$0xff] }
 0x39d   :  { %v4706_v63 = vadd.f32 %v4450_v37, %v4194_v26  ;;  %v4708_v27 = vadd.f32 %v4452_v12, %v4196_v47  ;;  %v4709_v24 = vadd.f32 %v4453_v29, %v4197_v6  ;;  %5848 = vmatpush1.bf16.msra.mxu1 %v5564_v17  ;;  %v4950_v49 = vmax.f32 %v11967_v33, 0.0  ;;  %v4385_v26 = vld [vmem:[%s15148_s1 + $0x78] sm:$0xff]  ;;  %v3512_v50 = vpop.permute.xlu1 %3511  ;;  %v7044_v37 = vld [vmem:[%s15147_s2 + $0x350] sm:$0xff]  ;;  %v4419_v42 = vld [vmem:[%s15148_s1 + $0x188] sm:$0xff] }
 0x39e   :  { %v4190_v1 = vadd.f32 %v16167_v5, %v3294_v32  ;;  %v4191_v3 = vadd.f32 %v16167_v5, %v3295_v58  ;;  %3851 = vperm.xlu1 %6497, %v7043_v38   ;;  %v16168_v8 = vmax.f32 %v11620_v52, 0.0  ;;  %v16169_v45 = vmax.f32 %v11622_v30, 0.0  ;;  %v4447_v58 = vld [vmem:[%s15148_s1 + $0x268] sm:$0xff]  ;;  %v4446_v52 = vld [vmem:[%s15148_s1 + $0x260] sm:$0xff]  ;;  %v16170_v30 = vld [vmem:[#allocation277_spill] sm:$0xff] }
 0x39f   :  { %4006 = vperm.xlu0 %6512, %v7044_v37   ;;  %v4128_v28 = vadd.f32 %v3512_v50, %v11664_v20  ;;  %v4129_v62 = vadd.f32 %v3512_v50, %v11668_v4  ;;  %v4965_v32 = vmax.f32 %v4709_v24, 0.0  ;;  %v4964_v59 = vmax.f32 %v4708_v27, 0.0  ;;  %v12101_v20 = vpop.permute.xlu0 %2965  ;;  %v16171_v17 = vld [vmem:[#allocation92_spill] sm:$0xff]  ;;  %v16172_v47 = vld [vmem:[#allocation89_spill] sm:$0xff] }
 0x3a0   :  { %v5531_v15 = vpack.c.bf16 %v4901_v9, %v16168_v8  ;;  %v5530_v2 = vpack.c.bf16 %v4900_v23, %v16169_v45  ;;  %v4162_v12 = vadd.f32 %v16170_v30, %v11795_v57  ;;  %v4163_v29 = vadd.f32 %v16170_v30, %v11799_v21  ;;  %v4443_v21 = vld [vmem:[%s15148_s1 + $0x248] sm:$0xff]  ;;  %v4442_v23 = vld [vmem:[%s15148_s1 + $0x240] sm:$0xff] }
 0x3a1   :  { %v4963_v4 = vmax.f32 %v4707_v51, 0.0  ;;  %v4962_v44 = vmax.f32 %v4706_v63, 0.0  ;;  %v3296_v60 = vmul.f32 %v11404_v22, %v16171_v17  ;;  %v3297_v6 = vmul.f32 %v11404_v22, %v16172_v47  ;;  %v4448_v22 = vld [vmem:[%s15148_s1 + $0x270] sm:$0xff]  ;;  %v4449_v51 = vld [vmem:[%s15148_s1 + $0x278] sm:$0xff]  ;;  %v3672_v63 = vpop.permute.xlu1 %3671  ;;  %v7047_v17 = vld [vmem:[%s15147_s2 + $0x340] sm:$0xff] }
 0x3a2   :  { %5656 = vmatprep.subr.bf16.mxu0 %v5531_v15  ;;  %v4640_v9 = vadd.f32 %v4384_v54, %v4128_v28  ;;  %v4641_v57 = vadd.f32 %v4385_v26, %v4129_v62  ;;  %4011 = vperm.xlu1 %6497, %v11430_v25   ;;  %v4703_v5 = vadd.f32 %v4447_v58, %v4191_v3  ;;  %v7045_v54 = vld [vmem:[%s15147_s2 + $0x240] sm:$0xff]  ;;  %v16173_v15 = vld [vmem:[#allocation279_spill] sm:$0xff]  ;;  %v4381_v58 = vld [vmem:[%s15148_s1 + $0x58] sm:$0xff]  ;;  %v16174_v30 = vmax.f32 %v11628_v46, 0.0 }
 0x3a3   :  { %5657 = vmatpush1.bf16.msra.mxu0 %v5530_v2  ;;  %v5563_v27 = vpack.c.bf16 %v4965_v32, %v4963_v4  ;;  %v5562_v24 = vpack.c.bf16 %v4964_v59, %v4962_v44  ;;  %v4702_v38 = vadd.f32 %v4446_v52, %v4190_v1  ;;  %3836 = vperm.xlu0 %6512, %v7045_v54   ;;  %v12133_v37 = vpop.permute.xlu0 %2975  ;;  %v4414_v32 = vld [vmem:[%s15148_s1 + $0x160] sm:$0xff] }
 0x3a4   :  { %v4192_v26 = vadd.f32 %v3672_v63, %v3296_v60  ;;  %v4193_v25 = vadd.f32 %v3672_v63, %v3297_v6  ;;  %v4897_v50 = vmax.f32 %v4641_v57, 0.0  ;;  %v4896_v8 = vmax.f32 %v4640_v9, 0.0  ;;  %v16176_v47 = vld [vmem:[#allocation14_spill] sm:$0xff] }
 0x3a5   :  { %v4158_v45 = vadd.f32 %v16173_v15, %v11776_v18  ;;  %v4159_v2 = vadd.f32 %v16173_v15, %v11780_v11  ;;  %5849 = vmatprep.subr.bf16.mxu1 %v5563_v27  ;;  %v12135_v3 = vadd.f32 %v4443_v21, %v4187_v31  ;;  %v12137_v1 = vadd.f32 %v4442_v23, %v4186_v53  ;;  %v4415_v18 = vld [vmem:[%s15148_s1 + $0x168] sm:$0xff]  ;;  %v4380_v31 = vld [vmem:[%s15148_s1 + $0x50] sm:$0xff]  ;;  %v3502_v52 = vpop.permute.xlu1 %3501  ;;  %v16177_v23 = vld [vmem:[#allocation41_spill] sm:$0xff] }
 0x3a6   :  { %v12139_v28 = vadd.f32 %v4418_v61, %v4162_v12  ;;  %v12141_v62 = vadd.f32 %v4419_v42, %v4163_v29  ;;  %v4704_v11 = vadd.f32 %v4448_v22, %v4192_v26  ;;  %v4705_v59 = vadd.f32 %v4449_v51, %v4193_v25  ;;  %5850 = vmatpush1.bf16.msra.mxu1 %v5562_v24  ;;  %v7046_v53 = vld [vmem:[%s15147_s2 + $0x248] sm:$0xff]  ;;  %v16179_v22 = vld [vmem:[#allocation49_spill] sm:$0xff]  ;;  %v16181_v27 = vld [vmem:[#allocation90_spill] sm:$0xff] }
 0x3a7   :  { %3841 = vperm.xlu1 %6497, %v7046_v53   ;;  %v5529_v12 = vpack.c.bf16 %v4897_v50, %v16174_v30  ;;  %v16175_v29 = vmax.f32 %v11626_v10, 0.0  ;;  %v4959_v44 = vmax.f32 %v4703_v5, 0.0  ;;  %v4958_v61 = vmax.f32 %v4702_v38, 0.0  ;;  %3996 = vperm.xlu0 %6512, %v7047_v17   ;;  %v16178_v10 = vld [vmem:[#allocation281_spill] sm:$0xff]  ;;  %v12175_v63 = vpop.permute.xlu0 %2985  ;;  %v16182_v24 = vld [vmem:[#allocation308_spill] sm:$0xff]  ;;  %v16183_v38 = vld [vmem:[#allocation87_spill] sm:$0xff] }
 0x3a8   :  { %v4124_v60 = vadd.f32 %v3502_v52, %v11638_v43  ;;  %v4125_v6 = vadd.f32 %v3502_v52, %v16176_v47  ;;  %v4961_v9 = vmax.f32 %v4705_v59, 0.0  ;;  %v4960_v57 = vmax.f32 %v4704_v11, 0.0  ;;  %16180 = vst [vmem:[#allocation245_spill] sm:$0xff] %v12175_v63  ;;  %v4410_v43 = vld [vmem:[%s15148_s1 + $0x140] sm:$0xff]  ;;  %v4411_v50 = vld [vmem:[%s15148_s1 + $0x148] sm:$0xff]  ;;  %v4444_v15 = vld [vmem:[%s15148_s1 + $0x250] sm:$0xff] }
 0x3a9   :  { %v5528_v4 = vpack.c.bf16 %v4896_v8, %v16175_v29  ;;  %v12167_v21 = vadd.f32 %v4414_v32, %v4158_v45  ;;  %v12169_v46 = vadd.f32 %v4415_v18, %v4159_v2  ;;  %v4154_v42 = vadd.f32 %v16178_v10, %v16177_v23  ;;  %5658 = vmatprep.subr.bf16.mxu0 %v5529_v12  ;;  %v16184_v8 = vld [vmem:[#allocation336_spill] sm:$0xff]  ;;  %v4445_v45 = vld [vmem:[%s15148_s1 + $0x258] sm:$0xff]  ;;  %v3662_v2 = vpop.permute.xlu1 %3661 }
 0x3aa   :  { %v4155_v51 = vadd.f32 %v16178_v10, %v16179_v22  ;;  %v3292_v5 = vmul.f32 %v16182_v24, %v16181_v27  ;;  %v3293_v54 = vmul.f32 %v16182_v24, %v16183_v38  ;;  %v4636_v26 = vadd.f32 %v4380_v31, %v4124_v60  ;;  %v7048_v53 = vld [vmem:[%s15147_s2 + $0x230] sm:$0xff]  ;;  %v7049_v10 = vld [vmem:[%s15147_s2 + $0x238] sm:$0xff] }
 0x3ab   :  { %v4637_v25 = vadd.f32 %v4381_v58, %v4125_v6  ;;  %5659 = vmatpush1.bf16.msra.mxu0 %v5528_v4  ;;  %4001 = vperm.xlu1 %6497, %v16184_v8   ;;  %v5561_v32 = vpack.c.bf16 %v4961_v9, %v4959_v44  ;;  %v5560_v18 = vpack.c.bf16 %v4960_v57, %v4958_v61  ;;  %v4955_v11 = vmax.f32 %v12135_v3, 0.0  ;;  %v12199_v12 = vpop.permute.xlu0 %2995  ;;  %v16186_v47 = vld [vmem:[#allocation112_spill] sm:$0xff]  ;;  %v16187_v6 = vld [vmem:[#allocation319_spill] sm:$0xff]  ;;  %v16188_v57 = vld [vmem:[#allocation110_spill] sm:$0xff] }
 0x3ac   :  { %v4954_v59 = vmax.f32 %v12137_v1, 0.0  ;;  %3826 = vperm.xlu0 %6512, %v7048_v53   ;;  %v4188_v31 = vadd.f32 %v3662_v2, %v3292_v5  ;;  %v4189_v58 = vadd.f32 %v3662_v2, %v3293_v54  ;;  %v4892_v30 = vmax.f32 %v4636_v26, 0.0  ;;  %16185 = vst [vmem:[#allocation55_spill] sm:$0xff] %v12199_v12  ;;  %v4377_v22 = vld [vmem:[%s15148_s1 + $0x38] sm:$0xff]  ;;  %v16191_v5 = vld [vmem:[#allocation23_spill] sm:$0xff]  ;;  %v7050_v26 = vld [vmem:[%s15147_s2 + $0x330] sm:$0xff] }
 0x3ad   :  { %v4893_v52 = vmax.f32 %v4637_v25, 0.0  ;;  %5851 = vmatprep.subr.bf16.mxu1 %v5561_v32  ;;  %v12205_v44 = vadd.f32 %v4410_v43, %v4154_v42  ;;  %v12207_v61 = vadd.f32 %v4411_v50, %v4155_v51  ;;  %v12211_v9 = vmul.f32 %v16187_v6, %v16186_v47  ;;  %v4376_v42 = vld [vmem:[%s15148_s1 + $0x30] sm:$0xff]  ;;  %v3492_v51 = vpop.permute.xlu1 %3491  ;;  %v16189_v43 = vld [vmem:[#allocation22_spill] sm:$0xff]  ;;  %v16193_v25 = vld [vmem:[#allocation17_spill] sm:$0xff] }
 0x3ae   :  { %v4700_v17 = vadd.f32 %v4444_v15, %v4188_v31  ;;  %v4701_v60 = vadd.f32 %v4445_v45, %v4189_v58  ;;  %5852 = vmatpush1.bf16.msra.mxu1 %v5560_v18  ;;  %v12215_v23 = vmul.f32 %v16187_v6, %v16188_v57  ;;  %v16190_v27 = vmax.f32 %v16189_v43, 0.0  ;;  %v16194_v8 = vld [vmem:[#allocation27_spill] sm:$0xff]  ;;  %v16195_v32 = vld [vmem:[#allocation70_spill] sm:$0xff]  ;;  %v16197_v31 = vld [vmem:[#allocation44_spill] sm:$0xff] }
 0x3af   :  { %3831 = vperm.xlu1 %6497, %v7049_v10   ;;  %v16192_v38 = vmax.f32 %v16191_v5, 0.0  ;;  %v4120_v50 = vadd.f32 %v3492_v51, %v16193_v25  ;;  %v4121_v15 = vadd.f32 %v3492_v51, %v16194_v8  ;;  %v16196_v18 = vld [vmem:[#allocation283_spill] sm:$0xff]  ;;  %v16200_v6 = vld [vmem:[#allocation12_spill] sm:$0xff]  ;;  %v12243_v10 = vpop.permute.xlu0 %3005  ;;  %v16203_v51 = vld [vmem:[#allocation306_spill] sm:$0xff] }
 0x3b0   :  { %v5527_v24 = vpack.c.bf16 %v4893_v52, %v16190_v27  ;;  %3986 = vperm.xlu0 %6512, %v7050_v26   ;;  %v4957_v45 = vmax.f32 %v4701_v60, 0.0  ;;  %v4956_v2 = vmax.f32 %v4700_v17, 0.0  ;;  %v4150_v53 = vadd.f32 %v16196_v18, %v16195_v32  ;;  %v16198_v52 = vld [vmem:[#allocation18_spill] sm:$0xff]  ;;  %v16199_v47 = vld [vmem:[#allocation287_spill] sm:$0xff]  ;;  %16201 = vst [vmem:[#allocation193_spill] sm:$0xff] %v12243_v10  ;;  %v16202_v17 = vld [vmem:[#allocation84_spill] sm:$0xff] }
 0x3b1   :  { %v5526_v54 = vpack.c.bf16 %v4892_v30, %v16192_v38  ;;  %v4151_v58 = vadd.f32 %v16196_v18, %v16197_v31  ;;  %v3218_v30 = vmul.f32 %v16199_v47, %v16198_v52  ;;  %v3219_v57 = vmul.f32 %v16199_v47, %v16200_v6  ;;  %v4406_v60 = vld [vmem:[%s15148_s1 + $0x120] sm:$0xff]  ;;  %v16204_v27 = vld [vmem:[#allocation83_spill] sm:$0xff]  ;;  %v4440_v8 = vld [vmem:[%s15148_s1 + $0x230] sm:$0xff] }
 0x3b2   :  { %5660 = vmatprep.subr.bf16.mxu0 %v5527_v24  ;;  %v3288_v43 = vmul.f32 %v16203_v51, %v16202_v17  ;;  %v3289_v5 = vmul.f32 %v16203_v51, %v16204_v27  ;;  %v4632_v38 = vadd.f32 %v4376_v42, %v4120_v50  ;;  %v4633_v26 = vadd.f32 %v4377_v22, %v4121_v15  ;;  %v4407_v25 = vld [vmem:[%s15148_s1 + $0x128] sm:$0xff]  ;;  %v7051_v24 = vld [vmem:[%s15147_s2 + $0x338] sm:$0xff]  ;;  %v3652_v42 = vpop.permute.xlu1 %3651  ;;  %v7052_v18 = vld [vmem:[%s15147_s2 + $0x220] sm:$0xff] }
 0x3b3   :  { %5661 = vmatpush1.bf16.msra.mxu0 %v5526_v54  ;;  %3991 = vperm.xlu1 %6497, %v7051_v24   ;;  %v4441_v32 = vld [vmem:[%s15148_s1 + $0x238] sm:$0xff]  ;;  %v5559_v22 = vpack.c.bf16 %v4957_v45, %v4955_v11  ;;  %v5558_v54 = vpack.c.bf16 %v4956_v2, %v4954_v59  ;;  %v16206_v51 = vld [vmem:[#allocation320_spill] sm:$0xff]  ;;  %v16208_v59 = vld [vmem:[#allocation298_spill] sm:$0xff]  ;;  %v12275_v15 = vpop.permute.xlu0 %3015  ;;  %v12277_v50 = vadd.f32 %v4406_v60, %v4150_v53 }
 0x3b4   :  { %3816 = vperm.xlu0 %6512, %v7052_v18   ;;  %v4184_v31 = vadd.f32 %v3652_v42, %v3288_v43  ;;  %v4185_v52 = vadd.f32 %v3652_v42, %v3289_v5  ;;  %v4889_v47 = vmax.f32 %v4633_v26, 0.0  ;;  %v4888_v6 = vmax.f32 %v4632_v38, 0.0  ;;  %v16205_v17 = vld [vmem:[#allocation117_spill] sm:$0xff]  ;;  %v16207_v24 = vld [vmem:[#allocation116_spill] sm:$0xff]  ;;  %16209 = vst [vmem:[#allocation314_spill] sm:$0xff] %v12275_v15  ;;  %v4371_v38 = vld [vmem:[%s15148_s1 + $0x8] sm:$0xff] }
 0x3b5   :  { %v3318_v27 = vmul.f32 %v16206_v51, %v16205_v17  ;;  %v3319_v11 = vmul.f32 %v16206_v51, %v16207_v24  ;;  %v4114_v45 = vadd.f32 %v16208_v59, %v3218_v30  ;;  %v4115_v2 = vadd.f32 %v16208_v59, %v3219_v57  ;;  %5853 = vmatprep.subr.bf16.mxu1 %v5559_v22  ;;  %v4370_v30 = vld [vmem:[%s15148_s1] sm:$0xff]  ;;  %v16210_v26 = vld [vmem:[#allocation120_spill] sm:$0xff]  ;;  %v16211_v57 = vld [vmem:[#allocation321_spill] sm:$0xff] }
 0x3b6   :  { %v12279_v18 = vadd.f32 %v4407_v25, %v4151_v58  ;;  %v4696_v43 = vadd.f32 %v4440_v8, %v4184_v31  ;;  %v4697_v5 = vadd.f32 %v4441_v32, %v4185_v52  ;;  %5854 = vmatpush1.bf16.msra.mxu1 %v5558_v54  ;;  %v3322_v42 = vmul.f32 %v16211_v57, %v16210_v26  ;;  %v16212_v22 = vld [vmem:[#allocation16_spill] sm:$0xff]  ;;  %v7053_v58 = vld [vmem:[%s15147_s2 + $0x228] sm:$0xff]  ;;  %v4373_v25 = vld [vmem:[%s15148_s1 + $0x18] sm:$0xff]  ;;  %v3482_v8 = vpop.permute.xlu1 %3481 }
 0x3b7   :  { %v3323_v53 = vmul.f32 %v16211_v57, %v16212_v22  ;;  %3821 = vperm.xlu1 %6497, %v7053_v58   ;;  %v4372_v60 = vld [vmem:[%s15148_s1 + $0x10] sm:$0xff]  ;;  %v16213_v32 = vld [vmem:[#allocation26_spill] sm:$0xff]  ;;  %v16217_v59 = vld [vmem:[#allocation31_spill] sm:$0xff] }
 0x3b8   :  { %v16214_v54 = vmax.f32 %v16213_v32, 0.0  ;;  %v16215_v52 = vld [vmem:[#allocation30_spill] sm:$0xff]  ;;  %v4116_v26 = vadd.f32 %v3482_v8, %v16217_v59  ;;  %v16218_v57 = vld [vmem:[#allocation13_spill] sm:$0xff]  ;;  %v4953_v58 = vmax.f32 %v4697_v5, 0.0  ;;  %v4952_v1 = vmax.f32 %v4696_v43, 0.0  ;;  %v16219_v3 = vld [vmem:[#allocation284_spill] sm:$0xff] }
 0x3b9   :  { %v16216_v17 = vmax.f32 %v16215_v52, 0.0  ;;  %v7054_v24 = vld [vmem:[%s15147_s2 + $0x320] sm:$0xff]  ;;  %v4117_v22 = vadd.f32 %v3482_v8, %v16218_v57  ;;  %v4214_v4 = vadd.f32 %v16219_v3, %v3318_v27  ;;  %v4215_v29 = vadd.f32 %v16219_v3, %v3319_v11  ;;  %v16222_v52 = vld [vmem:[#allocation304_spill] sm:$0xff]  ;;  %v7055_v27 = vld [vmem:[%s15147_s2 + $0x328] sm:$0xff] }
 0x3ba   :  { %v5525_v31 = vpack.c.bf16 %v4889_v47, %v16214_v54  ;;  %3976 = vperm.xlu0 %6512, %v7054_v24   ;;  %v12311_v47 = vpop.permute.xlu0 %3025  ;;  %v4627_v32 = vadd.f32 %v4371_v38, %v4115_v2  ;;  %v16221_v54 = vld [vmem:[#allocation80_spill] sm:$0xff]  ;;  %v3285_v24 = vmul.f32 %v16222_v52, %v16223_v36  ;;  %v4628_v59 = vadd.f32 %v4372_v60, %v4116_v26  ;;  %v4437_v11 = vld [vmem:[%s15148_s1 + $0x218] sm:$0xff]  ;;  %v4470_v57 = vld [vmem:[%s15148_s1 + $0x320] sm:$0xff] }
 0x3bb   :  { %v5524_v51 = vpack.c.bf16 %v4888_v6, %v16216_v17  ;;  %16220 = vst [vmem:[#allocation302_spill] sm:$0xff] %v12311_v47  ;;  %v4626_v6 = vadd.f32 %v4370_v30, %v4114_v45  ;;  %v3284_v17 = vmul.f32 %v16222_v52, %v16221_v54  ;;  %v4629_v14 = vadd.f32 %v4373_v25, %v4117_v22  ;;  %v4436_v3 = vld [vmem:[%s15148_s1 + $0x210] sm:$0xff]  ;;  %v3642_v45 = vpop.permute.xlu1 %3641  ;;  %v16228_v22 = vld [vmem:[#allocation78_spill] sm:$0xff]  ;;  %v16230_v52 = vld [vmem:[#allocation75_spill] sm:$0xff] }
 0x3bc   :  { %5662 = vmatprep.subr.bf16.mxu0 %v5525_v31  ;;  %3981 = vperm.xlu1 %6497, %v7055_v27   ;;  %v5557_v36 = vpack.c.bf16 %v4953_v58, %v4951_v0  ;;  %v5556_v2 = vpack.c.bf16 %v4952_v1, %v4950_v49  ;;  %v7056_v38 = vld [vmem:[%s15147_s2 + $0x210] sm:$0xff]  ;;  %v4181_v60 = vadd.f32 %v3642_v45, %v3285_v24  ;;  %v4884_v8 = vmax.f32 %v4628_v59, 0.0  ;;  %v16226_v0 = vld [vmem:[#allocation137_spill] sm:$0xff]  ;;  %v16229_v58 = vld [vmem:[#allocation334_spill] sm:$0xff] }
 0x3bd   :  { %5663 = vmatpush1.bf16.msra.mxu0 %v5524_v51  ;;  %v4180_v30 = vadd.f32 %v3642_v45, %v3284_v17  ;;  %v4885_v25 = vmax.f32 %v4629_v14, 0.0  ;;  %v16224_v31 = vld [vmem:[#allocation140_spill] sm:$0xff]  ;;  %v4883_v1 = vmax.f32 %v4627_v32, 0.0  ;;  %v4882_v26 = vmax.f32 %v4626_v6, 0.0  ;;  %v4471_v14 = vld [vmem:[%s15148_s1 + $0x328] sm:$0xff]  ;;  %v16231_v27 = vld [vmem:[#allocation282_spill] sm:$0xff] }
 0x3be   :  { %3806 = vperm.xlu0 %6512, %v7056_v38   ;;  %v16225_v51 = vld [vmem:[#allocation288_spill] sm:$0xff]  ;;  %5855 = vmatprep.subr.bf16.mxu1 %v5557_v36  ;;  %v12339_v49 = vpop.permute.xlu0 %3035  ;;  %v3280_v54 = vmul.f32 %v16229_v58, %v16228_v22  ;;  %v3281_v17 = vmul.f32 %v16229_v58, %v16230_v52  ;;  %v4693_v59 = vadd.f32 %v4437_v11, %v4181_v60  ;;  %v7057_v45 = vld [vmem:[%s15147_s2 + $0x218] sm:$0xff]  ;;  %v16252_v5 = vld [vmem:[#allocation274_spill] sm:$0xff] }
 0x3bf   :  { %v3342_v55 = vmul.f32 %v16225_v51, %v16224_v31  ;;  %v3343_v33 = vmul.f32 %v16225_v51, %v16226_v0  ;;  %16227 = vst [vmem:[#allocation81_spill] sm:$0xff] %v12339_v49  ;;  %v4692_v24 = vadd.f32 %v4436_v3, %v4180_v30  ;;  %5856 = vmatpush1.bf16.msra.mxu1 %v5556_v2  ;;  %v4432_v36 = vld [vmem:[%s15148_s1 + $0x1f0] sm:$0xff]  ;;  %v4433_v3 = vld [vmem:[%s15148_s1 + $0x1f8] sm:$0xff]  ;;  %v3632_v11 = vpop.permute.xlu1 %3631  ;;  %v16275_v47 = vld [vmem:[#allocation131_spill] sm:$0xff] }
 0x3c0   :  { %v12352_v32 = vadd.f32 %v16231_v27, %v3322_v42  ;;  %v4219_v6 = vadd.f32 %v16231_v27, %v3323_v53  ;;  %3811 = vperm.xlu1 %6497, %v7057_v45   ;;  %v5523_v2 = vpack.c.bf16 %v4885_v25, %v4883_v1  ;;  %v5522_v38 = vpack.c.bf16 %v4884_v8, %v4882_v26  ;;  %v7058_v42 = vld [vmem:[%s15147_s2 + $0x310] sm:$0xff]  ;;  %v16234_v8 = vld [vmem:[#allocation139_spill] sm:$0xff]  ;;  %v4497_v45 = vld [vmem:[%s15148_s1 + $0x3f8] sm:$0xff] }
 0x3c1   :  { %v4176_v53 = vadd.f32 %v3632_v11, %v3280_v54  ;;  %v4177_v30 = vadd.f32 %v3632_v11, %v3281_v17  ;;  %v4949_v60 = vmax.f32 %v4693_v59, 0.0  ;;  %v4948_v31 = vmax.f32 %v4692_v24, 0.0  ;;  %v16232_v22 = vld [vmem:[#allocation268_spill] sm:$0xff]  ;;  %v16264_v10 = vld [vmem:[#allocation65_spill] sm:$0xff]  ;;  %v16332_v49 = vld [vmem:[#allocation51_spill] sm:$0xff] }
 0x3c2   :  { %3966 = vperm.xlu0 %6512, %v7058_v42   ;;  %v12367_v51 = vadd.f32 %v4470_v57, %v4214_v4  ;;  %v12369_v0 = vadd.f32 %v4471_v14, %v4215_v29  ;;  %v4238_v58 = vadd.f32 %v16232_v22, %v3342_v55  ;;  %v4239_v52 = vadd.f32 %v16232_v22, %v3343_v33  ;;  %v12373_v25 = vpop.permute.xlu0 %3045  ;;  %v16235_v26 = vld [vmem:[#allocation136_spill] sm:$0xff]  ;;  %v4495_v29 = vld [vmem:[%s15148_s1 + $0x3e8] sm:$0xff]  ;;  %v4494_v4 = vld [vmem:[%s15148_s1 + $0x3e0] sm:$0xff] }
 0x3c3   :  { %5664 = vmatprep.subr.bf16.mxu0 %v5523_v2  ;;  %16233 = vst [vmem:[#allocation310_spill] sm:$0xff] %v12373_v25  ;;  %v3344_v1 = vmul.f32 %v11883_v35, %v16234_v8  ;;  %v3345_v54 = vmul.f32 %v11883_v35, %v16235_v26  ;;  %v4688_v17 = vadd.f32 %v4432_v36, %v4176_v53  ;;  %v16236_v55 = vld [vmem:[#allocation123_spill] sm:$0xff]  ;;  %v16237_v33 = vld [vmem:[#allocation322_spill] sm:$0xff]  ;;  %v16238_v14 = vld [vmem:[#allocation121_spill] sm:$0xff]  ;;  %v3792_v36 = vpop.permute.xlu1 %3791 }
 0x3c4   :  { %v4689_v59 = vadd.f32 %v4433_v3, %v4177_v30  ;;  %5665 = vmatpush1.bf16.msra.mxu0 %v5522_v38  ;;  %v12387_v57 = vmul.f32 %v16237_v33, %v16236_v55  ;;  %v12391_v24 = vmul.f32 %v16237_v33, %v16238_v14  ;;  %v7059_v35 = vld [vmem:[%s15147_s2 + $0x318] sm:$0xff]  ;;  %v4496_v27 = vld [vmem:[%s15148_s1 + $0x3f0] sm:$0xff]  ;;  %v16239_v3 = vld [vmem:[#allocation50_spill] sm:$0xff]  ;;  %v5554_v38 = vpack.c.bf16 %v4948_v31, %v4946_v39 }
 0x3c5   :  { %3971 = vperm.xlu1 %6497, %v7059_v35   ;;  %v16240_v11 = vmax.f32 %v16239_v3, 0.0  ;;  %v7060_v42 = vld [vmem:[%s15147_s2 + $0x200] sm:$0xff]  ;;  %v4240_v53 = vadd.f32 %v3792_v36, %v3344_v1  ;;  %v4241_v30 = vadd.f32 %v3792_v36, %v3345_v54  ;;  %v4944_v8 = vmax.f32 %v4688_v17, 0.0  ;;  %v4475_v26 = vld [vmem:[%s15148_s1 + $0x348] sm:$0xff]  ;;  %v16243_v31 = vld [vmem:[#allocation29_spill] sm:$0xff] }
 0x3c6   :  { %3796 = vperm.xlu0 %6512, %v7060_v42   ;;  %v4945_v22 = vmax.f32 %v4689_v59, 0.0  ;;  %v16241_v55 = vld [vmem:[#allocation135_spill] sm:$0xff]  ;;  %v3339_v33 = vmul.f32 %v16242_v40, %v16243_v31  ;;  %v12419_v14 = vpop.permute.xlu0 %3055  ;;  %v4751_v1 = vadd.f32 %v4495_v29, %v4239_v52  ;;  %v4750_v54 = vadd.f32 %v4494_v4, %v4238_v58  ;;  %v16245_v17 = vld [vmem:[#allocation72_spill] sm:$0xff]  ;;  %v4429_v58 = vld [vmem:[%s15148_s1 + $0x1d8] sm:$0xff] }
 0x3c7   :  { %v5555_v2 = vpack.c.bf16 %v4949_v60, %v16240_v11  ;;  %v4474_v60 = vld [vmem:[%s15148_s1 + $0x340] sm:$0xff]  ;;  %v3338_v39 = vmul.f32 %v16242_v40, %v16241_v55  ;;  %16244 = vst [vmem:[#allocation79_spill] sm:$0xff] %v12419_v14  ;;  %v16246_v59 = vld [vmem:[#allocation332_spill] sm:$0xff]  ;;  %v16247_v36 = vld [vmem:[#allocation71_spill] sm:$0xff]  ;;  %v4752_v11 = vadd.f32 %v4496_v27, %v4240_v53  ;;  %v4753_v42 = vadd.f32 %v4497_v45, %v4241_v30  ;;  %v3622_v52 = vpop.permute.xlu1 %3621 }
 0x3c8   :  { %v3276_v35 = vmul.f32 %v16246_v59, %v16245_v17  ;;  %v3277_v3 = vmul.f32 %v16246_v59, %v16247_v36  ;;  %v7061_v55 = vld [vmem:[%s15147_s2 + $0x208] sm:$0xff]  ;;  %v16248_v29 = vld [vmem:[#allocation272_spill] sm:$0xff]  ;;  %v12438_v53 = vadd.f32 %v4475_v26, %v4219_v6  ;;  %v12441_v30 = vadd.f32 %v4474_v60, %v12352_v32  ;;  %v7062_v31 = vld [vmem:[%s15147_s2 + $0x300] sm:$0xff] }
 0x3c9   :  { %5857 = vmatprep.subr.bf16.mxu1 %v5555_v2  ;;  %3801 = vperm.xlu1 %6497, %v7061_v55   ;;  %v4428_v2 = vld [vmem:[%s15148_s1 + $0x1d0] sm:$0xff]  ;;  %v16249_v4 = vmax.f32 %v16248_v29, 0.0  ;;  %v5009_v36 = vmax.f32 %v4753_v42, 0.0  ;;  %v5008_v55 = vmax.f32 %v4752_v11, 0.0  ;;  %v4234_v29 = vadd.f32 %v16252_v5, %v3338_v39  ;;  %v16253_v32 = vld [vmem:[#allocation138_spill] sm:$0xff]  ;;  %v4491_v39 = vld [vmem:[%s15148_s1 + $0x3c8] sm:$0xff] }
 0x3ca   :  { %5858 = vmatpush1.bf16.msra.mxu1 %v5554_v38  ;;  %v16250_v27 = vld [vmem:[#allocation52_spill] sm:$0xff]  ;;  %3956 = vperm.xlu0 %6512, %v7062_v31   ;;  %v4172_v17 = vadd.f32 %v3622_v52, %v3276_v35  ;;  %v4173_v59 = vadd.f32 %v3622_v52, %v3277_v3  ;;  %v5007_v6 = vmax.f32 %v4751_v1, 0.0  ;;  %v5006_v26 = vmax.f32 %v4750_v54, 0.0  ;;  %v16254_v60 = vld [vmem:[#allocation294_spill] sm:$0xff]  ;;  %v16257_v1 = vld [vmem:[#allocation285_spill] sm:$0xff] }
 0x3cb   :  { %v5553_v40 = vpack.c.bf16 %v4945_v22, %v16249_v4  ;;  %v16251_v45 = vmax.f32 %v16250_v27, 0.0  ;;  %v4235_v22 = vadd.f32 %v16252_v5, %v3339_v33  ;;  %v3340_v4 = vmul.f32 %v16254_v60, %v16253_v32  ;;  %v16255_v27 = vld [vmem:[#allocation134_spill] sm:$0xff]  ;;  %v16256_v33 = vld [vmem:[#allocation43_spill] sm:$0xff]  ;;  %v16258_v3 = vld [vmem:[#allocation73_spill] sm:$0xff]  ;;  %v3782_v52 = vpop.permute.xlu1 %3781 }
 0x3cc   :  { %v4684_v31 = vadd.f32 %v4428_v2, %v4172_v17  ;;  %v4685_v35 = vadd.f32 %v4429_v58, %v4173_v59  ;;  %v4490_v5 = vld [vmem:[%s15148_s1 + $0x3c0] sm:$0xff]  ;;  %v12462_v54 = vadd.f32 %v16257_v1, %v16256_v33  ;;  %v12466_v11 = vadd.f32 %v16257_v1, %v16258_v3  ;;  %v7063_v42 = vld [vmem:[%s15147_s2 + $0x308] sm:$0xff]  ;;  %v4492_v2 = vld [vmem:[%s15148_s1 + $0x3d0] sm:$0xff] }
 0x3cd   :  { %v5552_v38 = vpack.c.bf16 %v4944_v8, %v16251_v45  ;;  %5666 = vmatprep.subr.bf16.mxu0 %v5553_v40  ;;  %v12448_v8 = vpop.permute.xlu0 %3065  ;;  %v3341_v45 = vmul.f32 %v16254_v60, %v16255_v27  ;;  %3961 = vperm.xlu1 %6497, %v7063_v42   ;;  %v4493_v58 = vld [vmem:[%s15148_s1 + $0x3d8] sm:$0xff]  ;;  %v5585_v40 = vpack.c.bf16 %v5009_v36, %v5007_v6  ;;  %v16259_v33 = vld [vmem:[#allocation132_spill] sm:$0xff] }
 0x3ce   :  { %v7064_v17 = vld [vmem:[%s15147_s2 + $0x2f8] sm:$0xff]  ;;  %v4236_v59 = vadd.f32 %v3782_v52, %v3340_v4  ;;  %v4941_v60 = vmax.f32 %v4685_v35, 0.0  ;;  %v4940_v27 = vmax.f32 %v4684_v31, 0.0  ;;  %v16260_v1 = vld [vmem:[#allocation324_spill] sm:$0xff]  ;;  %v4747_v36 = vadd.f32 %v4491_v39, %v4235_v22 }
 0x3cf   :  { %5667 = vmatpush2.bf16.msra.mxu0 %v5552_v38  ;;  %v5584_v38 = vpack.c.bf16 %v5008_v55, %v5006_v26  ;;  %3951 = vperm.xlu0 %6512, %v7064_v17   ;;  %v4237_v32 = vadd.f32 %v3782_v52, %v3341_v45  ;;  %v3334_v3 = vmul.f32 %v16260_v1, %v16259_v33  ;;  %v16261_v42 = vld [vmem:[#allocation129_spill] sm:$0xff]  ;;  %v16262_v6 = vld [vmem:[#allocation68_spill] sm:$0xff]  ;;  %v16266_v17 = vmov 0   ;;  %v3612_v39 = vpop.permute.xlu1 %3611 }
 0x3d0   :  { %v3335_v43 = vmul.f32 %v16260_v1, %v16261_v42  ;;  %5859 = vmatprep.subr.bf16.mxu1 %v5585_v40  ;;  %v4746_v55 = vadd.f32 %v4490_v5, %v4234_v29  ;;  %v16263_v26 = vld [vmem:[#allocation301_spill] sm:$0xff]  ;;  %v4748_v45 = vadd.f32 %v4492_v2, %v4236_v59  ;;  %v16265_v31 = vld [vmem:[#allocation280_spill] sm:$0xff]  ;;  %v7065_v59 = vld [vmem:[%s15147_s2 + $0x2e8] sm:$0xff] }
 0x3d1   :  { %v12484_v63 = vpop.permute.xlu0 %3075  ;;  %v3272_v12 = vmul.f32 %v16263_v26, %v16262_v6  ;;  %v3273_v4 = vmul.f32 %v16263_v26, %v16264_v10  ;;  %v4749_v35 = vadd.f32 %v4493_v58, %v4237_v32  ;;  %5860 = vmatpush2.bf16.msra.mxu1 %v5584_v38  ;;  %v12492_v52 = vadd.f32 %v16265_v31, %v12387_v57  ;;  %v4424_v22 = vld [vmem:[%s15148_s1 + $0x1b0] sm:$0xff]  ;;  %v4425_v29 = vld [vmem:[%s15148_s1 + $0x1b8] sm:$0xff]  ;;  %v16271_v32 = vld [vmem:[#allocation38_spill] sm:$0xff] }
 0x3d2   :  { %6498 = vset.pattern.permute.xlu1 %v16266_v17  ;;  %v16267_v5 = vld [vmem:[#allocation309_spill] sm:$0xff]  ;;  %v16269_v58 = vld [vmem:[#allocation76_spill] sm:$0xff]  ;;  %v5004_v6 = vmax.f32 %v4748_v45, 0.0 }
 0x3d3   :  { %v16268_v10 = vmax.f32 %v16267_v5, 0.0  ;;  %v16270_v40 = vmax.f32 %v16269_v58, 0.0  ;;  %3941 = vperm.xlu0 %6512, %v7065_v59   ;;  %3215 = vperm.xlu1 %6498, %v16271_v32   ;;  %v4168_v33 = vadd.f32 %v3612_v39, %v3272_v12  ;;  %v4169_v1 = vadd.f32 %v3612_v39, %v3273_v4  ;;  %v16272_v26 = vld [vmem:[#allocation276_spill] sm:$0xff]  ;;  %v16273_v58 = vld [vmem:[#allocation133_spill] sm:$0xff]  ;;  %v16277_v4 = vld [vmem:[#allocation323_spill] sm:$0xff] }
 0x3d4   :  { %v5005_v42 = vmax.f32 %v4749_v35, 0.0  ;;  %v4230_v15 = vadd.f32 %v16272_v26, %v3334_v3  ;;  %v4487_v3 = vld [vmem:[%s15148_s1 + $0x3a8] sm:$0xff]  ;;  %v4489_v35 = vld [vmem:[%s15148_s1 + $0x3b8] sm:$0xff] }
 0x3d5   :  { %v5551_v2 = vpack.c.bf16 %v4941_v60, %v16268_v10  ;;  %v5550_v38 = vpack.c.bf16 %v4940_v27, %v16270_v40  ;;  %v4231_v60 = vadd.f32 %v16272_v26, %v3335_v43  ;;  %v12512_v5 = vpop.permute.xlu0 %3085  ;;  %v5003_v27 = vmax.f32 %v4747_v36, 0.0  ;;  %v16274_v40 = vld [vmem:[#allocation74_spill] sm:$0xff]  ;;  %v16333_v25 = vld [vmem:[#allocation161_spill] sm:$0xff] }
 0x3d6   :  { %v5002_v10 = vmax.f32 %v4746_v55, 0.0  ;;  %v3336_v57 = vmul.f32 %v16274_v40, %v16273_v58  ;;  %v3337_v59 = vmul.f32 %v16274_v40, %v16275_v47  ;;  %v4680_v32 = vadd.f32 %v4424_v22, %v4168_v33  ;;  %v4486_v43 = vld [vmem:[%s15148_s1 + $0x3a0] sm:$0xff]  ;;  %v16276_v55 = vld [vmem:[#allocation128_spill] sm:$0xff]  ;;  %v3772_v22 = vpop.permute.xlu1 %3771 }
 0x3d7   :  { %5668 = vmatprep.subr.bf16.mxu0 %v5551_v2  ;;  %v4681_v12 = vadd.f32 %v4425_v29, %v4169_v1  ;;  %v12526_v36 = vadd.f32 %v16265_v31, %v12391_v24  ;;  %v3330_v45 = vmul.f32 %v16277_v4, %v16276_v55  ;;  %v4488_v47 = vld [vmem:[%s15148_s1 + $0x3b0] sm:$0xff]  ;;  %v5583_v29 = vpack.c.bf16 %v5005_v42, %v5003_v27  ;;  %v4402_v2 = vld [vmem:[%s15148_s1 + $0x100] sm:$0xff]  ;;  %v7066_v24 = vld [vmem:[%s15147_s2 + $0x2d8] sm:$0xff] }
 0x3d8   :  { %5669 = vmatpush2.bf16.msra.mxu0 %v5550_v38  ;;  %v5582_v39 = vpack.c.bf16 %v5004_v6, %v5002_v10  ;;  %3931 = vperm.xlu0 %6512, %v7066_v24   ;;  %v4232_v31 = vadd.f32 %v3772_v22, %v3336_v57  ;;  %v4233_v38 = vadd.f32 %v3772_v22, %v3337_v59  ;;  %v4936_v1 = vmax.f32 %v4680_v32, 0.0  ;;  %v16278_v26 = vld [vmem:[#allocation126_spill] sm:$0xff]  ;;  %v7067_v42 = vld [vmem:[%s15147_s2 + $0x2f0] sm:$0xff]  ;;  %v16280_v57 = vld [vmem:[#allocation299_spill] sm:$0xff] }
 0x3d9   :  { %6499 = vset.pattern.permute.xlu1 %v16139_v19  ;;  %v4937_v33 = vmax.f32 %v4681_v12, 0.0  ;;  %v3331_v58 = vmul.f32 %v16277_v4, %v16278_v26  ;;  %5861 = vmatprep.subr.bf16.mxu1 %v5583_v29  ;;  %v12548_v6 = vpop.permute.xlu0 %3095  ;;  %v4743_v27 = vadd.f32 %v4487_v3, %v4231_v60  ;;  %v4742_v10 = vadd.f32 %v4486_v43, %v4230_v15  ;;  %v16279_v55 = vld [vmem:[#allocation66_spill] sm:$0xff]  ;;  %v16281_v12 = vld [vmem:[#allocation63_spill] sm:$0xff]  ;;  %v4420_v29 = vld [vmem:[%s15148_s1 + $0x190] sm:$0xff] }
 0x3da   :  { %3946 = vperm.xlu1 %6499, %v7067_v42   ;;  %v3268_v59 = vmul.f32 %v16280_v57, %v16279_v55  ;;  %v3269_v32 = vmul.f32 %v16280_v57, %v16281_v12  ;;  %v4744_v22 = vadd.f32 %v4488_v47, %v4232_v31  ;;  %v4745_v4 = vadd.f32 %v4489_v35, %v4233_v38  ;;  %v4421_v15 = vld [vmem:[%s15148_s1 + $0x198] sm:$0xff]  ;;  %v3602_v60 = vpop.permute.xlu1 %3601  ;;  %v7069_v55 = vld [vmem:[%s15147_s2 + $0x3f0] sm:$0xff] }
 0x3db   :  { %5862 = vmatpush2.bf16.msra.mxu1 %v5582_v39  ;;  %v12556_v24 = vadd.f32 %v4402_v2, %v12462_v54  ;;  %v16282_v3 = vmax.f32 %v11894_v7, 0.0  ;;  %v16283_v26 = vmax.f32 %v11892_v41, 0.0  ;;  %v4403_v54 = vld [vmem:[%s15148_s1 + $0x108] sm:$0xff]  ;;  %v16284_v7 = vld [vmem:[#allocation278_spill] sm:$0xff]  ;;  %v4998_v12 = vmax.f32 %v4742_v10, 0.0  ;;  %v16328_v35 = vld [vmem:[#allocation153_spill] sm:$0xff] }
 0x3dc   :  { %v7068_v39 = vld [vmem:[%s15147_s2 + $0x2c8] sm:$0xff]  ;;  %v4164_v2 = vadd.f32 %v3602_v60, %v3268_v59  ;;  %v4165_v31 = vadd.f32 %v3602_v60, %v3269_v32  ;;  %v5001_v38 = vmax.f32 %v4745_v4, 0.0  ;;  %v5000_v42 = vmax.f32 %v4744_v22, 0.0  ;;  %v16286_v22 = vld [vmem:[#allocation46_spill] sm:$0xff]  ;;  %v16287_v60 = vld [vmem:[#allocation124_spill] sm:$0xff] }
 0x3dd   :  { %v5549_v43 = vpack.c.bf16 %v4937_v33, %v16282_v3  ;;  %v5548_v47 = vpack.c.bf16 %v4936_v1, %v16283_v26  ;;  %3921 = vperm.xlu0 %6512, %v7068_v39   ;;  %v4479_v41 = vld [vmem:[%s15148_s1 + $0x368] sm:$0xff]  ;;  %v4226_v33 = vadd.f32 %v16284_v7, %v3330_v45  ;;  %v4227_v1 = vadd.f32 %v16284_v7, %v3331_v58  ;;  %v12583_v57 = vpop.permute.xlu0 %3105  ;;  %v7070_v7 = vld [vmem:[%s15147_s2 + $0x2b8] sm:$0xff] }
 0x3de   :  { %4106 = vperm.xlu1 %6499, %v7069_v55   ;;  %v4999_v59 = vmax.f32 %v4743_v27, 0.0  ;;  %v16285_v32 = vld [vmem:[#allocation127_spill] sm:$0xff]  ;;  %v3333_v3 = vmul.f32 %v16286_v22, %v16287_v60  ;;  %v4676_v26 = vadd.f32 %v4420_v29, %v4164_v2  ;;  %v4677_v45 = vadd.f32 %v4421_v15, %v4165_v31  ;;  %v4478_v27 = vld [vmem:[%s15148_s1 + $0x360] sm:$0xff]  ;;  %v4484_v29 = vld [vmem:[%s15148_s1 + $0x390] sm:$0xff] }
 0x3df   :  { %5670 = vmatprep.subr.bf16.mxu0 %v5549_v43  ;;  %v3332_v4 = vmul.f32 %v16286_v22, %v16285_v32  ;;  %v4483_v58 = vld [vmem:[%s15148_s1 + $0x388] sm:$0xff]  ;;  %v4482_v43 = vld [vmem:[%s15148_s1 + $0x380] sm:$0xff]  ;;  %v12599_v10 = vadd.f32 %v4403_v54, %v12466_v11  ;;  %v4485_v15 = vld [vmem:[%s15148_s1 + $0x398] sm:$0xff]  ;;  %v5580_v2 = vpack.c.bf16 %v5000_v42, %v4998_v12  ;;  %v12608_v31 = vadd.f32 %v4479_v41, %v12526_v36 }
 0x3e0   :  { %5671 = vmatpush2.bf16.msra.mxu0 %v5548_v47  ;;  %v3762_v47 = vpop.permute.xlu1 %3761  ;;  %v5581_v39 = vpack.c.bf16 %v5001_v38, %v4999_v59  ;;  %v4933_v55 = vmax.f32 %v4677_v45, 0.0  ;;  %v4932_v32 = vmax.f32 %v4676_v26, 0.0  ;;  %v7071_v22 = vld [vmem:[%s15147_s2 + $0x3f8] sm:$0xff]  ;;  %v4739_v42 = vadd.f32 %v4483_v58, %v4227_v1  ;;  %v16288_v12 = vld [vmem:[#allocation60_spill] sm:$0xff]  ;;  %v16326_v59 = vld [vmem:[#allocation326_spill] sm:$0xff] }
 0x3e1   :  { %3911 = vperm.xlu0 %6512, %v7070_v7   ;;  %v4228_v11 = vadd.f32 %v3762_v47, %v3332_v4  ;;  %v4229_v54 = vadd.f32 %v3762_v47, %v3333_v3  ;;  %v12616_v38 = vpop.permute.xlu0 %3115  ;;  %v4738_v36 = vadd.f32 %v4482_v43, %v4226_v33  ;;  %v12619_v41 = vadd.f32 %v4478_v27, %v12492_v52  ;;  %v16289_v4 = vld [vmem:[#allocation297_spill] sm:$0xff]  ;;  %v16290_v3 = vld [vmem:[#allocation59_spill] sm:$0xff]  ;;  %v4416_v52 = vld [vmem:[%s15148_s1 + $0x170] sm:$0xff] }
 0x3e2   :  { %4111 = vperm.xlu1 %6499, %v7071_v22   ;;  %5863 = vmatprep.subr.bf16.mxu1 %v5581_v39  ;;  %v3264_v60 = vmul.f32 %v16289_v4, %v16288_v12  ;;  %v3265_v26 = vmul.f32 %v16289_v4, %v16290_v3  ;;  %v16291_v39 = vld [vmem:[#allocation286_spill] sm:$0xff]  ;;  %v4417_v1 = vld [vmem:[%s15148_s1 + $0x178] sm:$0xff]  ;;  %v16292_v43 = vmax.f32 %v12141_v62, 0.0  ;;  %v4467_v4 = vld [vmem:[%s15148_s1 + $0x308] sm:$0xff] }
 0x3e3   :  { %v4740_v45 = vadd.f32 %v4484_v29, %v4228_v11  ;;  %v4741_v47 = vadd.f32 %v4485_v15, %v4229_v54  ;;  %5864 = vmatpush2.bf16.msra.mxu1 %v5580_v2  ;;  %v4210_v7 = vadd.f32 %v16291_v39, %v12211_v9  ;;  %v4211_v33 = vadd.f32 %v16291_v39, %v12215_v23  ;;  %v4466_v9 = vld [vmem:[%s15148_s1 + $0x300] sm:$0xff]  ;;  %v7072_v23 = vld [vmem:[%s15147_s2 + $0x2a8] sm:$0xff]  ;;  %v16294_v3 = vld [vmem:[#allocation125_spill] sm:$0xff] }
 0x3e4   :  { %v3592_v58 = vpop.permute.xlu1 %3591  ;;  %v5547_v27 = vpack.c.bf16 %v4933_v55, %v16292_v43  ;;  %v16293_v29 = vmax.f32 %v12139_v28, 0.0  ;;  %v4995_v28 = vmax.f32 %v4739_v42, 0.0  ;;  %v4994_v55 = vmax.f32 %v4738_v36, 0.0  ;;  %v16297_v43 = vld [vmem:[#allocation25_spill] sm:$0xff]  ;;  %v4480_v36 = vld [vmem:[%s15148_s1 + $0x370] sm:$0xff]  ;;  %v16301_v12 = vld [vmem:[#allocation142_spill] sm:$0xff] }
 0x3e5   :  { %3901 = vperm.xlu0 %6512, %v7072_v23   ;;  %v4160_v2 = vadd.f32 %v3592_v58, %v3264_v60  ;;  %v4161_v11 = vadd.f32 %v3592_v58, %v3265_v26  ;;  %v4997_v54 = vmax.f32 %v4741_v47, 0.0  ;;  %v4996_v22 = vmax.f32 %v4740_v45, 0.0  ;;  %v12647_v62 = vpop.permute.xlu0 %3125  ;;  %v16295_v60 = vld [vmem:[#allocation263_spill] sm:$0xff]  ;;  %v16296_v47 = vld [vmem:[#allocation122_spill] sm:$0xff] }
 0x3e6   :  { %v5546_v15 = vpack.c.bf16 %v4932_v32, %v16293_v29  ;;  %6500 = vset.pattern.permute.xlu1 %v16266_v17  ;;  %5672 = vmatprep.subr.bf16.mxu0 %v5547_v27  ;;  %v3328_v26 = vmul.f32 %v16295_v60, %v16294_v3  ;;  %v3329_v45 = vmul.f32 %v16295_v60, %v16296_v47  ;;  %v4481_v27 = vld [vmem:[%s15148_s1 + $0x378] sm:$0xff]  ;;  %v4991_v60 = vmax.f32 %v12608_v31, 0.0  ;;  %v16303_v31 = vld [vmem:[#allocation147_spill] sm:$0xff] }
 0x3e7   :  { %v4672_v39 = vadd.f32 %v4416_v52, %v4160_v2  ;;  %v4673_v58 = vadd.f32 %v4417_v1, %v4161_v11  ;;  %3205 = vperm.xlu1 %6500, %v16297_v43   ;;  %v12659_v42 = vadd.f32 %v4466_v9, %v4210_v7  ;;  %v5579_v23 = vpack.c.bf16 %v4997_v54, %v4995_v28  ;;  %v7073_v52 = vld [vmem:[%s15147_s2 + $0x298] sm:$0xff]  ;;  %v16298_v11 = vld [vmem:[#allocation144_spill] sm:$0xff]  ;;  %v16314_v32 = vld [vmem:[#allocation291_spill] sm:$0xff] }
 0x3e8   :  { %5673 = vmatpush2.bf16.msra.mxu0 %v5546_v15  ;;  %v3752_v29 = vpop.permute.xlu1 %3751  ;;  %v5578_v3 = vpack.c.bf16 %v4996_v22, %v4994_v55  ;;  %v12671_v2 = vadd.f32 %v4467_v4, %v4211_v33  ;;  %v16299_v47 = vld [vmem:[#allocation289_spill] sm:$0xff]  ;;  %v16304_v22 = vld [vmem:[#allocation290_spill] sm:$0xff] }
 0x3e9   :  { %3891 = vperm.xlu0 %6512, %v7073_v52   ;;  %v4224_v7 = vadd.f32 %v3752_v29, %v3328_v26  ;;  %v4225_v1 = vadd.f32 %v3752_v29, %v3329_v45  ;;  %v4929_v15 = vmax.f32 %v4673_v58, 0.0  ;;  %v4928_v9 = vmax.f32 %v4672_v39, 0.0  ;;  %5865 = vmatprep.subr.bf16.mxu1 %v5579_v23  ;;  %v12685_v55 = vpop.permute.xlu0 %3130  ;;  %v16306_v26 = vld [vmem:[#allocation56_spill] sm:$0xff]  ;;  %v16307_v45 = vld [vmem:[#allocation295_spill] sm:$0xff]  ;;  %v16308_v33 = vld [vmem:[#allocation53_spill] sm:$0xff] }
 0x3ea   :  { %v12675_v43 = vmul.f32 %v16299_v47, %v16298_v11  ;;  %v12679_v54 = vmul.f32 %v16299_v47, %v16301_v12  ;;  %v12683_v28 = vmul.f32 %v16304_v22, %v16303_v31  ;;  %v3260_v39 = vmul.f32 %v16307_v45, %v16306_v26  ;;  %v16309_v52 = vld [vmem:[#allocation145_spill] sm:$0xff]  ;;  %5866 = vmatpush2.bf16.msra.mxu1 %v5578_v3  ;;  %v7074_v23 = vld [vmem:[%s15147_s2 + $0x2e0] sm:$0xff]  ;;  %v4412_v11 = vld [vmem:[%s15148_s1 + $0x150] sm:$0xff] }
 0x3eb   :  { %v3261_v4 = vmul.f32 %v16307_v45, %v16308_v33  ;;  %v4736_v58 = vadd.f32 %v4480_v36, %v4224_v7  ;;  %v4737_v29 = vadd.f32 %v4481_v27, %v4225_v1  ;;  %6501 = vset.pattern.permute.xlu1 %v16139_v19  ;;  %v12694_v12 = vmul.f32 %v16304_v22, %v16309_v52  ;;  %v4413_v36 = vld [vmem:[%s15148_s1 + $0x158] sm:$0xff]  ;;  %v7075_v22 = vld [vmem:[%s15147_s2 + $0x288] sm:$0xff] }
 0x3ec   :  { %16300 = vst [vmem:[#allocation61_spill] sm:$0xff] %v12675_v43  ;;  %16302 = vst [vmem:[#allocation251_spill] sm:$0xff] %v12679_v54  ;;  %3936 = vperm.xlu1 %6501, %v7074_v23   ;;  %v3582_v27 = vpop.permute.xlu1 %3581  ;;  %v16311_v7 = vmax.f32 %v12169_v46, 0.0  ;;  %v16312_v47 = vmax.f32 %v12167_v21, 0.0  ;;  %v4990_v31 = vmax.f32 %v12619_v41, 0.0  ;;  %v16313_v23 = vld [vmem:[#allocation152_spill] sm:$0xff] }
 0x3ed   :  { %16305 = vst [vmem:[#allocation58_spill] sm:$0xff] %v12683_v28  ;;  %16310 = vst [vmem:[#allocation64_spill] sm:$0xff] %v12694_v12  ;;  %3881 = vperm.xlu0 %6512, %v7075_v22   ;;  %v4156_v26 = vadd.f32 %v3582_v27, %v3260_v39  ;;  %v4157_v45 = vadd.f32 %v3582_v27, %v3261_v4  ;;  %v4993_v33 = vmax.f32 %v4737_v29, 0.0  ;;  %v4992_v52 = vmax.f32 %v4736_v58, 0.0  ;;  %v16316_v46 = vld [vmem:[#allocation150_spill] sm:$0xff]  ;;  %v16318_v21 = vld [vmem:[#allocation48_spill] sm:$0xff]  ;;  %v12729_v39 = vpop.permute.xlu0 %3210 }
 0x3ee   :  { %v5545_v1 = vpack.c.bf16 %v4929_v15, %v16311_v7  ;;  %v5544_v3 = vpack.c.bf16 %v4928_v9, %v16312_v47  ;;  %v12715_v40 = vmul.f32 %v16314_v32, %v16313_v23  ;;  %v12719_v15 = vmul.f32 %v16314_v32, %v16316_v46  ;;  %v16319_v9 = vld [vmem:[#allocation292_spill] sm:$0xff]  ;;  %v16320_v7 = vld [vmem:[#allocation47_spill] sm:$0xff]  ;;  %16321 = vst [vmem:[#allocation69_spill] sm:$0xff] %v12729_v39  ;;  %v16323_v58 = vld [vmem:[#allocation21_spill] sm:$0xff] }
 0x3ef   :  { %v12723_v41 = vmul.f32 %v16319_v9, %v16318_v21  ;;  %v12727_v47 = vmul.f32 %v16319_v9, %v16320_v7  ;;  %v16322_v4 = vld [vmem:[#allocation15_spill] sm:$0xff]  ;;  %v4668_v23 = vadd.f32 %v4412_v11, %v4156_v26  ;;  %v4669_v32 = vadd.f32 %v4413_v36, %v4157_v45  ;;  %v16325_v46 = vld [vmem:[#allocation157_spill] sm:$0xff]  ;;  %v4476_v7 = vld [vmem:[%s15148_s1 + $0x350] sm:$0xff] }
 0x3f0   :  { %16315 = vst [vmem:[#allocation257_spill] sm:$0xff] %v12715_v40  ;;  %16317 = vst [vmem:[#allocation62_spill] sm:$0xff] %v12719_v15  ;;  %5674 = vmatprep.subr.bf16.mxu0 %v5545_v1  ;;  %v3324_v29 = vmul.f32 %v16323_v58, %v16322_v4  ;;  %v16324_v27 = vld [vmem:[#allocation119_spill] sm:$0xff]  ;;  %v12737_v21 = vmul.f32 %v16326_v59, %v16325_v46  ;;  %v12741_v9 = vmul.f32 %v16326_v59, %v16328_v35  ;;  %v7076_v1 = vld [vmem:[%s15147_s2 + $0x3e0] sm:$0xff]  ;;  %v3742_v36 = vpop.permute.xlu1 %3741 }
 0x3f1   :  { %v3325_v22 = vmul.f32 %v16323_v58, %v16324_v27  ;;  %5675 = vmatpush2.bf16.msra.mxu0 %v5544_v3  ;;  %4096 = vperm.xlu1 %6501, %v7076_v1   ;;  %v4477_v11 = vld [vmem:[%s15148_s1 + $0x358] sm:$0xff]  ;;  %v5577_v3 = vpack.c.bf16 %v4993_v33, %v4991_v60  ;;  %v5576_v26 = vpack.c.bf16 %v4992_v52, %v4990_v31  ;;  %v4925_v35 = vmax.f32 %v4669_v32, 0.0  ;;  %v16330_v58 = vld [vmem:[#allocation54_spill] sm:$0xff]  ;;  %v16334_v39 = vld [vmem:[#allocation327_spill] sm:$0xff]  ;;  %v12764_v60 = vpop.permute.xlu0 %3200 }
 0x3f2   :  { %16327 = vst [vmem:[#allocation260_spill] sm:$0xff] %v12737_v21  ;;  %16329 = vst [vmem:[#allocation67_spill] sm:$0xff] %v12741_v9  ;;  %v4220_v45 = vadd.f32 %v3742_v36, %v3324_v29  ;;  %v4924_v59 = vmax.f32 %v4668_v23, 0.0  ;;  %v16331_v27 = vld [vmem:[#allocation293_spill] sm:$0xff]  ;;  %v12758_v14 = vmul.f32 %v16334_v39, %v16333_v25  ;;  %v16336_v54 = vld [vmem:[#allocation155_spill] sm:$0xff] }
 0x3f3   :  { %v4221_v4 = vadd.f32 %v3742_v36, %v3325_v22  ;;  %v3256_v46 = vmul.f32 %v16331_v27, %v16330_v58  ;;  %v3257_v1 = vmul.f32 %v16331_v27, %v16332_v49  ;;  %v12762_v43 = vmul.f32 %v16334_v39, %v16336_v54  ;;  %5867 = vmatprep.subr.bf16.mxu1 %v5577_v3  ;;  %v16339_v31 = vld [vmem:[#allocation166_spill] sm:$0xff]  ;;  %v16340_v33 = vld [vmem:[#allocation328_spill] sm:$0xff]  ;;  %v16341_v29 = vld [vmem:[#allocation163_spill] sm:$0xff] }
 0x3f4   :  { %16335 = vst [vmem:[#allocation300_spill] sm:$0xff] %v12758_v14  ;;  %16338 = vst [vmem:[#allocation311_spill] sm:$0xff] %v12764_v60  ;;  %v12768_v52 = vmul.f32 %v16340_v33, %v16339_v31  ;;  %v12772_v22 = vmul.f32 %v16340_v33, %v16341_v29  ;;  %v4732_v49 = vadd.f32 %v4476_v7, %v4220_v45  ;;  %5868 = vmatpush2.bf16.msra.mxu1 %v5576_v26  ;;  %v16342_v25 = vld [vmem:[#allocation170_spill] sm:$0xff]  ;;  %v16343_v32 = vld [vmem:[#allocation329_spill] sm:$0xff] }
 0x3f5   :  { %16337 = vst [vmem:[#allocation85_spill] sm:$0xff] %v12762_v43  ;;  %v4733_v23 = vadd.f32 %v4477_v11, %v4221_v4  ;;  %v12776_v36 = vmul.f32 %v16343_v32, %v16342_v25  ;;  %v16344_v54 = vld [vmem:[#allocation168_spill] sm:$0xff]  ;;  %v7077_v3 = vld [vmem:[%s15147_s2 + $0x3e8] sm:$0xff]  ;;  %v4409_v7 = vld [vmem:[%s15148_s1 + $0x138] sm:$0xff]  ;;  %v3572_v11 = vpop.permute.xlu1 %3571  ;;  %v16345_v26 = vmax.f32 %v12207_v61, 0.0  ;;  %v16346_v4 = vmax.f32 %v12205_v44, 0.0 }
 0x3f6   :  { %v12780_v39 = vmul.f32 %v16343_v32, %v16344_v54  ;;  %4101 = vperm.xlu1 %6501, %v7077_v3   ;;  %v4408_v58 = vld [vmem:[%s15148_s1 + $0x130] sm:$0xff]  ;;  %v4152_v31 = vadd.f32 %v3572_v11, %v3256_v46  ;;  %v4153_v33 = vadd.f32 %v3572_v11, %v3257_v1  ;;  %v4988_v25 = vmax.f32 %v4732_v49, 0.0  ;;  %v16347_v32 = vld [vmem:[#allocation174_spill] sm:$0xff]  ;;  %v16357_v46 = vld [vmem:[#allocation19_spill] sm:$0xff] }
 0x3f7   :  { %v5543_v45 = vpack.c.bf16 %v4925_v35, %v16345_v26  ;;  %v5542_v27 = vpack.c.bf16 %v4924_v59, %v16346_v4  ;;  %v4989_v29 = vmax.f32 %v4733_v23, 0.0  ;;  %v16348_v54 = vld [vmem:[#allocation330_spill] sm:$0xff]  ;;  %v16349_v60 = vld [vmem:[#allocation172_spill] sm:$0xff]  ;;  %v12811_v35 = vpop.permute.xlu0 %3190  ;;  %v16358_v49 = vld [vmem:[#allocation113_spill] sm:$0xff] }
 0x3f8   :  { %v12797_v3 = vmul.f32 %v16348_v54, %v16347_v32  ;;  %v12801_v12 = vmul.f32 %v16348_v54, %v16349_v60  ;;  %v16350_v28 = vld [vmem:[#allocation212_spill] sm:$0xff]  ;;  %v16351_v15 = vld [vmem:[#allocation338_spill] sm:$0xff]  ;;  %16355 = vst [vmem:[#allocation318_spill] sm:$0xff] %v12811_v35  ;;  %v3321_v23 = vmul.f32 %v16357_v46, %v16358_v49  ;;  %v4664_v11 = vadd.f32 %v4408_v58, %v4152_v31  ;;  %v16359_v26 = vld [vmem:[#allocation215_spill] sm:$0xff] }
 0x3f9   :  { %v12805_v40 = vmul.f32 %v16351_v15, %v16350_v28  ;;  %v16353_v61 = vld [vmem:[#allocation210_spill] sm:$0xff]  ;;  %5676 = vmatprep.subr.bf16.mxu0 %v5543_v45  ;;  %v4665_v60 = vadd.f32 %v4409_v7, %v4153_v33  ;;  %v16360_v4 = vld [vmem:[#allocation339_spill] sm:$0xff]  ;;  %v4472_v45 = vld [vmem:[%s15148_s1 + $0x330] sm:$0xff]  ;;  %v3732_v7 = vpop.permute.xlu1 %3731  ;;  %v16365_v33 = vmax.f32 %v12441_v30, 0.0 }
 0x3fa   :  { %v12809_v44 = vmul.f32 %v16351_v15, %v16353_v61  ;;  %v16356_v59 = vld [vmem:[#allocation10_spill] sm:$0xff]  ;;  %5677 = vmatpush2.bf16.msra.mxu0 %v5542_v27  ;;  %v12819_v28 = vmul.f32 %v16360_v4, %v16359_v26  ;;  %v16362_v32 = vld [vmem:[#allocation211_spill] sm:$0xff]  ;;  %6502 = vset.pattern.permute.xlu1 %v16266_v17  ;;  %v4473_v58 = vld [vmem:[%s15148_s1 + $0x338] sm:$0xff]  ;;  %v16364_v27 = vmax.f32 %v12438_v53, 0.0  ;;  %v4920_v26 = vmax.f32 %v4664_v11, 0.0 }
 0x3fb   :  { %16352 = vst [vmem:[#allocation82_spill] sm:$0xff] %v12805_v40  ;;  %v3320_v1 = vmul.f32 %v16357_v46, %v16356_v59  ;;  %v12823_v15 = vmul.f32 %v16360_v4, %v16362_v32  ;;  %v5574_v54 = vpack.c.bf16 %v4988_v25, %v16365_v33  ;;  %v16366_v61 = vld [vmem:[#allocation34_spill] sm:$0xff]  ;;  %v4217_v46 = vadd.f32 %v3732_v7, %v3321_v23  ;;  %v16367_v4 = vld [vmem:[#allocation217_spill] sm:$0xff]  ;;  %v16373_v53 = vld [vmem:[#allocation20_spill] sm:$0xff]  ;;  %v12849_v25 = vpop.permute.xlu0 %3180 }
 0x3fc   :  { %16354 = vst [vmem:[#allocation109_spill] sm:$0xff] %v12809_v44  ;;  %16361 = vst [vmem:[#allocation106_spill] sm:$0xff] %v12819_v28  ;;  %v5575_v31 = vpack.c.bf16 %v4989_v29, %v16364_v27  ;;  %3195 = vperm.xlu1 %6502, %v16366_v61   ;;  %v4921_v49 = vmax.f32 %v4665_v60, 0.0  ;;  %v16368_v32 = vld [vmem:[#allocation37_spill] sm:$0xff]  ;;  %v16370_v44 = vld [vmem:[#allocation7_spill] sm:$0xff] }
 0x3fd   :  { %16363 = vst [vmem:[#allocation5_spill] sm:$0xff] %v12823_v15  ;;  %v4216_v59 = vadd.f32 %v3732_v7, %v3320_v1  ;;  %v12839_v35 = vmul.f32 %v16368_v32, %v16367_v4  ;;  %v12843_v40 = vmul.f32 %v16368_v32, %v16370_v44  ;;  %v16372_v15 = vld [vmem:[#allocation115_spill] sm:$0xff]  ;;  %16375 = vst [vmem:[#allocation275_spill] sm:$0xff] %v12849_v25  ;;  %v16376_v1 = vld [vmem:[#allocation221_spill] sm:$0xff] }
 0x3fe   :  { %v3316_v29 = vmul.f32 %v16373_v53, %v16372_v15  ;;  %v16374_v27 = vld [vmem:[#allocation111_spill] sm:$0xff]  ;;  %5869 = vmatprep.subr.bf16.mxu1 %v5575_v31  ;;  %v16377_v23 = vld [vmem:[#allocation40_spill] sm:$0xff]  ;;  %v4729_v44 = vadd.f32 %v4473_v58, %v4217_v46  ;;  %v16381_v61 = vld [vmem:[#allocation225_spill] sm:$0xff] }
 0x3ff   :  { %16369 = vst [vmem:[#allocation108_spill] sm:$0xff] %v12839_v35  ;;  %16371 = vst [vmem:[#allocation296_spill] sm:$0xff] %v12843_v40  ;;  %v3317_v30 = vmul.f32 %v16373_v53, %v16374_v27  ;;  %v12853_v11 = vmul.f32 %v16377_v23, %v16376_v1  ;;  %v16379_v60 = vld [vmem:[#allocation219_spill] sm:$0xff]  ;;  %v4728_v33 = vadd.f32 %v4472_v45, %v4216_v59  ;;  %5870 = vmatpush2.bf16.msra.mxu1 %v5574_v54  ;;  %v16382_v4 = vld [vmem:[#allocation24_spill] sm:$0xff]  ;;  %v3562_v1 = vpop.permute.xlu1 %3561 }
 0x400   :  { %v12857_v7 = vmul.f32 %v16377_v23, %v16379_v60  ;;  %v12861_v15 = vmul.f32 %v16382_v4, %v16381_v61  ;;  %v16384_v32 = vld [vmem:[#allocation223_spill] sm:$0xff]  ;;  %v4404_v53 = vld [vmem:[%s15148_s1 + $0x110] sm:$0xff]  ;;  %v4405_v27 = vld [vmem:[%s15148_s1 + $0x118] sm:$0xff]  ;;  %v16386_v45 = vmax.f32 %v12279_v18, 0.0  ;;  %v16387_v54 = vmax.f32 %v12277_v50, 0.0  ;;  %6503 = vset.pattern.permute.xlu1 %v16139_v19 }
 0x401   :  { %16378 = vst [vmem:[#allocation105_spill] sm:$0xff] %v12853_v11  ;;  %v12865_v31 = vmul.f32 %v16382_v4, %v16384_v32  ;;  %v4148_v46 = vadd.f32 %v3562_v1, %v12723_v41  ;;  %v4149_v23 = vadd.f32 %v3562_v1, %v12727_v47  ;;  %v4985_v60 = vmax.f32 %v4729_v44, 0.0  ;;  %v16388_v4 = vld [vmem:[#allocation229_spill] sm:$0xff]  ;;  %v16390_v28 = vld [vmem:[#allocation227_spill] sm:$0xff]  ;;  %v16391_v18 = vld [vmem:[#allocation232_spill] sm:$0xff]  ;;  %v12895_v47 = vpop.permute.xlu0 %3170 }
 0x402   :  { %16380 = vst [vmem:[#allocation317_spill] sm:$0xff] %v12857_v7  ;;  %16383 = vst [vmem:[#allocation104_spill] sm:$0xff] %v12861_v15  ;;  %v5541_v58 = vpack.c.bf16 %v4921_v49, %v16386_v45  ;;  %v5540_v59 = vpack.c.bf16 %v4920_v26, %v16387_v54  ;;  %v4984_v61 = vmax.f32 %v4728_v33, 0.0  ;;  %v16389_v32 = vld [vmem:[#allocation45_spill] sm:$0xff]  ;;  %v7078_v41 = vld [vmem:[%s15147_s2 + $0x2d0] sm:$0xff]  ;;  %v4979_v26 = vmax.f32 %v12671_v2, 0.0 }
 0x403   :  { %16385 = vst [vmem:[#allocation42_spill] sm:$0xff] %v12865_v31  ;;  %v12882_v25 = vmul.f32 %v16389_v32, %v16388_v4  ;;  %v12886_v40 = vmul.f32 %v16389_v32, %v16390_v28  ;;  %v16392_v49 = vld [vmem:[#allocation213_spill] sm:$0xff]  ;;  %3926 = vperm.xlu1 %6503, %v7078_v41   ;;  %16393 = vst [vmem:[#allocation39_spill] sm:$0xff] %v12895_v47  ;;  %v16394_v33 = vld [vmem:[#allocation231_spill] sm:$0xff]  ;;  %v4660_v54 = vadd.f32 %v4404_v53, %v4148_v46 }
 0x404   :  { %v12890_v50 = vmul.f32 %v16392_v49, %v16391_v18  ;;  %5678 = vmatprep.subr.bf16.mxu0 %v5541_v58  ;;  %v12900_v44 = vmul.f32 %v16392_v49, %v16394_v33  ;;  %v16395_v28 = vld [vmem:[#allocation143_spill] sm:$0xff]  ;;  %v16396_v1 = vld [vmem:[#allocation57_spill] sm:$0xff]  ;;  %v4661_v4 = vadd.f32 %v4405_v27, %v4149_v23  ;;  %v4468_v32 = vld [vmem:[%s15148_s1 + $0x310] sm:$0xff]  ;;  %v3722_v33 = vpop.permute.xlu1 %3721  ;;  %v16402_v53 = vmax.f32 %v12369_v0, 0.0 }
 0x405   :  { %v12904_v45 = vmul.f32 %v16396_v1, %v16395_v28  ;;  %5679 = vmatpush2.bf16.msra.mxu0 %v5540_v59  ;;  %v16398_v58 = vld [vmem:[#allocation141_spill] sm:$0xff]  ;;  %v16403_v59 = vmax.f32 %v12367_v51, 0.0  ;;  %v12927_v23 = vld [vmem:[%s15149_s3] sm:$0xff]  ;;  %v4916_v47 = vmax.f32 %v4660_v54, 0.0  ;;  %v12937_v0 = vld [vmem:[%s15149_s3 + $0x10] sm:$0xff] }
 0x406   :  { %v12911_v18 = vmul.f32 %v16396_v1, %v16398_v58  ;;  %v16400_v2 = vld [vmem:[#allocation149_spill] sm:$0xff]  ;;  %v5573_v27 = vpack.c.bf16 %v4985_v60, %v16402_v53  ;;  %v12932_v28 = vld [vmem:[%s15149_s3 + $0x40] sm:$0xff]  ;;  %v4212_v1 = vadd.f32 %v3722_v33, %v3316_v29  ;;  %v4213_v58 = vadd.f32 %v3722_v33, %v3317_v30  ;;  %v12942_v51 = vld [vmem:[%s15149_s3 + $0x50] sm:$0xff]  ;;  %v12959_v33 = vpop.permute.xlu0 %3160 }
 0x407   :  { %16397 = vst [vmem:[#allocation88_spill] sm:$0xff] %v12904_v45  ;;  %v12915_v41 = vmul.f32 %v11948_v13, %v16400_v2  ;;  %v4469_v49 = vld [vmem:[%s15148_s1 + $0x318] sm:$0xff]  ;;  %v5572_v46 = vpack.c.bf16 %v4984_v61, %v16403_v59  ;;  %v4917_v2 = vmax.f32 %v4661_v4, 0.0  ;;  %v16404_v60 = vld [vmem:[#allocation146_spill] sm:$0xff]  ;;  %v16406_v53 = vld [vmem:[#allocation151_spill] sm:$0xff]  ;;  %v4978_v59 = vmax.f32 %v12659_v42, 0.0 }
 0x408   :  { %16399 = vst [vmem:[#allocation312_spill] sm:$0xff] %v12911_v18  ;;  %v12946_v61 = vmul.f32 %v11948_v13, %v16404_v60  ;;  %v12950_v29 = vmul.f32 %v11973_v16, %v16406_v53  ;;  %v16408_v30 = vld [vmem:[#allocation148_spill] sm:$0xff]  ;;  %5871 = vmatprep.subr.bf16.mxu1 %v5573_v27  ;;  %16410 = vst [vmem:[#allocation100_spill] sm:$0xff] %v12959_v33  ;;  %v4724_v53 = vadd.f32 %v4468_v32, %v4212_v1  ;;  %v4526_v35 = vld [vmem:[%s15148_s1 + $0x4e0] sm:$0xff] }
 0x409   :  { %16401 = vst [vmem:[#allocation199_spill] sm:$0xff] %v12915_v41  ;;  %v12954_v54 = vmul.f32 %v11973_v16, %v16408_v30  ;;  %v7079_v4 = vld [vmem:[%s15147_s2 + $0x3d0] sm:$0xff]  ;;  %v4725_v18 = vadd.f32 %v4469_v49, %v4213_v58  ;;  %5872 = vmatpush2.bf16.msra.mxu1 %v5572_v46  ;;  %v5394_v16 = vpack.c.bf16 %v12932_v28, %v12927_v23  ;;  %v16413_v30 = vld [vmem:[#allocation154_spill] sm:$0xff]  ;;  %v16415_v27 = vmax.f32 %v12599_v10, 0.0  ;;  %v16419_v49 = vld [vmem:[#allocation159_spill] sm:$0xff]  ;;  %v12986_v23 = vpop.permute.xlu1 %3135 }
 0x40a   :  { %16405 = vst [vmem:[#allocation3_spill] sm:$0xff] %v12946_v61  ;;  %16407 = vst [vmem:[#allocation101_spill] sm:$0xff] %v12950_v29  ;;  %4086 = vperm.xlu1 %6503, %v7079_v4   ;;  %v16411_v13 = vld [vmem:[#allocation156_spill] sm:$0xff]  ;;  %v12970_v45 = vmul.f32 %v12005_v48, %v16413_v30  ;;  %v16416_v33 = vmax.f32 %v12556_v24, 0.0  ;;  %v12984_v46 = vmul.f32 %v12037_v56, %v16419_v49  ;;  %v4980_v28 = vmax.f32 %v4724_v53, 0.0  ;;  %v5155_v24 = vld [vmem:[%s15149_s3 + $0x88] sm:$0xff] }
 0x40b   :  { %16409 = vst [vmem:[#allocation86_spill] sm:$0xff] %v12954_v54  ;;  %v12964_v60 = vmul.f32 %v12005_v48, %v16411_v13  ;;  %v5539_v4 = vpack.c.bf16 %v4917_v2, %v16415_v27  ;;  %v16417_v61 = vld [vmem:[#allocation164_spill] sm:$0xff]  ;;  %v4981_v48 = vmax.f32 %v4725_v18, 0.0  ;;  %v5163_v10 = vld [vmem:[%s15149_s3 + $0xc8] sm:$0xff]  ;;  %v16422_v58 = vld [vmem:[#allocation162_spill] sm:$0xff] }
 0x40c   :  { %16414 = vst [vmem:[#allocation98_spill] sm:$0xff] %v12970_v45  ;;  %v5538_v42 = vpack.c.bf16 %v4916_v47, %v16416_v33  ;;  %v12980_v32 = vmul.f32 %v12037_v56, %v16417_v61  ;;  %16420 = vst [vmem:[#allocation35_spill] sm:$0xff] %v12984_v46  ;;  %v16421_v47 = vld [vmem:[#allocation165_spill] sm:$0xff]  ;;  %v13000_v56 = vmul.f32 %v12067_v34, %v16422_v58  ;;  %v13009_v33 = vpop.permute.xlu0 %3150  ;;  %v16425_v53 = vld [vmem:[#allocation167_spill] sm:$0xff] }
 0x40d   :  { %16412 = vst [vmem:[#allocation316_spill] sm:$0xff] %v12964_v60  ;;  %v12996_v1 = vmul.f32 %v12067_v34, %v16421_v47  ;;  %v16423_v2 = vld [vmem:[#allocation169_spill] sm:$0xff]  ;;  %5680 = vmatprep.subr.bf16.mxu0 %v5539_v4  ;;  %16424 = vst [vmem:[#allocation205_spill] sm:$0xff] %v13009_v33  ;;  %v13013_v30 = vmul.f32 %v12101_v20, %v16425_v53  ;;  %v5571_v49 = vpack.c.bf16 %v4981_v48, %v4979_v26  ;;  %v13045_v48 = vld [vmem:[%s15149_s3 + $0xc0] sm:$0xff] }
 0x40e   :  { %16418 = vst [vmem:[#allocation36_spill] sm:$0xff] %v12980_v32  ;;  %v13004_v18 = vmul.f32 %v12101_v20, %v16423_v2  ;;  %v7080_v61 = vld [vmem:[%s15147_s2 + $0x3d8] sm:$0xff]  ;;  %5681 = vmatpush2.bf16.msra.mxu0 %v5538_v42  ;;  %v5570_v47 = vpack.c.bf16 %v4980_v28, %v4978_v59  ;;  %v16427_v2 = vld [vmem:[#allocation171_spill] sm:$0xff]  ;;  %v16428_v20 = vld [vmem:[#allocation8_spill] sm:$0xff]  ;;  %v5403_v59 = vpack.c.bf16 %v5163_v10, %v5155_v24 }
 0x40f   :  { %4091 = vperm.xlu1 %6503, %v7080_v61   ;;  %v16426_v27 = vld [vmem:[#allocation173_spill] sm:$0xff]  ;;  %v13027_v61 = vmul.f32 %v12133_v37, %v16427_v2  ;;  %v13031_v53 = vmul.f32 %v12448_v8, %v16428_v20  ;;  %v13040_v42 = vld [vmem:[%s15149_s3 + $0x80] sm:$0xff]  ;;  %v16432_v28 = vld [vmem:[#allocation11_spill] sm:$0xff]  ;;  %5873 = vmatprep.subr.bf16.mxu1 %v5571_v49  ;;  %v16455_v60 = vpack.c.bf16 %v12942_v51, %v12937_v0 }
 0x410   :  { %v13017_v34 = vmul.f32 %v12133_v37, %v16426_v27  ;;  %v5157_v58 = vld [vmem:[%s15149_s3 + $0x98] sm:$0xff]  ;;  %v16430_v27 = vld [vmem:[#allocation6_spill] sm:$0xff]  ;;  %v13050_v37 = vld [vmem:[%s15149_s3 + $0x90] sm:$0xff]  ;;  %v13059_v24 = vmul.f32 %v12484_v63, %v16432_v28  ;;  %5874 = vmatpush2.bf16.msra.mxu1 %v5570_v47  ;;  %v5402_v9 = vpack.c.bf16 %v13045_v48, %v13040_v42 }
 0x411   :  { %v5165_v4 = vld [vmem:[%s15149_s3 + $0xd8] sm:$0xff]  ;;  %16429 = vst [vmem:[#allocation103_spill] sm:$0xff] %v13031_v53  ;;  %v13035_v26 = vmul.f32 %v12448_v8, %v16430_v27  ;;  %v13055_v8 = vld [vmem:[%s15149_s3 + $0xd0] sm:$0xff]  ;;  %v16434_v10 = vld [vmem:[#allocation214_spill] sm:$0xff]  ;;  %5683 = vmatmul.mubr.bf16.vlgmr.msra.gmra.mxu0 %v5394_v16 }
 0x412   :  { %16433 = vst [vmem:[#allocation97_spill] sm:$0xff] %v13059_v24  ;;  %v13063_v2 = vmul.f32 %v12484_v63, %v16434_v10  ;;  %v16436_v20 = vld [vmem:[#allocation118_spill] sm:$0xff]  ;;  %v16438_v13 = vld [vmem:[#allocation216_spill] sm:$0xff]  ;;  %v13081_v28 = vld [vmem:[%s15149_s3 + $0x148] sm:$0xff]  ;;  %v5405_v24 = vpack.c.bf16 %v5165_v4, %v5157_v58  ;;  %5692 = vmatprep.mubr.bf16.mxu0 %v5403_v59 }
 0x413   :  { %16431 = vst [vmem:[#allocation99_spill] sm:$0xff] %v13035_v26  ;;  %v13067_v27 = vmul.f32 %v12512_v5, %v16436_v20  ;;  %v13071_v33 = vmul.f32 %v12512_v5, %v16438_v13  ;;  %v13076_v26 = vld [vmem:[%s15149_s3 + $0x108] sm:$0xff]  ;;  %v13086_v63 = vld [vmem:[%s15149_s3 + $0x100] sm:$0xff]  ;;  %v13096_v13 = vld [vmem:[%s15149_s3 + $0x118] sm:$0xff]  ;;  %6504 = vset.pattern.permute.xlu1 %v16266_v17  ;;  %5876 = vmatmul.mubr.bf16.vlgmr.msra.gmra.mxu1 %v16455_v60 }
 0x414   :  { %16435 = vst [vmem:[#allocation315_spill] sm:$0xff] %v13063_v2  ;;  %v13091_v5 = vld [vmem:[%s15149_s3 + $0x140] sm:$0xff]  ;;  %v16440_v49 = vld [vmem:[#allocation220_spill] sm:$0xff]  ;;  %v13107_v2 = vpop.permute.xlu0 %3140  ;;  %v13112_v41 = vld [vmem:[%s15149_s3 + $0x158] sm:$0xff]  ;;  %5885 = vmatprep.mubr.bf16.mxu1 %v5405_v24 }
 0x415   :  { %16437 = vst [vmem:[#allocation94_spill] sm:$0xff] %v13067_v27  ;;  %16439 = vst [vmem:[#allocation32_spill] sm:$0xff] %v13071_v33  ;;  %v13100_v10 = vmul.f32 %v12548_v6, %v16440_v49  ;;  %v16442_v20 = vld [vmem:[#allocation218_spill] sm:$0xff]  ;;  %v13117_v49 = vld [vmem:[%s15149_s3 + $0x110] sm:$0xff]  ;;  %v5413_v51 = vpack.c.bf16 %v13112_v41, %v13096_v13 }
 0x416   :  { %v13104_v53 = vmul.f32 %v12548_v6, %v16442_v20  ;;  %16444 = vst [vmem:[#allocation96_spill] sm:$0xff] %v13107_v2  ;;  %v13122_v6 = vld [vmem:[%s15149_s3 + $0x150] sm:$0xff]  ;;  %v16447_v47 = vld [vmem:[#allocation222_spill] sm:$0xff]  ;;  %v16450_v27 = vld [vmem:[#allocation9_spill] sm:$0xff] }
 0x417   :  { %16441 = vst [vmem:[#allocation28_spill] sm:$0xff] %v13100_v10  ;;  %v16445_v20 = vld [vmem:[#allocation224_spill] sm:$0xff]  ;;  %v13130_v58 = vmul.f32 %v12583_v57, %v16447_v47  ;;  %3185 = vperm.xlu1 %6504, %v16450_v27   ;;  %v4527_v54 = vld [vmem:[%s15148_s1 + $0x4e8] sm:$0xff]  ;;  %v13156_v27 = vld [vmem:[%s15149_s3 + $0x198] sm:$0xff] }
 0x418   :  { %16443 = vst [vmem:[#allocation207_spill] sm:$0xff] %v13104_v53  ;;  %v13126_v2 = vmul.f32 %v12583_v57, %v16445_v20  ;;  %v16449_v4 = vld [vmem:[#allocation228_spill] sm:$0xff]  ;;  %v3867_v20 = vpop.permute.xlu1 %3866  ;;  %v13146_v57 = vld [vmem:[%s15149_s3 + $0x188] sm:$0xff]  ;;  %v16452_v16 = vld [vmem:[#allocation130_spill] sm:$0xff]  ;;  %v3872_v15 = vpop.permute.xlu0 %3871 }
 0x419   :  { %16448 = vst [vmem:[#allocation93_spill] sm:$0xff] %v13130_v58  ;;  %v13134_v33 = vmul.f32 %v12616_v38, %v16449_v4  ;;  %v13151_v47 = vld [vmem:[%s15149_s3 + $0x1c8] sm:$0xff]  ;;  %v16451_v4 = vld [vmem:[#allocation226_spill] sm:$0xff]  ;;  %v13164_v53 = vmul.f32 %v12647_v62, %v16452_v16  ;;  %v4270_v10 = vadd.f32 %v3867_v20, %v12797_v3  ;;  %v4271_v7 = vadd.f32 %v3867_v20, %v12801_v12  ;;  %v16454_v12 = vld [vmem:[#allocation237_spill] sm:$0xff] }
 0x41a   :  { %16446 = vst [vmem:[#allocation95_spill] sm:$0xff] %v13126_v2  ;;  %v13160_v29 = vmul.f32 %v12616_v38, %v16451_v4  ;;  %v13171_v11 = vld [vmem:[%s15149_s3 + $0x180] sm:$0xff]  ;;  %v13181_v38 = vld [vmem:[%s15149_s3 + $0x1d8] sm:$0xff]  ;;  %v3438_v59 = vmul.f32 %v12685_v55, %v16454_v12  ;;  %v4591_v16 = vld [vmem:[%s15148_s1 + $0x6e8] sm:$0xff]  ;;  %v5411_v58 = vpack.c.bf16 %v13081_v28, %v13076_v26  ;;  %5693 = vmatmul.mubr.bf16.gmra.mxu0 %v5402_v9 }
 0x41b   :  { %v13176_v45 = vld [vmem:[%s15149_s3 + $0x1c0] sm:$0xff]  ;;  %v13218_v60 = vld [vmem:[%s15149_s3 + $0x1d0] sm:$0xff]  ;;  %v13223_v42 = vld [vmem:[%s15149_s3 + $0x208] sm:$0xff]  ;;  %6505 = vset.pattern.permute.xlu1 %v16139_v19  ;;  %v4783_v0 = vadd.f32 %v4527_v54, %v4271_v7  ;;  %v4273_v7 = vadd.f32 %v3872_v15, %v13027_v61 }
 0x41c   :  { %v16453_v4 = vld [vmem:[#allocation230_spill] sm:$0xff]  ;;  %v4027_v26 = vpop.permute.xlu1 %4026  ;;  %v4528_v41 = vld [vmem:[%s15148_s1 + $0x4f0] sm:$0xff]  ;;  %v4529_v48 = vld [vmem:[%s15148_s1 + $0x4f8] sm:$0xff]  ;;  %5702 = vmatprep.mubr.bf16.mxu0 %v5411_v58 }
 0x41d   :  { %v13185_v3 = vmul.f32 %v12647_v62, %v16453_v4  ;;  %v4590_v20 = vld [vmem:[%s15148_s1 + $0x6e0] sm:$0xff]  ;;  %v5404_v62 = vpack.c.bf16 %v13055_v8, %v13050_v37  ;;  %v13205_v4 = vld [vmem:[%s15149_s3 + $0x190] sm:$0xff]  ;;  %v13248_v13 = vld [vmem:[%s15149_s3 + $0x218] sm:$0xff]  ;;  %v4334_v2 = vadd.f32 %v4027_v26, %v3438_v59  ;;  %v4785_v14 = vadd.f32 %v4529_v48, %v4273_v7 }
 0x41e   :  { %v16456_v12 = vld [vmem:[#allocation234_spill] sm:$0xff]  ;;  %v5420_v54 = vpack.c.bf16 %v13218_v60, %v13205_v4  ;;  %v16457_v59 = vld [vmem:[#allocation236_spill] sm:$0xff]  ;;  %v4523_v48 = vld [vmem:[%s15148_s1 + $0x4c8] sm:$0xff] }
 0x41f   :  { %v3439_v21 = vmul.f32 %v12685_v55, %v16456_v12  ;;  %v13228_v55 = vld [vmem:[%s15149_s3 + $0x248] sm:$0xff]  ;;  %v4782_v12 = vadd.f32 %v4526_v35, %v4270_v10  ;;  %v7081_v8 = vld [vmem:[%s15147_s2 + $0x2c0] sm:$0xff]  ;;  %v4272_v35 = vadd.f32 %v3872_v15, %v13017_v34  ;;  %v4846_v46 = vadd.f32 %v4590_v20, %v4334_v2  ;;  %v4592_v15 = vld [vmem:[%s15148_s1 + $0x6f0] sm:$0xff]  ;;  %5886 = vmatmul.mubr.bf16.gmra.mxu1 %v5404_v62 }
 0x420   :  { %3916 = vperm.xlu1 %6505, %v7081_v8   ;;  %v13256_v24 = vld [vmem:[%s15149_s3 + $0x200] sm:$0xff]  ;;  %v5427_v10 = vpack.c.bf16 %v13228_v55, %v13223_v42  ;;  %v16458_v8 = vld [vmem:[#allocation233_spill] sm:$0xff]  ;;  %v4032_v61 = vpop.permute.xlu1 %4031  ;;  %5895 = vmatprep.mubr.bf16.mxu1 %v5413_v51  ;;  %v4524_v58 = vld [vmem:[%s15148_s1 + $0x4d0] sm:$0xff] }
 0x421   :  { %v4335_v31 = vadd.f32 %v4027_v26, %v3439_v21  ;;  %v13261_v28 = vld [vmem:[%s15149_s3 + $0x240] sm:$0xff]  ;;  %v13266_v21 = vld [vmem:[%s15149_s3 + $0x258] sm:$0xff]  ;;  %v3440_v26 = vmul.f32 %v12986_v23, %v16457_v59  ;;  %v3441_v37 = vmul.f32 %v12986_v23, %v16458_v8  ;;  %v4784_v43 = vadd.f32 %v4528_v41, %v4272_v35  ;;  %v3857_v35 = vpop.permute.xlu0 %3856  ;;  %v7085_v55 = vld [vmem:[%s15147_s2 + $0x3b0] sm:$0xff] }
 0x422   :  { %v4593_v34 = vld [vmem:[%s15148_s1 + $0x6f8] sm:$0xff]  ;;  %v5038_v2 = vmax.f32 %v4782_v12, 0.0  ;;  %v4522_v41 = vld [vmem:[%s15148_s1 + $0x4c0] sm:$0xff]  ;;  %v5041_v12 = vmax.f32 %v4785_v14, 0.0  ;;  %v5102_v8 = vmax.f32 %v4846_v46, 0.0  ;;  %v13312_v14 = vld [vmem:[%s15149_s3 + $0x288] sm:$0xff]  ;;  %v16469_v4 = vpack.c.bf16 %v13266_v21, %v13248_v13 }
 0x423   :  { %v4847_v32 = vadd.f32 %v4591_v16, %v4335_v31  ;;  %v5039_v31 = vmax.f32 %v4783_v0, 0.0  ;;  %v4336_v20 = vadd.f32 %v4032_v61, %v3440_v26  ;;  %v4337_v16 = vadd.f32 %v4032_v61, %v3441_v37  ;;  %v7082_v9 = vld [vmem:[%s15147_s2 + $0x3c0] sm:$0xff]  ;;  %v13302_v26 = vld [vmem:[%s15149_s3 + $0x210] sm:$0xff]  ;;  %v4525_v62 = vld [vmem:[%s15148_s1 + $0x4d8] sm:$0xff] }
 0x424   :  { %4076 = vperm.xlu1 %6505, %v7082_v9   ;;  %v5040_v7 = vmax.f32 %v4784_v43, 0.0  ;;  %v4266_v0 = vadd.f32 %v3857_v35, %v12776_v36  ;;  %v4267_v37 = vadd.f32 %v3857_v35, %v12780_v39  ;;  %v13307_v43 = vld [vmem:[%s15149_s3 + $0x250] sm:$0xff]  ;;  %v13317_v36 = vld [vmem:[%s15149_s3 + $0x2c8] sm:$0xff]  ;;  %v3862_v51 = vpop.permute.xlu1 %3861  ;;  %v7086_v21 = vld [vmem:[%s15147_s2 + $0x3b8] sm:$0xff] }
 0x425   :  { %v5103_v61 = vmax.f32 %v4847_v32, 0.0  ;;  %v4848_v59 = vadd.f32 %v4592_v15, %v4336_v20  ;;  %v4849_v23 = vadd.f32 %v4593_v34, %v4337_v16  ;;  %v5601_v15 = vpack.c.bf16 %v5041_v12, %v5039_v31  ;;  %v7083_v9 = vld [vmem:[%s15147_s2 + $0x3c8] sm:$0xff]  ;;  %v16470_v60 = vld [vmem:[#allocation104_spill] sm:$0xff] }
 0x426   :  { %v5600_v39 = vpack.c.bf16 %v5040_v7, %v5038_v2  ;;  %v4778_v32 = vadd.f32 %v4522_v41, %v4266_v0  ;;  %v4779_v46 = vadd.f32 %v4523_v48, %v4267_v37  ;;  %v4268_v16 = vadd.f32 %v3862_v51, %v13004_v18  ;;  %v4586_v2 = vld [vmem:[%s15148_s1 + $0x6c0] sm:$0xff]  ;;  %v4587_v41 = vld [vmem:[%s15148_s1 + $0x6c8] sm:$0xff]  ;;  %v4017_v48 = vpop.permute.xlu0 %4016 }
 0x427   :  { %v5104_v34 = vmax.f32 %v4848_v59, 0.0  ;;  %v5105_v20 = vmax.f32 %v4849_v23, 0.0  ;;  %v4269_v35 = vadd.f32 %v3862_v51, %v13013_v30  ;;  %v4330_v59 = vadd.f32 %v4017_v48, %v12890_v50  ;;  %6036 = vmatprep.subr.bf16.mxu0 %v5601_v15  ;;  %v13345_v37 = vld [vmem:[%s15149_s3 + $0x280] sm:$0xff] }
 0x428   :  { %4081 = vperm.xlu1 %6505, %v7083_v9   ;;  %v4331_v18 = vadd.f32 %v4017_v48, %v12900_v44  ;;  %v5428_v30 = vpack.c.bf16 %v13307_v43, %v13302_v26  ;;  %v5435_v23 = vpack.c.bf16 %v13317_v36, %v13312_v14  ;;  %v4780_v7 = vadd.f32 %v4524_v58, %v4268_v16  ;;  %v13350_v50 = vld [vmem:[%s15149_s3 + $0x2c0] sm:$0xff]  ;;  %v4519_v16 = vld [vmem:[%s15148_s1 + $0x4a8] sm:$0xff]  ;;  %v16480_v26 = vld [vmem:[#allocation105_spill] sm:$0xff] }
 0x429   :  { %v5632_v31 = vpack.c.bf16 %v5104_v34, %v5102_v8  ;;  %v4781_v12 = vadd.f32 %v4525_v62, %v4269_v35  ;;  %6037 = vmatpush1.bf16.msra.mxu0 %v5600_v39  ;;  %v5633_v0 = vpack.c.bf16 %v5105_v20, %v5103_v61  ;;  %v5034_v44 = vmax.f32 %v4778_v32, 0.0  ;;  %v4588_v8 = vld [vmem:[%s15148_s1 + $0x6d0] sm:$0xff]  ;;  %v4589_v61 = vld [vmem:[%s15148_s1 + $0x6d8] sm:$0xff]  ;;  %v4022_v39 = vpop.permute.xlu1 %4021  ;;  %v4518_v20 = vld [vmem:[%s15148_s1 + $0x4a0] sm:$0xff] }
 0x42a   :  { %v5035_v51 = vmax.f32 %v4779_v46, 0.0  ;;  %v4842_v15 = vadd.f32 %v4586_v2, %v4330_v59  ;;  %v4843_v48 = vadd.f32 %v4587_v41, %v4331_v18  ;;  %v16459_v58 = vpack.c.bf16 %v13091_v5, %v13086_v63  ;;  %v3847_v35 = vpop.permute.xlu0 %3846  ;;  %v16460_v2 = vld [vmem:[#allocation33_spill] sm:$0xff] }
 0x42b   :  { %v5036_v62 = vmax.f32 %v4780_v7, 0.0  ;;  %v5037_v34 = vmax.f32 %v4781_v12, 0.0  ;;  %v4332_v32 = vadd.f32 %v4022_v39, %v13164_v53  ;;  %v4333_v46 = vadd.f32 %v4022_v39, %v13185_v3  ;;  %6229 = vmatprep.subr.bf16.mxu1 %v5633_v0 }
 0x42c   :  { %5703 = vmatmul.mubr.bf16.gmra.mxu0 %v16459_v58  ;;  %6506 = vset.pattern.permute.xlu1 %v16266_v17  ;;  %v4262_v63 = vadd.f32 %v3847_v35, %v12768_v52  ;;  %v4263_v5 = vadd.f32 %v3847_v35, %v12772_v22  ;;  %v5434_v53 = vpack.c.bf16 %v13350_v50, %v13345_v37  ;;  %v13381_v52 = vld [vmem:[%s15149_s3 + $0x298] sm:$0xff]  ;;  %v5099_v7 = vmax.f32 %v4843_v48, 0.0  ;;  %v4582_v58 = vld [vmem:[%s15148_s1 + $0x6a0] sm:$0xff] }
 0x42d   :  { %3175 = vperm.xlu1 %6506, %v16460_v2   ;;  %6230 = vmatpush1.bf16.msra.mxu1 %v5632_v31  ;;  %v5598_v3 = vpack.c.bf16 %v5036_v62, %v5034_v44  ;;  %v4844_v41 = vadd.f32 %v4588_v8, %v4332_v32  ;;  %v4845_v9 = vadd.f32 %v4589_v61, %v4333_v46  ;;  %v13386_v22 = vld [vmem:[%s15149_s3 + $0x2d8] sm:$0xff]  ;;  %v5098_v31 = vmax.f32 %v4842_v15, 0.0  ;;  %v4520_v44 = vld [vmem:[%s15148_s1 + $0x4b0] sm:$0xff]  ;;  %v4583_v62 = vld [vmem:[%s15148_s1 + $0x6a8] sm:$0xff] }
 0x42e   :  { %v5599_v59 = vpack.c.bf16 %v5037_v34, %v5035_v51  ;;  %v16461_v18 = vpack.c.bf16 %v13122_v6, %v13117_v49  ;;  %v4774_v12 = vadd.f32 %v4518_v20, %v4262_v63  ;;  %v4775_v0 = vadd.f32 %v4519_v16, %v4263_v5  ;;  %v4521_v49 = vld [vmem:[%s15148_s1 + $0x4b8] sm:$0xff]  ;;  %v3852_v6 = vpop.permute.xlu1 %3851  ;;  %v13424_v46 = vld [vmem:[%s15149_s3 + $0x2d0] sm:$0xff]  ;;  %v13429_v20 = vld [vmem:[%s15149_s3 + $0x308] sm:$0xff] }
 0x42f   :  { %v16462_v51 = vpack.c.bf16 %v13151_v47, %v13146_v57  ;;  %v16463_v8 = vpack.c.bf16 %v13181_v38, %v13156_v27  ;;  %v5100_v15 = vmax.f32 %v4844_v41, 0.0  ;;  %v5101_v48 = vmax.f32 %v4845_v9, 0.0  ;;  %v4007_v57 = vpop.permute.xlu0 %4006  ;;  %v13434_v16 = vld [vmem:[%s15149_s3 + $0x348] sm:$0xff]  ;;  %v4585_v41 = vld [vmem:[%s15148_s1 + $0x6b8] sm:$0xff]  ;;  %v7087_v37 = vld [vmem:[%s15147_s2 + $0x2a0] sm:$0xff] }
 0x430   :  { %5896 = vmatmul.mubr.bf16.gmra.mxu1 %v16461_v18  ;;  %v4264_v61 = vadd.f32 %v3852_v6, %v12996_v1  ;;  %v4265_v39 = vadd.f32 %v3852_v6, %v13000_v56  ;;  %6038 = vmatprep.subr.bf16.mxu0 %v5599_v59  ;;  %v4326_v47 = vadd.f32 %v4007_v57, %v12882_v25  ;;  %v13416_v56 = vld [vmem:[%s15149_s3 + $0x290] sm:$0xff]  ;;  %v5030_v35 = vmax.f32 %v4774_v12, 0.0  ;;  %v16466_v6 = vld [vmem:[#allocation85_spill] sm:$0xff] }
 0x431   :  { %5712 = vmatprep.mubr.bf16.mxu0 %v16462_v51  ;;  %5905 = vmatprep.mubr.bf16.mxu1 %v16463_v8  ;;  %v4327_v27 = vadd.f32 %v4007_v57, %v12886_v40  ;;  %v5437_v1 = vpack.c.bf16 %v13386_v22, %v13381_v52  ;;  %v5630_v38 = vpack.c.bf16 %v5100_v15, %v5098_v31  ;;  %v7084_v25 = vld [vmem:[%s15147_s2 + $0x2b0] sm:$0xff]  ;;  %v5031_v63 = vmax.f32 %v4775_v0, 0.0  ;;  %v4514_v0 = vld [vmem:[%s15148_s1 + $0x480] sm:$0xff]  ;;  %v13465_v8 = vld [vmem:[%s15149_s3 + $0x318] sm:$0xff] }
 0x432   :  { %6507 = vset.pattern.permute.xlu1 %v16139_v19  ;;  %6039 = vmatpush1.bf16.msra.mxu0 %v5598_v3  ;;  %v4776_v34 = vadd.f32 %v4520_v44, %v4264_v61  ;;  %v4777_v32 = vadd.f32 %v4521_v49, %v4265_v39  ;;  %v5631_v40 = vpack.c.bf16 %v5101_v48, %v5099_v7  ;;  %v4584_v3 = vld [vmem:[%s15148_s1 + $0x6b0] sm:$0xff]  ;;  %v4012_v9 = vpop.permute.xlu1 %4011  ;;  %v4515_v44 = vld [vmem:[%s15148_s1 + $0x488] sm:$0xff]  ;;  %v13473_v61 = vld [vmem:[%s15149_s3 + $0x300] sm:$0xff] }
 0x433   :  { %3906 = vperm.xlu1 %6507, %v7084_v25   ;;  %v4838_v5 = vadd.f32 %v4582_v58, %v4326_v47  ;;  %v4839_v2 = vadd.f32 %v4583_v62, %v4327_v27  ;;  %v16464_v59 = vpack.c.bf16 %v13176_v45, %v13171_v11  ;;  %v4328_v7 = vadd.f32 %v4012_v9, %v13134_v33  ;;  %v3837_v49 = vpop.permute.xlu0 %3836  ;;  %v16465_v11 = vld [vmem:[#allocation300_spill] sm:$0xff]  ;;  %v13478_v39 = vld [vmem:[%s15149_s3 + $0x340] sm:$0xff]  ;;  %v13483_v58 = vld [vmem:[%s15149_s3 + $0x358] sm:$0xff] }
 0x434   :  { %v5032_v18 = vmax.f32 %v4776_v34, 0.0  ;;  %v5033_v31 = vmax.f32 %v4777_v32, 0.0  ;;  %v4329_v12 = vadd.f32 %v4012_v9, %v13160_v29  ;;  %6231 = vmatprep.subr.bf16.mxu1 %v5631_v40  ;;  %v4258_v45 = vadd.f32 %v3837_v49, %v16465_v11  ;;  %v4517_v34 = vld [vmem:[%s15148_s1 + $0x498] sm:$0xff]  ;;  %v13522_v11 = vld [vmem:[%s15149_s3 + $0x350] sm:$0xff] }
 0x435   :  { %5713 = vmatmul.mubr.bf16.gmra.mxu0 %v16464_v59  ;;  %v4259_v33 = vadd.f32 %v3837_v49, %v16466_v6  ;;  %6232 = vmatpush1.bf16.msra.mxu1 %v5630_v38  ;;  %v5436_v29 = vpack.c.bf16 %v13424_v46, %v13416_v56  ;;  %v5443_v51 = vpack.c.bf16 %v13434_v16, %v13429_v20  ;;  %v5094_v62 = vmax.f32 %v4838_v5, 0.0  ;;  %v4516_v38 = vld [vmem:[%s15148_s1 + $0x490] sm:$0xff]  ;;  %v16468_v5 = vld [vmem:[#allocation35_spill] sm:$0xff]  ;;  %v16471_v59 = vld [vmem:[#allocation42_spill] sm:$0xff] }
 0x436   :  { %5722 = vmatprep.mubr.bf16.mxu0 %v5427_v10  ;;  %v5596_v15 = vpack.c.bf16 %v5032_v18, %v5030_v35  ;;  %v4840_v48 = vadd.f32 %v4584_v3, %v4328_v7  ;;  %v4841_v42 = vadd.f32 %v4585_v41, %v4329_v12  ;;  %v5597_v10 = vpack.c.bf16 %v5033_v31, %v5031_v63  ;;  %v3842_v32 = vpop.permute.xlu1 %3841  ;;  %v16467_v35 = vld [vmem:[#allocation36_spill] sm:$0xff]  ;;  %v4578_v3 = vld [vmem:[%s15148_s1 + $0x680] sm:$0xff]  ;;  %v4579_v41 = vld [vmem:[%s15148_s1 + $0x688] sm:$0xff] }
 0x437   :  { %4066 = vperm.xlu1 %6507, %v7085_v55   ;;  %v5095_v57 = vmax.f32 %v4839_v2, 0.0  ;;  %v4770_v47 = vadd.f32 %v4514_v0, %v4258_v45  ;;  %v4771_v27 = vadd.f32 %v4515_v44, %v4259_v33  ;;  %v4260_v63 = vadd.f32 %v3842_v32, %v16467_v35  ;;  %v3997_v9 = vpop.permute.xlu0 %3996  ;;  %v13514_v12 = vld [vmem:[%s15149_s3 + $0x310] sm:$0xff]  ;;  %v13527_v45 = vld [vmem:[%s15149_s3 + $0x388] sm:$0xff]  ;;  %v16484_v50 = vld [vmem:[#allocation257_spill] sm:$0xff] }
 0x438   :  { %5906 = vmatmul.mubr.bf16.gmra.mxu1 %v5420_v54  ;;  %v5096_v25 = vmax.f32 %v4840_v48, 0.0  ;;  %v5097_v40 = vmax.f32 %v4841_v42, 0.0  ;;  %v4261_v2 = vadd.f32 %v3842_v32, %v16468_v5  ;;  %6040 = vmatprep.subr.bf16.mxu0 %v5597_v10  ;;  %v4322_v54 = vadd.f32 %v3997_v9, %v16470_v60  ;;  %v13532_v6 = vld [vmem:[%s15149_s3 + $0x3c8] sm:$0xff]  ;;  %v4580_v55 = vld [vmem:[%s15148_s1 + $0x690] sm:$0xff]  ;;  %v4581_v10 = vld [vmem:[%s15148_s1 + $0x698] sm:$0xff] }
 0x439   :  { %5915 = vmatprep.mubr.bf16.mxu1 %v16469_v4  ;;  %v4323_v18 = vadd.f32 %v3997_v9, %v16471_v59  ;;  %6041 = vmatpush1.bf16.msra.mxu0 %v5596_v15  ;;  %v5442_v31 = vpack.c.bf16 %v13478_v39, %v13473_v61  ;;  %v5445_v7 = vpack.c.bf16 %v13483_v58, %v13465_v8  ;;  %v5026_v33 = vmax.f32 %v4770_v47, 0.0  ;;  %v16473_v32 = vld [vmem:[#allocation95_spill] sm:$0xff]  ;;  %v13563_v9 = vld [vmem:[%s15149_s3 + $0x398] sm:$0xff]  ;;  %v13611_v52 = vld [vmem:[%s15149_s3 + $0x390] sm:$0xff] }
 0x43a   :  { %v5628_v0 = vpack.c.bf16 %v5096_v25, %v5094_v62  ;;  %v4772_v44 = vadd.f32 %v4516_v38, %v4260_v63  ;;  %v4773_v13 = vadd.f32 %v4517_v34, %v4261_v2  ;;  %v5629_v49 = vpack.c.bf16 %v5097_v40, %v5095_v57  ;;  %v4002_v62 = vpop.permute.xlu1 %4001  ;;  %v4510_v40 = vld [vmem:[%s15148_s1 + $0x460] sm:$0xff]  ;;  %v4511_v35 = vld [vmem:[%s15148_s1 + $0x468] sm:$0xff]  ;;  %v13579_v59 = vld [vmem:[%s15149_s3 + $0x3d8] sm:$0xff] }
 0x43b   :  { %4071 = vperm.xlu1 %6507, %v7086_v21   ;;  %v5027_v15 = vmax.f32 %v4771_v27, 0.0  ;;  %v4834_v48 = vadd.f32 %v4578_v3, %v4322_v54  ;;  %v4835_v42 = vadd.f32 %v4579_v41, %v4323_v18  ;;  %v16472_v57 = vpack.c.bf16 %v13261_v28, %v13256_v24  ;;  %v16474_v27 = vld [vmem:[#allocation93_spill] sm:$0xff]  ;;  %v3827_v63 = vpop.permute.xlu0 %3826  ;;  %v16475_v24 = vld [vmem:[#allocation260_spill] sm:$0xff]  ;;  %v16476_v5 = vld [vmem:[#allocation67_spill] sm:$0xff] }
 0x43c   :  { %v5028_v38 = vmax.f32 %v4772_v44, 0.0  ;;  %v5029_v34 = vmax.f32 %v4773_v13, 0.0  ;;  %v4324_v47 = vadd.f32 %v4002_v62, %v16473_v32  ;;  %v4325_v25 = vadd.f32 %v4002_v62, %v16474_v27  ;;  %6233 = vmatprep.subr.bf16.mxu1 %v5629_v49  ;;  %v13574_v54 = vld [vmem:[%s15149_s3 + $0x3c0] sm:$0xff]  ;;  %v16477_v21 = vld [vmem:[#allocation340_spill] sm:$0xff]  ;;  %v16488_v46 = vld [vmem:[#allocation303_spill] sm:$0xff] }
 0x43d   :  { %5723 = vmatmul.mubr.bf16.gmra.mxu0 %v16472_v57  ;;  %v4254_v28 = vadd.f32 %v3827_v63, %v16475_v24  ;;  %v4255_v2 = vadd.f32 %v3827_v63, %v16476_v5  ;;  %6234 = vmatpush1.bf16.msra.mxu1 %v5628_v0  ;;  %v5444_v3 = vpack.c.bf16 %v13522_v11, %v13514_v12  ;;  %v5090_v18 = vmax.f32 %v4834_v48, 0.0  ;;  %v4512_v49 = vld [vmem:[%s15148_s1 + $0x470] sm:$0xff]  ;;  %v16479_v62 = vld [vmem:[#allocation98_spill] sm:$0xff]  ;;  %v7089_v61 = vld [vmem:[%s15147_s2 + $0x3a8] sm:$0xff] }
 0x43e   :  { %5732 = vmatprep.mubr.bf16.mxu0 %v5435_v23  ;;  %v5451_v41 = vpack.c.bf16 %v13532_v6, %v13527_v45  ;;  %v5594_v4 = vpack.c.bf16 %v5028_v38, %v5026_v33  ;;  %v4836_v60 = vadd.f32 %v4580_v55, %v4324_v47  ;;  %v4837_v14 = vadd.f32 %v4581_v10, %v4325_v25  ;;  %v13569_v23 = vld [vmem:[%s15149_s3 + $0x380] sm:$0xff]  ;;  %v4513_v33 = vld [vmem:[%s15148_s1 + $0x478] sm:$0xff]  ;;  %v13616_v22 = vld [vmem:[%s15149_s3 + $0x3d0] sm:$0xff] }
 0x43f   :  { %6508 = vset.pattern.permute.xlu1 %v16266_v17  ;;  %v5595_v36 = vpack.c.bf16 %v5029_v34, %v5027_v15  ;;  %v5091_v0 = vmax.f32 %v4835_v42, 0.0  ;;  %v4766_v44 = vadd.f32 %v4510_v40, %v4254_v28  ;;  %v4767_v13 = vadd.f32 %v4511_v35, %v4255_v2  ;;  %v3832_v15 = vpop.permute.xlu1 %3831  ;;  %v16478_v42 = vld [vmem:[#allocation316_spill] sm:$0xff]  ;;  %v4574_v38 = vld [vmem:[%s15148_s1 + $0x660] sm:$0xff]  ;;  %v4575_v34 = vld [vmem:[%s15148_s1 + $0x668] sm:$0xff]  ;;  %v3987_v32 = vpop.permute.xlu0 %3986 }
 0x440   :  { %3165 = vperm.xlu1 %6508, %v16477_v21   ;;  %5916 = vmatmul.mubr.bf16.gmra.mxu1 %v5428_v30  ;;  %v5092_v55 = vmax.f32 %v4836_v60, 0.0  ;;  %v5093_v48 = vmax.f32 %v4837_v14, 0.0  ;;  %v4256_v10 = vadd.f32 %v3832_v15, %v16478_v42  ;;  %v4257_v57 = vadd.f32 %v3832_v15, %v16479_v62  ;;  %v16481_v30 = vld [vmem:[#allocation317_spill] sm:$0xff]  ;;  %v7088_v56 = vld [vmem:[%s15147_s2 + $0x3a0] sm:$0xff] }
 0x441   :  { %6042 = vmatprep.subr.bf16.mxu0 %v5595_v36  ;;  %5925 = vmatprep.mubr.bf16.mxu1 %v5437_v1  ;;  %v4318_v43 = vadd.f32 %v3987_v32, %v16480_v26  ;;  %v4319_v47 = vadd.f32 %v3987_v32, %v16481_v30  ;;  %v5450_v27 = vpack.c.bf16 %v13574_v54, %v13569_v23  ;;  %v5022_v1 = vmax.f32 %v4766_v44, 0.0  ;;  %v4577_v60 = vld [vmem:[%s15148_s1 + $0x678] sm:$0xff]  ;;  %v13654_v32 = vld [vmem:[%s15149_s3 + $0x448] sm:$0xff]  ;;  %v16497_v12 = vld [vmem:[#allocation106_spill] sm:$0xff] }
 0x442   :  { %6043 = vmatpush1.bf16.msra.mxu0 %v5594_v4  ;;  %v5453_v25 = vpack.c.bf16 %v13579_v59, %v13563_v9  ;;  %v5626_v40 = vpack.c.bf16 %v5092_v55, %v5090_v18  ;;  %v4768_v35 = vadd.f32 %v4512_v49, %v4256_v10  ;;  %v4769_v63 = vadd.f32 %v4513_v33, %v4257_v57  ;;  %v4576_v4 = vld [vmem:[%s15148_s1 + $0x670] sm:$0xff]  ;;  %v4506_v49 = vld [vmem:[%s15148_s1 + $0x440] sm:$0xff]  ;;  %v4507_v33 = vld [vmem:[%s15148_s1 + $0x448] sm:$0xff] }
 0x443   :  { %v5627_v24 = vpack.c.bf16 %v5093_v48, %v5091_v0  ;;  %v5023_v28 = vmax.f32 %v4767_v13, 0.0  ;;  %v4830_v5 = vadd.f32 %v4574_v38, %v4318_v43  ;;  %v4831_v2 = vadd.f32 %v4575_v34, %v4319_v47  ;;  %v3992_v14 = vpop.permute.xlu1 %3991  ;;  %v16482_v0 = vld [vmem:[#allocation28_spill] sm:$0xff]  ;;  %v16483_v13 = vld [vmem:[#allocation207_spill] sm:$0xff]  ;;  %v3817_v15 = vpop.permute.xlu0 %3816  ;;  %v16485_v55 = vld [vmem:[#allocation62_spill] sm:$0xff] }
 0x444   :  { %6509 = vset.pattern.permute.xlu1 %v16139_v19  ;;  %v5024_v36 = vmax.f32 %v4768_v35, 0.0  ;;  %v5025_v18 = vmax.f32 %v4769_v63, 0.0  ;;  %v4320_v44 = vadd.f32 %v3992_v14, %v16482_v0  ;;  %v4321_v21 = vadd.f32 %v3992_v14, %v16483_v13  ;;  %v13649_v34 = vld [vmem:[%s15149_s3 + $0x408] sm:$0xff]  ;;  %v4508_v43 = vld [vmem:[%s15148_s1 + $0x450] sm:$0xff]  ;;  %v4509_v30 = vld [vmem:[%s15148_s1 + $0x458] sm:$0xff] }
 0x445   :  { %5733 = vmatmul.mubr.bf16.gmra.mxu0 %v5434_v53  ;;  %3896 = vperm.xlu1 %6509, %v7087_v37   ;;  %v4250_v53 = vadd.f32 %v3817_v15, %v16484_v50  ;;  %v4251_v48 = vadd.f32 %v3817_v15, %v16485_v55  ;;  %v5452_v42 = vpack.c.bf16 %v13616_v22, %v13611_v52  ;;  %v5086_v26 = vmax.f32 %v4830_v5, 0.0  ;;  %v16486_v63 = vld [vmem:[#allocation101_spill] sm:$0xff]  ;;  %v4570_v5 = vld [vmem:[%s15148_s1 + $0x640] sm:$0xff]  ;;  %v4572_v50 = vld [vmem:[%s15148_s1 + $0x650] sm:$0xff] }
 0x446   :  { %6235 = vmatprep.subr.bf16.mxu1 %v5627_v24  ;;  %5742 = vmatprep.mubr.bf16.mxu0 %v5443_v51  ;;  %v5592_v10 = vpack.c.bf16 %v5024_v36, %v5022_v1  ;;  %v4832_v62 = vadd.f32 %v4576_v4, %v4320_v44  ;;  %v4833_v57 = vadd.f32 %v4577_v60, %v4321_v21  ;;  %v5087_v20 = vmax.f32 %v4831_v2, 0.0  ;;  %v16487_v1 = vld [vmem:[#allocation86_spill] sm:$0xff]  ;;  %v4571_v2 = vld [vmem:[%s15148_s1 + $0x648] sm:$0xff]  ;;  %v16489_v60 = vld [vmem:[#allocation108_spill] sm:$0xff] }
 0x447   :  { %6236 = vmatpush1.bf16.msra.mxu1 %v5626_v40  ;;  %v5593_v38 = vpack.c.bf16 %v5025_v18, %v5023_v28  ;;  %v4762_v16 = vadd.f32 %v4506_v49, %v4250_v53  ;;  %v4763_v51 = vadd.f32 %v4507_v33, %v4251_v48  ;;  %v3822_v47 = vpop.permute.xlu1 %3821  ;;  %v3977_v4 = vpop.permute.xlu0 %3976  ;;  %v16490_v36 = vld [vmem:[#allocation296_spill] sm:$0xff]  ;;  %v5459_v0 = vpack.c.bf16 %v13654_v32, %v13649_v34  ;;  %v13687_v33 = vld [vmem:[%s15149_s3 + $0x400] sm:$0xff]  ;;  %v4573_v53 = vld [vmem:[%s15148_s1 + $0x658] sm:$0xff] }
 0x448   :  { %5926 = vmatmul.mubr.bf16.gmra.mxu1 %v5436_v29  ;;  %v5088_v40 = vmax.f32 %v4832_v62, 0.0  ;;  %v5089_v35 = vmax.f32 %v4833_v57, 0.0  ;;  %v4252_v24 = vadd.f32 %v3822_v47, %v16486_v63  ;;  %v4253_v28 = vadd.f32 %v3822_v47, %v16487_v1  ;;  %v13692_v15 = vld [vmem:[%s15149_s3 + $0x440] sm:$0xff]  ;;  %v4569_v9 = vld [vmem:[%s15148_s1 + $0x638] sm:$0xff]  ;;  %v7090_v34 = vld [vmem:[%s15147_s2 + $0x290] sm:$0xff] }
 0x449   :  { %4056 = vperm.xlu1 %6509, %v7088_v56   ;;  %6044 = vmatprep.subr.bf16.mxu0 %v5593_v38  ;;  %v2051_v29 = vmul.f32 0.0051020407, %v16488_v46  ;;  %v4314_v14 = vadd.f32 %v3977_v4, %v16489_v60  ;;  %v4315_v18 = vadd.f32 %v3977_v4, %v16490_v36  ;;  %v5018_v37 = vmax.f32 %v4762_v16, 0.0  ;;  %v16491_v62 = vld [vmem:[#allocation94_spill] sm:$0xff]  ;;  %v16492_v38 = vld [vmem:[#allocation32_spill] sm:$0xff]  ;;  %v4503_v16 = vld [vmem:[%s15148_s1 + $0x428] sm:$0xff] }
 0x44a   :  { %6045 = vmatpush1.bf16.msra.mxu0 %v5592_v10  ;;  %5935 = vmatprep.mubr.bf16.mxu1 %v5445_v7  ;;  %v5624_v44 = vpack.c.bf16 %v5088_v40, %v5086_v26  ;;  %v4764_v13 = vadd.f32 %v4508_v43, %v4252_v24  ;;  %v4765_v21 = vadd.f32 %v4509_v30, %v4253_v28  ;;  %v5019_v8 = vmax.f32 %v4763_v51, 0.0  ;;  %v16494_v30 = vld [vmem:[#allocation64_spill] sm:$0xff]  ;;  %v13724_v28 = vld [vmem:[%s15149_s3 + $0x418] sm:$0xff] }
 0x44b   :  { %v5625_v49 = vpack.c.bf16 %v5089_v35, %v5087_v20  ;;  %v4826_v58 = vadd.f32 %v4570_v5, %v4314_v14  ;;  %v4827_v7 = vadd.f32 %v4571_v2, %v4315_v18  ;;  %v3982_v55 = vpop.permute.xlu1 %3981  ;;  %v4502_v20 = vld [vmem:[%s15148_s1 + $0x420] sm:$0xff]  ;;  %v3807_v51 = vpop.permute.xlu0 %3806  ;;  %v2179_v39 = vadd.f32 1e-05, %v2051_v29  ;;  %v13729_v5 = vld [vmem:[%s15149_s3 + $0x458] sm:$0xff]  ;;  %v4504_v4 = vld [vmem:[%s15148_s1 + $0x430] sm:$0xff] }
 0x44c   :  { %v5020_v48 = vmax.f32 %v4764_v13, 0.0  ;;  %v5021_v10 = vmax.f32 %v4765_v21, 0.0  ;;  %v4316_v57 = vadd.f32 %v3982_v55, %v16491_v62  ;;  %v4317_v26 = vadd.f32 %v3982_v55, %v16492_v38  ;;  %v4505_v56 = vld [vmem:[%s15148_s1 + $0x438] sm:$0xff]  ;;  %v16495_v14 = vld [vmem:[#allocation199_spill] sm:$0xff]  ;;  %v4566_v13 = vld [vmem:[%s15148_s1 + $0x620] sm:$0xff] }
 0x44d   :  { %5743 = vmatmul.mubr.bf16.gmra.mxu0 %v5442_v31  ;;  %4061 = vperm.xlu1 %6509, %v7089_v61   ;;  %v16493_v31 = vld [vmem:[#allocation58_spill] sm:$0xff]  ;;  %v4247_v47 = vadd.f32 %v3807_v51, %v16494_v30  ;;  %v5458_v40 = vpack.c.bf16 %v13692_v15, %v13687_v33  ;;  %v5082_v2 = vmax.f32 %v4826_v58, 0.0  ;;  %v5083_v45 = vmax.f32 %v4827_v7, 0.0  ;;  %v16496_v18 = vld [vmem:[#allocation3_spill] sm:$0xff]  ;;  %v16502_v23 = vld [vmem:[#allocation61_spill] sm:$0xff] }
 0x44e   :  { %6237 = vmatprep.subr.bf16.mxu1 %v5625_v49  ;;  %v4246_v43 = vadd.f32 %v3807_v51, %v16493_v31  ;;  %5752 = vmatprep.mubr.bf16.mxu0 %v5451_v41  ;;  %v5590_v35 = vpack.c.bf16 %v5020_v48, %v5018_v37  ;;  %v4828_v63 = vadd.f32 %v4572_v50, %v4316_v57  ;;  %v4567_v21 = vld [vmem:[%s15148_s1 + $0x628] sm:$0xff]  ;;  %6769 = vrsqrt.f32 %v2179_v39  ;;  %v16500_v51 = vld [vmem:[#allocation97_spill] sm:$0xff] }
 0x44f   :  { %6238 = vmatpush1.bf16.msra.mxu1 %v5624_v44  ;;  %v4829_v24 = vadd.f32 %v4573_v53, %v4317_v26  ;;  %v5591_v1 = vpack.c.bf16 %v5021_v10, %v5019_v8  ;;  %v4759_v41 = vadd.f32 %v4503_v16, %v4247_v47  ;;  %v3812_v46 = vpop.permute.xlu1 %3811  ;;  %v3967_v49 = vpop.permute.xlu0 %3966  ;;  %v16499_v8 = vld [vmem:[#allocation341_spill] sm:$0xff]  ;;  %v5461_v58 = vpack.c.bf16 %v13729_v5, %v13724_v28  ;;  %v13760_v48 = vld [vmem:[%s15149_s3 + $0x488] sm:$0xff] }
 0x450   :  { %v4758_v6 = vadd.f32 %v4502_v20, %v4246_v43  ;;  %5936 = vmatmul.mubr.bf16.gmra.mxu1 %v5444_v3  ;;  %v5084_v29 = vmax.f32 %v4828_v63, 0.0  ;;  %v4248_v36 = vadd.f32 %v3812_v46, %v16495_v14  ;;  %v4249_v44 = vadd.f32 %v3812_v46, %v16496_v18  ;;  %v16498_v3 = vld [vmem:[#allocation5_spill] sm:$0xff]  ;;  %v13765_v10 = vld [vmem:[%s15149_s3 + $0x4c8] sm:$0xff]  ;;  %v4568_v20 = vld [vmem:[%s15148_s1 + $0x630] sm:$0xff] }
 0x451   :  { %v5085_v60 = vmax.f32 %v4829_v24, 0.0  ;;  %6510 = vset.pattern.permute.xlu1 %v16266_v17  ;;  %6046 = vmatprep.subr.bf16.mxu0 %v5591_v1  ;;  %v4310_v11 = vadd.f32 %v3967_v49, %v16497_v12  ;;  %v4311_v37 = vadd.f32 %v3967_v49, %v16498_v3  ;;  %v5015_v57 = vmax.f32 %v4759_v41, 0.0  ;;  %v16501_v39 = vld [vmem:[#allocation315_spill] sm:$0xff]  ;;  %v4498_v43 = vld [vmem:[%s15148_s1 + $0x400] sm:$0xff]  ;;  %v13793_v63 = vld [vmem:[%s15149_s3 + $0x410] sm:$0xff] }
 0x452   :  { %3155 = vperm.xlu1 %6510, %v16499_v8   ;;  %6047 = vmatpush1.bf16.msra.mxu0 %v5590_v35  ;;  %v5622_v7 = vpack.c.bf16 %v5084_v29, %v5082_v2  ;;  %v4760_v50 = vadd.f32 %v4504_v4, %v4248_v36  ;;  %v4761_v53 = vadd.f32 %v4505_v56, %v4249_v44  ;;  %v5014_v62 = vmax.f32 %v4758_v6, 0.0  ;;  %v4499_v30 = vld [vmem:[%s15148_s1 + $0x408] sm:$0xff]  ;;  %v13806_v2 = vld [vmem:[%s15149_s3 + $0x498] sm:$0xff]  ;;  %v4500_v46 = vld [vmem:[%s15148_s1 + $0x410] sm:$0xff] }
 0x453   :  { %v5623_v55 = vpack.c.bf16 %v5085_v60, %v5083_v45  ;;  %5945 = vmatprep.mubr.bf16.mxu1 %v5453_v25  ;;  %v4822_v38 = vadd.f32 %v4566_v13, %v4310_v11  ;;  %v4823_v26 = vadd.f32 %v4567_v21, %v4311_v37  ;;  %v3972_v59 = vpop.permute.xlu1 %3971  ;;  %v3797_v47 = vpop.permute.xlu0 %3796  ;;  %v5467_v24 = vpack.c.bf16 %v13765_v10, %v13760_v48  ;;  %v13811_v45 = vld [vmem:[%s15149_s3 + $0x4d8] sm:$0xff]  ;;  %v16504_v18 = vld [vmem:[#allocation88_spill] sm:$0xff]  ;;  %v4562_v49 = vld [vmem:[%s15148_s1 + $0x600] sm:$0xff] }
 0x454   :  { %v5016_v25 = vmax.f32 %v4760_v50, 0.0  ;;  %v5017_v16 = vmax.f32 %v4761_v53, 0.0  ;;  %v4312_v61 = vadd.f32 %v3972_v59, %v16500_v51  ;;  %v4313_v31 = vadd.f32 %v3972_v59, %v16501_v39  ;;  %v4501_v29 = vld [vmem:[%s15148_s1 + $0x418] sm:$0xff]  ;;  %v16505_v13 = vld [vmem:[#allocation312_spill] sm:$0xff]  ;;  %v4563_v12 = vld [vmem:[%s15148_s1 + $0x608] sm:$0xff] }
 0x455   :  { %5753 = vmatmul.mubr.bf16.gmra.mxu0 %v5450_v27  ;;  %6239 = vmatprep.subr.bf16.mxu1 %v5623_v55  ;;  %v4242_v54 = vadd.f32 %v3797_v47, %v16502_v23  ;;  %v16503_v27 = vld [vmem:[#allocation251_spill] sm:$0xff]  ;;  %v5078_v6 = vmax.f32 %v4822_v38, 0.0  ;;  %v5079_v41 = vmax.f32 %v4823_v26, 0.0  ;;  %v16506_v3 = vld [vmem:[#allocation82_spill] sm:$0xff]  ;;  %v16507_v22 = vld [vmem:[#allocation109_spill] sm:$0xff]  ;;  %v5469_v8 = vpack.c.bf16 %v13811_v45, %v13806_v2 }
 0x456   :  { %5762 = vmatprep.mubr.bf16.mxu0 %v5459_v0  ;;  %v4243_v35 = vadd.f32 %v3797_v47, %v16503_v27  ;;  %6511 = vset.pattern.permute.xlu1 %v16139_v19  ;;  %v5588_v1 = vpack.c.bf16 %v5016_v25, %v5014_v62  ;;  %v4824_v28 = vadd.f32 %v4568_v20, %v4312_v61  ;;  %v5276_v0 = vld [vmem:[%s15149_s3 + $0x450] sm:$0xff]  ;;  %v4565_v26 = vld [vmem:[%s15148_s1 + $0x618] sm:$0xff]  ;;  %v16509_v61 = vld [vmem:[#allocation99_spill] sm:$0xff] }
 0x457   :  { %6240 = vmatpush1.bf16.msra.mxu1 %v5622_v7  ;;  %v4825_v5 = vadd.f32 %v4569_v9, %v4313_v31  ;;  %3886 = vperm.xlu1 %6511, %v7090_v34   ;;  %v5589_v32 = vpack.c.bf16 %v5017_v16, %v5015_v57  ;;  %v4754_v4 = vadd.f32 %v4498_v43, %v4242_v54  ;;  %v3802_v60 = vpop.permute.xlu1 %3801  ;;  %v3957_v11 = vpop.permute.xlu0 %3956  ;;  %v7091_v55 = vld [vmem:[%s15147_s2 + $0x390] sm:$0xff]  ;;  %v5282_v9 = vld [vmem:[%s15149_s3 + $0x480] sm:$0xff]  ;;  %v16508_v16 = vld [vmem:[#allocation103_spill] sm:$0xff] }
 0x458   :  { %v4755_v56 = vadd.f32 %v4499_v30, %v4243_v35  ;;  %5946 = vmatmul.mubr.bf16.gmra.mxu1 %v5452_v42  ;;  %v5080_v14 = vmax.f32 %v4824_v28, 0.0  ;;  %v4244_v44 = vadd.f32 %v3802_v60, %v16504_v18  ;;  %v4245_v21 = vadd.f32 %v3802_v60, %v16505_v13  ;;  %v4564_v38 = vld [vmem:[%s15148_s1 + $0x610] sm:$0xff]  ;;  %v5290_v31 = vld [vmem:[%s15149_s3 + $0x4c0] sm:$0xff]  ;;  %v5299_v33 = vld [vmem:[%s15149_s3 + $0x508] sm:$0xff] }
 0x459   :  { %v5081_v36 = vmax.f32 %v4825_v5, 0.0  ;;  %6048 = vmatprep.subr.bf16.mxu0 %v5589_v32  ;;  %5955 = vmatprep.mubr.bf16.mxu1 %v5461_v58  ;;  %v4306_v52 = vadd.f32 %v3957_v11, %v16506_v3  ;;  %v4307_v42 = vadd.f32 %v3957_v11, %v16507_v22  ;;  %v5460_v37 = vpack.c.bf16 %v5276_v0, %v13793_v63  ;;  %v5307_v15 = vld [vmem:[%s15149_s3 + $0x548] sm:$0xff]  ;;  %v7092_v54 = vld [vmem:[%s15147_s2 + $0x398] sm:$0xff]  ;;  %v16510_v63 = vld [vmem:[#allocation4_spill] sm:$0xff] }
 0x45a   :  { %6049 = vmatpush1.bf16.msra.mxu0 %v5588_v1  ;;  %v5620_v7 = vpack.c.bf16 %v5080_v14, %v5078_v6  ;;  %v4756_v50 = vadd.f32 %v4500_v46, %v4244_v44  ;;  %v4757_v53 = vadd.f32 %v4501_v29, %v4245_v21  ;;  %v5010_v58 = vmax.f32 %v4754_v4, 0.0  ;;  %v13867_v35 = vld [vmem:[%s15147_s2 + $0x388] sm:$0xff]  ;;  %v16512_v28 = vld [vmem:[#allocation208_spill] sm:$0xff]  ;;  %v5301_v14 = vld [vmem:[%s15149_s3 + $0x518] sm:$0xff] }
 0x45b   :  { %4046 = vperm.xlu1 %6511, %v7091_v55   ;;  %v5621_v48 = vpack.c.bf16 %v5081_v36, %v5079_v41  ;;  %v5011_v10 = vmax.f32 %v4755_v56, 0.0  ;;  %v4818_v62 = vadd.f32 %v4562_v49, %v4306_v52  ;;  %v4819_v57 = vadd.f32 %v4563_v12, %v4307_v42  ;;  %v3962_v20 = vpop.permute.xlu1 %3961  ;;  %v3952_v23 = vpop.permute.xlu0 %3951  ;;  %v5284_v4 = vld [vmem:[%s15149_s3 + $0x490] sm:$0xff]  ;;  %v5309_v36 = vld [vmem:[%s15149_s3 + $0x558] sm:$0xff]  ;;  %v16513_v12 = vld [vmem:[#allocation102_spill] sm:$0xff] }
 0x45c   :  { %v5012_v59 = vmax.f32 %v4756_v50, 0.0  ;;  %v5013_v25 = vmax.f32 %v4757_v53, 0.0  ;;  %v4308_v51 = vadd.f32 %v3962_v20, %v16508_v16  ;;  %v4309_v39 = vadd.f32 %v3962_v20, %v16509_v61  ;;  %v5292_v56 = vld [vmem:[%s15149_s3 + $0x4d0] sm:$0xff]  ;;  %v4561_v13 = vld [vmem:[%s15148_s1 + $0x5f8] sm:$0xff]  ;;  %v5298_v42 = vld [vmem:[%s15149_s3 + $0x500] sm:$0xff] }
 0x45d   :  { %5763 = vmatmul.mubr.bf16.gmra.mxu0 %v5458_v40  ;;  %6241 = vmatprep.subr.bf16.mxu1 %v5621_v48  ;;  %v6770_v40 = vpop.eup %6769  ;;  %v5466_v34 = vpack.c.bf16 %v5290_v31, %v5282_v9  ;;  %v5475_v32 = vpack.c.bf16 %v5307_v15, %v5299_v33  ;;  %v5074_v0 = vmax.f32 %v4818_v62, 0.0  ;;  %v5075_v2 = vmax.f32 %v4819_v57, 0.0  ;;  %v4560_v44 = vld [vmem:[%s15148_s1 + $0x5f0] sm:$0xff]  ;;  %v16514_v11 = vld [vmem:[#allocation337_spill] sm:$0xff]  ;;  %v4558_v50 = vld [vmem:[%s15148_s1 + $0x5e0] sm:$0xff] }
 0x45e   :  { %5772 = vmatprep.mubr.bf16.mxu0 %v5467_v24  ;;  %6242 = vmatpush1.bf16.msra.mxu1 %v5620_v7  ;;  %v5586_v43 = vpack.c.bf16 %v5012_v59, %v5010_v58  ;;  %v4820_v30 = vadd.f32 %v4564_v38, %v4308_v51  ;;  %v4821_v47 = vadd.f32 %v4565_v26, %v4309_v39  ;;  %v16511_v24 = vld [vmem:[#allocation79_spill] sm:$0xff]  ;;  %v16515_v52 = vld [vmem:[#allocation209_spill] sm:$0xff]  ;;  %v5300_v9 = vld [vmem:[%s15149_s3 + $0x510] sm:$0xff] }
 0x45f   :  { %4051 = vperm.xlu1 %6511, %v7092_v54   ;;  %v5587_v27 = vpack.c.bf16 %v5013_v25, %v5011_v10  ;;  %v3408_v1 = vmul.f32 %v16511_v24, %v16510_v63  ;;  %v3409_v5 = vmul.f32 %v16511_v24, %v16512_v28  ;;  %v13873_v41 = vpop.permute.xlu1 %3215  ;;  %v2563_v60 = vmul.f32 %v6770_v40, %v13867_v35  ;;  %v4559_v53 = vld [vmem:[%s15148_s1 + $0x5e8] sm:$0xff]  ;;  %v16517_v38 = vld [vmem:[#allocation69_spill] sm:$0xff]  ;;  %v7093_v61 = vld [vmem:[%s15147_s2 + $0x280] sm:$0xff] }
 0x460   :  { %5956 = vmatmul.mubr.bf16.gmra.mxu1 %v5460_v37  ;;  %v5076_v45 = vmax.f32 %v4820_v30, 0.0  ;;  %v5077_v6 = vmax.f32 %v4821_v47, 0.0  ;;  %v5468_v49 = vpack.c.bf16 %v5292_v56, %v5284_v4  ;;  %v3406_v3 = vmul.f32 %v16514_v11, %v16513_v12  ;;  %v5315_v10 = vld [vmem:[%s15149_s3 + $0x588] sm:$0xff]  ;;  %v16518_v59 = vld [vmem:[#allocation269_spill] sm:$0xff]  ;;  %v5314_v4 = vld [vmem:[%s15149_s3 + $0x580] sm:$0xff] }
 0x461   :  { %6050 = vmatprep.subr.bf16.mxu0 %v5587_v27  ;;  %5965 = vmatprep.mubr.bf16.mxu1 %v5469_v8  ;;  %v4304_v46 = vadd.f32 %v3952_v23, %v3408_v1  ;;  %v4305_v29 = vadd.f32 %v3952_v23, %v3409_v5  ;;  %v3407_v22 = vmul.f32 %v16514_v11, %v16515_v52  ;;  %v5323_v62 = vld [vmem:[%s15149_s3 + $0x5c8] sm:$0xff]  ;;  %v5317_v39 = vld [vmem:[%s15149_s3 + $0x598] sm:$0xff]  ;;  %v4622_v27 = vld [vmem:[%s15148_s1 + $0x7e0] sm:$0xff] }
 0x462   :  { %6051 = vmatpush1.bf16.msra.mxu0 %v5586_v43  ;;  %v5618_v18 = vpack.c.bf16 %v5076_v45, %v5074_v0  ;;  %v5619_v21 = vpack.c.bf16 %v5077_v6, %v5075_v2  ;;  %v5477_v37 = vpack.c.bf16 %v5309_v36, %v5301_v14  ;;  %v16516_v57 = vld [vmem:[#allocation271_spill] sm:$0xff]  ;;  %v3471_v25 = vmul.f32 %v16517_v38, %v16518_v59  ;;  %v5325_v31 = vld [vmem:[%s15149_s3 + $0x5d8] sm:$0xff]  ;;  %v7094_v2 = vld [vmem:[%s15147_s2 + $0x380] sm:$0xff] }
 0x463   :  { %6513 = vset.pattern.permute.xlu1 %v16266_v17  ;;  %v5306_v17 = vld [vmem:[%s15149_s3 + $0x540] sm:$0xff]  ;;  %v4816_v8 = vadd.f32 %v4560_v44, %v4304_v46  ;;  %v4817_v7 = vadd.f32 %v4561_v13, %v4305_v29  ;;  %v3947_v55 = vpop.permute.xlu1 %3946  ;;  %v3470_v26 = vmul.f32 %v16517_v38, %v16516_v57  ;;  %v5483_v43 = vpack.c.bf16 %v5323_v62, %v5315_v10  ;;  %v4623_v63 = vld [vmem:[%s15148_s1 + $0x7e8] sm:$0xff]  ;;  %v16519_v28 = vld [vmem:[#allocation273_spill] sm:$0xff] }
 0x464   :  { %3145 = vperm.xlu1 %6513, %v2563_v60   ;;  %6243 = vmatprep.subr.bf16.mxu1 %v5619_v21  ;;  %v4302_v48 = vadd.f32 %v3947_v55, %v3406_v3  ;;  %v4303_v58 = vadd.f32 %v3947_v55, %v3407_v22  ;;  %v5474_v20 = vpack.c.bf16 %v5306_v17, %v5298_v42  ;;  %v4624_v45 = vld [vmem:[%s15148_s1 + $0x7f0] sm:$0xff]  ;;  %v5322_v56 = vld [vmem:[%s15149_s3 + $0x5c0] sm:$0xff]  ;;  %v5331_v29 = vld [vmem:[%s15149_s3 + $0x608] sm:$0xff]  ;;  %v3942_v21 = vpop.permute.xlu0 %3941 }
 0x465   :  { %5773 = vmatmul.mubr.bf16.gmra.mxu0 %v5466_v34  ;;  %6244 = vmatpush1.bf16.msra.mxu1 %v5618_v18  ;;  %v5072_v33 = vmax.f32 %v4816_v8, 0.0  ;;  %v5073_v15 = vmax.f32 %v4817_v7, 0.0  ;;  %v5485_v1 = vpack.c.bf16 %v5325_v31, %v5317_v39  ;;  %v3472_v5 = vmul.f32 %v13873_v41, %v16519_v28  ;;  %v16520_v34 = vld [vmem:[#allocation270_spill] sm:$0xff]  ;;  %v5339_v60 = vld [vmem:[%s15149_s3 + $0x648] sm:$0xff]  ;;  %v5324_v8 = vld [vmem:[%s15149_s3 + $0x5d0] sm:$0xff] }
 0x466   :  { %5782 = vmatprep.mubr.bf16.mxu0 %v5475_v32  ;;  %v4814_v16 = vadd.f32 %v4558_v50, %v4302_v48  ;;  %v4815_v51 = vadd.f32 %v4559_v53, %v4303_v58  ;;  %v3473_v32 = vmul.f32 %v13873_v41, %v16520_v34  ;;  %v4625_v41 = vld [vmem:[%s15148_s1 + $0x7f8] sm:$0xff]  ;;  %v5482_v13 = vpack.c.bf16 %v5322_v56, %v5314_v4  ;;  %v16521_v3 = vld [vmem:[#allocation2_spill] sm:$0xff]  ;;  %v16523_v42 = vld [vmem:[#allocation203_spill] sm:$0xff] }
 0x467   :  { %v4107_v40 = vpop.permute.xlu1 %4106  ;;  %v5491_v11 = vpack.c.bf16 %v5339_v60, %v5331_v29  ;;  %v16522_v52 = vld [vmem:[#allocation310_spill] sm:$0xff]  ;;  %v5333_v48 = vld [vmem:[%s15149_s3 + $0x618] sm:$0xff]  ;;  %v4556_v10 = vld [vmem:[%s15148_s1 + $0x5d0] sm:$0xff] }
 0x468   :  { %6514 = vset.pattern.permute.xlu1 %v16139_v19  ;;  %5966 = vmatmul.mubr.bf16.gmra.mxu1 %v5468_v49  ;;  %v5308_v19 = vld [vmem:[%s15149_s3 + $0x550] sm:$0xff]  ;;  %v5070_v30 = vmax.f32 %v4814_v16, 0.0  ;;  %v5071_v47 = vmax.f32 %v4815_v51, 0.0  ;;  %v4366_v23 = vadd.f32 %v4107_v40, %v3470_v26  ;;  %v4367_v54 = vadd.f32 %v4107_v40, %v3471_v25  ;;  %v5341_v58 = vld [vmem:[%s15149_s3 + $0x658] sm:$0xff]  ;;  %v5330_v59 = vld [vmem:[%s15149_s3 + $0x600] sm:$0xff] }
 0x469   :  { %3876 = vperm.xlu1 %6514, %v7093_v61   ;;  %5975 = vmatprep.mubr.bf16.mxu1 %v5477_v37  ;;  %v5476_v24 = vpack.c.bf16 %v5308_v19, %v5300_v9  ;;  %v3404_v22 = vmul.f32 %v16522_v52, %v16521_v3  ;;  %v3405_v17 = vmul.f32 %v16522_v52, %v16523_v42  ;;  %v5316_v37 = vld [vmem:[%s15149_s3 + $0x590] sm:$0xff]  ;;  %v4557_v38 = vld [vmem:[%s15148_s1 + $0x5d8] sm:$0xff]  ;;  %v5338_v25 = vld [vmem:[%s15149_s3 + $0x640] sm:$0xff] }
 0x46a   :  { %v5616_v0 = vpack.c.bf16 %v5072_v33, %v5070_v30  ;;  %v5617_v6 = vpack.c.bf16 %v5073_v15, %v5071_v47  ;;  %v4878_v14 = vadd.f32 %v4622_v27, %v4366_v23  ;;  %v4879_v36 = vadd.f32 %v4623_v63, %v4367_v54  ;;  %v5347_v51 = vld [vmem:[%s15149_s3 + $0x688] sm:$0xff]  ;;  %v16524_v19 = vld [vmem:[#allocation206_spill] sm:$0xff]  ;;  %v16525_v39 = vld [vmem:[#allocation188_spill] sm:$0xff] }
 0x46b   :  { %v4112_v46 = vpop.permute.xlu1 %4111  ;;  %v4300_v62 = vadd.f32 %v3942_v21, %v3404_v22  ;;  %v4301_v57 = vadd.f32 %v3942_v21, %v3405_v17  ;;  %v5484_v9 = vpack.c.bf16 %v5324_v8, %v5316_v37  ;;  %v5493_v16 = vpack.c.bf16 %v5341_v58, %v5333_v48  ;;  %v5355_v61 = vld [vmem:[%s15149_s3 + $0x6c8] sm:$0xff]  ;;  %v16526_v33 = vld [vmem:[#allocation204_spill] sm:$0xff]  ;;  %v4554_v30 = vld [vmem:[%s15148_s1 + $0x5c0] sm:$0xff] }
 0x46c   :  { %v4368_v18 = vadd.f32 %v4112_v46, %v3472_v5  ;;  %v4369_v44 = vadd.f32 %v4112_v46, %v3473_v32  ;;  %6052 = vmatprep.subr.bf16.mxu0 %v5617_v6  ;;  %v5134_v7 = vmax.f32 %v4878_v14, 0.0  ;;  %v5135_v50 = vmax.f32 %v4879_v36, 0.0  ;;  %v4555_v47 = vld [vmem:[%s15148_s1 + $0x5c8] sm:$0xff]  ;;  %v5349_v4 = vld [vmem:[%s15149_s3 + $0x698] sm:$0xff]  ;;  %v4618_v29 = vld [vmem:[%s15148_s1 + $0x7c0] sm:$0xff] }
 0x46d   :  { %5783 = vmatmul.mubr.bf16.gmra.mxu0 %v5474_v20  ;;  %4036 = vperm.xlu1 %6514, %v7094_v2   ;;  %v3402_v31 = vmul.f32 %v16525_v39, %v16524_v19  ;;  %v3403_v15 = vmul.f32 %v16525_v39, %v16526_v33  ;;  %v4812_v40 = vadd.f32 %v4556_v10, %v4300_v62  ;;  %v16527_v5 = vld [vmem:[#allocation267_spill] sm:$0xff]  ;;  %v5357_v56 = vld [vmem:[%s15149_s3 + $0x6d8] sm:$0xff]  ;;  %v5346_v36 = vld [vmem:[%s15149_s3 + $0x680] sm:$0xff] }
 0x46e   :  { %5792 = vmatprep.mubr.bf16.mxu0 %v5483_v43  ;;  %6053 = vmatpush2.bf16.msra.mxu0 %v5616_v0  ;;  %v4880_v49 = vadd.f32 %v4624_v45, %v4368_v18  ;;  %v4881_v12 = vadd.f32 %v4625_v41, %v4369_v44  ;;  %v4813_v43 = vadd.f32 %v4557_v38, %v4301_v57  ;;  %v16528_v34 = vld [vmem:[#allocation311_spill] sm:$0xff]  ;;  %v16529_v0 = vld [vmem:[#allocation264_spill] sm:$0xff]  ;;  %v16530_v22 = vld [vmem:[#allocation266_spill] sm:$0xff] }
 0x46f   :  { %v3206_v55 = vpop.permute.xlu1 %3205  ;;  %v5490_v54 = vpack.c.bf16 %v5338_v25, %v5330_v59  ;;  %v5499_v28 = vpack.c.bf16 %v5355_v61, %v5347_v51  ;;  %v3466_v32 = vmul.f32 %v16528_v34, %v16527_v5  ;;  %v3467_v2 = vmul.f32 %v16528_v34, %v16529_v0  ;;  %v4619_v3 = vld [vmem:[%s15148_s1 + $0x7c8] sm:$0xff]  ;;  %v16531_v17 = vld [vmem:[#allocation265_spill] sm:$0xff]  ;;  %v4552_v5 = vld [vmem:[%s15148_s1 + $0x5b0] sm:$0xff] }
 0x470   :  { %5976 = vmatmul.mubr.bf16.gmra.mxu1 %v5476_v24  ;;  %v5136_v53 = vmax.f32 %v4880_v49, 0.0  ;;  %v5332_v24 = vld [vmem:[%s15149_s3 + $0x610] sm:$0xff]  ;;  %v5068_v41 = vmax.f32 %v4812_v40, 0.0  ;;  %v5069_v46 = vmax.f32 %v4813_v43, 0.0  ;;  %v5354_v49 = vld [vmem:[%s15149_s3 + $0x6c0] sm:$0xff]  ;;  %v5501_v52 = vpack.c.bf16 %v5357_v56, %v5349_v4  ;;  %v5365_v25 = vld [vmem:[%s15149_s3 + $0x718] sm:$0xff] }
 0x471   :  { %4041 = vperm.xlu1 %6514, %v13867_v35   ;;  %5985 = vmatprep.mubr.bf16.mxu1 %v5485_v1  ;;  %v5137_v35 = vmax.f32 %v4881_v12, 0.0  ;;  %v5340_v1 = vld [vmem:[%s15149_s3 + $0x650] sm:$0xff]  ;;  %v5363_v12 = vld [vmem:[%s15149_s3 + $0x708] sm:$0xff]  ;;  %v3468_v42 = vmul.f32 %v3206_v55, %v16530_v22  ;;  %v3469_v37 = vmul.f32 %v3206_v55, %v16531_v17  ;;  %v5498_v58 = vpack.c.bf16 %v5354_v49, %v5346_v36  ;;  %v16532_v51 = vld [vmem:[#allocation201_spill] sm:$0xff] }
 0x472   :  { %v5648_v26 = vpack.c.bf16 %v5136_v53, %v5134_v7  ;;  %v5492_v14 = vpack.c.bf16 %v5340_v1, %v5332_v24  ;;  %v4620_v53 = vld [vmem:[%s15148_s1 + $0x7d0] sm:$0xff]  ;;  %v16533_v61 = vld [vmem:[#allocation81_spill] sm:$0xff]  ;;  %v5379_v1 = vld [vmem:[%s15149_s3 + $0x788] sm:$0xff] }
 0x473   :  { %v5649_v20 = vpack.c.bf16 %v5137_v35, %v5135_v50  ;;  %v3937_v23 = vpop.permute.xlu1 %3936  ;;  %v4621_v35 = vld [vmem:[%s15148_s1 + $0x7d8] sm:$0xff]  ;;  %v5348_v55 = vld [vmem:[%s15149_s3 + $0x690] sm:$0xff]  ;;  %v3400_v19 = vmul.f32 %v16533_v61, %v16532_v51  ;;  %v16537_v56 = vld [vmem:[#allocation198_spill] sm:$0xff] }
 0x474   :  { %v4298_v27 = vadd.f32 %v3937_v23, %v3402_v31  ;;  %v4299_v63 = vadd.f32 %v3937_v23, %v3403_v15  ;;  %v16534_v39 = vld [vmem:[#allocation197_spill] sm:$0xff]  ;;  %v5362_v23 = vld [vmem:[%s15149_s3 + $0x700] sm:$0xff]  ;;  %v4551_v36 = vld [vmem:[%s15148_s1 + $0x5a8] sm:$0xff] }
 0x475   :  { %5793 = vmatmul.mubr.bf16.gmra.mxu0 %v5482_v13  ;;  %6245 = vmatprep.subr.bf16.mxu1 %v5649_v20  ;;  %v3932_v20 = vpop.permute.xlu0 %3931  ;;  %v3401_v31 = vmul.f32 %v16533_v61, %v16534_v39  ;;  %v4553_v34 = vld [vmem:[%s15148_s1 + $0x5b8] sm:$0xff] }
 0x476   :  { %5802 = vmatprep.mubr.bf16.mxu0 %v5491_v11  ;;  %6246 = vmatpush2.bf16.msra.mxu1 %v5648_v26  ;;  %v4810_v45 = vadd.f32 %v4554_v30, %v4298_v27  ;;  %v4811_v6 = vadd.f32 %v4555_v47, %v4299_v63  ;;  %v5371_v11 = vld [vmem:[%s15149_s3 + $0x748] sm:$0xff]  ;;  %v5356_v26 = vld [vmem:[%s15149_s3 + $0x6d0] sm:$0xff]  ;;  %v4296_v27 = vadd.f32 %v3932_v20, %v3400_v19  ;;  %v16542_v61 = vld [vmem:[#allocation261_spill] sm:$0xff] }
 0x477   :  { %v4097_v60 = vpop.permute.xlu1 %4096  ;;  %v5507_v10 = vpack.c.bf16 %v5371_v11, %v5363_v12  ;;  %v5500_v33 = vpack.c.bf16 %v5356_v26, %v5348_v55  ;;  %v4297_v63 = vadd.f32 %v3932_v20, %v3401_v31  ;;  %v5381_v12 = vld [vmem:[%s15149_s3 + $0x798] sm:$0xff]  ;;  %v5143_v26 = vld [vmem:[%s15149_s3 + $0x28] sm:$0xff]  ;;  %v4616_v31 = vld [vmem:[%s15148_s1 + $0x7b0] sm:$0xff] }
 0x478   :  { %5986 = vmatmul.mubr.bf16.gmra.mxu1 %v5484_v9  ;;  %v5066_v18 = vmax.f32 %v4810_v45, 0.0  ;;  %v5067_v44 = vmax.f32 %v4811_v6, 0.0  ;;  %v4362_v13 = vadd.f32 %v4097_v60, %v3466_v32  ;;  %v4363_v21 = vadd.f32 %v4097_v60, %v3467_v2  ;;  %v16535_v45 = vld [vmem:[#allocation202_spill] sm:$0xff]  ;;  %v16536_v6 = vld [vmem:[#allocation184_spill] sm:$0xff]  ;;  %v5389_v11 = vld [vmem:[%s15149_s3 + $0x7d8] sm:$0xff] }
 0x479   :  { %5995 = vmatprep.mubr.bf16.mxu1 %v5493_v16  ;;  %v5373_v16 = vld [vmem:[%s15149_s3 + $0x758] sm:$0xff]  ;;  %v3398_v4 = vmul.f32 %v16536_v6, %v16535_v45  ;;  %v4808_v60 = vadd.f32 %v4552_v5, %v4296_v27  ;;  %v5151_v20 = vld [vmem:[%s15149_s3 + $0x68] sm:$0xff] }
 0x47a   :  { %v5614_v8 = vpack.c.bf16 %v5068_v41, %v5066_v18  ;;  %v5615_v7 = vpack.c.bf16 %v5069_v46, %v5067_v44  ;;  %v4874_v50 = vadd.f32 %v4618_v29, %v4362_v13  ;;  %v4875_v62 = vadd.f32 %v4619_v3, %v4363_v21  ;;  %v4550_v46 = vld [vmem:[%s15148_s1 + $0x5a0] sm:$0xff]  ;;  %v5364_v44 = vld [vmem:[%s15149_s3 + $0x710] sm:$0xff] }
 0x47b   :  { %v4102_v48 = vpop.permute.xlu1 %4101  ;;  %v5509_v24 = vpack.c.bf16 %v5373_v16, %v5365_v25  ;;  %v3399_v41 = vmul.f32 %v16536_v6, %v16537_v56  ;;  %v5372_v13 = vld [vmem:[%s15149_s3 + $0x750] sm:$0xff]  ;;  %v16538_v3 = vld [vmem:[#allocation158_spill] sm:$0xff]  ;;  %v16545_v6 = vld [vmem:[#allocation195_spill] sm:$0xff] }
 0x47c   :  { %v4364_v57 = vadd.f32 %v4102_v48, %v3468_v42  ;;  %v4365_v38 = vadd.f32 %v4102_v48, %v3469_v37  ;;  %6054 = vmatprep.subr.bf16.mxu0 %v5615_v7  ;;  %v5130_v15 = vmax.f32 %v4874_v50, 0.0  ;;  %v5131_v40 = vmax.f32 %v4875_v62, 0.0  ;;  %v16540_v42 = vld [vmem:[#allocation262_spill] sm:$0xff]  ;;  %v16541_v16 = vld [vmem:[#allocation160_spill] sm:$0xff] }
 0x47d   :  { %5803 = vmatmul.mubr.bf16.gmra.mxu0 %v5490_v54  ;;  %v5370_v54 = vld [vmem:[%s15149_s3 + $0x740] sm:$0xff]  ;;  %v5508_v7 = vpack.c.bf16 %v5372_v13, %v5364_v44  ;;  %v4548_v44 = vld [vmem:[%s15148_s1 + $0x590] sm:$0xff]  ;;  %v4549_v13 = vld [vmem:[%s15148_s1 + $0x598] sm:$0xff] }
 0x47e   :  { %5812 = vmatprep.mubr.bf16.mxu0 %v5499_v28  ;;  %6055 = vmatpush2.bf16.msra.mxu0 %v5614_v8  ;;  %v4876_v9 = vadd.f32 %v4620_v53, %v4364_v57  ;;  %v4877_v59 = vadd.f32 %v4621_v35, %v4365_v38  ;;  %v5387_v28 = vld [vmem:[%s15149_s3 + $0x7c8] sm:$0xff]  ;;  %v5506_v2 = vpack.c.bf16 %v5370_v54, %v5362_v23  ;;  %v5378_v50 = vld [vmem:[%s15149_s3 + $0x780] sm:$0xff]  ;;  %v5064_v35 = vmax.f32 %v4808_v60, 0.0 }
 0x47f   :  { %v3196_v47 = vpop.permute.xlu1 %3195  ;;  %v5515_v29 = vpack.c.bf16 %v5387_v28, %v5379_v1  ;;  %v5386_v53 = vld [vmem:[%s15149_s3 + $0x7c0] sm:$0xff]  ;;  %v5153_v1 = vld [vmem:[%s15149_s3 + $0x78] sm:$0xff]  ;;  %v3922_v28 = vpop.permute.xlu0 %3921 }
 0x480   :  { %5996 = vmatmul.mubr.bf16.gmra.mxu1 %v5492_v14  ;;  %v5132_v43 = vmax.f32 %v4876_v9, 0.0  ;;  %v5133_v30 = vmax.f32 %v4877_v59, 0.0  ;;  %v4809_v14 = vadd.f32 %v4553_v34, %v4297_v63  ;;  %v4614_v9 = vld [vmem:[%s15148_s1 + $0x7a0] sm:$0xff]  ;;  %v4615_v59 = vld [vmem:[%s15148_s1 + $0x7a8] sm:$0xff]  ;;  %v5514_v25 = vpack.c.bf16 %v5386_v53, %v5378_v50 }
 0x481   :  { %6005 = vmatprep.mubr.bf16.mxu1 %v5501_v52  ;;  %v16539_v52 = vld [vmem:[#allocation318_spill] sm:$0xff]  ;;  %v3464_v51 = vmul.f32 %v3196_v47, %v16541_v16  ;;  %v3465_v19 = vmul.f32 %v3196_v47, %v16542_v61  ;;  %v5399_v47 = vpack.c.bf16 %v5151_v20, %v5143_v26  ;;  %v4611_v61 = vld [vmem:[%s15148_s1 + $0x788] sm:$0xff] }
 0x482   :  { %v5646_v32 = vpack.c.bf16 %v5132_v43, %v5130_v15  ;;  %v5647_v0 = vpack.c.bf16 %v5133_v30, %v5131_v40  ;;  %v3462_v22 = vmul.f32 %v16539_v52, %v16538_v3  ;;  %v3463_v17 = vmul.f32 %v16539_v52, %v16540_v42  ;;  %v4617_v15 = vld [vmem:[%s15148_s1 + $0x7b8] sm:$0xff]  ;;  %v5380_v43 = vld [vmem:[%s15149_s3 + $0x790] sm:$0xff] }
 0x483   :  { %v3927_v18 = vpop.permute.xlu1 %3926  ;;  %v5065_v48 = vmax.f32 %v4809_v14, 0.0  ;;  %v5388_v30 = vld [vmem:[%s15149_s3 + $0x7d0] sm:$0xff] }
 0x484   :  { %6247 = vmatprep.subr.bf16.mxu1 %v5647_v0  ;;  %v4294_v21 = vadd.f32 %v3927_v18, %v3398_v4  ;;  %v4295_v49 = vadd.f32 %v3927_v18, %v3399_v41  ;;  %v16543_v0 = vld [vmem:[#allocation200_spill] sm:$0xff] }
 0x485   :  { %5813 = vmatmul.mubr.bf16.gmra.mxu0 %v5498_v58  ;;  %6248 = vmatpush2.bf16.msra.mxu1 %v5646_v32  ;;  %v5516_v32 = vpack.c.bf16 %v5388_v30, %v5380_v43  ;;  %v16548_v52 = vld [vmem:[#allocation192_spill] sm:$0xff]  ;;  %v4613_v30 = vld [vmem:[%s15148_s1 + $0x798] sm:$0xff] }
 0x486   :  { %5822 = vmatprep.mubr.bf16.mxu0 %v5507_v10  ;;  %v4806_v37 = vadd.f32 %v4550_v46, %v4294_v21  ;;  %v4807_v8 = vadd.f32 %v4551_v36, %v4295_v49  ;;  %v5517_v10 = vpack.c.bf16 %v5389_v11, %v5381_v12  ;;  %v16546_v12 = vld [vmem:[#allocation196_spill] sm:$0xff]  ;;  %v16547_v11 = vld [vmem:[#allocation307_spill] sm:$0xff] }
 0x487   :  { %v4087_v58 = vpop.permute.xlu1 %4086  ;;  %v3394_v3 = vmul.f32 %v16547_v11, %v16546_v12  ;;  %v4612_v43 = vld [vmem:[%s15148_s1 + $0x790] sm:$0xff] }
 0x488   :  { %6006 = vmatmul.mubr.bf16.gmra.mxu1 %v5500_v33  ;;  %v5062_v62 = vmax.f32 %v4806_v37, 0.0  ;;  %v5063_v57 = vmax.f32 %v4807_v8, 0.0  ;;  %v4358_v38 = vadd.f32 %v4087_v58, %v3462_v22  ;;  %v4359_v55 = vadd.f32 %v4087_v58, %v3463_v17  ;;  %v4546_v37 = vld [vmem:[%s15148_s1 + $0x580] sm:$0xff]  ;;  %v4547_v8 = vld [vmem:[%s15148_s1 + $0x588] sm:$0xff] }
 0x489   :  { %6015 = vmatprep.mubr.bf16.mxu1 %v5509_v24  ;;  %v5145_v24 = vld [vmem:[%s15149_s3 + $0x38] sm:$0xff]  ;;  %v3395_v22 = vmul.f32 %v16547_v11, %v16548_v52  ;;  %v4542_v52 = vld [vmem:[%s15148_s1 + $0x560] sm:$0xff] }
 0x48a   :  { %v5612_v39 = vpack.c.bf16 %v5064_v35, %v5062_v62  ;;  %v5613_v33 = vpack.c.bf16 %v5065_v48, %v5063_v57  ;;  %v4870_v23 = vadd.f32 %v4614_v9, %v4358_v38  ;;  %v4871_v54 = vadd.f32 %v4615_v59, %v4359_v55  ;;  %v16549_v35 = vld [vmem:[#allocation259_spill] sm:$0xff] }
 0x48b   :  { %v4092_v40 = vpop.permute.xlu1 %4091  ;;  %v5401_v56 = vpack.c.bf16 %v5153_v1, %v5145_v24  ;;  %v16550_v48 = vld [vmem:[#allocation275_spill] sm:$0xff]  ;;  %v3912_v24 = vpop.permute.xlu0 %3911 }
 0x48c   :  { %v4360_v27 = vadd.f32 %v4092_v40, %v3464_v51  ;;  %v4361_v63 = vadd.f32 %v4092_v40, %v3465_v19  ;;  %6056 = vmatprep.subr.bf16.mxu0 %v5613_v33  ;;  %v5126_v41 = vmax.f32 %v4870_v23, 0.0  ;;  %v5127_v46 = vmax.f32 %v4871_v54, 0.0  ;;  %v4610_v51 = vld [vmem:[%s15148_s1 + $0x780] sm:$0xff] }
 0x48d   :  { %5823 = vmatmul.mubr.bf16.gmra.mxu0 %v5506_v2  ;;  %v16544_v2 = vld [vmem:[#allocation302_spill] sm:$0xff]  ;;  %v3458_v58 = vmul.f32 %v16550_v48, %v16549_v35 }
 0x48e   :  { %5832 = vmatprep.mubr.bf16.mxu0 %v5515_v29  ;;  %6057 = vmatpush2.bf16.msra.mxu0 %v5612_v39  ;;  %v4872_v5 = vadd.f32 %v4616_v31, %v4360_v27  ;;  %v4873_v34 = vadd.f32 %v4617_v15, %v4361_v63  ;;  %v3396_v45 = vmul.f32 %v16544_v2, %v16543_v0  ;;  %v16552_v19 = vld [vmem:[#allocation258_spill] sm:$0xff]  ;;  %v16553_v31 = vld [vmem:[#allocation255_spill] sm:$0xff] }
 0x48f   :  { %v3397_v4 = vmul.f32 %v16544_v2, %v16545_v6  ;;  %v16556_v0 = vld [vmem:[#allocation190_spill] sm:$0xff] }
 0x490   :  { %6016 = vmatmul.mubr.bf16.gmra.mxu1 %v5508_v7  ;;  %v5128_v29 = vmax.f32 %v4872_v5, 0.0  ;;  %v5129_v60 = vmax.f32 %v4873_v34, 0.0  ;;  %v4292_v36 = vadd.f32 %v3922_v28, %v3396_v45  ;;  %v16554_v5 = vld [vmem:[#allocation194_spill] sm:$0xff] }
 0x491   :  { %6025 = vmatprep.mubr.bf16.mxu1 %v5517_v10  ;;  %v4293_v18 = vadd.f32 %v3922_v28, %v3397_v4  ;;  %v16551_v10 = vld [vmem:[#allocation256_spill] sm:$0xff]  ;;  %v16555_v34 = vld [vmem:[#allocation314_spill] sm:$0xff] }
 0x492   :  { %v3186_v14 = vpop.permute.xlu1 %3185  ;;  %v5644_v21 = vpack.c.bf16 %v5128_v29, %v5126_v41  ;;  %v5645_v49 = vpack.c.bf16 %v5129_v60, %v5127_v46  ;;  %v4804_v42 = vadd.f32 %v4548_v44, %v4292_v36  ;;  %v3459_v62 = vmul.f32 %v16550_v48, %v16551_v10  ;;  %v4544_v60 = vld [vmem:[%s15148_s1 + $0x570] sm:$0xff]  ;;  %v16557_v44 = vld [vmem:[#allocation191_spill] sm:$0xff] }
 0x493   :  { %v4805_v17 = vadd.f32 %v4549_v13, %v4293_v18  ;;  %v3460_v39 = vmul.f32 %v3186_v14, %v16552_v19  ;;  %v3461_v33 = vmul.f32 %v3186_v14, %v16553_v31  ;;  %v3393_v2 = vmul.f32 %v16555_v34, %v16556_v0  ;;  %v4545_v14 = vld [vmem:[%s15148_s1 + $0x578] sm:$0xff]  ;;  %v4608_v31 = vld [vmem:[%s15148_s1 + $0x770] sm:$0xff] }
 0x494   :  { %6249 = vmatprep.subr.bf16.mxu1 %v5645_v49  ;;  %v5060_v55 = vmax.f32 %v4804_v42, 0.0  ;;  %v16558_v13 = vld [vmem:[#allocation305_spill] sm:$0xff]  ;;  %v16559_v49 = vld [vmem:[#allocation187_spill] sm:$0xff] }
 0x495   :  { %5833 = vmatmul.mubr.bf16.gmra.mxu0 %v5514_v25  ;;  %6250 = vmatpush2.bf16.msra.mxu1 %v5644_v21  ;;  %v5061_v26 = vmax.f32 %v4805_v17, 0.0  ;;  %v4289_v29 = vadd.f32 %v3912_v24, %v3393_v2  ;;  %v3390_v21 = vmul.f32 %v16558_v13, %v16557_v44  ;;  %v3391_v12 = vmul.f32 %v16558_v13, %v16559_v49  ;;  %v4538_v49 = vld [vmem:[%s15148_s1 + $0x540] sm:$0xff] }
 0x496   :  { %6068 = vmatprep.mubr.bf16.mxu0 %v5399_v47 }
 0x498   :  { %6026 = vmatmul.mubr.bf16.gmra.mxu1 %v5516_v32  ;;  %v3392_v32 = vmul.f32 %v16555_v34, %v16554_v5 }
 0x499   :  { %6261 = vmatprep.mubr.bf16.mxu1 %v5401_v56 }
 0x49a   :  { %v4288_v46 = vadd.f32 %v3912_v24, %v3392_v32  ;;  %v16566_v24 = vld [vmem:[#allocation193_spill] sm:$0xff] }
 0x49b   :  { %v3917_v7 = vpop.permute.xlu1 %3916 }
 0x49c   :  { %v4290_v50 = vadd.f32 %v3917_v7, %v3394_v3  ;;  %v4291_v53 = vadd.f32 %v3917_v7, %v3395_v22  ;;  %v4800_v11 = vadd.f32 %v4544_v60, %v4288_v46  ;;  %v4801_v3 = vadd.f32 %v4545_v14, %v4289_v29  ;;  %v4543_v22 = vld [vmem:[%s15148_s1 + $0x568] sm:$0xff]  ;;  %v16568_v60 = vld [vmem:[#allocation186_spill] sm:$0xff] }
 0x49d   :  { %v16561_v7 = vld [vmem:[#allocation39_spill] sm:$0xff] }
 0x49e   :  { %v4802_v57 = vadd.f32 %v4546_v37, %v4290_v50  ;;  %v4803_v38 = vadd.f32 %v4547_v8, %v4291_v53  ;;  %v16560_v8 = vld [vmem:[#allocation254_spill] sm:$0xff]  ;;  %v5056_v10 = vmax.f32 %v4800_v11, 0.0  ;;  %v16569_v14 = vld [vmem:[#allocation335_spill] sm:$0xff] }
 0x49f   :  { %v4077_v20 = vpop.permute.xlu1 %4076  ;;  %v3454_v50 = vmul.f32 %v16561_v7, %v16560_v8  ;;  %v16562_v53 = vld [vmem:[#allocation250_spill] sm:$0xff] }
 0x4a0   :  { %v5058_v9 = vmax.f32 %v4802_v57, 0.0  ;;  %v5059_v59 = vmax.f32 %v4803_v38, 0.0  ;;  %v4354_v25 = vadd.f32 %v4077_v20, %v3458_v58  ;;  %v4355_v16 = vadd.f32 %v4077_v20, %v3459_v62 }
 0x4a1   :  { %v3455_v35 = vmul.f32 %v16561_v7, %v16562_v53  ;;  %v5057_v62 = vmax.f32 %v4801_v3, 0.0 }
 0x4a2   :  { %v5610_v15 = vpack.c.bf16 %v5060_v55, %v5058_v9  ;;  %v5611_v40 = vpack.c.bf16 %v5061_v26, %v5059_v59  ;;  %v4866_v23 = vadd.f32 %v4610_v51, %v4354_v25  ;;  %v4867_v54 = vadd.f32 %v4611_v61, %v4355_v16  ;;  %v4606_v9 = vld [vmem:[%s15148_s1 + $0x760] sm:$0xff]  ;;  %v4607_v59 = vld [vmem:[%s15148_s1 + $0x768] sm:$0xff]  ;;  %v16563_v25 = vld [vmem:[#allocation253_spill] sm:$0xff] }
 0x4a3   :  { %v4082_v47 = vpop.permute.xlu1 %4081  ;;  %v16564_v51 = vld [vmem:[#allocation249_spill] sm:$0xff] }
 0x4a4   :  { %v4356_v27 = vadd.f32 %v4082_v47, %v3460_v39  ;;  %v4357_v63 = vadd.f32 %v4082_v47, %v3461_v33  ;;  %6058 = vmatprep.subr.bf16.mxu0 %v5611_v40  ;;  %v5122_v45 = vmax.f32 %v4866_v23, 0.0  ;;  %v5123_v6 = vmax.f32 %v4867_v54, 0.0  ;;  %v4609_v33 = vld [vmem:[%s15148_s1 + $0x778] sm:$0xff]  ;;  %v3902_v23 = vpop.permute.xlu0 %3901 }
 0x4a5   :  { %6059 = vmatpush2.bf16.msra.mxu0 %v5610_v15 }
 0x4a6   :  { %v4868_v1 = vadd.f32 %v4612_v43, %v4356_v27  ;;  %v4869_v28 = vadd.f32 %v4613_v30, %v4357_v63  ;;  %v16565_v63 = vld [vmem:[#allocation189_spill] sm:$0xff] }
 0x4a8   :  { %v5124_v4 = vmax.f32 %v4868_v1, 0.0  ;;  %v5125_v56 = vmax.f32 %v4869_v28, 0.0  ;;  %v3176_v41 = vpop.permute.xlu1 %3175  ;;  %v3388_v1 = vmul.f32 %v16566_v24, %v16565_v63  ;;  %v16567_v28 = vld [vmem:[#allocation185_spill] sm:$0xff] }
 0x4a9   :  { %v3456_v16 = vmul.f32 %v3176_v41, %v16563_v25  ;;  %v3457_v61 = vmul.f32 %v3176_v41, %v16564_v51  ;;  %v3389_v5 = vmul.f32 %v16566_v24, %v16567_v28  ;;  %v4541_v41 = vld [vmem:[%s15148_s1 + $0x558] sm:$0xff]  ;;  %v4604_v51 = vld [vmem:[%s15148_s1 + $0x750] sm:$0xff] }
 0x4aa   :  { %v5642_v36 = vpack.c.bf16 %v5124_v4, %v5122_v45  ;;  %v5643_v18 = vpack.c.bf16 %v5125_v56, %v5123_v6  ;;  %v4284_v6 = vadd.f32 %v3902_v23, %v3388_v1  ;;  %v4540_v56 = vld [vmem:[%s15148_s1 + $0x550] sm:$0xff] }
 0x4ab   :  { %v4285_v4 = vadd.f32 %v3902_v23, %v3389_v5  ;;  %v16577_v23 = vld [vmem:[#allocation55_spill] sm:$0xff] }
 0x4ac   :  { %6251 = vmatprep.subr.bf16.mxu1 %v5643_v18  ;;  %v16570_v18 = vld [vmem:[#allocation181_spill] sm:$0xff]  ;;  %v4796_v13 = vadd.f32 %v4540_v56, %v4284_v6  ;;  %v16579_v56 = vld [vmem:[#allocation183_spill] sm:$0xff] }
 0x4ad   :  { %6252 = vmatpush2.bf16.msra.mxu1 %v5642_v36  ;;  %v3386_v36 = vmul.f32 %v16569_v14, %v16568_v60  ;;  %v3387_v44 = vmul.f32 %v16569_v14, %v16570_v18  ;;  %v4534_v18 = vld [vmem:[%s15148_s1 + $0x520] sm:$0xff] }
 0x4ae   :  { %v3907_v42 = vpop.permute.xlu1 %3906  ;;  %v5052_v53 = vmax.f32 %v4796_v13, 0.0 }
 0x4af   :  { %v4286_v17 = vadd.f32 %v3907_v42, %v3390_v21  ;;  %v4287_v37 = vadd.f32 %v3907_v42, %v3391_v12  ;;  %v4797_v21 = vadd.f32 %v4541_v41, %v4285_v4  ;;  %v4539_v12 = vld [vmem:[%s15148_s1 + $0x548] sm:$0xff]  ;;  %v16572_v42 = vld [vmem:[#allocation100_spill] sm:$0xff]  ;;  %v16580_v41 = vld [vmem:[#allocation333_spill] sm:$0xff] }
 0x4b1   :  { %v4798_v48 = vadd.f32 %v4542_v52, %v4286_v17  ;;  %v4799_v58 = vadd.f32 %v4543_v22, %v4287_v37  ;;  %v16571_v22 = vld [vmem:[#allocation248_spill] sm:$0xff] }
 0x4b2   :  { %v4067_v57 = vpop.permute.xlu1 %4066  ;;  %v3450_v17 = vmul.f32 %v16572_v42, %v16571_v22  ;;  %v16573_v37 = vld [vmem:[#allocation244_spill] sm:$0xff] }
 0x4b3   :  { %v5054_v38 = vmax.f32 %v4798_v48, 0.0  ;;  %v5055_v55 = vmax.f32 %v4799_v58, 0.0  ;;  %v4350_v26 = vadd.f32 %v4067_v57, %v3454_v50  ;;  %v4351_v20 = vadd.f32 %v4067_v57, %v3455_v35 }
 0x4b4   :  { %v3451_v8 = vmul.f32 %v16572_v42, %v16573_v37  ;;  %v5053_v35 = vmax.f32 %v4797_v21, 0.0 }
 0x4b5   :  { %v5608_v19 = vpack.c.bf16 %v5056_v10, %v5054_v38  ;;  %v5609_v39 = vpack.c.bf16 %v5057_v62, %v5055_v55  ;;  %v4862_v40 = vadd.f32 %v4606_v9, %v4350_v26  ;;  %v4863_v43 = vadd.f32 %v4607_v59, %v4351_v20  ;;  %v4602_v38 = vld [vmem:[%s15148_s1 + $0x740] sm:$0xff]  ;;  %v4603_v55 = vld [vmem:[%s15148_s1 + $0x748] sm:$0xff]  ;;  %v16574_v26 = vld [vmem:[#allocation252_spill] sm:$0xff] }
 0x4b6   :  { %v4072_v15 = vpop.permute.xlu1 %4071  ;;  %v16575_v9 = vld [vmem:[#allocation247_spill] sm:$0xff] }
 0x4b7   :  { %v4352_v30 = vadd.f32 %v4072_v15, %v3456_v16  ;;  %v4353_v47 = vadd.f32 %v4072_v15, %v3457_v61  ;;  %6060 = vmatprep.subr.bf16.mxu0 %v5609_v39  ;;  %v5118_v34 = vmax.f32 %v4862_v40, 0.0  ;;  %v5119_v32 = vmax.f32 %v4863_v43, 0.0  ;;  %v4605_v61 = vld [vmem:[%s15148_s1 + $0x758] sm:$0xff]  ;;  %v3892_v40 = vpop.permute.xlu0 %3891 }
 0x4b8   :  { %6061 = vmatpush2.bf16.msra.mxu0 %v5608_v19 }
 0x4b9   :  { %v4864_v54 = vadd.f32 %v4608_v31, %v4352_v30  ;;  %v4865_v27 = vadd.f32 %v4609_v33, %v4353_v47  ;;  %v16576_v47 = vld [vmem:[#allocation182_spill] sm:$0xff] }
 0x4bb   :  { %v5120_v0 = vmax.f32 %v4864_v54, 0.0  ;;  %v5121_v2 = vmax.f32 %v4865_v27, 0.0  ;;  %v3166_v45 = vpop.permute.xlu1 %3165  ;;  %v3384_v54 = vmul.f32 %v16577_v23, %v16576_v47  ;;  %v16578_v27 = vld [vmem:[#allocation179_spill] sm:$0xff] }
 0x4bc   :  { %v3452_v20 = vmul.f32 %v3166_v45, %v16574_v26  ;;  %v3453_v59 = vmul.f32 %v3166_v45, %v16575_v9  ;;  %v3385_v63 = vmul.f32 %v16577_v23, %v16578_v27  ;;  %v4537_v45 = vld [vmem:[%s15148_s1 + $0x538] sm:$0xff]  ;;  %v16589_v47 = vld [vmem:[#allocation175_spill] sm:$0xff] }
 0x4bd   :  { %v5640_v46 = vpack.c.bf16 %v5120_v0, %v5118_v34  ;;  %v5641_v29 = vpack.c.bf16 %v5121_v2, %v5119_v32  ;;  %v4280_v32 = vadd.f32 %v3892_v40, %v3384_v54  ;;  %v4536_v2 = vld [vmem:[%s15148_s1 + $0x530] sm:$0xff] }
 0x4be   :  { %v4281_v0 = vadd.f32 %v3892_v40, %v3385_v63  ;;  %v16587_v40 = vld [vmem:[#allocation177_spill] sm:$0xff] }
 0x4bf   :  { %6253 = vmatprep.subr.bf16.mxu1 %v5641_v29  ;;  %v16581_v29 = vld [vmem:[#allocation180_spill] sm:$0xff]  ;;  %v4792_v14 = vadd.f32 %v4536_v2, %v4280_v32 }
 0x4c0   :  { %v3897_v11 = vpop.permute.xlu1 %3896  ;;  %6254 = vmatpush2.bf16.msra.mxu1 %v5640_v46  ;;  %v3382_v46 = vmul.f32 %v16580_v41, %v16579_v56  ;;  %v3383_v60 = vmul.f32 %v16580_v41, %v16581_v29 }
 0x4c1   :  { %v4282_v3 = vadd.f32 %v3897_v11, %v3386_v36  ;;  %v4283_v52 = vadd.f32 %v3897_v11, %v3387_v44  ;;  %v4793_v36 = vadd.f32 %v4537_v45, %v4281_v0  ;;  %v4535_v44 = vld [vmem:[%s15148_s1 + $0x528] sm:$0xff]  ;;  %v16583_v11 = vld [vmem:[#allocation205_spill] sm:$0xff]  ;;  %v5048_v37 = vmax.f32 %v4792_v14, 0.0  ;;  %v16590_v14 = vld [vmem:[#allocation178_spill] sm:$0xff] }
 0x4c3   :  { %v4794_v7 = vadd.f32 %v4538_v49, %v4282_v3  ;;  %v4795_v50 = vadd.f32 %v4539_v12, %v4283_v52  ;;  %v16582_v12 = vld [vmem:[#allocation243_spill] sm:$0xff]  ;;  %v16584_v52 = vld [vmem:[#allocation240_spill] sm:$0xff] }
 0x4c4   :  { %v4057_v48 = vpop.permute.xlu1 %4056  ;;  %v3446_v3 = vmul.f32 %v16583_v11, %v16582_v12  ;;  %v3447_v22 = vmul.f32 %v16583_v11, %v16584_v52  ;;  %v4530_v11 = vld [vmem:[%s15148_s1 + $0x500] sm:$0xff] }
 0x4c5   :  { %v5050_v58 = vmax.f32 %v4794_v7, 0.0  ;;  %v5051_v10 = vmax.f32 %v4795_v50, 0.0  ;;  %v4346_v62 = vadd.f32 %v4057_v48, %v3450_v17  ;;  %v4347_v57 = vadd.f32 %v4057_v48, %v3451_v8 }
 0x4c6   :  { %v5049_v8 = vmax.f32 %v4793_v36, 0.0  ;;  %v16591_v36 = vld [vmem:[#allocation331_spill] sm:$0xff] }
 0x4c7   :  { %v5606_v25 = vpack.c.bf16 %v5052_v53, %v5050_v58  ;;  %v5607_v16 = vpack.c.bf16 %v5053_v35, %v5051_v10  ;;  %v4858_v39 = vadd.f32 %v4602_v38, %v4346_v62  ;;  %v4859_v31 = vadd.f32 %v4603_v55, %v4347_v57  ;;  %v4598_v35 = vld [vmem:[%s15148_s1 + $0x720] sm:$0xff]  ;;  %v4599_v10 = vld [vmem:[%s15148_s1 + $0x728] sm:$0xff] }
 0x4c8   :  { %v4062_v19 = vpop.permute.xlu1 %4061  ;;  %v16585_v62 = vld [vmem:[#allocation246_spill] sm:$0xff] }
 0x4c9   :  { %v4348_v33 = vadd.f32 %v4062_v19, %v3452_v20  ;;  %v4349_v15 = vadd.f32 %v4062_v19, %v3453_v59  ;;  %6062 = vmatprep.subr.bf16.mxu0 %v5607_v16  ;;  %v5114_v24 = vmax.f32 %v4858_v39, 0.0  ;;  %v5115_v1 = vmax.f32 %v4859_v31, 0.0  ;;  %v16586_v38 = vld [vmem:[#allocation242_spill] sm:$0xff]  ;;  %v4600_v59 = vld [vmem:[%s15148_s1 + $0x730] sm:$0xff]  ;;  %v3882_v31 = vpop.permute.xlu0 %3881 }
 0x4ca   :  { %6063 = vmatpush2.bf16.msra.mxu0 %v5606_v25  ;;  %v4601_v25 = vld [vmem:[%s15148_s1 + $0x738] sm:$0xff] }
 0x4cb   :  { %v4860_v43 = vadd.f32 %v4604_v51, %v4348_v33  ;;  %v4861_v30 = vadd.f32 %v4605_v61, %v4349_v15 }
 0x4cd   :  { %v5116_v28 = vmax.f32 %v4860_v43, 0.0  ;;  %v5117_v5 = vmax.f32 %v4861_v30, 0.0  ;;  %v3156_v34 = vpop.permute.xlu1 %3155  ;;  %v16588_v43 = vld [vmem:[#allocation245_spill] sm:$0xff] }
 0x4ce   :  { %v3448_v57 = vmul.f32 %v3156_v34, %v16585_v62  ;;  %v3449_v55 = vmul.f32 %v3156_v34, %v16586_v38  ;;  %v3380_v30 = vmul.f32 %v16588_v43, %v16587_v40  ;;  %v3381_v23 = vmul.f32 %v16588_v43, %v16589_v47  ;;  %v16596_v40 = vld [vmem:[#allocation241_spill] sm:$0xff] }
 0x4cf   :  { %v5638_v6 = vpack.c.bf16 %v5116_v28, %v5114_v24  ;;  %v5639_v4 = vpack.c.bf16 %v5117_v5, %v5115_v1 }
 0x4d0   :  { %v4276_v32 = vadd.f32 %v3882_v31, %v3380_v30  ;;  %v4277_v0 = vadd.f32 %v3882_v31, %v3381_v23  ;;  %v4595_v31 = vld [vmem:[%s15148_s1 + $0x708] sm:$0xff]  ;;  %v16597_v30 = vld [vmem:[#allocation238_spill] sm:$0xff] }
 0x4d1   :  { %6255 = vmatprep.subr.bf16.mxu1 %v5639_v4  ;;  %v5684_v39 = vpop.f32.mrf.mxu0  ;;  %v4533_v4 = vld [vmem:[%s15148_s1 + $0x518] sm:$0xff] }
 0x4d2   :  { %v3887_v13 = vpop.permute.xlu1 %3886  ;;  %6256 = vmatpush2.bf16.msra.mxu1 %v5638_v6  ;;  %v4532_v6 = vld [vmem:[%s15148_s1 + $0x510] sm:$0xff]  ;;  %v4789_v12 = vadd.f32 %v4533_v4, %v4277_v0 }
 0x4d3   :  { %v4278_v21 = vadd.f32 %v3887_v13, %v3382_v46  ;;  %v4279_v49 = vadd.f32 %v3887_v13, %v3383_v60  ;;  %v5686_v27 = vpop.f32.mrf.mxu0  ;;  %v5877_v63 = vpop.f32.mrf.mxu1 }
 0x4d4   :  { %v14309_v34 = vadd.f32 %v5877_v63, %v5684_v39  ;;  %v5045_v38 = vmax.f32 %v4789_v12, 0.0  ;;  %v4594_v39 = vld [vmem:[%s15148_s1 + $0x700] sm:$0xff]  ;;  %v5167_v63 = vld [vmem:[%s15149_s3 + $0xe8] sm:$0xff] }
 0x4d5   :  { %v4790_v42 = vadd.f32 %v4534_v18, %v4278_v21  ;;  %v4791_v17 = vadd.f32 %v4535_v44, %v4279_v49  ;;  %v5688_v2 = vpop.f32.mrf.mxu0  ;;  %v5879_v45 = vpop.f32.mrf.mxu1  ;;  %v3378_v18 = vmul.f32 %v16591_v36, %v16590_v14  ;;  %v16592_v44 = vld [vmem:[#allocation176_spill] sm:$0xff]  ;;  %v4788_v49 = vadd.f32 %v4532_v6, %v4276_v32 }
 0x4d6   :  { %v4047_v7 = vpop.permute.xlu1 %4046  ;;  %v14317_v46 = vadd.f32 %v5879_v45, %v5686_v27  ;;  %v3379_v13 = vmul.f32 %v16591_v36, %v16592_v44  ;;  %v5159_v27 = vld [vmem:[%s15149_s3 + $0xa8] sm:$0xff] }
 0x4d7   :  { %v5046_v50 = vmax.f32 %v4790_v42, 0.0  ;;  %v5047_v53 = vmax.f32 %v4791_v17, 0.0  ;;  %v4342_v48 = vadd.f32 %v4047_v7, %v3446_v3  ;;  %v4343_v58 = vadd.f32 %v4047_v7, %v3447_v22  ;;  %v14319_v29 = vpop.f32.mrf.mxu0  ;;  %v5881_v60 = vpop.f32.mrf.mxu1  ;;  %v4531_v3 = vld [vmem:[%s15148_s1 + $0x508] sm:$0xff] }
 0x4d8   :  { %v14325_v21 = vadd.f32 %v5881_v60, %v5688_v2  ;;  %v16593_v7 = vld [vmem:[#allocation239_spill] sm:$0xff]  ;;  %v5407_v60 = vpack.c.bf16 %v5167_v63, %v5159_v27 }
 0x4d9   :  { %v5604_v26 = vpack.c.bf16 %v5048_v37, %v5046_v50  ;;  %v5605_v20 = vpack.c.bf16 %v5049_v8, %v5047_v53  ;;  %v4854_v9 = vadd.f32 %v4598_v35, %v4342_v48  ;;  %v4855_v51 = vadd.f32 %v4599_v10, %v4343_v58  ;;  %v14333_v37 = vpop.f32.mrf.mxu1  ;;  %v16594_v50 = vld [vmem:[#allocation96_spill] sm:$0xff]  ;;  %v16595_v35 = vld [vmem:[#allocation235_spill] sm:$0xff] }
 0x4da   :  { %v4052_v16 = vpop.permute.xlu1 %4051  ;;  %v5694_v22 = vpop.f32.mrf.mxu0  ;;  %v3442_v53 = vmul.f32 %v16594_v50, %v16593_v7  ;;  %v3443_v48 = vmul.f32 %v16594_v50, %v16595_v35  ;;  %v5152_v7 = vld [vmem:[%s15149_s3 + $0x70] sm:$0xff]  ;;  %v5175_v50 = vld [vmem:[%s15149_s3 + $0x128] sm:$0xff] }
 0x4db   :  { %v4344_v61 = vadd.f32 %v4052_v16, %v3448_v57  ;;  %v4345_v19 = vadd.f32 %v4052_v16, %v3449_v55  ;;  %6064 = vmatprep.subr.bf16.mxu0 %v5605_v20  ;;  %v5110_v54 = vmax.f32 %v4854_v9, 0.0  ;;  %v5111_v24 = vmax.f32 %v4855_v51, 0.0  ;;  %v5142_v51 = vld [vmem:[%s15149_s3 + $0x20] sm:$0xff]  ;;  %v5199_v63 = vld [vmem:[%s15149_s3 + $0x1e8] sm:$0xff] }
 0x4dc   :  { %6065 = vmatpush2.bf16.msra.mxu0 %v5604_v26  ;;  %v5696_v8 = vpop.f32.mrf.mxu0  ;;  %v5044_v57 = vmax.f32 %v4788_v49, 0.0 }
 0x4dd   :  { %v4856_v33 = vadd.f32 %v4600_v59, %v4344_v61  ;;  %v4857_v15 = vadd.f32 %v4601_v25, %v4345_v19  ;;  %v5150_v61 = vld [vmem:[%s15149_s3 + $0x60] sm:$0xff] }
 0x4de   :  { %v5698_v26 = vpop.f32.mrf.mxu0  ;;  %v5398_v32 = vpack.c.bf16 %v5150_v61, %v5142_v51 }
 0x4df   :  { %v5112_v1 = vmax.f32 %v4856_v33, 0.0  ;;  %v5113_v28 = vmax.f32 %v4857_v15, 0.0  ;;  %v3146_v5 = vpop.permute.xlu1 %3145  ;;  %v5887_v62 = vpop.f32.mrf.mxu1 }
 0x4e0   :  { %v14339_v20 = vadd.f32 %v5887_v62, %v5694_v22  ;;  %v14353_v33 = vpop.f32.mrf.mxu0  ;;  %v3444_v43 = vmul.f32 %v3146_v5, %v16596_v40  ;;  %v3445_v47 = vmul.f32 %v3146_v5, %v16597_v30  ;;  %v5158_v22 = vld [vmem:[%s15149_s3 + $0xa0] sm:$0xff]  ;;  %v5161_v62 = vld [vmem:[%s15149_s3 + $0xb8] sm:$0xff]  ;;  %v5160_v30 = vld [vmem:[%s15149_s3 + $0xb0] sm:$0xff] }
 0x4e1   :  { %v5636_v56 = vpack.c.bf16 %v5112_v1, %v5110_v54  ;;  %v5637_v41 = vpack.c.bf16 %v5113_v28, %v5111_v24  ;;  %v5889_v19 = vpop.f32.mrf.mxu1  ;;  %v4596_v1 = vld [vmem:[%s15148_s1 + $0x710] sm:$0xff]  ;;  %v4597_v28 = vld [vmem:[%s15148_s1 + $0x718] sm:$0xff]  ;;  %v5182_v40 = vld [vmem:[%s15149_s3 + $0x160] sm:$0xff] }
 0x4e2   :  { %v14355_v15 = vadd.f32 %v5889_v19, %v5696_v8  ;;  %v5144_v8 = vld [vmem:[%s15149_s3 + $0x30] sm:$0xff] }
 0x4e3   :  { %6257 = vmatprep.subr.bf16.mxu1 %v5637_v41  ;;  %v5891_v24 = vpop.f32.mrf.mxu1 }
 0x4e4   :  { %v3877_v52 = vpop.permute.xlu1 %3876  ;;  %6258 = vmatpush2.bf16.msra.mxu1 %v5636_v56  ;;  %v14371_v2 = vadd.f32 %v5891_v24, %v5698_v26  ;;  %v5177_v24 = vld [vmem:[%s15149_s3 + $0x138] sm:$0xff] }
 0x4e5   :  { %v4274_v42 = vadd.f32 %v3877_v52, %v3378_v18  ;;  %v4275_v17 = vadd.f32 %v3877_v52, %v3379_v13  ;;  %v14373_v41 = vpop.f32.mrf.mxu1 }
 0x4e7   :  { %v4786_v58 = vadd.f32 %v4530_v11, %v4274_v42  ;;  %v4787_v10 = vadd.f32 %v4531_v3, %v4275_v17  ;;  %v5166_v42 = vld [vmem:[%s15149_s3 + $0xe0] sm:$0xff] }
 0x4e8   :  { %v4037_v55 = vpop.permute.xlu1 %4036 }
 0x4e9   :  { %v5042_v9 = vmax.f32 %v4786_v58, 0.0  ;;  %v5043_v59 = vmax.f32 %v4787_v10, 0.0  ;;  %v4338_v25 = vadd.f32 %v4037_v55, %v3442_v53  ;;  %v4339_v16 = vadd.f32 %v4037_v55, %v3443_v48  ;;  %v5183_v10 = vld [vmem:[%s15149_s3 + $0x168] sm:$0xff] }
 0x4eb   :  { %v5602_v23 = vpack.c.bf16 %v5044_v57, %v5042_v9  ;;  %v5603_v54 = vpack.c.bf16 %v5045_v38, %v5043_v59  ;;  %v4850_v45 = vadd.f32 %v4594_v39, %v4338_v25  ;;  %v4851_v6 = vadd.f32 %v4595_v31, %v4339_v16  ;;  %v5169_v57 = vld [vmem:[%s15149_s3 + $0xf8] sm:$0xff]  ;;  %v5174_v31 = vld [vmem:[%s15149_s3 + $0x120] sm:$0xff] }
 0x4ec   :  { %v4042_v5 = vpop.permute.xlu1 %4041  ;;  %v5704_v0 = vpop.f32.mrf.mxu0  ;;  %v5406_v9 = vpack.c.bf16 %v5166_v42, %v5158_v22  ;;  %v5400_v59 = vpack.c.bf16 %v5152_v7, %v5144_v8  ;;  %v5415_v16 = vpack.c.bf16 %v5183_v10, %v5175_v50  ;;  %v5409_v51 = vpack.c.bf16 %v5169_v57, %v5161_v62  ;;  %v5193_v8 = vld [vmem:[%s15149_s3 + $0x1b8] sm:$0xff] }
 0x4ed   :  { %v4340_v4 = vadd.f32 %v4042_v5, %v3444_v43  ;;  %v4341_v56 = vadd.f32 %v4042_v5, %v3445_v47  ;;  %6066 = vmatprep.subr.bf16.mxu0 %v5603_v54  ;;  %v5106_v12 = vmax.f32 %v4850_v45, 0.0  ;;  %v5107_v11 = vmax.f32 %v4851_v6, 0.0  ;;  %v5168_v47 = vld [vmem:[%s15149_s3 + $0xf0] sm:$0xff]  ;;  %v5201_v7 = vld [vmem:[%s15149_s3 + $0x1f8] sm:$0xff] }
 0x4ee   :  { %6067 = vmatpush2.bf16.msra.mxu0 %v5602_v23  ;;  %v5706_v14 = vpop.f32.mrf.mxu0  ;;  %v5191_v23 = vld [vmem:[%s15149_s3 + $0x1a8] sm:$0xff]  ;;  %v5408_v45 = vpack.c.bf16 %v5168_v47, %v5160_v30  ;;  %v5200_v30 = vld [vmem:[%s15149_s3 + $0x1f0] sm:$0xff] }
 0x4ef   :  { %v4852_v36 = vadd.f32 %v4596_v1, %v4340_v4  ;;  %v4853_v18 = vadd.f32 %v4597_v28, %v4341_v56  ;;  %v5185_v1 = vld [vmem:[%s15149_s3 + $0x178] sm:$0xff]  ;;  %v5423_v4 = vpack.c.bf16 %v5199_v63, %v5191_v23  ;;  %v5223_v47 = vld [vmem:[%s15149_s3 + $0x2a8] sm:$0xff] }
 0x4f0   :  { %v5897_v44 = vpop.f32.mrf.mxu1  ;;  %v5708_v13 = vpop.f32.mrf.mxu0  ;;  %v5417_v56 = vpack.c.bf16 %v5185_v1, %v5177_v24  ;;  %v5231_v63 = vld [vmem:[%s15149_s3 + $0x2e8] sm:$0xff]  ;;  %v5209_v24 = vld [vmem:[%s15149_s3 + $0x238] sm:$0xff] }
 0x4f1   :  { %v14375_v49 = vadd.f32 %v5897_v44, %v5704_v0  ;;  %v5108_v3 = vmax.f32 %v4852_v36, 0.0  ;;  %v5109_v52 = vmax.f32 %v4853_v18, 0.0  ;;  %6069 = vmatmul.mubr.bf16.vlgmr.msra.gmra.mxu0 %v5398_v32  ;;  %v5414_v0 = vpack.c.bf16 %v5182_v40, %v5174_v31  ;;  %v5190_v44 = vld [vmem:[%s15149_s3 + $0x1a0] sm:$0xff]  ;;  %v5192_v40 = vld [vmem:[%s15149_s3 + $0x1b0] sm:$0xff]  ;;  %v5217_v1 = vld [vmem:[%s15149_s3 + $0x278] sm:$0xff] }
 0x4f2   :  { %v5899_v17 = vpop.f32.mrf.mxu1  ;;  %6078 = vmatprep.mubr.bf16.mxu0 %v5407_v60  ;;  %v14392_v53 = vpop.f32.mrf.mxu0 }
 0x4f3   :  { %v14394_v35 = vadd.f32 %v5899_v17, %v5706_v14  ;;  %v5634_v48 = vpack.c.bf16 %v5108_v3, %v5106_v12  ;;  %v5635_v58 = vpack.c.bf16 %v5109_v52, %v5107_v11  ;;  %v5176_v11 = vld [vmem:[%s15149_s3 + $0x130] sm:$0xff]  ;;  %v5207_v52 = vld [vmem:[%s15149_s3 + $0x228] sm:$0xff] }
 0x4f4   :  { %v5901_v38 = vpop.f32.mrf.mxu1  ;;  %v5184_v3 = vld [vmem:[%s15149_s3 + $0x170] sm:$0xff]  ;;  %v5215_v17 = vld [vmem:[%s15149_s3 + $0x268] sm:$0xff] }
 0x4f5   :  { %v5714_v55 = vpop.f32.mrf.mxu0  ;;  %v14405_v26 = vadd.f32 %v5901_v38, %v5708_v13  ;;  %6259 = vmatprep.subr.bf16.mxu1 %v5635_v58  ;;  %v5198_v13 = vld [vmem:[%s15149_s3 + $0x1e0] sm:$0xff]  ;;  %v5416_v62 = vpack.c.bf16 %v5184_v3, %v5176_v11  ;;  %v5431_v38 = vpack.c.bf16 %v5215_v17, %v5207_v52  ;;  %v5208_v17 = vld [vmem:[%s15149_s3 + $0x230] sm:$0xff] }
 0x4f6   :  { %v14407_v25 = vpop.f32.mrf.mxu1  ;;  %6260 = vmatpush2.bf16.msra.mxu1 %v5634_v48  ;;  %v5422_v10 = vpack.c.bf16 %v5198_v13, %v5190_v44  ;;  %v5222_v52 = vld [vmem:[%s15149_s3 + $0x2a0] sm:$0xff] }
 0x4f7   :  { %v5716_v61 = vpop.f32.mrf.mxu0 }
 0x4f8   :  { %v5907_v39 = vpop.f32.mrf.mxu1 }
 0x4f9   :  { %v5718_v19 = vpop.f32.mrf.mxu0  ;;  %6079 = vmatmul.mubr.bf16.gmra.mxu0 %v5406_v9  ;;  %6262 = vmatmul.mubr.bf16.vlgmr.msra.gmra.mxu1 %v5400_v59  ;;  %v14415_v43 = vadd.f32 %v5907_v39, %v5714_v55  ;;  %v5425_v55 = vpack.c.bf16 %v5201_v7, %v5193_v8  ;;  %v5214_v39 = vld [vmem:[%s15149_s3 + $0x260] sm:$0xff]  ;;  %v5216_v8 = vld [vmem:[%s15149_s3 + $0x270] sm:$0xff]  ;;  %v5239_v7 = vld [vmem:[%s15149_s3 + $0x328] sm:$0xff] }
 0x4fa   :  { %6088 = vmatprep.mubr.bf16.mxu0 %v5415_v16  ;;  %6271 = vmatprep.mubr.bf16.mxu1 %v5409_v51  ;;  %v5909_v27 = vpop.f32.mrf.mxu1 }
 0x4fb   :  { %v14426_v54 = vpop.f32.mrf.mxu0  ;;  %v14437_v28 = vadd.f32 %v5909_v27, %v5716_v61 }
 0x4fc   :  { %v5911_v32 = vpop.f32.mrf.mxu1 }
 0x4fd   :  { %v5724_v5 = vpop.f32.mrf.mxu0  ;;  %v14439_v6 = vadd.f32 %v5911_v32, %v5718_v19  ;;  %v5206_v19 = vld [vmem:[%s15149_s3 + $0x220] sm:$0xff] }
 0x4fe   :  { %v14441_v14 = vpop.f32.mrf.mxu1 }
 0x4ff   :  { %v5726_v60 = vpop.f32.mrf.mxu0 }
 0x500   :  { %v5917_v18 = vpop.f32.mrf.mxu1 }
 0x501   :  { %v5728_v36 = vpop.f32.mrf.mxu0  ;;  %6089 = vmatmul.mubr.bf16.gmra.mxu0 %v5414_v0  ;;  %6272 = vmatmul.mubr.bf16.gmra.mxu1 %v5408_v45  ;;  %v14449_v12 = vadd.f32 %v5917_v18, %v5724_v5  ;;  %v5430_v45 = vpack.c.bf16 %v5214_v39, %v5206_v19 }
 0x502   :  { %6098 = vmatprep.mubr.bf16.mxu0 %v5423_v4  ;;  %6281 = vmatprep.mubr.bf16.mxu1 %v5417_v56  ;;  %v5919_v42 = vpop.f32.mrf.mxu1  ;;  %v5424_v4 = vpack.c.bf16 %v5200_v30, %v5192_v40 }
 0x503   :  { %v5730_v22 = vpop.f32.mrf.mxu0  ;;  %v14469_v50 = vadd.f32 %v5919_v42, %v5726_v60  ;;  %v5439_v60 = vpack.c.bf16 %v5231_v63, %v5223_v47 }
 0x504   :  { %v5921_v58 = vpop.f32.mrf.mxu1 }
 0x505   :  { %v5734_v48 = vpop.f32.mrf.mxu0  ;;  %v14471_v57 = vadd.f32 %v5921_v58, %v5728_v36  ;;  %v5433_v36 = vpack.c.bf16 %v5217_v1, %v5209_v24  ;;  %v5238_v24 = vld [vmem:[%s15149_s3 + $0x320] sm:$0xff] }
 0x506   :  { %v5923_v59 = vpop.f32.mrf.mxu1  ;;  %v5246_v1 = vld [vmem:[%s15149_s3 + $0x360] sm:$0xff] }
 0x507   :  { %v5736_v9 = vpop.f32.mrf.mxu0  ;;  %v14473_v16 = vadd.f32 %v5923_v59, %v5730_v22  ;;  %v5230_v22 = vld [vmem:[%s15149_s3 + $0x2e0] sm:$0xff] }
 0x508   :  { %v5927_v61 = vpop.f32.mrf.mxu1 }
 0x509   :  { %v5738_v51 = vpop.f32.mrf.mxu0  ;;  %6099 = vmatmul.mubr.bf16.gmra.mxu0 %v5422_v10  ;;  %6282 = vmatmul.mubr.bf16.gmra.mxu1 %v5416_v62  ;;  %v14481_v31 = vadd.f32 %v5927_v61, %v5734_v48  ;;  %v5247_v10 = vld [vmem:[%s15149_s3 + $0x368] sm:$0xff]  ;;  %v5225_v62 = vld [vmem:[%s15149_s3 + $0x2b8] sm:$0xff]  ;;  %v5432_v61 = vpack.c.bf16 %v5216_v8, %v5208_v17  ;;  %v5446_v17 = vpack.c.bf16 %v5246_v1, %v5238_v24 }
 0x50a   :  { %6108 = vmatprep.mubr.bf16.mxu0 %v5431_v38  ;;  %6291 = vmatprep.mubr.bf16.mxu1 %v5425_v55  ;;  %v5929_v27 = vpop.f32.mrf.mxu1  ;;  %v5233_v38 = vld [vmem:[%s15149_s3 + $0x2f8] sm:$0xff]  ;;  %v5447_v39 = vpack.c.bf16 %v5247_v10, %v5239_v7  ;;  %v5279_v24 = vld [vmem:[%s15149_s3 + $0x468] sm:$0xff] }
 0x50b   :  { %v5740_v23 = vpop.f32.mrf.mxu0  ;;  %v14501_v5 = vadd.f32 %v5929_v27, %v5736_v9  ;;  %v5441_v40 = vpack.c.bf16 %v5233_v38, %v5225_v62  ;;  %v5257_v1 = vld [vmem:[%s15149_s3 + $0x3b8] sm:$0xff] }
 0x50c   :  { %v5931_v0 = vpop.f32.mrf.mxu1 }
 0x50d   :  { %v5744_v32 = vpop.f32.mrf.mxu0  ;;  %v14503_v56 = vadd.f32 %v5931_v0, %v5738_v51  ;;  %v5438_v51 = vpack.c.bf16 %v5230_v22, %v5222_v52  ;;  %v5224_v0 = vld [vmem:[%s15149_s3 + $0x2b0] sm:$0xff] }
 0x50e   :  { %v5933_v44 = vpop.f32.mrf.mxu1 }
 0x50f   :  { %v5746_v18 = vpop.f32.mrf.mxu0  ;;  %v14505_v13 = vadd.f32 %v5933_v44, %v5740_v23  ;;  %v5241_v44 = vld [vmem:[%s15149_s3 + $0x338] sm:$0xff] }
 0x510   :  { %v5937_v3 = vpop.f32.mrf.mxu1 }
 0x511   :  { %v5748_v11 = vpop.f32.mrf.mxu0  ;;  %6109 = vmatmul.mubr.bf16.gmra.mxu0 %v5430_v45  ;;  %6292 = vmatmul.mubr.bf16.gmra.mxu1 %v5424_v4  ;;  %v14513_v42 = vadd.f32 %v5937_v3, %v5744_v32  ;;  %v5232_v45 = vld [vmem:[%s15149_s3 + $0x2f0] sm:$0xff]  ;;  %v5255_v4 = vld [vmem:[%s15149_s3 + $0x3a8] sm:$0xff] }
 0x512   :  { %6118 = vmatprep.mubr.bf16.mxu0 %v5439_v60  ;;  %6301 = vmatprep.mubr.bf16.mxu1 %v5433_v36  ;;  %v5939_v58 = vpop.f32.mrf.mxu1  ;;  %v5440_v8 = vpack.c.bf16 %v5232_v45, %v5224_v0  ;;  %v5265_v0 = vld [vmem:[%s15149_s3 + $0x3f8] sm:$0xff] }
 0x513   :  { %v5750_v48 = vpop.f32.mrf.mxu0  ;;  %v14533_v55 = vadd.f32 %v5939_v58, %v5746_v18  ;;  %v5263_v18 = vld [vmem:[%s15149_s3 + $0x3e8] sm:$0xff] }
 0x514   :  { %v5941_v59 = vpop.f32.mrf.mxu1 }
 0x515   :  { %v5754_v9 = vpop.f32.mrf.mxu0  ;;  %v14535_v19 = vadd.f32 %v5941_v59, %v5748_v11  ;;  %v5249_v11 = vld [vmem:[%s15149_s3 + $0x378] sm:$0xff] }
 0x516   :  { %v5943_v47 = vpop.f32.mrf.mxu1  ;;  %v5449_v58 = vpack.c.bf16 %v5249_v11, %v5241_v44 }
 0x517   :  { %v5756_v30 = vpop.f32.mrf.mxu0  ;;  %v14537_v23 = vadd.f32 %v5943_v47, %v5750_v48  ;;  %v5455_v48 = vpack.c.bf16 %v5263_v18, %v5255_v4  ;;  %v5271_v47 = vld [vmem:[%s15149_s3 + $0x428] sm:$0xff] }
 0x518   :  { %v5947_v63 = vpop.f32.mrf.mxu1  ;;  %v5463_v11 = vpack.c.bf16 %v5279_v24, %v5271_v47  ;;  %v5295_v47 = vld [vmem:[%s15149_s3 + $0x4e8] sm:$0xff] }
 0x519   :  { %v5758_v27 = vpop.f32.mrf.mxu0  ;;  %6119 = vmatmul.mubr.bf16.gmra.mxu0 %v5438_v51  ;;  %6302 = vmatmul.mubr.bf16.gmra.mxu1 %v5432_v61  ;;  %v14545_v32 = vadd.f32 %v5947_v63, %v5754_v9  ;;  %v5254_v51 = vld [vmem:[%s15149_s3 + $0x3a0] sm:$0xff] }
 0x51a   :  { %6128 = vmatprep.mubr.bf16.mxu0 %v5447_v39  ;;  %6311 = vmatprep.mubr.bf16.mxu1 %v5441_v40  ;;  %v5949_v36 = vpop.f32.mrf.mxu1  ;;  %v5262_v61 = vld [vmem:[%s15149_s3 + $0x3e0] sm:$0xff]  ;;  %v5240_v40 = vld [vmem:[%s15149_s3 + $0x330] sm:$0xff] }
 0x51b   :  { %v5760_v60 = vpop.f32.mrf.mxu0  ;;  %v14565_v3 = vadd.f32 %v5949_v36, %v5756_v30  ;;  %v5248_v30 = vld [vmem:[%s15149_s3 + $0x370] sm:$0xff]  ;;  %v5454_v36 = vpack.c.bf16 %v5262_v61, %v5254_v51  ;;  %v5287_v61 = vld [vmem:[%s15149_s3 + $0x4a8] sm:$0xff] }
 0x51c   :  { %v5951_v22 = vpop.f32.mrf.mxu1  ;;  %v5448_v18 = vpack.c.bf16 %v5248_v30, %v5240_v40  ;;  %v5264_v51 = vld [vmem:[%s15149_s3 + $0x3f0] sm:$0xff] }
 0x51d   :  { %v5764_v52 = vpop.f32.mrf.mxu0  ;;  %v14567_v7 = vadd.f32 %v5951_v22, %v5758_v27 }
 0x51e   :  { %v5953_v62 = vpop.f32.mrf.mxu1 }
 0x51f   :  { %v5766_v10 = vpop.f32.mrf.mxu0  ;;  %v14569_v38 = vadd.f32 %v5953_v62, %v5760_v60  ;;  %v5278_v62 = vld [vmem:[%s15149_s3 + $0x460] sm:$0xff] }
 0x520   :  { %v5957_v59 = vpop.f32.mrf.mxu1 }
 0x521   :  { %v5768_v9 = vpop.f32.mrf.mxu0  ;;  %6129 = vmatmul.mubr.bf16.gmra.mxu0 %v5446_v17  ;;  %6312 = vmatmul.mubr.bf16.gmra.mxu1 %v5440_v8  ;;  %v14577_v39 = vadd.f32 %v5957_v59, %v5764_v52  ;;  %v5457_v52 = vpack.c.bf16 %v5265_v0, %v5257_v1  ;;  %v5256_v59 = vld [vmem:[%s15149_s3 + $0x3b0] sm:$0xff] }
 0x522   :  { %6138 = vmatprep.mubr.bf16.mxu0 %v5455_v48  ;;  %6321 = vmatprep.mubr.bf16.mxu1 %v5449_v58  ;;  %v5959_v63 = vpop.f32.mrf.mxu1 }
 0x523   :  { %v5770_v27 = vpop.f32.mrf.mxu0  ;;  %v14597_v45 = vadd.f32 %v5959_v63, %v5766_v10  ;;  %v5270_v10 = vld [vmem:[%s15149_s3 + $0x420] sm:$0xff]  ;;  %v5281_v63 = vld [vmem:[%s15149_s3 + $0x478] sm:$0xff] }
 0x524   :  { %v5961_v60 = vpop.f32.mrf.mxu1 }
 0x525   :  { %v5774_v4 = vpop.f32.mrf.mxu0  ;;  %v14599_v44 = vadd.f32 %v5961_v60, %v5768_v9  ;;  %v5456_v60 = vpack.c.bf16 %v5264_v51, %v5256_v59  ;;  %v5280_v59 = vld [vmem:[%s15149_s3 + $0x470] sm:$0xff]  ;;  %v5303_v51 = vld [vmem:[%s15149_s3 + $0x528] sm:$0xff] }
 0x526   :  { %v5963_v17 = vpop.f32.mrf.mxu1 }
 0x527   :  { %v5776_v22 = vpop.f32.mrf.mxu0  ;;  %v14601_v8 = vadd.f32 %v5963_v17, %v5770_v27  ;;  %v5273_v27 = vld [vmem:[%s15149_s3 + $0x438] sm:$0xff] }
 0x528   :  { %v5967_v58 = vpop.f32.mrf.mxu1 }
 0x529   :  { %16598 = vst [vmem:[#allocation313_spill] sm:$0xff] %v14601_v8  ;;  %v5778_v48 = vpop.f32.mrf.mxu0  ;;  %6139 = vmatmul.mubr.bf16.gmra.mxu0 %v5454_v36  ;;  %6322 = vmatmul.mubr.bf16.gmra.mxu1 %v5448_v18  ;;  %v14609_v9 = vadd.f32 %v5967_v58, %v5774_v4  ;;  %v5462_v4 = vpack.c.bf16 %v5278_v62, %v5270_v10  ;;  %v5294_v10 = vld [vmem:[%s15149_s3 + $0x4e0] sm:$0xff]  ;;  %v5272_v62 = vld [vmem:[%s15149_s3 + $0x430] sm:$0xff] }
 0x52a   :  { %6148 = vmatprep.mubr.bf16.mxu0 %v5463_v11  ;;  %6331 = vmatprep.mubr.bf16.mxu1 %v5457_v52  ;;  %v5969_v30 = vpop.f32.mrf.mxu1  ;;  %v5471_v18 = vpack.c.bf16 %v5295_v47, %v5287_v61  ;;  %v5465_v11 = vpack.c.bf16 %v5281_v63, %v5273_v27  ;;  %v5297_v47 = vld [vmem:[%s15149_s3 + $0x4f8] sm:$0xff] }
 0x52b   :  { %16599 = vst [vmem:[#allocation91_spill] sm:$0xff] %v14609_v9  ;;  %v5780_v40 = vpop.f32.mrf.mxu0  ;;  %v14629_v24 = vadd.f32 %v5969_v30, %v5776_v22  ;;  %v5286_v22 = vld [vmem:[%s15149_s3 + $0x4a0] sm:$0xff]  ;;  %v5289_v30 = vld [vmem:[%s15149_s3 + $0x4b8] sm:$0xff] }
 0x52c   :  { %v5971_v0 = vpop.f32.mrf.mxu1 }
 0x52d   :  { %v5784_v1 = vpop.f32.mrf.mxu0  ;;  %v14631_v36 = vadd.f32 %v5971_v0, %v5778_v48  ;;  %v5470_v0 = vpack.c.bf16 %v5294_v10, %v5286_v22  ;;  %v5310_v22 = vld [vmem:[%s15149_s3 + $0x560] sm:$0xff] }
 0x52e   :  { %v5973_v17 = vpop.f32.mrf.mxu1 }
 0x52f   :  { %16600 = vst [vmem:[#allocation114_spill] sm:$0xff] %v14631_v36  ;;  %v5786_v52 = vpop.f32.mrf.mxu0  ;;  %v14633_v58 = vadd.f32 %v5973_v17, %v5780_v40 }
 0x530   :  { %v5977_v8 = vpop.f32.mrf.mxu1 }
 0x531   :  { %16601 = vst [vmem:[#allocation107_spill] sm:$0xff] %v14633_v58  ;;  %v5788_v9 = vpop.f32.mrf.mxu0  ;;  %6149 = vmatmul.mubr.bf16.gmra.mxu0 %v5462_v4  ;;  %6332 = vmatmul.mubr.bf16.gmra.mxu1 %v5456_v60  ;;  %v14641_v48 = vadd.f32 %v5977_v8, %v5784_v1  ;;  %v5311_v8 = vld [vmem:[%s15149_s3 + $0x568] sm:$0xff]  ;;  %v5464_v4 = vpack.c.bf16 %v5280_v59, %v5272_v62 }
 0x532   :  { %6158 = vmatprep.mubr.bf16.mxu0 %v5471_v18  ;;  %6341 = vmatprep.mubr.bf16.mxu1 %v5465_v11  ;;  %v5979_v40 = vpop.f32.mrf.mxu1  ;;  %v5479_v18 = vpack.c.bf16 %v5311_v8, %v5303_v51  ;;  %v5473_v11 = vpack.c.bf16 %v5297_v47, %v5289_v30  ;;  %v5319_v62 = vld [vmem:[%s15149_s3 + $0x5a8] sm:$0xff]  ;;  %v5313_v8 = vld [vmem:[%s15149_s3 + $0x578] sm:$0xff] }
 0x533   :  { %16602 = vst [vmem:[#allocation277_spill] sm:$0xff] %v14641_v48  ;;  %v5790_v61 = vpop.f32.mrf.mxu0  ;;  %v14661_v27 = vadd.f32 %v5979_v40, %v5786_v52  ;;  %v5302_v52 = vld [vmem:[%s15149_s3 + $0x520] sm:$0xff]  ;;  %v5305_v40 = vld [vmem:[%s15149_s3 + $0x538] sm:$0xff] }
 0x534   :  { %v5981_v1 = vpop.f32.mrf.mxu1 }
 0x535   :  { %16603 = vst [vmem:[#allocation92_spill] sm:$0xff] %v14661_v27  ;;  %v5794_v63 = vpop.f32.mrf.mxu0  ;;  %v14663_v60 = vadd.f32 %v5981_v1, %v5788_v9  ;;  %v5288_v9 = vld [vmem:[%s15149_s3 + $0x4b0] sm:$0xff] }
 0x536   :  { %v5983_v48 = vpop.f32.mrf.mxu1 }
 0x537   :  { %16604 = vst [vmem:[#allocation89_spill] sm:$0xff] %v14663_v60  ;;  %v5796_v17 = vpop.f32.mrf.mxu0  ;;  %v14665_v58 = vadd.f32 %v5983_v48, %v5790_v61  ;;  %v5296_v48 = vld [vmem:[%s15149_s3 + $0x4f0] sm:$0xff]  ;;  %v5327_v61 = vld [vmem:[%s15149_s3 + $0x5e8] sm:$0xff] }
 0x538   :  { %v5987_v10 = vpop.f32.mrf.mxu1 }
 0x539   :  { %16605 = vst [vmem:[#allocation279_spill] sm:$0xff] %v14665_v58  ;;  %v5798_v36 = vpop.f32.mrf.mxu0  ;;  %6159 = vmatmul.mubr.bf16.gmra.mxu0 %v5470_v0  ;;  %6342 = vmatmul.mubr.bf16.gmra.mxu1 %v5464_v4  ;;  %v14682_v59 = vadd.f32 %v5987_v10, %v5794_v63  ;;  %v5478_v0 = vpack.c.bf16 %v5310_v22, %v5302_v52  ;;  %v5326_v52 = vld [vmem:[%s15149_s3 + $0x5e0] sm:$0xff] }
 0x53a   :  { %6168 = vmatprep.mubr.bf16.mxu0 %v5479_v18  ;;  %6351 = vmatprep.mubr.bf16.mxu1 %v5473_v11  ;;  %v5989_v30 = vpop.f32.mrf.mxu1  ;;  %v5472_v63 = vpack.c.bf16 %v5296_v48, %v5288_v9  ;;  %v5487_v18 = vpack.c.bf16 %v5327_v61, %v5319_v62  ;;  %v5481_v11 = vpack.c.bf16 %v5313_v8, %v5305_v40  ;;  %v5335_v9 = vld [vmem:[%s15149_s3 + $0x628] sm:$0xff]  ;;  %v5321_v61 = vld [vmem:[%s15149_s3 + $0x5b8] sm:$0xff] }
 0x53b   :  { %16606 = vst [vmem:[#allocation14_spill] sm:$0xff] %v14682_v59  ;;  %v5800_v51 = vpop.f32.mrf.mxu0  ;;  %v14693_v47 = vadd.f32 %v5989_v30, %v5796_v17  ;;  %v5318_v17 = vld [vmem:[%s15149_s3 + $0x5a0] sm:$0xff]  ;;  %v5329_v40 = vld [vmem:[%s15149_s3 + $0x5f8] sm:$0xff] }
 0x53c   :  { %v5991_v4 = vpop.f32.mrf.mxu1 }
 0x53d   :  { %16607 = vst [vmem:[#allocation41_spill] sm:$0xff] %v14693_v47  ;;  %v5804_v1 = vpop.f32.mrf.mxu0  ;;  %v14695_v10 = vadd.f32 %v5991_v4, %v5798_v36  ;;  %v5304_v36 = vld [vmem:[%s15149_s3 + $0x530] sm:$0xff] }
 0x53e   :  { %v5993_v58 = vpop.f32.mrf.mxu1 }
 0x53f   :  { %16608 = vst [vmem:[#allocation281_spill] sm:$0xff] %v14695_v10  ;;  %v5806_v59 = vpop.f32.mrf.mxu0  ;;  %v14697_v60 = vadd.f32 %v5993_v58, %v5800_v51  ;;  %v5312_v58 = vld [vmem:[%s15149_s3 + $0x570] sm:$0xff]  ;;  %v5343_v51 = vld [vmem:[%s15149_s3 + $0x668] sm:$0xff] }
 0x540   :  { %v5997_v22 = vpop.f32.mrf.mxu1 }
 0x541   :  { %16609 = vst [vmem:[#allocation49_spill] sm:$0xff] %v14697_v60  ;;  %v5808_v27 = vpop.f32.mrf.mxu0  ;;  %6169 = vmatmul.mubr.bf16.gmra.mxu0 %v5478_v0  ;;  %6352 = vmatmul.mubr.bf16.gmra.mxu1 %v5472_v63  ;;  %v14714_v48 = vadd.f32 %v5997_v22, %v5804_v1  ;;  %v5486_v63 = vpack.c.bf16 %v5326_v52, %v5318_v17  ;;  %v5342_v17 = vld [vmem:[%s15149_s3 + $0x660] sm:$0xff] }
 0x542   :  { %6178 = vmatprep.mubr.bf16.mxu0 %v5487_v18  ;;  %6361 = vmatprep.mubr.bf16.mxu1 %v5481_v11  ;;  %v5999_v8 = vpop.f32.mrf.mxu1  ;;  %v5480_v1 = vpack.c.bf16 %v5312_v58, %v5304_v36  ;;  %v5495_v18 = vpack.c.bf16 %v5343_v51, %v5335_v9  ;;  %v5489_v11 = vpack.c.bf16 %v5329_v40, %v5321_v61  ;;  %v5351_v36 = vld [vmem:[%s15149_s3 + $0x6a8] sm:$0xff]  ;;  %v5337_v51 = vld [vmem:[%s15149_s3 + $0x638] sm:$0xff] }
 0x543   :  { %16610 = vst [vmem:[#allocation90_spill] sm:$0xff] %v14714_v48  ;;  %v5810_v62 = vpop.f32.mrf.mxu0  ;;  %v14725_v30 = vadd.f32 %v5999_v8, %v5806_v59  ;;  %v5334_v59 = vld [vmem:[%s15149_s3 + $0x620] sm:$0xff]  ;;  %v5345_v61 = vld [vmem:[%s15149_s3 + $0x678] sm:$0xff] }
 0x544   :  { %v6001_v4 = vpop.f32.mrf.mxu1 }
 0x545   :  { %16611 = vst [vmem:[#allocation308_spill] sm:$0xff] %v14725_v30  ;;  %v5814_v0 = vpop.f32.mrf.mxu0  ;;  %v14727_v22 = vadd.f32 %v6001_v4, %v5808_v27  ;;  %v5320_v27 = vld [vmem:[%s15149_s3 + $0x5b0] sm:$0xff] }
 0x546   :  { %v6003_v60 = vpop.f32.mrf.mxu1 }
 0x547   :  { %16612 = vst [vmem:[#allocation87_spill] sm:$0xff] %v14727_v22  ;;  %v5816_v48 = vpop.f32.mrf.mxu0  ;;  %v14729_v10 = vadd.f32 %v6003_v60, %v5810_v62  ;;  %v5328_v60 = vld [vmem:[%s15149_s3 + $0x5f0] sm:$0xff]  ;;  %v5359_v62 = vld [vmem:[%s15149_s3 + $0x6e8] sm:$0xff] }
 0x548   :  { %v6007_v52 = vpop.f32.mrf.mxu1 }
 0x549   :  { %16613 = vst [vmem:[#allocation336_spill] sm:$0xff] %v14729_v10  ;;  %v5818_v47 = vpop.f32.mrf.mxu0  ;;  %6179 = vmatmul.mubr.bf16.gmra.mxu0 %v5486_v63  ;;  %6362 = vmatmul.mubr.bf16.gmra.mxu1 %v5480_v1  ;;  %v14746_v58 = vadd.f32 %v6007_v52, %v5814_v0  ;;  %v5494_v1 = vpack.c.bf16 %v5342_v17, %v5334_v59  ;;  %v5358_v59 = vld [vmem:[%s15149_s3 + $0x6e0] sm:$0xff] }
 0x54a   :  { %6188 = vmatprep.mubr.bf16.mxu0 %v5495_v18  ;;  %6371 = vmatprep.mubr.bf16.mxu1 %v5489_v11  ;;  %v6009_v40 = vpop.f32.mrf.mxu1  ;;  %v5488_v0 = vpack.c.bf16 %v5328_v60, %v5320_v27  ;;  %v5503_v18 = vpack.c.bf16 %v5359_v62, %v5351_v36  ;;  %v5497_v11 = vpack.c.bf16 %v5345_v61, %v5337_v51  ;;  %v5367_v27 = vld [vmem:[%s15149_s3 + $0x728] sm:$0xff]  ;;  %v5353_v62 = vld [vmem:[%s15149_s3 + $0x6b8] sm:$0xff] }
 0x54b   :  { %16614 = vst [vmem:[#allocation112_spill] sm:$0xff] %v14746_v58  ;;  %v5820_v9 = vpop.f32.mrf.mxu0  ;;  %v14757_v8 = vadd.f32 %v6009_v40, %v5816_v48  ;;  %v5350_v48 = vld [vmem:[%s15149_s3 + $0x6a0] sm:$0xff]  ;;  %v5361_v51 = vld [vmem:[%s15149_s3 + $0x6f8] sm:$0xff] }
 0x54c   :  { %v6011_v4 = vpop.f32.mrf.mxu1 }
 0x54d   :  { %v5824_v63 = vpop.f32.mrf.mxu0  ;;  %v14759_v52 = vadd.f32 %v6011_v4, %v5818_v47  ;;  %v5336_v47 = vld [vmem:[%s15149_s3 + $0x630] sm:$0xff] }
 0x54e   :  { %v6013_v10 = vpop.f32.mrf.mxu1 }
 0x54f   :  { %16615 = vst [vmem:[#allocation319_spill] sm:$0xff] %v14759_v52  ;;  %v5826_v58 = vpop.f32.mrf.mxu0  ;;  %v14761_v22 = vadd.f32 %v6013_v10, %v5820_v9  ;;  %v5344_v10 = vld [vmem:[%s15149_s3 + $0x670] sm:$0xff]  ;;  %v5375_v9 = vld [vmem:[%s15149_s3 + $0x768] sm:$0xff]  ;;  %v5366_v52 = vld [vmem:[%s15149_s3 + $0x720] sm:$0xff] }
 0x550   :  { %v6017_v17 = vpop.f32.mrf.mxu1 }
 0x551   :  { %16616 = vst [vmem:[#allocation110_spill] sm:$0xff] %v14761_v22  ;;  %v5828_v30 = vpop.f32.mrf.mxu0  ;;  %6189 = vmatmul.mubr.bf16.gmra.mxu0 %v5494_v1  ;;  %6372 = vmatmul.mubr.bf16.gmra.mxu1 %v5488_v0  ;;  %v14778_v60 = vadd.f32 %v6017_v17, %v5824_v63  ;;  %v5502_v1 = vpack.c.bf16 %v5358_v59, %v5350_v48 }
 0x552   :  { %6198 = vmatprep.mubr.bf16.mxu0 %v5503_v18  ;;  %6381 = vmatprep.mubr.bf16.mxu1 %v5497_v11  ;;  %v6019_v61 = vpop.f32.mrf.mxu1  ;;  %v5496_v0 = vpack.c.bf16 %v5344_v10, %v5336_v47  ;;  %v5511_v18 = vpack.c.bf16 %v5375_v9, %v5367_v27  ;;  %v5505_v11 = vpack.c.bf16 %v5361_v51, %v5353_v62  ;;  %v5360_v47 = vld [vmem:[%s15149_s3 + $0x6f0] sm:$0xff]  ;;  %v5383_v10 = vld [vmem:[%s15149_s3 + $0x7a8] sm:$0xff]  ;;  %v5377_v9 = vld [vmem:[%s15149_s3 + $0x778] sm:$0xff] }
 0x553   :  { %16617 = vst [vmem:[#allocation22_spill] sm:$0xff] %v14778_v60  ;;  %v5830_v36 = vpop.f32.mrf.mxu0  ;;  %v14789_v40 = vadd.f32 %v6019_v61, %v5826_v58  ;;  %v5374_v58 = vld [vmem:[%s15149_s3 + $0x760] sm:$0xff] }
 0x554   :  { %v6021_v4 = vpop.f32.mrf.mxu1  ;;  %v5510_v61 = vpack.c.bf16 %v5374_v58, %v5366_v52  ;;  %v5368_v52 = vld [vmem:[%s15149_s3 + $0x730] sm:$0xff] }
 0x555   :  { %v5834_v63 = vpop.f32.mrf.mxu0  ;;  %v14791_v17 = vadd.f32 %v6021_v4, %v5828_v30  ;;  %v5352_v30 = vld [vmem:[%s15149_s3 + $0x6b0] sm:$0xff] }
 0x556   :  { %v6023_v60 = vpop.f32.mrf.mxu1  ;;  %v5376_v58 = vld [vmem:[%s15149_s3 + $0x770] sm:$0xff] }
 0x557   :  { %v14793_v22 = vadd.f32 %v6023_v60, %v5830_v36  ;;  %v5836_v48 = vpop.f32.mrf.mxu0  ;;  %v5391_v60 = vld [vmem:[%s15149_s3 + $0x7e8] sm:$0xff]  ;;  %v5369_v36 = vld [vmem:[%s15149_s3 + $0x738] sm:$0xff] }
 0x558   :  { %v6027_v59 = vpop.f32.mrf.mxu1  ;;  %v5519_v4 = vpack.c.bf16 %v5391_v60, %v5383_v10  ;;  %v5512_v60 = vpack.c.bf16 %v5376_v58, %v5368_v52 }
 0x559   :  { %6199 = vmatmul.mubr.bf16.gmra.mxu0 %v5502_v1  ;;  %6382 = vmatmul.mubr.bf16.gmra.mxu1 %v5496_v0  ;;  %v14810_v27 = vadd.f32 %v6027_v59, %v5834_v63  ;;  %v5504_v1 = vpack.c.bf16 %v5360_v47, %v5352_v30  ;;  %v5838_v0 = vpop.f32.mrf.mxu0  ;;  %v5382_v59 = vld [vmem:[%s15149_s3 + $0x7a0] sm:$0xff]  ;;  %v5385_v30 = vld [vmem:[%s15149_s3 + $0x7b8] sm:$0xff] }
 0x55a   :  { %6208 = vmatprep.mubr.bf16.mxu0 %v5511_v18  ;;  %6391 = vmatprep.mubr.bf16.mxu1 %v5505_v11  ;;  %v6029_v62 = vpop.f32.mrf.mxu1  ;;  %v5513_v18 = vpack.c.bf16 %v5377_v9, %v5369_v36  ;;  %v5393_v47 = vld [vmem:[%s15149_s3 + $0x7f8] sm:$0xff]  ;;  %v5384_v9 = vld [vmem:[%s15149_s3 + $0x7b0] sm:$0xff] }
 0x55b   :  { %v14821_v51 = vadd.f32 %v6029_v62, %v5836_v48  ;;  %v5390_v48 = vld [vmem:[%s15149_s3 + $0x7e0] sm:$0xff]  ;;  %v5521_v36 = vpack.c.bf16 %v5393_v47, %v5385_v30  ;;  %v5392_v62 = vld [vmem:[%s15149_s3 + $0x7f0] sm:$0xff] }
 0x55c   :  { %v6031_v63 = vpop.f32.mrf.mxu1  ;;  %v5518_v10 = vpack.c.bf16 %v5390_v48, %v5382_v59 }
 0x55d   :  { %v14823_v11 = vadd.f32 %v6031_v63, %v5838_v0 }
 0x55f   :  { %16618 = vst [vmem:[#allocation23_spill] sm:$0xff] %v14823_v11 }
 0x561   :  { %6209 = vmatmul.mubr.bf16.gmra.mxu0 %v5510_v61  ;;  %6392 = vmatmul.mubr.bf16.gmra.mxu1 %v5504_v1  ;;  %v5520_v61 = vpack.c.bf16 %v5392_v62, %v5384_v9  ;;  %v14849_v1 = vpop.f32.mrf.mxu0 }
 0x562   :  { %6218 = vmatprep.mubr.bf16.mxu0 %v5519_v4  ;;  %6401 = vmatprep.mubr.bf16.mxu1 %v5513_v18  ;;  %v14851_v18 = vpop.f32.mrf.mxu1 }
 0x569   :  { %6219 = vmatmul.mubr.bf16.gmra.mxu0 %v5518_v10  ;;  %6402 = vmatmul.mubr.bf16.gmra.mxu1 %v5512_v60 }
 0x56a   :  { %6411 = vmatprep.mubr.bf16.mxu1 %v5521_v36  ;;  %v5884_v36 = vadd.f32 %v14333_v37, %v14319_v29 }
 0x571   :  { %6412 = vmatmul.mubr.bf16.gmra.mxu1 %v5520_v61 }
 0x5b1   :  { %v6070_v0 = vpop.f32.mrf.mxu0 }
 0x5b2   :  { %v6071_v48 = vadd.f32 %v6070_v0, %v14309_v34 }
 0x5b3   :  { %v6072_v63 = vpop.f32.mrf.mxu0 }
 0x5b4   :  { %v6073_v30 = vadd.f32 %v6072_v63, %v14317_v46 }
 0x5b5   :  { %v6074_v4 = vpop.f32.mrf.mxu0 }
 0x5b6   :  { %v6075_v9 = vadd.f32 %v6074_v4, %v14325_v21 }
 0x5b7   :  { %v6076_v59 = vpop.f32.mrf.mxu0 }
 0x5b8   :  { %v6077_v34 = vadd.f32 %v6076_v59, %v5884_v36 }
 0x5b9   :  { %v6080_v52 = vpop.f32.mrf.mxu0  ;;  %v6263_v58 = vpop.f32.mrf.mxu1 }
 0x5ba   :  { %v6264_v47 = vadd.f32 %v6263_v58, %v6071_v48  ;;  %v6081_v29 = vadd.f32 %v6080_v52, %v14339_v20  ;;  %v5894_v20 = vadd.f32 %v14373_v41, %v14353_v33 }
 0x5bb   :  { %v6082_v10 = vpop.f32.mrf.mxu0  ;;  %v6265_v60 = vpop.f32.mrf.mxu1 }
 0x5bc   :  { %6422 = vst [vmem:[%s15150_s4] sm:$0xff] %v6264_v47  ;;  %v6266_v62 = vadd.f32 %v6265_v60, %v6073_v30  ;;  %v6083_v48 = vadd.f32 %v6082_v10, %v14355_v15 }
 0x5bd   :  { %v6084_v61 = vpop.f32.mrf.mxu0  ;;  %v6267_v11 = vpop.f32.mrf.mxu1 }
 0x5be   :  { %6423 = vst.msk [vmem:[%s15150_s4 + $0x8] sm:$0xff] %vm273_vm0, %v6266_v62  ;;  %v6268_v46 = vadd.f32 %v6267_v11, %v6075_v9  ;;  %v6085_v52 = vadd.f32 %v6084_v61, %v14371_v2 }
 0x5bf   :  { %v6086_v0 = vpop.f32.mrf.mxu0  ;;  %v6269_v63 = vpop.f32.mrf.mxu1 }
 0x5c0   :  { %6424 = vst [vmem:[%s15150_s4 + $0x10] sm:$0xff] %v6268_v46  ;;  %v6270_v21 = vadd.f32 %v6269_v63, %v6077_v34  ;;  %v6087_v10 = vadd.f32 %v6086_v0, %v5894_v20 }
 0x5c1   :  { %v6090_v37 = vpop.f32.mrf.mxu0  ;;  %v6273_v4 = vpop.f32.mrf.mxu1 }
 0x5c2   :  { %6425 = vst.msk [vmem:[%s15150_s4 + $0x18] sm:$0xff] %vm273_vm0, %v6270_v21  ;;  %v6274_v59 = vadd.f32 %v6273_v4, %v6081_v29  ;;  %v6091_v33 = vadd.f32 %v6090_v37, %v14375_v49  ;;  %v5904_v49 = vadd.f32 %v14407_v25, %v14392_v53 }
 0x5c3   :  { %v6092_v11 = vpop.f32.mrf.mxu0  ;;  %v6275_v58 = vpop.f32.mrf.mxu1 }
 0x5c4   :  { %6426 = vst [vmem:[%s15150_s4 + $0x20] sm:$0xff] %v6274_v59  ;;  %v6276_v30 = vadd.f32 %v6275_v58, %v6083_v48  ;;  %v6093_v61 = vadd.f32 %v6092_v11, %v14394_v35 }
 0x5c5   :  { %v6094_v47 = vpop.f32.mrf.mxu0  ;;  %v6277_v15 = vpop.f32.mrf.mxu1 }
 0x5c6   :  { %6427 = vst.msk [vmem:[%s15150_s4 + $0x28] sm:$0xff] %vm273_vm0, %v6276_v30  ;;  %v6278_v60 = vadd.f32 %v6277_v15, %v6085_v52  ;;  %v6095_v63 = vadd.f32 %v6094_v47, %v14405_v26 }
 0x5c7   :  { %v6096_v36 = vpop.f32.mrf.mxu0  ;;  %v6279_v9 = vpop.f32.mrf.mxu1 }
 0x5c8   :  { %6428 = vst [vmem:[%s15150_s4 + $0x30] sm:$0xff] %v6278_v60  ;;  %v6280_v2 = vadd.f32 %v6279_v9, %v6087_v10  ;;  %v6097_v37 = vadd.f32 %v6096_v36, %v5904_v49 }
 0x5c9   :  { %v6100_v41 = vpop.f32.mrf.mxu0  ;;  %v6283_v62 = vpop.f32.mrf.mxu1 }
 0x5ca   :  { %6429 = vst.msk [vmem:[%s15150_s4 + $0x38] sm:$0xff] %vm273_vm0, %v6280_v2  ;;  %v6284_v34 = vadd.f32 %v6283_v62, %v6091_v33  ;;  %v6101_v53 = vadd.f32 %v6100_v41, %v14415_v43  ;;  %v5914_v43 = vadd.f32 %v14441_v14, %v14426_v54 }
 0x5cb   :  { %v6102_v46 = vpop.f32.mrf.mxu0  ;;  %v6285_v0 = vpop.f32.mrf.mxu1 }
 0x5cc   :  { %6430 = vst [vmem:[%s15150_s4 + $0x40] sm:$0xff] %v6284_v34  ;;  %v6286_v29 = vadd.f32 %v6285_v0, %v6093_v61  ;;  %v6103_v58 = vadd.f32 %v6102_v46, %v14437_v28 }
 0x5cd   :  { %v6104_v21 = vpop.f32.mrf.mxu0  ;;  %v6287_v35 = vpop.f32.mrf.mxu1 }
 0x5ce   :  { %6431 = vst.msk [vmem:[%s15150_s4 + $0x48] sm:$0xff] %vm273_vm0, %v6286_v29  ;;  %v6288_v4 = vadd.f32 %v6287_v35, %v6095_v63  ;;  %v6105_v47 = vadd.f32 %v6104_v21, %v14439_v6 }
 0x5cf   :  { %v6106_v48 = vpop.f32.mrf.mxu0  ;;  %v6289_v59 = vpop.f32.mrf.mxu1 }
 0x5d0   :  { %6432 = vst [vmem:[%s15150_s4 + $0x50] sm:$0xff] %v6288_v4  ;;  %v6290_v26 = vadd.f32 %v6289_v59, %v6097_v37  ;;  %v6107_v60 = vadd.f32 %v6106_v48, %v5914_v43 }
 0x5d1   :  { %v6110_v25 = vpop.f32.mrf.mxu0  ;;  %v6293_v11 = vpop.f32.mrf.mxu1 }
 0x5d2   :  { %6433 = vst.msk [vmem:[%s15150_s4 + $0x58] sm:$0xff] %vm273_vm0, %v6290_v26  ;;  %v6294_v20 = vadd.f32 %v6293_v11, %v6101_v53  ;;  %v6111_v54 = vadd.f32 %v6110_v25, %v14449_v12 }
 0x5d3   :  { %v6112_v52 = vpop.f32.mrf.mxu0  ;;  %v6295_v30 = vpop.f32.mrf.mxu1 }
 0x5d4   :  { %6434 = vst [vmem:[%s15150_s4 + $0x60] sm:$0xff] %v6294_v20  ;;  %v6296_v15 = vadd.f32 %v6295_v30, %v6103_v58  ;;  %v6113_v41 = vadd.f32 %v6112_v52, %v14469_v50 }
 0x5d5   :  { %v6114_v10 = vpop.f32.mrf.mxu0  ;;  %v6297_v28 = vpop.f32.mrf.mxu1 }
 0x5d6   :  { %6435 = vst.msk [vmem:[%s15150_s4 + $0x68] sm:$0xff] %vm273_vm0, %v6296_v15  ;;  %v6298_v36 = vadd.f32 %v6297_v28, %v6105_v47  ;;  %v6115_v46 = vadd.f32 %v6114_v10, %v14471_v57 }
 0x5d7   :  { %v6116_v9 = vpop.f32.mrf.mxu0  ;;  %v6299_v33 = vpop.f32.mrf.mxu1 }
 0x5d8   :  { %6436 = vst [vmem:[%s15150_s4 + $0x70] sm:$0xff] %v6298_v36  ;;  %v6300_v6 = vadd.f32 %v6299_v33, %v6107_v60  ;;  %v6117_v63 = vadd.f32 %v6116_v9, %v14473_v16 }
 0x5d9   :  { %v6120_v14 = vpop.f32.mrf.mxu0  ;;  %v6303_v2 = vpop.f32.mrf.mxu1 }
 0x5da   :  { %6437 = vst.msk [vmem:[%s15150_s4 + $0x78] sm:$0xff] %vm273_vm0, %v6300_v6  ;;  %v6304_v62 = vadd.f32 %v6303_v2, %v6111_v54  ;;  %v6121_v35 = vadd.f32 %v6120_v14, %v14481_v31 }
 0x5db   :  { %v6122_v61 = vpop.f32.mrf.mxu0  ;;  %v6305_v34 = vpop.f32.mrf.mxu1 }
 0x5dc   :  { %6438 = vst [vmem:[%s15150_s4 + $0x80] sm:$0xff] %v6304_v62  ;;  %v6306_v12 = vadd.f32 %v6305_v34, %v6113_v41  ;;  %v6123_v48 = vadd.f32 %v6122_v61, %v14501_v5 }
 0x5dd   :  { %v6124_v0 = vpop.f32.mrf.mxu0  ;;  %v6307_v49 = vpop.f32.mrf.mxu1 }
 0x5de   :  { %6439 = vst.msk [vmem:[%s15150_s4 + $0x88] sm:$0xff] %vm273_vm0, %v6306_v12  ;;  %v6308_v50 = vadd.f32 %v6307_v49, %v6115_v46  ;;  %v6125_v26 = vadd.f32 %v6124_v0, %v14503_v56 }
 0x5df   :  { %v6126_v29 = vpop.f32.mrf.mxu0  ;;  %v6309_v21 = vpop.f32.mrf.mxu1 }
 0x5e0   :  { %6440 = vst [vmem:[%s15150_s4 + $0x90] sm:$0xff] %v6308_v50  ;;  %v6310_v57 = vadd.f32 %v6309_v21, %v6117_v63  ;;  %v6127_v58 = vadd.f32 %v6126_v29, %v14505_v13 }
 0x5e1   :  { %v6130_v37 = vpop.f32.mrf.mxu0  ;;  %v6313_v4 = vpop.f32.mrf.mxu1 }
 0x5e2   :  { %6441 = vst.msk [vmem:[%s15150_s4 + $0x98] sm:$0xff] %vm273_vm0, %v6310_v57  ;;  %v6314_v16 = vadd.f32 %v6313_v4, %v6121_v35  ;;  %v6131_v30 = vadd.f32 %v6130_v37, %v14513_v42 }
 0x5e3   :  { %v6132_v59 = vpop.f32.mrf.mxu0  ;;  %v6315_v53 = vpop.f32.mrf.mxu1 }
 0x5e4   :  { %6442 = vst [vmem:[%s15150_s4 + $0xa0] sm:$0xff] %v6314_v16  ;;  %v6316_v31 = vadd.f32 %v6315_v53, %v6123_v48  ;;  %v6133_v15 = vadd.f32 %v6132_v59, %v14533_v55  ;;  %v16619_v53 = vld [vmem:[#allocation313_spill] sm:$0xff] }
 0x5e5   :  { %v6134_v25 = vpop.f32.mrf.mxu0  ;;  %v6317_v11 = vpop.f32.mrf.mxu1 }
 0x5e6   :  { %6443 = vst.msk [vmem:[%s15150_s4 + $0xa8] sm:$0xff] %vm273_vm0, %v6316_v31  ;;  %v6318_v5 = vadd.f32 %v6317_v11, %v6125_v26  ;;  %v6135_v60 = vadd.f32 %v6134_v25, %v14535_v19  ;;  %v16620_v11 = vld [vmem:[#allocation91_spill] sm:$0xff] }
 0x5e7   :  { %v6136_v20 = vpop.f32.mrf.mxu0  ;;  %v6319_v52 = vpop.f32.mrf.mxu1 }
 0x5e8   :  { %6444 = vst [vmem:[%s15150_s4 + $0xb0] sm:$0xff] %v6318_v5  ;;  %v6320_v56 = vadd.f32 %v6319_v52, %v6127_v58  ;;  %v6137_v33 = vadd.f32 %v6136_v20, %v14537_v23 }
 0x5e9   :  { %v6140_v43 = vpop.f32.mrf.mxu0  ;;  %v6323_v47 = vpop.f32.mrf.mxu1 }
 0x5ea   :  { %6445 = vst.msk [vmem:[%s15150_s4 + $0xb8] sm:$0xff] %vm273_vm0, %v6320_v56  ;;  %v6324_v13 = vadd.f32 %v6323_v47, %v6131_v30  ;;  %v6141_v14 = vadd.f32 %v6140_v43, %v14545_v32  ;;  %v16621_v47 = vld [vmem:[#allocation114_spill] sm:$0xff] }
 0x5eb   :  { %v6142_v10 = vpop.f32.mrf.mxu0  ;;  %v6325_v28 = vpop.f32.mrf.mxu1 }
 0x5ec   :  { %6446 = vst [vmem:[%s15150_s4 + $0xc0] sm:$0xff] %v6324_v13  ;;  %v6326_v42 = vadd.f32 %v6325_v28, %v6133_v15  ;;  %v6143_v62 = vadd.f32 %v6142_v10, %v14565_v3 }
 0x5ed   :  { %v6144_v36 = vpop.f32.mrf.mxu0  ;;  %v6327_v9 = vpop.f32.mrf.mxu1 }
 0x5ee   :  { %6447 = vst.msk [vmem:[%s15150_s4 + $0xc8] sm:$0xff] %vm273_vm0, %v6326_v42  ;;  %v6328_v55 = vadd.f32 %v6327_v9, %v6135_v60  ;;  %v6145_v46 = vadd.f32 %v6144_v36, %v14567_v7  ;;  %v16622_v60 = vld [vmem:[#allocation107_spill] sm:$0xff] }
 0x5ef   :  { %v6146_v54 = vpop.f32.mrf.mxu0  ;;  %v6329_v6 = vpop.f32.mrf.mxu1 }
 0x5f0   :  { %6448 = vst [vmem:[%s15150_s4 + $0xd0] sm:$0xff] %v6328_v55  ;;  %v6330_v19 = vadd.f32 %v6329_v6, %v6137_v33  ;;  %v6147_v49 = vadd.f32 %v6146_v54, %v14569_v38  ;;  %v16623_v33 = vld [vmem:[#allocation277_spill] sm:$0xff] }
 0x5f1   :  { %v6150_v2 = vpop.f32.mrf.mxu0  ;;  %v6333_v41 = vpop.f32.mrf.mxu1 }
 0x5f2   :  { %6449 = vst.msk [vmem:[%s15150_s4 + $0xd8] sm:$0xff] %vm273_vm0, %v6330_v19  ;;  %v6334_v23 = vadd.f32 %v6333_v41, %v6141_v14  ;;  %v6151_v29 = vadd.f32 %v6150_v2, %v14577_v39  ;;  %v16624_v19 = vld [vmem:[#allocation92_spill] sm:$0xff] }
 0x5f3   :  { %v6152_v61 = vpop.f32.mrf.mxu0  ;;  %v6335_v34 = vpop.f32.mrf.mxu1 }
 0x5f4   :  { %6450 = vst [vmem:[%s15150_s4 + $0xe0] sm:$0xff] %v6334_v23  ;;  %v6336_v32 = vadd.f32 %v6335_v34, %v6143_v62  ;;  %v6153_v57 = vadd.f32 %v6152_v61, %v14597_v45  ;;  %v16625_v61 = vld [vmem:[#allocation89_spill] sm:$0xff] }
 0x5f5   :  { %v6154_v12 = vpop.f32.mrf.mxu0  ;;  %v6337_v0 = vpop.f32.mrf.mxu1 }
 0x5f6   :  { %6451 = vst.msk [vmem:[%s15150_s4 + $0xe8] sm:$0xff] %vm273_vm0, %v6336_v32  ;;  %v6338_v3 = vadd.f32 %v6337_v0, %v6145_v46  ;;  %v6155_v48 = vadd.f32 %v6154_v12, %v14599_v44  ;;  %v16626_v0 = vld [vmem:[#allocation279_spill] sm:$0xff] }
 0x5f7   :  { %v6156_v63 = vpop.f32.mrf.mxu0  ;;  %v6339_v50 = vpop.f32.mrf.mxu1 }
 0x5f8   :  { %6452 = vst [vmem:[%s15150_s4 + $0xf0] sm:$0xff] %v6338_v3  ;;  %v6340_v7 = vadd.f32 %v6339_v50, %v6147_v49  ;;  %v6157_v26 = vadd.f32 %v6156_v63, %v16619_v53 }
 0x5f9   :  { %v6160_v21 = vpop.f32.mrf.mxu0  ;;  %v6343_v35 = vpop.f32.mrf.mxu1 }
 0x5fa   :  { %6453 = vst.msk [vmem:[%s15150_s4 + $0xf8] sm:$0xff] %vm273_vm0, %v6340_v7  ;;  %v6344_v38 = vadd.f32 %v6343_v35, %v6151_v29  ;;  %v6161_v58 = vadd.f32 %v6160_v21, %v16620_v11  ;;  %v16627_v29 = vld [vmem:[#allocation14_spill] sm:$0xff] }
 0x5fb   :  { %v6162_v37 = vpop.f32.mrf.mxu0  ;;  %v6345_v4 = vpop.f32.mrf.mxu1 }
 0x5fc   :  { %6454 = vst [vmem:[%s15150_s4 + $0x100] sm:$0xff] %v6344_v38  ;;  %v6346_v39 = vadd.f32 %v6345_v4, %v6153_v57  ;;  %v6163_v52 = vadd.f32 %v6162_v37, %v14629_v24  ;;  %v16628_v38 = vld [vmem:[#allocation41_spill] sm:$0xff] }
 0x5fd   :  { %v6164_v16 = vpop.f32.mrf.mxu0  ;;  %v6347_v59 = vpop.f32.mrf.mxu1 }
 0x5fe   :  { %6455 = vst.msk [vmem:[%s15150_s4 + $0x108] sm:$0xff] %vm273_vm0, %v6346_v39  ;;  %v6348_v45 = vadd.f32 %v6347_v59, %v6155_v48  ;;  %v6165_v15 = vadd.f32 %v6164_v16, %v16621_v47  ;;  %v16629_v16 = vld [vmem:[#allocation281_spill] sm:$0xff] }
 0x5ff   :  { %v6166_v31 = vpop.f32.mrf.mxu0  ;;  %v6349_v25 = vpop.f32.mrf.mxu1 }
 0x600   :  { %6456 = vst [vmem:[%s15150_s4 + $0x110] sm:$0xff] %v6348_v45  ;;  %v6350_v44 = vadd.f32 %v6349_v25, %v6157_v26  ;;  %v6167_v42 = vadd.f32 %v6166_v31, %v16622_v60  ;;  %v16630_v31 = vld [vmem:[#allocation49_spill] sm:$0xff] }
 0x601   :  { %v6170_v5 = vpop.f32.mrf.mxu0  ;;  %v6353_v20 = vpop.f32.mrf.mxu1 }
 0x602   :  { %6457 = vst.msk [vmem:[%s15150_s4 + $0x118] sm:$0xff] %vm273_vm0, %v6350_v44  ;;  %v6354_v30 = vadd.f32 %v6353_v20, %v6161_v58  ;;  %v6171_v55 = vadd.f32 %v6170_v5, %v16623_v33  ;;  %v16631_v5 = vld [vmem:[#allocation90_spill] sm:$0xff] }
 0x603   :  { %v6172_v56 = vpop.f32.mrf.mxu0  ;;  %v6355_v43 = vpop.f32.mrf.mxu1 }
 0x604   :  { %6458 = vst [vmem:[%s15150_s4 + $0x120] sm:$0xff] %v6354_v30  ;;  %v6356_v13 = vadd.f32 %v6355_v43, %v6163_v52  ;;  %v6173_v2 = vadd.f32 %v6172_v56, %v16624_v19  ;;  %v16632_v43 = vld [vmem:[#allocation308_spill] sm:$0xff] }
 0x605   :  { %v6174_v10 = vpop.f32.mrf.mxu0  ;;  %v6357_v28 = vpop.f32.mrf.mxu1 }
 0x606   :  { %6459 = vst.msk [vmem:[%s15150_s4 + $0x128] sm:$0xff] %vm273_vm0, %v6356_v13  ;;  %v6358_v24 = vadd.f32 %v6357_v28, %v6165_v15  ;;  %v6175_v34 = vadd.f32 %v6174_v10, %v16625_v61  ;;  %v16633_v28 = vld [vmem:[#allocation87_spill] sm:$0xff] }
 0x607   :  { %v6176_v36 = vpop.f32.mrf.mxu0  ;;  %v6359_v9 = vpop.f32.mrf.mxu1 }
 0x608   :  { %6460 = vst [vmem:[%s15150_s4 + $0x130] sm:$0xff] %v6358_v24  ;;  %v6360_v54 = vadd.f32 %v6359_v9, %v6167_v42  ;;  %v6177_v49 = vadd.f32 %v6176_v36, %v16626_v0  ;;  %v16634_v9 = vld [vmem:[#allocation336_spill] sm:$0xff] }
 0x609   :  { %v6180_v6 = vpop.f32.mrf.mxu0  ;;  %v6363_v14 = vpop.f32.mrf.mxu1 }
 0x60a   :  { %6461 = vst.msk [vmem:[%s15150_s4 + $0x138] sm:$0xff] %vm273_vm0, %v6360_v54  ;;  %v6364_v41 = vadd.f32 %v6363_v14, %v6171_v55  ;;  %v6181_v7 = vadd.f32 %v6180_v6, %v16627_v29  ;;  %v16635_v14 = vld [vmem:[#allocation112_spill] sm:$0xff] }
 0x60b   :  { %v6182_v62 = vpop.f32.mrf.mxu0  ;;  %v6365_v23 = vpop.f32.mrf.mxu1 }
 0x60c   :  { %6462 = vst [vmem:[%s15150_s4 + $0x140] sm:$0xff] %v6364_v41  ;;  %v6366_v46 = vadd.f32 %v6365_v23, %v6173_v2  ;;  %v6183_v37 = vadd.f32 %v6182_v62, %v16628_v38 }
 0x60d   :  { %v6184_v32 = vpop.f32.mrf.mxu0  ;;  %v6367_v12 = vpop.f32.mrf.mxu1 }
 0x60e   :  { %6463 = vst.msk [vmem:[%s15150_s4 + $0x148] sm:$0xff] %vm273_vm0, %v6366_v46  ;;  %v6368_v3 = vadd.f32 %v6367_v12, %v6175_v34  ;;  %v6185_v59 = vadd.f32 %v6184_v32, %v16629_v16  ;;  %v16636_v32 = vld [vmem:[#allocation319_spill] sm:$0xff] }
 0x60f   :  { %v6186_v63 = vpop.f32.mrf.mxu0  ;;  %v6369_v50 = vpop.f32.mrf.mxu1 }
 0x610   :  { %6464 = vst [vmem:[%s15150_s4 + $0x150] sm:$0xff] %v6368_v3  ;;  %v6370_v21 = vadd.f32 %v6369_v50, %v6177_v49  ;;  %v6187_v25 = vadd.f32 %v6186_v63, %v16630_v31  ;;  %v16637_v63 = vld [vmem:[#allocation110_spill] sm:$0xff] }
 0x611   :  { %v6190_v35 = vpop.f32.mrf.mxu0  ;;  %v6373_v57 = vpop.f32.mrf.mxu1 }
 0x612   :  { %6465 = vst.msk [vmem:[%s15150_s4 + $0x158] sm:$0xff] %vm273_vm0, %v6370_v21  ;;  %v6374_v4 = vadd.f32 %v6373_v57, %v6181_v7  ;;  %v6191_v20 = vadd.f32 %v6190_v35, %v16631_v5  ;;  %v16638_v21 = vld [vmem:[#allocation22_spill] sm:$0xff] }
 0x613   :  { %v6192_v48 = vpop.f32.mrf.mxu0  ;;  %v6375_v39 = vpop.f32.mrf.mxu1 }
 0x614   :  { %6466 = vst [vmem:[%s15150_s4 + $0x160] sm:$0xff] %v6374_v4  ;;  %v6376_v53 = vadd.f32 %v6375_v39, %v6183_v37  ;;  %v6193_v47 = vadd.f32 %v6192_v48, %v16632_v43 }
 0x615   :  { %v6194_v26 = vpop.f32.mrf.mxu0  ;;  %v6377_v45 = vpop.f32.mrf.mxu1 }
 0x616   :  { %6467 = vst.msk [vmem:[%s15150_s4 + $0x168] sm:$0xff] %vm273_vm0, %v6376_v53  ;;  %v6378_v11 = vadd.f32 %v6377_v45, %v6185_v59  ;;  %v6195_v60 = vadd.f32 %v6194_v26, %v16633_v28 }
 0x617   :  { %v6196_v58 = vpop.f32.mrf.mxu0  ;;  %v6379_v44 = vpop.f32.mrf.mxu1 }
 0x618   :  { %6468 = vst [vmem:[%s15150_s4 + $0x170] sm:$0xff] %v6378_v11  ;;  %v6380_v52 = vadd.f32 %v6379_v44, %v6187_v25  ;;  %v6197_v33 = vadd.f32 %v6196_v58, %v16634_v9 }
 0x619   :  { %v6200_v30 = vpop.f32.mrf.mxu0  ;;  %v6383_v56 = vpop.f32.mrf.mxu1 }
 0x61a   :  { %6469 = vst.msk [vmem:[%s15150_s4 + $0x178] sm:$0xff] %vm273_vm0, %v6380_v52  ;;  %v6384_v15 = vadd.f32 %v6383_v56, %v6191_v20  ;;  %v6201_v19 = vadd.f32 %v6200_v30, %v16635_v14  ;;  %v6034_v52 = vadd.f32 %v14851_v18, %v14849_v1 }
 0x61b   :  { %v6202_v13 = vpop.f32.mrf.mxu0  ;;  %v6385_v10 = vpop.f32.mrf.mxu1 }
 0x61c   :  { %6470 = vst [vmem:[%s15150_s4 + $0x180] sm:$0xff] %v6384_v15  ;;  %v6386_v42 = vadd.f32 %v6385_v10, %v6193_v47  ;;  %v6203_v23 = vadd.f32 %v6202_v13, %v14757_v8 }
 0x61d   :  { %v6204_v24 = vpop.f32.mrf.mxu0  ;;  %v6387_v36 = vpop.f32.mrf.mxu1 }
 0x61e   :  { %6471 = vst.msk [vmem:[%s15150_s4 + $0x188] sm:$0xff] %vm273_vm0, %v6386_v42  ;;  %v6388_v55 = vadd.f32 %v6387_v36, %v6195_v60  ;;  %v6205_v12 = vadd.f32 %v6204_v24, %v16636_v32 }
 0x61f   :  { %v6206_v54 = vpop.f32.mrf.mxu0  ;;  %v6389_v6 = vpop.f32.mrf.mxu1 }
 0x620   :  { %6472 = vst [vmem:[%s15150_s4 + $0x190] sm:$0xff] %v6388_v55  ;;  %v6390_v2 = vadd.f32 %v6389_v6, %v6197_v33  ;;  %v6207_v50 = vadd.f32 %v6206_v54, %v16637_v63 }
 0x621   :  { %v6210_v41 = vpop.f32.mrf.mxu0  ;;  %v6393_v62 = vpop.f32.mrf.mxu1 }
 0x622   :  { %6473 = vst.msk [vmem:[%s15150_s4 + $0x198] sm:$0xff] %vm273_vm0, %v6390_v2  ;;  %v6394_v61 = vadd.f32 %v6393_v62, %v6201_v19  ;;  %v6211_v35 = vadd.f32 %v6210_v41, %v16638_v21 }
 0x623   :  { %v6212_v34 = vpop.f32.mrf.mxu0  ;;  %v6395_v46 = vpop.f32.mrf.mxu1 }
 0x624   :  { %6474 = vst [vmem:[%s15150_s4 + $0x1a0] sm:$0xff] %v6394_v61  ;;  %v6396_v0 = vadd.f32 %v6395_v46, %v6203_v23  ;;  %v6213_v4 = vadd.f32 %v6212_v34, %v14789_v40 }
 0x625   :  { %v6214_v49 = vpop.f32.mrf.mxu0  ;;  %v6397_v3 = vpop.f32.mrf.mxu1 }
 0x626   :  { %6475 = vst.msk [vmem:[%s15150_s4 + $0x1a8] sm:$0xff] %vm273_vm0, %v6396_v0  ;;  %v6398_v8 = vadd.f32 %v6397_v3, %v6205_v12  ;;  %v6215_v59 = vadd.f32 %v6214_v49, %v14791_v17 }
 0x627   :  { %v6216_v29 = vpop.f32.mrf.mxu0  ;;  %v6399_v7 = vpop.f32.mrf.mxu1 }
 0x628   :  { %6476 = vst [vmem:[%s15150_s4 + $0x1b0] sm:$0xff] %v6398_v8  ;;  %v6400_v57 = vadd.f32 %v6399_v7, %v6207_v50  ;;  %v6217_v45 = vadd.f32 %v6216_v29, %v14793_v22 }
 0x629   :  { %v6220_v38 = vpop.f32.mrf.mxu0  ;;  %v6403_v37 = vpop.f32.mrf.mxu1 }
 0x62a   :  { %6477 = vst.msk [vmem:[%s15150_s4 + $0x1b8] sm:$0xff] %vm273_vm0, %v6400_v57  ;;  %v6404_v48 = vadd.f32 %v6403_v37, %v6211_v35  ;;  %v6221_v11 = vadd.f32 %v6220_v38, %v14810_v27  ;;  %v16639_v27 = vld [vmem:[#allocation23_spill] sm:$0xff] }
 0x62b   :  { %v6222_v39 = vpop.f32.mrf.mxu0  ;;  %v6405_v16 = vpop.f32.mrf.mxu1 }
 0x62c   :  { %6478 = vst [vmem:[%s15150_s4 + $0x1c0] sm:$0xff] %v6404_v48  ;;  %v6406_v53 = vadd.f32 %v6405_v16, %v6213_v4  ;;  %v6223_v44 = vadd.f32 %v6222_v39, %v14821_v51 }
 0x62d   :  { %v6407_v26 = vpop.f32.mrf.mxu1  ;;  %v6224_v31 = vpop.f32.mrf.mxu0 }
 0x62e   :  { %6479 = vst.msk [vmem:[%s15150_s4 + $0x1c8] sm:$0xff] %vm273_vm0, %v6406_v53  ;;  %v6408_v40 = vadd.f32 %v6407_v26, %v6215_v59  ;;  %v6225_v30 = vadd.f32 %v6224_v31, %v16639_v27 }
 0x62f   :  { %v6409_v25 = vpop.f32.mrf.mxu1  ;;  %v6226_v5 = vpop.f32.mrf.mxu0 }
 0x630   :  { %6480 = vst [vmem:[%s15150_s4 + $0x1d0] sm:$0xff] %v6408_v40  ;;  %v6410_v17 = vadd.f32 %v6409_v25, %v6217_v45  ;;  %v6227_v51 = vadd.f32 %v6226_v5, %v6034_v52 }
 0x631   :  { %v6413_v58 = vpop.f32.mrf.mxu1 }
 0x632   :  { %6481 = vst.msk [vmem:[%s15150_s4 + $0x1d8] sm:$0xff] %vm273_vm0, %v6410_v17  ;;  %v6414_v22 = vadd.f32 %v6413_v58, %v6221_v11 }
 0x633   :  { %v6415_v20 = vpop.f32.mrf.mxu1 }
 0x634   :  { %6482 = vst [vmem:[%s15150_s4 + $0x1e0] sm:$0xff] %v6414_v22  ;;  %v6416_v56 = vadd.f32 %v6415_v20, %v6223_v44 }
 0x635   :  { %v6417_v43 = vpop.f32.mrf.mxu1 }
 0x636   :  { %6483 = vst.msk [vmem:[%s15150_s4 + $0x1e8] sm:$0xff] %vm273_vm0, %v6416_v56  ;;  %v6418_v47 = vadd.f32 %v6417_v43, %v6225_v30 }
 0x637   :  { %v6419_v15 = vpop.f32.mrf.mxu1 }
 0x638   :  { %6484 = vst [vmem:[%s15150_s4 + $0x1f0] sm:$0xff] %v6418_v47  ;;  %v6420_v1 = vadd.f32 %v6419_v15, %v6227_v51 }
 0x63a   :  { %6485 = vst.msk [vmem:[%s15150_s4 + $0x1f8] sm:$0xff] %vm273_vm0, %v6420_v1 }

</bundles_post_ra>
